<compile_context>
chip_gen: v6e
topology: v6e:2x2x1
jax: 0.10.0
libtpu: 0.0.40
codegen_flags: <defaults>
</compile_context>

<pallas_src>
import functools

import jax
import jax.numpy as jnp
from jax import lax
from jax.experimental import pallas as pl
from jax.experimental.pallas import tpu as pltpu


_LEAKY_SLOPE = 0.01          # PyTorch nn.LeakyReLU default negative_slope
_MAX_VPU_CIN_X_COUT = 256    # guard for the fully unrolled direct-VPU conv


# ----------------------------------------------------------------------------
# Fused whole-module kernel: conv3x3(+stride) + bias + LeakyReLU chained in VMEM
# ----------------------------------------------------------------------------
def _make_stride_module_kernel(cfgs, dims):
    """cfgs: ((cin, cout, stride), ...) per layer.
    dims: ((h_in, w_in, h_out, w_out), ...) per layer."""
    n_layers = len(cfgs)

    def kernel(*refs):
        x_ref = refs[0]
        w_refs = [refs[1 + 2 * l] for l in range(n_layers)]   # SMEM, flat HWIO
        b_refs = [refs[2 + 2 * l] for l in range(n_layers)]   # SMEM
        o_ref = refs[1 + 2 * n_layers]                        # (C_last, Ho, Wo)
        scratch = list(refs[2 + 2 * n_layers:])
        si = 0

        def zero_frame(buf, c, h, w):
            # Zero only the 1-pixel frame that the 3x3 taps actually read;
            # the interior is fully overwritten below, so no double store.
            # Done every grid step so the kernel stays correct when the batch
            # grid is sharded across megacores (no step-0-only init).
            buf[:, 0:1, :] = jnp.zeros((c, 1, w + 2), jnp.float32)
            buf[:, h + 1:h + 2, :] = jnp.zeros((c, 1, w + 2), jnp.float32)
            buf[:, :, 0:1] = jnp.zeros((c, h + 2, 1), jnp.float32)
            buf[:, :, w + 1:w + 2] = jnp.zeros((c, h + 2, 1), jnp.float32)

        # ---- stage the raw input into a zero-framed padded VMEM buffer ----
        # (padding happens in-kernel; no wrapper-side HBM pad pass)
        cin0 = cfgs[0][0]
        h0, w0 = dims[0][0], dims[0][1]
        src = scratch[si]; si += 1                      # (cin0, h0+2, w0+2)
        zero_frame(src, cin0, h0, w0)
        src[:, 1:1 + h0, 1:1 + w0] = x_ref[...]

        for l in range(n_layers):
            cin, cout, stride = cfgs[l]
            h_in, w_in, h_out, w_out = dims[l]
            hp, wp = h_in + 2, w_in + 2
            w_ref, b_ref = w_refs[l], b_refs[l]
            last = l == n_layers - 1

            if stride == 2:
                # In-kernel space-to-depth of the padded source via 0/1
                # selection matmuls: parity plane P[pr,pc](u,v) = src(2u+pr,
                # 2v+pc).  Stride-2 taps then become plain unit-stride slices.
                par = scratch[si]; si += 1              # (4*cin, h_out+1, w_out+1)
                iu = lax.broadcasted_iota(jnp.int32, (h_out + 1, hp), 0)
                ii = lax.broadcasted_iota(jnp.int32, (h_out + 1, hp), 1)
                rsel = [(ii == 2 * iu + p).astype(jnp.float32) for p in (0, 1)]
                jj = lax.broadcasted_iota(jnp.int32, (wp, w_out + 1), 0)
                jv = lax.broadcasted_iota(jnp.int32, (wp, w_out + 1), 1)
                csel = [(jj == 2 * jv + p).astype(jnp.float32) for p in (0, 1)]
                for ci in range(cin):
                    plane = src[ci, :, :]
                    xc = [jnp.dot(plane, csel[pc],
                                  preferred_element_type=jnp.float32)
                          for pc in (0, 1)]
                    for pr in (0, 1):
                        for pc in (0, 1):
                            par[(pr * 2 + pc) * cin + ci, :, :] = jnp.dot(
                                rsel[pr], xc[pc],
                                preferred_element_type=jnp.float32)

                def tap(ci, kh, kw, r0, bh, _par=par, _cin=cin, _wo=w_out):
                    p = (kh % 2) * 2 + (kw % 2)
                    return _par[p * _cin + ci,
                                kh // 2 + r0: kh // 2 + r0 + bh,
                                kw // 2: kw // 2 + _wo]
            else:
                def tap(ci, kh, kw, r0, bh, _src=src, _wo=w_out):
                    return _src[ci, r0 + kh: r0 + kh + bh, kw: kw + _wo]

            if last:
                dst = o_ref
            else:
                dst = scratch[si]; si += 1              # (cout, h_out+2, w_out+2)
                zero_frame(dst, cout, h_out, w_out)

            # Direct conv on the VPU, one 8-row band at a time: all cout
            # accumulators of the band stay in vregs (stored once per band).
            # TODO(synk): move the band loop to lax.fori_loop(unroll=True) if
            #             h_out ever gets large enough for trace size to matter.
            for r0 in range(0, h_out, 8):
                bh = min(8, h_out - r0)
                accs = [jnp.full((bh, w_out), b_ref[co], jnp.float32)
                        for co in range(cout)]
                for kh in range(3):
                    for kw in range(3):
                        for ci in range(cin):
                            t = tap(ci, kh, kw, r0, bh)
                            base = ((kh * 3 + kw) * cin + ci) * cout
                            for co in range(cout):
                                accs[co] = accs[co] + w_ref[base + co] * t
                for co in range(cout):
                    y = accs[co]
                    y = jnp.maximum(y, _LEAKY_SLOPE * y)     # LeakyReLU
                    if last:
                        dst[co, r0:r0 + bh, :] = y
                    else:
                        dst[co, 1 + r0:1 + r0 + bh, 1:1 + w_out] = y

            if not last:
                src = dst

    return kernel


def _tile_padded_bytes(shape, itemsize=4):
    """Approximate physical VMEM footprint of an f32 array incl. (8,128) tiling."""
    shape = tuple(shape)
    if len(shape) < 2:
        shape = (1,) * (2 - len(shape)) + shape
    lead = 1
    for d in shape[:-2]:
        lead *= d
    rows = -(-shape[-2] // 8) * 8
    cols = -(-shape[-1] // 128) * 128
    return lead * rows * cols * itemsize


# ----------------------------------------------------------------------------
# Wrapper: one fused pallas_call for the whole StrideModule
# ----------------------------------------------------------------------------
@functools.partial(jax.jit, static_argnums=(2,))
def stride_module_forward(x_nchw, params, strides):
    """params: [(w_hwio(3,3,cin,cout), b(cout,)), ...]; strides: tuple of 1/2."""
    if not params:
        return x_nchw
    x = x_nchw.astype(jnp.float32)
    n, cin0, h, w = x.shape

    cfgs, dims = [], []
    hh, ww = h, w
    for (wgt, _b), s in zip(params, strides):
        cin, cout = wgt.shape[2], wgt.shape[3]
        ho = (hh - 1) // s + 1          # conv3x3, pad=1
        wo = (ww - 1) // s + 1
        cfgs.append((cin, cout, s))
        dims.append((hh, ww, ho, wo))
        hh, ww = ho, wo
    assert cfgs[0][0] == cin0, (cfgs[0], cin0)
    for cin, cout, _s in cfgs:
        # TODO(synk): MXU im2col (channels-last) path for large channel counts.
        assert cin * cout <= _MAX_VPU_CIN_X_COUT, (
            "direct-VPU StrideModule kernel is guarded to tiny channel counts")

    c_last = cfgs[-1][1]
    ho_l, wo_l = dims[-1][2], dims[-1][3]

    in_specs = [pl.BlockSpec((None, cin0, h, w), lambda i: (i, 0, 0, 0))]
    flat_args = [x]
    for wgt, b in params:
        flat_args.append(wgt.reshape(-1).astype(jnp.float32))   # HWIO, flattened
        flat_args.append(b.reshape(-1).astype(jnp.float32))
        in_specs.append(pl.BlockSpec(memory_space=pltpu.MemorySpace.SMEM))
        in_specs.append(pl.BlockSpec(memory_space=pltpu.MemorySpace.SMEM))

    # Scratch: staged padded input, then per layer a parity buffer (stride-2)
    # and a padded intermediate buffer (non-last layers).  Order must match
    # the kernel's consumption order.
    scratch_dims = [(cin0, h + 2, w + 2)]
    for l, (cin, cout, s) in enumerate(cfgs):
        _, _, ho, wo = dims[l]
        if s == 2:
            scratch_dims.append((4 * cin, ho + 1, wo + 1))
        if l != len(cfgs) - 1:
            scratch_dims.append((cout, ho + 2, wo + 2))
    scratch_shapes = [pltpu.VMEM(sd, jnp.float32) for sd in scratch_dims]

    # VMEM budget: double-buffered I/O blocks + persistent scratch, clamped to
    # ~75% of this chip's physical VMEM (v5e/v6e: 128 MiB, v7x: 64 MiB).
    vmem_need = (2 * _tile_padded_bytes((cin0, h, w))
                 + 2 * _tile_padded_bytes((c_last, ho_l, wo_l))
                 + sum(_tile_padded_bytes(sd) for sd in scratch_dims))
    try:
        phys_vmem = int(getattr(pltpu.get_tpu_info(), "vmem_capacity_bytes",
                                64 * 1024 * 1024))
    except Exception:
        phys_vmem = 64 * 1024 * 1024          # conservative (v7x)
    vmem_limit = max(min(max(2 * vmem_need, 32 * 1024 * 1024),
                         (phys_vmem * 3) // 4),
                     vmem_need + (2 << 20))

    flops = 2 * 9 * sum(n * oh * ow * ci * co
                        for (ci, co, _s), (_hi, _wi, oh, ow) in zip(cfgs, dims))
    bytes_accessed = 4 * (x.size + sum(a.size for a in flat_args[1:])
                          + n * c_last * ho_l * wo_l)

    kernel = _make_stride_module_kernel(tuple(cfgs), tuple(dims))
    return pl.pallas_call(
        kernel,
        out_shape=jax.ShapeDtypeStruct((n, c_last, ho_l, wo_l), jnp.float32),
        grid=(n,),
        in_specs=in_specs,
        out_specs=pl.BlockSpec((None, c_last, ho_l, wo_l), lambda i: (i, 0, 0, 0)),
        scratch_shapes=scratch_shapes,
        compiler_params=pltpu.CompilerParams(
            dimension_semantics=("parallel",),       # pipelining + megacore
            vmem_limit_bytes=int(vmem_limit),
        ),
        cost_estimate=pl.CostEstimate(flops=flops, transcendentals=0,
                                      bytes_accessed=bytes_accessed),
    )(*flat_args)


# ----------------------------------------------------------------------------
# StrideModule: layer-config replication + parameter init + reference
# ----------------------------------------------------------------------------
def build_layer_configs(in_channels, channel_division, stride_n):
    """Replicates StrideModule.__init__ channel / stride schedule."""
    state = {"n_chn": in_channels, "chn_div": channel_division}

    def next_sizes():
        old = state["n_chn"]
        if state["chn_div"] > 0:
            state["n_chn"] //= 2
            state["chn_div"] -= 1
            new = state["n_chn"]
        else:
            new = old
        return old, new

    cfgs = []
    while stride_n > 0:
        old, new = next_sizes()
        cfgs.append((old, new, 2))
        stride_n -= 1
    if state["chn_div"] > 0:
        while state["chn_div"] > 0:
            old, new = next_sizes()
            cfgs.append((old, new, 1))
    return cfgs


def init_params(key, cfgs):
    params = []
    for li, (cin, cout, _stride) in enumerate(cfgs):
        kw_, kb_ = jax.random.split(jax.random.fold_in(key, li))
        wgt = 0.1 * jax.random.normal(kw_, (3, 3, cin, cout), dtype=jnp.float32)  # HWIO
        b = 0.1 * jax.random.normal(kb_, (cout,), dtype=jnp.float32)
        params.append((wgt, b))
    return params


def reference_forward(x_nchw, params, strides):
    """Pure-JAX reference (NCHW activations, HWIO weights)."""
    x = x_nchw
    for (wgt, b), s in zip(params, strides):
        y = lax.conv_general_dilated(
            x, wgt, window_strides=(s, s), padding=((1, 1), (1, 1)),
            dimension_numbers=("NCHW", "HWIO", "NCHW"),
        ) + b[None, :, None, None]
        x = jnp.where(y >= 0.0, y, _LEAKY_SLOPE * y)
    return x


if __name__ == "__main__":
    # (in_channels, channel_division, stride_n, spatial) -- exercises:
    #   A: stride-2 then stride-1 (the canonical StrideModule config)
    #   B: pure stride-1 stack (stride_n = 0)
    #   C: chained stride-2 layers, stride-2 final output
    test_cases = [
        (8, 2, 1, 16),
        (8, 3, 0, 16),
        (16, 2, 2, 16),
    ]
    key = jax.random.PRNGKey(0)
    for idx, (in_c, div, sn, hw) in enumerate(test_cases):
        cfgs = build_layer_configs(in_c, div, sn)
        strides = tuple(s for (_, _, s) in cfgs)
        kx, kp = jax.random.split(jax.random.fold_in(key, idx))
        x = jax.random.normal(kx, (2, in_c, hw, hw), dtype=jnp.float32)  # NCHW
        params = init_params(kp, cfgs)

        out = jax.block_until_ready(stride_module_forward(x, params, strides))
        ref = reference_forward(x, params, strides)
        assert out.shape == ref.shape, (idx, out.shape, ref.shape)
        max_err = float(jnp.max(jnp.abs(out - ref)))
        assert jnp.allclose(out, ref, atol=1e-4, rtol=1e-4), (
            f"case {idx}: mismatch vs reference (max abs err {max_err})")

    print("KERNEL_OK")
</pallas_src>

<mosaic_0001>
module attributes {stable_mosaic.version = 11 : i64} {
  func.func @kernel(%arg0: i32, %arg1: memref<1x8x16x16xf32, #tpu.memory_space<vmem>>, %arg2: memref<288xf32, #tpu.memory_space<smem>>, %arg3: memref<4xf32, #tpu.memory_space<smem>>, %arg4: memref<72xf32, #tpu.memory_space<smem>>, %arg5: memref<2xf32, #tpu.memory_space<smem>>, %arg6: memref<1x2x8x8xf32, #tpu.memory_space<vmem>>, %arg7: memref<8x18x18xf32, #tpu.memory_space<vmem>>, %arg8: memref<32x9x9xf32, #tpu.memory_space<vmem>>, %arg9: memref<4x10x10xf32, #tpu.memory_space<vmem>>) attributes {dimension_semantics = [#tpu.dimension_semantics<parallel>], iteration_bounds = array<i64: 2>, scalar_prefetch = 0 : i64, scratch_operands = 3 : i64, tpu.core_type = #tpu.core_type<tc>, window_params = [{transform_indices = @transform_0, window_bounds = array<i64: 1, 8, 16, 16>}, {transform_indices = @transform_1, window_bounds = array<i64: 288>}, {transform_indices = @transform_2, window_bounds = array<i64: 4>}, {transform_indices = @transform_3, window_bounds = array<i64: 72>}, {transform_indices = @transform_4, window_bounds = array<i64: 2>}, {transform_indices = @transform_5, window_bounds = array<i64: 1, 2, 8, 8>}]} {
    %cst = arith.constant 0.000000e+00 : f32
    %0 = vector.broadcast %cst : f32 to vector<8x1x18xf32>
    %c0 = arith.constant 0 : index
    %c0_0 = arith.constant 0 : index
    %c0_1 = arith.constant 0 : index
    %1 = vector.load %arg7[%c0, %c0_0, %c0_1] : memref<8x18x18xf32, #tpu.memory_space<vmem>>, vector<8x1x18xf32>
    tpu.vector_store %arg7[%c0, %c0_0, %c0_1], %0 {strides = array<i32>} : memref<8x18x18xf32, #tpu.memory_space<vmem>>, vector<8x1x18xf32>,
    %cst_2 = arith.constant 0.000000e+00 : f32
    %2 = vector.broadcast %cst_2 : f32 to vector<8x1x18xf32>
    %c0_3 = arith.constant 0 : index
    %c17 = arith.constant 17 : index
    %c0_4 = arith.constant 0 : index
    %3 = vector.load %arg7[%c0_3, %c17, %c0_4] : memref<8x18x18xf32, #tpu.memory_space<vmem>>, vector<8x1x18xf32>
    tpu.vector_store %arg7[%c0_3, %c17, %c0_4], %2 {strides = array<i32>} : memref<8x18x18xf32, #tpu.memory_space<vmem>>, vector<8x1x18xf32>,
    %cst_5 = arith.constant 0.000000e+00 : f32
    %4 = vector.broadcast %cst_5 : f32 to vector<8x18x1xf32>
    %c0_6 = arith.constant 0 : index
    %c0_7 = arith.constant 0 : index
    %c0_8 = arith.constant 0 : index
    %5 = vector.load %arg7[%c0_6, %c0_7, %c0_8] : memref<8x18x18xf32, #tpu.memory_space<vmem>>, vector<8x18x1xf32>
    tpu.vector_store %arg7[%c0_6, %c0_7, %c0_8], %4 {strides = array<i32>} : memref<8x18x18xf32, #tpu.memory_space<vmem>>, vector<8x18x1xf32>,
    %cst_9 = arith.constant 0.000000e+00 : f32
    %6 = vector.broadcast %cst_9 : f32 to vector<8x18x1xf32>
    %c0_10 = arith.constant 0 : index
    %c0_11 = arith.constant 0 : index
    %c17_12 = arith.constant 17 : index
    %7 = vector.load %arg7[%c0_10, %c0_11, %c17_12] : memref<8x18x18xf32, #tpu.memory_space<vmem>>, vector<8x18x1xf32>
    tpu.vector_store %arg7[%c0_10, %c0_11, %c17_12], %6 {strides = array<i32>} : memref<8x18x18xf32, #tpu.memory_space<vmem>>, vector<8x18x1xf32>,
    %c0_13 = arith.constant 0 : index
    %c0_14 = arith.constant 0 : index
    %c0_15 = arith.constant 0 : index
    %c0_16 = arith.constant 0 : index
    %8 = vector.load %arg1[%c0_13, %c0_14, %c0_15, %c0_16] : memref<1x8x16x16xf32, #tpu.memory_space<vmem>>, vector<1x8x16x16xf32>
    %9 = vector.shape_cast %8 : vector<1x8x16x16xf32> to vector<8x16x16xf32>
    %c0_17 = arith.constant 0 : index
    %c1 = arith.constant 1 : index
    %c1_18 = arith.constant 1 : index
    %10 = vector.load %arg7[%c0_17, %c1, %c1_18] : memref<8x18x18xf32, #tpu.memory_space<vmem>>, vector<8x16x16xf32>
    tpu.vector_store %arg7[%c0_17, %c1, %c1_18], %9 {strides = array<i32>} : memref<8x18x18xf32, #tpu.memory_space<vmem>>, vector<8x16x16xf32>,
    %11 = tpu.iota {dimensions = array<i32: 0>} : vector<9x18xi32>
    %12 = tpu.iota {dimensions = array<i32: 1>} : vector<9x18xi32>
    %c2_i32 = arith.constant 2 : i32
    %13 = vector.broadcast %c2_i32 : i32 to vector<9x18xi32>
    %14 = arith.muli %13, %11 : vector<9x18xi32>
    %c0_i32 = arith.constant 0 : i32
    %15 = vector.broadcast %c0_i32 : i32 to vector<9x18xi32>
    %16 = arith.addi %14, %15 : vector<9x18xi32>
    %17 = arith.cmpi eq, %12, %16 : vector<9x18xi32>
    %18 = arith.extui %17 : vector<9x18xi1> to vector<9x18xi32>
    %19 = arith.sitofp %18 : vector<9x18xi32> to vector<9x18xf32>
    %c2_i32_19 = arith.constant 2 : i32
    %20 = vector.broadcast %c2_i32_19 : i32 to vector<9x18xi32>
    %21 = arith.muli %20, %11 : vector<9x18xi32>
    %c1_i32 = arith.constant 1 : i32
    %22 = vector.broadcast %c1_i32 : i32 to vector<9x18xi32>
    %23 = arith.addi %21, %22 : vector<9x18xi32>
    %24 = arith.cmpi eq, %12, %23 : vector<9x18xi32>
    %25 = arith.extui %24 : vector<9x18xi1> to vector<9x18xi32>
    %26 = arith.sitofp %25 : vector<9x18xi32> to vector<9x18xf32>
    %27 = tpu.iota {dimensions = array<i32: 0>} : vector<18x9xi32>
    %28 = tpu.iota {dimensions = array<i32: 1>} : vector<18x9xi32>
    %c2_i32_20 = arith.constant 2 : i32
    %29 = vector.broadcast %c2_i32_20 : i32 to vector<18x9xi32>
    %30 = arith.muli %29, %28 : vector<18x9xi32>
    %c0_i32_21 = arith.constant 0 : i32
    %31 = vector.broadcast %c0_i32_21 : i32 to vector<18x9xi32>
    %32 = arith.addi %30, %31 : vector<18x9xi32>
    %33 = arith.cmpi eq, %27, %32 : vector<18x9xi32>
    %34 = arith.extui %33 : vector<18x9xi1> to vector<18x9xi32>
    %35 = arith.sitofp %34 : vector<18x9xi32> to vector<18x9xf32>
    %c2_i32_22 = arith.constant 2 : i32
    %36 = vector.broadcast %c2_i32_22 : i32 to vector<18x9xi32>
    %37 = arith.muli %36, %28 : vector<18x9xi32>
    %c1_i32_23 = arith.constant 1 : i32
    %38 = vector.broadcast %c1_i32_23 : i32 to vector<18x9xi32>
    %39 = arith.addi %37, %38 : vector<18x9xi32>
    %40 = arith.cmpi eq, %27, %39 : vector<18x9xi32>
    %41 = arith.extui %40 : vector<18x9xi1> to vector<18x9xi32>
    %42 = arith.sitofp %41 : vector<18x9xi32> to vector<18x9xf32>
    %c0_24 = arith.constant 0 : index
    %c0_25 = arith.constant 0 : index
    %c0_26 = arith.constant 0 : index
    %43 = vector.load %arg7[%c0_24, %c0_25, %c0_26] : memref<8x18x18xf32, #tpu.memory_space<vmem>>, vector<1x18x18xf32>
    %44 = vector.shape_cast %43 : vector<1x18x18xf32> to vector<18x18xf32>
    %cst_27 = arith.constant dense<0.000000e+00> : vector<18x9xf32>
    %45 = tpu.matmul %44, %35, %cst_27 {dimension_numbers = #tpu.dot_dimension_numbers<[1], [0], [0], [1], [0, 0, 1, 1], [], []>} : vector<18x18xf32>, vector<18x9xf32>, vector<18x9xf32> -> vector<18x9xf32>
    %cst_28 = arith.constant dense<0.000000e+00> : vector<18x9xf32>
    %46 = tpu.matmul %44, %42, %cst_28 {dimension_numbers = #tpu.dot_dimension_numbers<[1], [0], [0], [1], [0, 0, 1, 1], [], []>} : vector<18x18xf32>, vector<18x9xf32>, vector<18x9xf32> -> vector<18x9xf32>
    %cst_29 = arith.constant dense<0.000000e+00> : vector<9x9xf32>
    %47 = tpu.matmul %19, %45, %cst_29 {dimension_numbers = #tpu.dot_dimension_numbers<[1], [0], [0], [1], [0, 0, 1, 1], [], []>} : vector<9x18xf32>, vector<18x9xf32>, vector<9x9xf32> -> vector<9x9xf32>
    %c0_30 = arith.constant 0 : index
    %c0_31 = arith.constant 0 : index
    %c0_32 = arith.constant 0 : index
    %48 = vector.load %arg8[%c0_30, %c0_31, %c0_32] : memref<32x9x9xf32, #tpu.memory_space<vmem>>, vector<1x9x9xf32>
    %49 = vector.shape_cast %48 : vector<1x9x9xf32> to vector<9x9xf32>
    %50 = vector.shape_cast %47 : vector<9x9xf32> to vector<1x9x9xf32>
    tpu.vector_store %arg8[%c0_30, %c0_31, %c0_32], %50 {strides = array<i32>} : memref<32x9x9xf32, #tpu.memory_space<vmem>>, vector<1x9x9xf32>,
    %cst_33 = arith.constant dense<0.000000e+00> : vector<9x9xf32>
    %51 = tpu.matmul %19, %46, %cst_33 {dimension_numbers = #tpu.dot_dimension_numbers<[1], [0], [0], [1], [0, 0, 1, 1], [], []>} : vector<9x18xf32>, vector<18x9xf32>, vector<9x9xf32> -> vector<9x9xf32>
    %c8 = arith.constant 8 : index
    %c0_34 = arith.constant 0 : index
    %c0_35 = arith.constant 0 : index
    %52 = vector.load %arg8[%c8, %c0_34, %c0_35] : memref<32x9x9xf32, #tpu.memory_space<vmem>>, vector<1x9x9xf32>
    %53 = vector.shape_cast %52 : vector<1x9x9xf32> to vector<9x9xf32>
    %54 = vector.shape_cast %51 : vector<9x9xf32> to vector<1x9x9xf32>
    tpu.vector_store %arg8[%c8, %c0_34, %c0_35], %54 {strides = array<i32>} : memref<32x9x9xf32, #tpu.memory_space<vmem>>, vector<1x9x9xf32>,
    %cst_36 = arith.constant dense<0.000000e+00> : vector<9x9xf32>
    %55 = tpu.matmul %26, %45, %cst_36 {dimension_numbers = #tpu.dot_dimension_numbers<[1], [0], [0], [1], [0, 0, 1, 1], [], []>} : vector<9x18xf32>, vector<18x9xf32>, vector<9x9xf32> -> vector<9x9xf32>
    %c16 = arith.constant 16 : index
    %c0_37 = arith.constant 0 : index
    %c0_38 = arith.constant 0 : index
    %56 = vector.load %arg8[%c16, %c0_37, %c0_38] : memref<32x9x9xf32, #tpu.memory_space<vmem>>, vector<1x9x9xf32>
    %57 = vector.shape_cast %56 : vector<1x9x9xf32> to vector<9x9xf32>
    %58 = vector.shape_cast %55 : vector<9x9xf32> to vector<1x9x9xf32>
    tpu.vector_store %arg8[%c16, %c0_37, %c0_38], %58 {strides = array<i32>} : memref<32x9x9xf32, #tpu.memory_space<vmem>>, vector<1x9x9xf32>,
    %cst_39 = arith.constant dense<0.000000e+00> : vector<9x9xf32>
    %59 = tpu.matmul %26, %46, %cst_39 {dimension_numbers = #tpu.dot_dimension_numbers<[1], [0], [0], [1], [0, 0, 1, 1], [], []>} : vector<9x18xf32>, vector<18x9xf32>, vector<9x9xf32> -> vector<9x9xf32>
    %c24 = arith.constant 24 : index
    %c0_40 = arith.constant 0 : index
    %c0_41 = arith.constant 0 : index
    %60 = vector.load %arg8[%c24, %c0_40, %c0_41] : memref<32x9x9xf32, #tpu.memory_space<vmem>>, vector<1x9x9xf32>
    %61 = vector.shape_cast %60 : vector<1x9x9xf32> to vector<9x9xf32>
    %62 = vector.shape_cast %59 : vector<9x9xf32> to vector<1x9x9xf32>
    tpu.vector_store %arg8[%c24, %c0_40, %c0_41], %62 {strides = array<i32>} : memref<32x9x9xf32, #tpu.memory_space<vmem>>, vector<1x9x9xf32>,
    %c1_42 = arith.constant 1 : index
    %c0_43 = arith.constant 0 : index
    %c0_44 = arith.constant 0 : index
    %63 = vector.load %arg7[%c1_42, %c0_43, %c0_44] : memref<8x18x18xf32, #tpu.memory_space<vmem>>, vector<1x18x18xf32>
    %64 = vector.shape_cast %63 : vector<1x18x18xf32> to vector<18x18xf32>
    %cst_45 = arith.constant dense<0.000000e+00> : vector<18x9xf32>
    %65 = tpu.matmul %64, %35, %cst_45 {dimension_numbers = #tpu.dot_dimension_numbers<[1], [0], [0], [1], [0, 0, 1, 1], [], []>} : vector<18x18xf32>, vector<18x9xf32>, vector<18x9xf32> -> vector<18x9xf32>
    %cst_46 = arith.constant dense<0.000000e+00> : vector<18x9xf32>
    %66 = tpu.matmul %64, %42, %cst_46 {dimension_numbers = #tpu.dot_dimension_numbers<[1], [0], [0], [1], [0, 0, 1, 1], [], []>} : vector<18x18xf32>, vector<18x9xf32>, vector<18x9xf32> -> vector<18x9xf32>
    %cst_47 = arith.constant dense<0.000000e+00> : vector<9x9xf32>
    %67 = tpu.matmul %19, %65, %cst_47 {dimension_numbers = #tpu.dot_dimension_numbers<[1], [0], [0], [1], [0, 0, 1, 1], [], []>} : vector<9x18xf32>, vector<18x9xf32>, vector<9x9xf32> -> vector<9x9xf32>
    %c1_48 = arith.constant 1 : index
    %c0_49 = arith.constant 0 : index
    %c0_50 = arith.constant 0 : index
    %68 = vector.load %arg8[%c1_48, %c0_49, %c0_50] : memref<32x9x9xf32, #tpu.memory_space<vmem>>, vector<1x9x9xf32>
    %69 = vector.shape_cast %68 : vector<1x9x9xf32> to vector<9x9xf32>
    %70 = vector.shape_cast %67 : vector<9x9xf32> to vector<1x9x9xf32>
    tpu.vector_store %arg8[%c1_48, %c0_49, %c0_50], %70 {strides = array<i32>} : memref<32x9x9xf32, #tpu.memory_space<vmem>>, vector<1x9x9xf32>,
    %cst_51 = arith.constant dense<0.000000e+00> : vector<9x9xf32>
    %71 = tpu.matmul %19, %66, %cst_51 {dimension_numbers = #tpu.dot_dimension_numbers<[1], [0], [0], [1], [0, 0, 1, 1], [], []>} : vector<9x18xf32>, vector<18x9xf32>, vector<9x9xf32> -> vector<9x9xf32>
    %c9 = arith.constant 9 : index
    %c0_52 = arith.constant 0 : index
    %c0_53 = arith.constant 0 : index
    %72 = vector.load %arg8[%c9, %c0_52, %c0_53] : memref<32x9x9xf32, #tpu.memory_space<vmem>>, vector<1x9x9xf32>
    %73 = vector.shape_cast %72 : vector<1x9x9xf32> to vector<9x9xf32>
    %74 = vector.shape_cast %71 : vector<9x9xf32> to vector<1x9x9xf32>
    tpu.vector_store %arg8[%c9, %c0_52, %c0_53], %74 {strides = array<i32>} : memref<32x9x9xf32, #tpu.memory_space<vmem>>, vector<1x9x9xf32>,
    %cst_54 = arith.constant dense<0.000000e+00> : vector<9x9xf32>
    %75 = tpu.matmul %26, %65, %cst_54 {dimension_numbers = #tpu.dot_dimension_numbers<[1], [0], [0], [1], [0, 0, 1, 1], [], []>} : vector<9x18xf32>, vector<18x9xf32>, vector<9x9xf32> -> vector<9x9xf32>
    %c17_55 = arith.constant 17 : index
    %c0_56 = arith.constant 0 : index
    %c0_57 = arith.constant 0 : index
    %76 = vector.load %arg8[%c17_55, %c0_56, %c0_57] : memref<32x9x9xf32, #tpu.memory_space<vmem>>, vector<1x9x9xf32>
    %77 = vector.shape_cast %76 : vector<1x9x9xf32> to vector<9x9xf32>
    %78 = vector.shape_cast %75 : vector<9x9xf32> to vector<1x9x9xf32>
    tpu.vector_store %arg8[%c17_55, %c0_56, %c0_57], %78 {strides = array<i32>} : memref<32x9x9xf32, #tpu.memory_space<vmem>>, vector<1x9x9xf32>,
    %cst_58 = arith.constant dense<0.000000e+00> : vector<9x9xf32>
    %79 = tpu.matmul %26, %66, %cst_58 {dimension_numbers = #tpu.dot_dimension_numbers<[1], [0], [0], [1], [0, 0, 1, 1], [], []>} : vector<9x18xf32>, vector<18x9xf32>, vector<9x9xf32> -> vector<9x9xf32>
    %c25 = arith.constant 25 : index
    %c0_59 = arith.constant 0 : index
    %c0_60 = arith.constant 0 : index
    %80 = vector.load %arg8[%c25, %c0_59, %c0_60] : memref<32x9x9xf32, #tpu.memory_space<vmem>>, vector<1x9x9xf32>
    %81 = vector.shape_cast %80 : vector<1x9x9xf32> to vector<9x9xf32>
    %82 = vector.shape_cast %79 : vector<9x9xf32> to vector<1x9x9xf32>
    tpu.vector_store %arg8[%c25, %c0_59, %c0_60], %82 {strides = array<i32>} : memref<32x9x9xf32, #tpu.memory_space<vmem>>, vector<1x9x9xf32>,
    %c2 = arith.constant 2 : index
    %c0_61 = arith.constant 0 : index
    %c0_62 = arith.constant 0 : index
    %83 = vector.load %arg7[%c2, %c0_61, %c0_62] : memref<8x18x18xf32, #tpu.memory_space<vmem>>, vector<1x18x18xf32>
    %84 = vector.shape_cast %83 : vector<1x18x18xf32> to vector<18x18xf32>
    %cst_63 = arith.constant dense<0.000000e+00> : vector<18x9xf32>
    %85 = tpu.matmul %84, %35, %cst_63 {dimension_numbers = #tpu.dot_dimension_numbers<[1], [0], [0], [1], [0, 0, 1, 1], [], []>} : vector<18x18xf32>, vector<18x9xf32>, vector<18x9xf32> -> vector<18x9xf32>
    %cst_64 = arith.constant dense<0.000000e+00> : vector<18x9xf32>
    %86 = tpu.matmul %84, %42, %cst_64 {dimension_numbers = #tpu.dot_dimension_numbers<[1], [0], [0], [1], [0, 0, 1, 1], [], []>} : vector<18x18xf32>, vector<18x9xf32>, vector<18x9xf32> -> vector<18x9xf32>
    %cst_65 = arith.constant dense<0.000000e+00> : vector<9x9xf32>
    %87 = tpu.matmul %19, %85, %cst_65 {dimension_numbers = #tpu.dot_dimension_numbers<[1], [0], [0], [1], [0, 0, 1, 1], [], []>} : vector<9x18xf32>, vector<18x9xf32>, vector<9x9xf32> -> vector<9x9xf32>
    %c2_66 = arith.constant 2 : index
    %c0_67 = arith.constant 0 : index
    %c0_68 = arith.constant 0 : index
    %88 = vector.load %arg8[%c2_66, %c0_67, %c0_68] : memref<32x9x9xf32, #tpu.memory_space<vmem>>, vector<1x9x9xf32>
    %89 = vector.shape_cast %88 : vector<1x9x9xf32> to vector<9x9xf32>
    %90 = vector.shape_cast %87 : vector<9x9xf32> to vector<1x9x9xf32>
    tpu.vector_store %arg8[%c2_66, %c0_67, %c0_68], %90 {strides = array<i32>} : memref<32x9x9xf32, #tpu.memory_space<vmem>>, vector<1x9x9xf32>,
    %cst_69 = arith.constant dense<0.000000e+00> : vector<9x9xf32>
    %91 = tpu.matmul %19, %86, %cst_69 {dimension_numbers = #tpu.dot_dimension_numbers<[1], [0], [0], [1], [0, 0, 1, 1], [], []>} : vector<9x18xf32>, vector<18x9xf32>, vector<9x9xf32> -> vector<9x9xf32>
    %c10 = arith.constant 10 : index
    %c0_70 = arith.constant 0 : index
    %c0_71 = arith.constant 0 : index
    %92 = vector.load %arg8[%c10, %c0_70, %c0_71] : memref<32x9x9xf32, #tpu.memory_space<vmem>>, vector<1x9x9xf32>
    %93 = vector.shape_cast %92 : vector<1x9x9xf32> to vector<9x9xf32>
    %94 = vector.shape_cast %91 : vector<9x9xf32> to vector<1x9x9xf32>
    tpu.vector_store %arg8[%c10, %c0_70, %c0_71], %94 {strides = array<i32>} : memref<32x9x9xf32, #tpu.memory_space<vmem>>, vector<1x9x9xf32>,
    %cst_72 = arith.constant dense<0.000000e+00> : vector<9x9xf32>
    %95 = tpu.matmul %26, %85, %cst_72 {dimension_numbers = #tpu.dot_dimension_numbers<[1], [0], [0], [1], [0, 0, 1, 1], [], []>} : vector<9x18xf32>, vector<18x9xf32>, vector<9x9xf32> -> vector<9x9xf32>
    %c18 = arith.constant 18 : index
    %c0_73 = arith.constant 0 : index
    %c0_74 = arith.constant 0 : index
    %96 = vector.load %arg8[%c18, %c0_73, %c0_74] : memref<32x9x9xf32, #tpu.memory_space<vmem>>, vector<1x9x9xf32>
    %97 = vector.shape_cast %96 : vector<1x9x9xf32> to vector<9x9xf32>
    %98 = vector.shape_cast %95 : vector<9x9xf32> to vector<1x9x9xf32>
    tpu.vector_store %arg8[%c18, %c0_73, %c0_74], %98 {strides = array<i32>} : memref<32x9x9xf32, #tpu.memory_space<vmem>>, vector<1x9x9xf32>,
    %cst_75 = arith.constant dense<0.000000e+00> : vector<9x9xf32>
    %99 = tpu.matmul %26, %86, %cst_75 {dimension_numbers = #tpu.dot_dimension_numbers<[1], [0], [0], [1], [0, 0, 1, 1], [], []>} : vector<9x18xf32>, vector<18x9xf32>, vector<9x9xf32> -> vector<9x9xf32>
    %c26 = arith.constant 26 : index
    %c0_76 = arith.constant 0 : index
    %c0_77 = arith.constant 0 : index
    %100 = vector.load %arg8[%c26, %c0_76, %c0_77] : memref<32x9x9xf32, #tpu.memory_space<vmem>>, vector<1x9x9xf32>
    %101 = vector.shape_cast %100 : vector<1x9x9xf32> to vector<9x9xf32>
    %102 = vector.shape_cast %99 : vector<9x9xf32> to vector<1x9x9xf32>
    tpu.vector_store %arg8[%c26, %c0_76, %c0_77], %102 {strides = array<i32>} : memref<32x9x9xf32, #tpu.memory_space<vmem>>, vector<1x9x9xf32>,
    %c3 = arith.constant 3 : index
    %c0_78 = arith.constant 0 : index
    %c0_79 = arith.constant 0 : index
    %103 = vector.load %arg7[%c3, %c0_78, %c0_79] : memref<8x18x18xf32, #tpu.memory_space<vmem>>, vector<1x18x18xf32>
    %104 = vector.shape_cast %103 : vector<1x18x18xf32> to vector<18x18xf32>
    %cst_80 = arith.constant dense<0.000000e+00> : vector<18x9xf32>
    %105 = tpu.matmul %104, %35, %cst_80 {dimension_numbers = #tpu.dot_dimension_numbers<[1], [0], [0], [1], [0, 0, 1, 1], [], []>} : vector<18x18xf32>, vector<18x9xf32>, vector<18x9xf32> -> vector<18x9xf32>
    %cst_81 = arith.constant dense<0.000000e+00> : vector<18x9xf32>
    %106 = tpu.matmul %104, %42, %cst_81 {dimension_numbers = #tpu.dot_dimension_numbers<[1], [0], [0], [1], [0, 0, 1, 1], [], []>} : vector<18x18xf32>, vector<18x9xf32>, vector<18x9xf32> -> vector<18x9xf32>
    %cst_82 = arith.constant dense<0.000000e+00> : vector<9x9xf32>
    %107 = tpu.matmul %19, %105, %cst_82 {dimension_numbers = #tpu.dot_dimension_numbers<[1], [0], [0], [1], [0, 0, 1, 1], [], []>} : vector<9x18xf32>, vector<18x9xf32>, vector<9x9xf32> -> vector<9x9xf32>
    %c3_83 = arith.constant 3 : index
    %c0_84 = arith.constant 0 : index
    %c0_85 = arith.constant 0 : index
    %108 = vector.load %arg8[%c3_83, %c0_84, %c0_85] : memref<32x9x9xf32, #tpu.memory_space<vmem>>, vector<1x9x9xf32>
    %109 = vector.shape_cast %108 : vector<1x9x9xf32> to vector<9x9xf32>
    %110 = vector.shape_cast %107 : vector<9x9xf32> to vector<1x9x9xf32>
    tpu.vector_store %arg8[%c3_83, %c0_84, %c0_85], %110 {strides = array<i32>} : memref<32x9x9xf32, #tpu.memory_space<vmem>>, vector<1x9x9xf32>,
    %cst_86 = arith.constant dense<0.000000e+00> : vector<9x9xf32>
    %111 = tpu.matmul %19, %106, %cst_86 {dimension_numbers = #tpu.dot_dimension_numbers<[1], [0], [0], [1], [0, 0, 1, 1], [], []>} : vector<9x18xf32>, vector<18x9xf32>, vector<9x9xf32> -> vector<9x9xf32>
    %c11 = arith.constant 11 : index
    %c0_87 = arith.constant 0 : index
    %c0_88 = arith.constant 0 : index
    %112 = vector.load %arg8[%c11, %c0_87, %c0_88] : memref<32x9x9xf32, #tpu.memory_space<vmem>>, vector<1x9x9xf32>
    %113 = vector.shape_cast %112 : vector<1x9x9xf32> to vector<9x9xf32>
    %114 = vector.shape_cast %111 : vector<9x9xf32> to vector<1x9x9xf32>
    tpu.vector_store %arg8[%c11, %c0_87, %c0_88], %114 {strides = array<i32>} : memref<32x9x9xf32, #tpu.memory_space<vmem>>, vector<1x9x9xf32>,
    %cst_89 = arith.constant dense<0.000000e+00> : vector<9x9xf32>
    %115 = tpu.matmul %26, %105, %cst_89 {dimension_numbers = #tpu.dot_dimension_numbers<[1], [0], [0], [1], [0, 0, 1, 1], [], []>} : vector<9x18xf32>, vector<18x9xf32>, vector<9x9xf32> -> vector<9x9xf32>
    %c19 = arith.constant 19 : index
    %c0_90 = arith.constant 0 : index
    %c0_91 = arith.constant 0 : index
    %116 = vector.load %arg8[%c19, %c0_90, %c0_91] : memref<32x9x9xf32, #tpu.memory_space<vmem>>, vector<1x9x9xf32>
    %117 = vector.shape_cast %116 : vector<1x9x9xf32> to vector<9x9xf32>
    %118 = vector.shape_cast %115 : vector<9x9xf32> to vector<1x9x9xf32>
    tpu.vector_store %arg8[%c19, %c0_90, %c0_91], %118 {strides = array<i32>} : memref<32x9x9xf32, #tpu.memory_space<vmem>>, vector<1x9x9xf32>,
    %cst_92 = arith.constant dense<0.000000e+00> : vector<9x9xf32>
    %119 = tpu.matmul %26, %106, %cst_92 {dimension_numbers = #tpu.dot_dimension_numbers<[1], [0], [0], [1], [0, 0, 1, 1], [], []>} : vector<9x18xf32>, vector<18x9xf32>, vector<9x9xf32> -> vector<9x9xf32>
    %c27 = arith.constant 27 : index
    %c0_93 = arith.constant 0 : index
    %c0_94 = arith.constant 0 : index
    %120 = vector.load %arg8[%c27, %c0_93, %c0_94] : memref<32x9x9xf32, #tpu.memory_space<vmem>>, vector<1x9x9xf32>
    %121 = vector.shape_cast %120 : vector<1x9x9xf32> to vector<9x9xf32>
    %122 = vector.shape_cast %119 : vector<9x9xf32> to vector<1x9x9xf32>
    tpu.vector_store %arg8[%c27, %c0_93, %c0_94], %122 {strides = array<i32>} : memref<32x9x9xf32, #tpu.memory_space<vmem>>, vector<1x9x9xf32>,
    %c4 = arith.constant 4 : index
    %c0_95 = arith.constant 0 : index
    %c0_96 = arith.constant 0 : index
    %123 = vector.load %arg7[%c4, %c0_95, %c0_96] : memref<8x18x18xf32, #tpu.memory_space<vmem>>, vector<1x18x18xf32>
    %124 = vector.shape_cast %123 : vector<1x18x18xf32> to vector<18x18xf32>
    %cst_97 = arith.constant dense<0.000000e+00> : vector<18x9xf32>
    %125 = tpu.matmul %124, %35, %cst_97 {dimension_numbers = #tpu.dot_dimension_numbers<[1], [0], [0], [1], [0, 0, 1, 1], [], []>} : vector<18x18xf32>, vector<18x9xf32>, vector<18x9xf32> -> vector<18x9xf32>
    %cst_98 = arith.constant dense<0.000000e+00> : vector<18x9xf32>
    %126 = tpu.matmul %124, %42, %cst_98 {dimension_numbers = #tpu.dot_dimension_numbers<[1], [0], [0], [1], [0, 0, 1, 1], [], []>} : vector<18x18xf32>, vector<18x9xf32>, vector<18x9xf32> -> vector<18x9xf32>
    %cst_99 = arith.constant dense<0.000000e+00> : vector<9x9xf32>
    %127 = tpu.matmul %19, %125, %cst_99 {dimension_numbers = #tpu.dot_dimension_numbers<[1], [0], [0], [1], [0, 0, 1, 1], [], []>} : vector<9x18xf32>, vector<18x9xf32>, vector<9x9xf32> -> vector<9x9xf32>
    %c4_100 = arith.constant 4 : index
    %c0_101 = arith.constant 0 : index
    %c0_102 = arith.constant 0 : index
    %128 = vector.load %arg8[%c4_100, %c0_101, %c0_102] : memref<32x9x9xf32, #tpu.memory_space<vmem>>, vector<1x9x9xf32>
    %129 = vector.shape_cast %128 : vector<1x9x9xf32> to vector<9x9xf32>
    %130 = vector.shape_cast %127 : vector<9x9xf32> to vector<1x9x9xf32>
    tpu.vector_store %arg8[%c4_100, %c0_101, %c0_102], %130 {strides = array<i32>} : memref<32x9x9xf32, #tpu.memory_space<vmem>>, vector<1x9x9xf32>,
    %cst_103 = arith.constant dense<0.000000e+00> : vector<9x9xf32>
    %131 = tpu.matmul %19, %126, %cst_103 {dimension_numbers = #tpu.dot_dimension_numbers<[1], [0], [0], [1], [0, 0, 1, 1], [], []>} : vector<9x18xf32>, vector<18x9xf32>, vector<9x9xf32> -> vector<9x9xf32>
    %c12 = arith.constant 12 : index
    %c0_104 = arith.constant 0 : index
    %c0_105 = arith.constant 0 : index
    %132 = vector.load %arg8[%c12, %c0_104, %c0_105] : memref<32x9x9xf32, #tpu.memory_space<vmem>>, vector<1x9x9xf32>
    %133 = vector.shape_cast %132 : vector<1x9x9xf32> to vector<9x9xf32>
    %134 = vector.shape_cast %131 : vector<9x9xf32> to vector<1x9x9xf32>
    tpu.vector_store %arg8[%c12, %c0_104, %c0_105], %134 {strides = array<i32>} : memref<32x9x9xf32, #tpu.memory_space<vmem>>, vector<1x9x9xf32>,
    %cst_106 = arith.constant dense<0.000000e+00> : vector<9x9xf32>
    %135 = tpu.matmul %26, %125, %cst_106 {dimension_numbers = #tpu.dot_dimension_numbers<[1], [0], [0], [1], [0, 0, 1, 1], [], []>} : vector<9x18xf32>, vector<18x9xf32>, vector<9x9xf32> -> vector<9x9xf32>
    %c20 = arith.constant 20 : index
    %c0_107 = arith.constant 0 : index
    %c0_108 = arith.constant 0 : index
    %136 = vector.load %arg8[%c20, %c0_107, %c0_108] : memref<32x9x9xf32, #tpu.memory_space<vmem>>, vector<1x9x9xf32>
    %137 = vector.shape_cast %136 : vector<1x9x9xf32> to vector<9x9xf32>
    %138 = vector.shape_cast %135 : vector<9x9xf32> to vector<1x9x9xf32>
    tpu.vector_store %arg8[%c20, %c0_107, %c0_108], %138 {strides = array<i32>} : memref<32x9x9xf32, #tpu.memory_space<vmem>>, vector<1x9x9xf32>,
    %cst_109 = arith.constant dense<0.000000e+00> : vector<9x9xf32>
    %139 = tpu.matmul %26, %126, %cst_109 {dimension_numbers = #tpu.dot_dimension_numbers<[1], [0], [0], [1], [0, 0, 1, 1], [], []>} : vector<9x18xf32>, vector<18x9xf32>, vector<9x9xf32> -> vector<9x9xf32>
    %c28 = arith.constant 28 : index
    %c0_110 = arith.constant 0 : index
    %c0_111 = arith.constant 0 : index
    %140 = vector.load %arg8[%c28, %c0_110, %c0_111] : memref<32x9x9xf32, #tpu.memory_space<vmem>>, vector<1x9x9xf32>
    %141 = vector.shape_cast %140 : vector<1x9x9xf32> to vector<9x9xf32>
    %142 = vector.shape_cast %139 : vector<9x9xf32> to vector<1x9x9xf32>
    tpu.vector_store %arg8[%c28, %c0_110, %c0_111], %142 {strides = array<i32>} : memref<32x9x9xf32, #tpu.memory_space<vmem>>, vector<1x9x9xf32>,
    %c5 = arith.constant 5 : index
    %c0_112 = arith.constant 0 : index
    %c0_113 = arith.constant 0 : index
    %143 = vector.load %arg7[%c5, %c0_112, %c0_113] : memref<8x18x18xf32, #tpu.memory_space<vmem>>, vector<1x18x18xf32>
    %144 = vector.shape_cast %143 : vector<1x18x18xf32> to vector<18x18xf32>
    %cst_114 = arith.constant dense<0.000000e+00> : vector<18x9xf32>
    %145 = tpu.matmul %144, %35, %cst_114 {dimension_numbers = #tpu.dot_dimension_numbers<[1], [0], [0], [1], [0, 0, 1, 1], [], []>} : vector<18x18xf32>, vector<18x9xf32>, vector<18x9xf32> -> vector<18x9xf32>
    %cst_115 = arith.constant dense<0.000000e+00> : vector<18x9xf32>
    %146 = tpu.matmul %144, %42, %cst_115 {dimension_numbers = #tpu.dot_dimension_numbers<[1], [0], [0], [1], [0, 0, 1, 1], [], []>} : vector<18x18xf32>, vector<18x9xf32>, vector<18x9xf32> -> vector<18x9xf32>
    %cst_116 = arith.constant dense<0.000000e+00> : vector<9x9xf32>
    %147 = tpu.matmul %19, %145, %cst_116 {dimension_numbers = #tpu.dot_dimension_numbers<[1], [0], [0], [1], [0, 0, 1, 1], [], []>} : vector<9x18xf32>, vector<18x9xf32>, vector<9x9xf32> -> vector<9x9xf32>
    %c5_117 = arith.constant 5 : index
    %c0_118 = arith.constant 0 : index
    %c0_119 = arith.constant 0 : index
    %148 = vector.load %arg8[%c5_117, %c0_118, %c0_119] : memref<32x9x9xf32, #tpu.memory_space<vmem>>, vector<1x9x9xf32>
    %149 = vector.shape_cast %148 : vector<1x9x9xf32> to vector<9x9xf32>
    %150 = vector.shape_cast %147 : vector<9x9xf32> to vector<1x9x9xf32>
    tpu.vector_store %arg8[%c5_117, %c0_118, %c0_119], %150 {strides = array<i32>} : memref<32x9x9xf32, #tpu.memory_space<vmem>>, vector<1x9x9xf32>,
    %cst_120 = arith.constant dense<0.000000e+00> : vector<9x9xf32>
    %151 = tpu.matmul %19, %146, %cst_120 {dimension_numbers = #tpu.dot_dimension_numbers<[1], [0], [0], [1], [0, 0, 1, 1], [], []>} : vector<9x18xf32>, vector<18x9xf32>, vector<9x9xf32> -> vector<9x9xf32>
    %c13 = arith.constant 13 : index
    %c0_121 = arith.constant 0 : index
    %c0_122 = arith.constant 0 : index
    %152 = vector.load %arg8[%c13, %c0_121, %c0_122] : memref<32x9x9xf32, #tpu.memory_space<vmem>>, vector<1x9x9xf32>
    %153 = vector.shape_cast %152 : vector<1x9x9xf32> to vector<9x9xf32>
    %154 = vector.shape_cast %151 : vector<9x9xf32> to vector<1x9x9xf32>
    tpu.vector_store %arg8[%c13, %c0_121, %c0_122], %154 {strides = array<i32>} : memref<32x9x9xf32, #tpu.memory_space<vmem>>, vector<1x9x9xf32>,
    %cst_123 = arith.constant dense<0.000000e+00> : vector<9x9xf32>
    %155 = tpu.matmul %26, %145, %cst_123 {dimension_numbers = #tpu.dot_dimension_numbers<[1], [0], [0], [1], [0, 0, 1, 1], [], []>} : vector<9x18xf32>, vector<18x9xf32>, vector<9x9xf32> -> vector<9x9xf32>
    %c21 = arith.constant 21 : index
    %c0_124 = arith.constant 0 : index
    %c0_125 = arith.constant 0 : index
    %156 = vector.load %arg8[%c21, %c0_124, %c0_125] : memref<32x9x9xf32, #tpu.memory_space<vmem>>, vector<1x9x9xf32>
    %157 = vector.shape_cast %156 : vector<1x9x9xf32> to vector<9x9xf32>
    %158 = vector.shape_cast %155 : vector<9x9xf32> to vector<1x9x9xf32>
    tpu.vector_store %arg8[%c21, %c0_124, %c0_125], %158 {strides = array<i32>} : memref<32x9x9xf32, #tpu.memory_space<vmem>>, vector<1x9x9xf32>,
    %cst_126 = arith.constant dense<0.000000e+00> : vector<9x9xf32>
    %159 = tpu.matmul %26, %146, %cst_126 {dimension_numbers = #tpu.dot_dimension_numbers<[1], [0], [0], [1], [0, 0, 1, 1], [], []>} : vector<9x18xf32>, vector<18x9xf32>, vector<9x9xf32> -> vector<9x9xf32>
    %c29 = arith.constant 29 : index
    %c0_127 = arith.constant 0 : index
    %c0_128 = arith.constant 0 : index
    %160 = vector.load %arg8[%c29, %c0_127, %c0_128] : memref<32x9x9xf32, #tpu.memory_space<vmem>>, vector<1x9x9xf32>
    %161 = vector.shape_cast %160 : vector<1x9x9xf32> to vector<9x9xf32>
    %162 = vector.shape_cast %159 : vector<9x9xf32> to vector<1x9x9xf32>
    tpu.vector_store %arg8[%c29, %c0_127, %c0_128], %162 {strides = array<i32>} : memref<32x9x9xf32, #tpu.memory_space<vmem>>, vector<1x9x9xf32>,
    %c6 = arith.constant 6 : index
    %c0_129 = arith.constant 0 : index
    %c0_130 = arith.constant 0 : index
    %163 = vector.load %arg7[%c6, %c0_129, %c0_130] : memref<8x18x18xf32, #tpu.memory_space<vmem>>, vector<1x18x18xf32>
    %164 = vector.shape_cast %163 : vector<1x18x18xf32> to vector<18x18xf32>
    %cst_131 = arith.constant dense<0.000000e+00> : vector<18x9xf32>
    %165 = tpu.matmul %164, %35, %cst_131 {dimension_numbers = #tpu.dot_dimension_numbers<[1], [0], [0], [1], [0, 0, 1, 1], [], []>} : vector<18x18xf32>, vector<18x9xf32>, vector<18x9xf32> -> vector<18x9xf32>
    %cst_132 = arith.constant dense<0.000000e+00> : vector<18x9xf32>
    %166 = tpu.matmul %164, %42, %cst_132 {dimension_numbers = #tpu.dot_dimension_numbers<[1], [0], [0], [1], [0, 0, 1, 1], [], []>} : vector<18x18xf32>, vector<18x9xf32>, vector<18x9xf32> -> vector<18x9xf32>
    %cst_133 = arith.constant dense<0.000000e+00> : vector<9x9xf32>
    %167 = tpu.matmul %19, %165, %cst_133 {dimension_numbers = #tpu.dot_dimension_numbers<[1], [0], [0], [1], [0, 0, 1, 1], [], []>} : vector<9x18xf32>, vector<18x9xf32>, vector<9x9xf32> -> vector<9x9xf32>
    %c6_134 = arith.constant 6 : index
    %c0_135 = arith.constant 0 : index
    %c0_136 = arith.constant 0 : index
    %168 = vector.load %arg8[%c6_134, %c0_135, %c0_136] : memref<32x9x9xf32, #tpu.memory_space<vmem>>, vector<1x9x9xf32>
    %169 = vector.shape_cast %168 : vector<1x9x9xf32> to vector<9x9xf32>
    %170 = vector.shape_cast %167 : vector<9x9xf32> to vector<1x9x9xf32>
    tpu.vector_store %arg8[%c6_134, %c0_135, %c0_136], %170 {strides = array<i32>} : memref<32x9x9xf32, #tpu.memory_space<vmem>>, vector<1x9x9xf32>,
    %cst_137 = arith.constant dense<0.000000e+00> : vector<9x9xf32>
    %171 = tpu.matmul %19, %166, %cst_137 {dimension_numbers = #tpu.dot_dimension_numbers<[1], [0], [0], [1], [0, 0, 1, 1], [], []>} : vector<9x18xf32>, vector<18x9xf32>, vector<9x9xf32> -> vector<9x9xf32>
    %c14 = arith.constant 14 : index
    %c0_138 = arith.constant 0 : index
    %c0_139 = arith.constant 0 : index
    %172 = vector.load %arg8[%c14, %c0_138, %c0_139] : memref<32x9x9xf32, #tpu.memory_space<vmem>>, vector<1x9x9xf32>
    %173 = vector.shape_cast %172 : vector<1x9x9xf32> to vector<9x9xf32>
    %174 = vector.shape_cast %171 : vector<9x9xf32> to vector<1x9x9xf32>
    tpu.vector_store %arg8[%c14, %c0_138, %c0_139], %174 {strides = array<i32>} : memref<32x9x9xf32, #tpu.memory_space<vmem>>, vector<1x9x9xf32>,
    %cst_140 = arith.constant dense<0.000000e+00> : vector<9x9xf32>
    %175 = tpu.matmul %26, %165, %cst_140 {dimension_numbers = #tpu.dot_dimension_numbers<[1], [0], [0], [1], [0, 0, 1, 1], [], []>} : vector<9x18xf32>, vector<18x9xf32>, vector<9x9xf32> -> vector<9x9xf32>
    %c22 = arith.constant 22 : index
    %c0_141 = arith.constant 0 : index
    %c0_142 = arith.constant 0 : index
    %176 = vector.load %arg8[%c22, %c0_141, %c0_142] : memref<32x9x9xf32, #tpu.memory_space<vmem>>, vector<1x9x9xf32>
    %177 = vector.shape_cast %176 : vector<1x9x9xf32> to vector<9x9xf32>
    %178 = vector.shape_cast %175 : vector<9x9xf32> to vector<1x9x9xf32>
    tpu.vector_store %arg8[%c22, %c0_141, %c0_142], %178 {strides = array<i32>} : memref<32x9x9xf32, #tpu.memory_space<vmem>>, vector<1x9x9xf32>,
    %cst_143 = arith.constant dense<0.000000e+00> : vector<9x9xf32>
    %179 = tpu.matmul %26, %166, %cst_143 {dimension_numbers = #tpu.dot_dimension_numbers<[1], [0], [0], [1], [0, 0, 1, 1], [], []>} : vector<9x18xf32>, vector<18x9xf32>, vector<9x9xf32> -> vector<9x9xf32>
    %c30 = arith.constant 30 : index
    %c0_144 = arith.constant 0 : index
    %c0_145 = arith.constant 0 : index
    %180 = vector.load %arg8[%c30, %c0_144, %c0_145] : memref<32x9x9xf32, #tpu.memory_space<vmem>>, vector<1x9x9xf32>
    %181 = vector.shape_cast %180 : vector<1x9x9xf32> to vector<9x9xf32>
    %182 = vector.shape_cast %179 : vector<9x9xf32> to vector<1x9x9xf32>
    tpu.vector_store %arg8[%c30, %c0_144, %c0_145], %182 {strides = array<i32>} : memref<32x9x9xf32, #tpu.memory_space<vmem>>, vector<1x9x9xf32>,
    %c7 = arith.constant 7 : index
    %c0_146 = arith.constant 0 : index
    %c0_147 = arith.constant 0 : index
    %183 = vector.load %arg7[%c7, %c0_146, %c0_147] : memref<8x18x18xf32, #tpu.memory_space<vmem>>, vector<1x18x18xf32>
    %184 = vector.shape_cast %183 : vector<1x18x18xf32> to vector<18x18xf32>
    %cst_148 = arith.constant dense<0.000000e+00> : vector<18x9xf32>
    %185 = tpu.matmul %184, %35, %cst_148 {dimension_numbers = #tpu.dot_dimension_numbers<[1], [0], [0], [1], [0, 0, 1, 1], [], []>} : vector<18x18xf32>, vector<18x9xf32>, vector<18x9xf32> -> vector<18x9xf32>
    %cst_149 = arith.constant dense<0.000000e+00> : vector<18x9xf32>
    %186 = tpu.matmul %184, %42, %cst_149 {dimension_numbers = #tpu.dot_dimension_numbers<[1], [0], [0], [1], [0, 0, 1, 1], [], []>} : vector<18x18xf32>, vector<18x9xf32>, vector<18x9xf32> -> vector<18x9xf32>
    %cst_150 = arith.constant dense<0.000000e+00> : vector<9x9xf32>
    %187 = tpu.matmul %19, %185, %cst_150 {dimension_numbers = #tpu.dot_dimension_numbers<[1], [0], [0], [1], [0, 0, 1, 1], [], []>} : vector<9x18xf32>, vector<18x9xf32>, vector<9x9xf32> -> vector<9x9xf32>
    %c7_151 = arith.constant 7 : index
    %c0_152 = arith.constant 0 : index
    %c0_153 = arith.constant 0 : index
    %188 = vector.load %arg8[%c7_151, %c0_152, %c0_153] : memref<32x9x9xf32, #tpu.memory_space<vmem>>, vector<1x9x9xf32>
    %189 = vector.shape_cast %188 : vector<1x9x9xf32> to vector<9x9xf32>
    %190 = vector.shape_cast %187 : vector<9x9xf32> to vector<1x9x9xf32>
    tpu.vector_store %arg8[%c7_151, %c0_152, %c0_153], %190 {strides = array<i32>} : memref<32x9x9xf32, #tpu.memory_space<vmem>>, vector<1x9x9xf32>,
    %cst_154 = arith.constant dense<0.000000e+00> : vector<9x9xf32>
    %191 = tpu.matmul %19, %186, %cst_154 {dimension_numbers = #tpu.dot_dimension_numbers<[1], [0], [0], [1], [0, 0, 1, 1], [], []>} : vector<9x18xf32>, vector<18x9xf32>, vector<9x9xf32> -> vector<9x9xf32>
    %c15 = arith.constant 15 : index
    %c0_155 = arith.constant 0 : index
    %c0_156 = arith.constant 0 : index
    %192 = vector.load %arg8[%c15, %c0_155, %c0_156] : memref<32x9x9xf32, #tpu.memory_space<vmem>>, vector<1x9x9xf32>
    %193 = vector.shape_cast %192 : vector<1x9x9xf32> to vector<9x9xf32>
    %194 = vector.shape_cast %191 : vector<9x9xf32> to vector<1x9x9xf32>
    tpu.vector_store %arg8[%c15, %c0_155, %c0_156], %194 {strides = array<i32>} : memref<32x9x9xf32, #tpu.memory_space<vmem>>, vector<1x9x9xf32>,
    %cst_157 = arith.constant dense<0.000000e+00> : vector<9x9xf32>
    %195 = tpu.matmul %26, %185, %cst_157 {dimension_numbers = #tpu.dot_dimension_numbers<[1], [0], [0], [1], [0, 0, 1, 1], [], []>} : vector<9x18xf32>, vector<18x9xf32>, vector<9x9xf32> -> vector<9x9xf32>
    %c23 = arith.constant 23 : index
    %c0_158 = arith.constant 0 : index
    %c0_159 = arith.constant 0 : index
    %196 = vector.load %arg8[%c23, %c0_158, %c0_159] : memref<32x9x9xf32, #tpu.memory_space<vmem>>, vector<1x9x9xf32>
    %197 = vector.shape_cast %196 : vector<1x9x9xf32> to vector<9x9xf32>
    %198 = vector.shape_cast %195 : vector<9x9xf32> to vector<1x9x9xf32>
    tpu.vector_store %arg8[%c23, %c0_158, %c0_159], %198 {strides = array<i32>} : memref<32x9x9xf32, #tpu.memory_space<vmem>>, vector<1x9x9xf32>,
    %cst_160 = arith.constant dense<0.000000e+00> : vector<9x9xf32>
    %199 = tpu.matmul %26, %186, %cst_160 {dimension_numbers = #tpu.dot_dimension_numbers<[1], [0], [0], [1], [0, 0, 1, 1], [], []>} : vector<9x18xf32>, vector<18x9xf32>, vector<9x9xf32> -> vector<9x9xf32>
    %c31 = arith.constant 31 : index
    %c0_161 = arith.constant 0 : index
    %c0_162 = arith.constant 0 : index
    %200 = vector.load %arg8[%c31, %c0_161, %c0_162] : memref<32x9x9xf32, #tpu.memory_space<vmem>>, vector<1x9x9xf32>
    %201 = vector.shape_cast %200 : vector<1x9x9xf32> to vector<9x9xf32>
    %202 = vector.shape_cast %199 : vector<9x9xf32> to vector<1x9x9xf32>
    tpu.vector_store %arg8[%c31, %c0_161, %c0_162], %202 {strides = array<i32>} : memref<32x9x9xf32, #tpu.memory_space<vmem>>, vector<1x9x9xf32>,
    %cst_163 = arith.constant 0.000000e+00 : f32
    %203 = vector.broadcast %cst_163 : f32 to vector<4x1x10xf32>
    %c0_164 = arith.constant 0 : index
    %c0_165 = arith.constant 0 : index
    %c0_166 = arith.constant 0 : index
    %204 = vector.load %arg9[%c0_164, %c0_165, %c0_166] : memref<4x10x10xf32, #tpu.memory_space<vmem>>, vector<4x1x10xf32>
    tpu.vector_store %arg9[%c0_164, %c0_165, %c0_166], %203 {strides = array<i32>} : memref<4x10x10xf32, #tpu.memory_space<vmem>>, vector<4x1x10xf32>,
    %cst_167 = arith.constant 0.000000e+00 : f32
    %205 = vector.broadcast %cst_167 : f32 to vector<4x1x10xf32>
    %c0_168 = arith.constant 0 : index
    %c9_169 = arith.constant 9 : index
    %c0_170 = arith.constant 0 : index
    %206 = vector.load %arg9[%c0_168, %c9_169, %c0_170] : memref<4x10x10xf32, #tpu.memory_space<vmem>>, vector<4x1x10xf32>
    tpu.vector_store %arg9[%c0_168, %c9_169, %c0_170], %205 {strides = array<i32>} : memref<4x10x10xf32, #tpu.memory_space<vmem>>, vector<4x1x10xf32>,
    %cst_171 = arith.constant 0.000000e+00 : f32
    %207 = vector.broadcast %cst_171 : f32 to vector<4x10x1xf32>
    %c0_172 = arith.constant 0 : index
    %c0_173 = arith.constant 0 : index
    %c0_174 = arith.constant 0 : index
    %208 = vector.load %arg9[%c0_172, %c0_173, %c0_174] : memref<4x10x10xf32, #tpu.memory_space<vmem>>, vector<4x10x1xf32>
    tpu.vector_store %arg9[%c0_172, %c0_173, %c0_174], %207 {strides = array<i32>} : memref<4x10x10xf32, #tpu.memory_space<vmem>>, vector<4x10x1xf32>,
    %cst_175 = arith.constant 0.000000e+00 : f32
    %209 = vector.broadcast %cst_175 : f32 to vector<4x10x1xf32>
    %c0_176 = arith.constant 0 : index
    %c0_177 = arith.constant 0 : index
    %c9_178 = arith.constant 9 : index
    %210 = vector.load %arg9[%c0_176, %c0_177, %c9_178] : memref<4x10x10xf32, #tpu.memory_space<vmem>>, vector<4x10x1xf32>
    tpu.vector_store %arg9[%c0_176, %c0_177, %c9_178], %209 {strides = array<i32>} : memref<4x10x10xf32, #tpu.memory_space<vmem>>, vector<4x10x1xf32>,
    %c0_179 = arith.constant 0 : index
    %211 = memref.load %arg3[%c0_179] : memref<4xf32, #tpu.memory_space<smem>>
    %212 = vector.broadcast %211 : f32 to vector<8x8xf32>
    %c1_180 = arith.constant 1 : index
    %213 = memref.load %arg3[%c1_180] : memref<4xf32, #tpu.memory_space<smem>>
    %214 = vector.broadcast %213 : f32 to vector<8x8xf32>
    %c2_181 = arith.constant 2 : index
    %215 = memref.load %arg3[%c2_181] : memref<4xf32, #tpu.memory_space<smem>>
    %216 = vector.broadcast %215 : f32 to vector<8x8xf32>
    %c3_182 = arith.constant 3 : index
    %217 = memref.load %arg3[%c3_182] : memref<4xf32, #tpu.memory_space<smem>>
    %218 = vector.broadcast %217 : f32 to vector<8x8xf32>
    %c0_183 = arith.constant 0 : index
    %c0_184 = arith.constant 0 : index
    %c0_185 = arith.constant 0 : index
    %219 = vector.load %arg8[%c0_183, %c0_184, %c0_185] : memref<32x9x9xf32, #tpu.memory_space<vmem>>, vector<1x8x8xf32>
    %220 = vector.shape_cast %219 : vector<1x8x8xf32> to vector<8x8xf32>
    %c0_186 = arith.constant 0 : index
    %221 = memref.load %arg2[%c0_186] : memref<288xf32, #tpu.memory_space<smem>>
    %222 = vector.broadcast %221 : f32 to vector<8x8xf32>
    %223 = arith.mulf %222, %220 : vector<8x8xf32>
    %224 = arith.addf %212, %223 : vector<8x8xf32>
    %c1_187 = arith.constant 1 : index
    %225 = memref.load %arg2[%c1_187] : memref<288xf32, #tpu.memory_space<smem>>
    %226 = vector.broadcast %225 : f32 to vector<8x8xf32>
    %227 = arith.mulf %226, %220 : vector<8x8xf32>
    %228 = arith.addf %214, %227 : vector<8x8xf32>
    %c2_188 = arith.constant 2 : index
    %229 = memref.load %arg2[%c2_188] : memref<288xf32, #tpu.memory_space<smem>>
    %230 = vector.broadcast %229 : f32 to vector<8x8xf32>
    %231 = arith.mulf %230, %220 : vector<8x8xf32>
    %232 = arith.addf %216, %231 : vector<8x8xf32>
    %c3_189 = arith.constant 3 : index
    %233 = memref.load %arg2[%c3_189] : memref<288xf32, #tpu.memory_space<smem>>
    %234 = vector.broadcast %233 : f32 to vector<8x8xf32>
    %235 = arith.mulf %234, %220 : vector<8x8xf32>
    %236 = arith.addf %218, %235 : vector<8x8xf32>
    %c1_190 = arith.constant 1 : index
    %c0_191 = arith.constant 0 : index
    %c0_192 = arith.constant 0 : index
    %237 = vector.load %arg8[%c1_190, %c0_191, %c0_192] : memref<32x9x9xf32, #tpu.memory_space<vmem>>, vector<1x8x8xf32>
    %238 = vector.shape_cast %237 : vector<1x8x8xf32> to vector<8x8xf32>
    %c4_193 = arith.constant 4 : index
    %239 = memref.load %arg2[%c4_193] : memref<288xf32, #tpu.memory_space<smem>>
    %240 = vector.broadcast %239 : f32 to vector<8x8xf32>
    %241 = arith.mulf %240, %238 : vector<8x8xf32>
    %242 = arith.addf %224, %241 : vector<8x8xf32>
    %c5_194 = arith.constant 5 : index
    %243 = memref.load %arg2[%c5_194] : memref<288xf32, #tpu.memory_space<smem>>
    %244 = vector.broadcast %243 : f32 to vector<8x8xf32>
    %245 = arith.mulf %244, %238 : vector<8x8xf32>
    %246 = arith.addf %228, %245 : vector<8x8xf32>
    %c6_195 = arith.constant 6 : index
    %247 = memref.load %arg2[%c6_195] : memref<288xf32, #tpu.memory_space<smem>>
    %248 = vector.broadcast %247 : f32 to vector<8x8xf32>
    %249 = arith.mulf %248, %238 : vector<8x8xf32>
    %250 = arith.addf %232, %249 : vector<8x8xf32>
    %c7_196 = arith.constant 7 : index
    %251 = memref.load %arg2[%c7_196] : memref<288xf32, #tpu.memory_space<smem>>
    %252 = vector.broadcast %251 : f32 to vector<8x8xf32>
    %253 = arith.mulf %252, %238 : vector<8x8xf32>
    %254 = arith.addf %236, %253 : vector<8x8xf32>
    %c2_197 = arith.constant 2 : index
    %c0_198 = arith.constant 0 : index
    %c0_199 = arith.constant 0 : index
    %255 = vector.load %arg8[%c2_197, %c0_198, %c0_199] : memref<32x9x9xf32, #tpu.memory_space<vmem>>, vector<1x8x8xf32>
    %256 = vector.shape_cast %255 : vector<1x8x8xf32> to vector<8x8xf32>
    %c8_200 = arith.constant 8 : index
    %257 = memref.load %arg2[%c8_200] : memref<288xf32, #tpu.memory_space<smem>>
    %258 = vector.broadcast %257 : f32 to vector<8x8xf32>
    %259 = arith.mulf %258, %256 : vector<8x8xf32>
    %260 = arith.addf %242, %259 : vector<8x8xf32>
    %c9_201 = arith.constant 9 : index
    %261 = memref.load %arg2[%c9_201] : memref<288xf32, #tpu.memory_space<smem>>
    %262 = vector.broadcast %261 : f32 to vector<8x8xf32>
    %263 = arith.mulf %262, %256 : vector<8x8xf32>
    %264 = arith.addf %246, %263 : vector<8x8xf32>
    %c10_202 = arith.constant 10 : index
    %265 = memref.load %arg2[%c10_202] : memref<288xf32, #tpu.memory_space<smem>>
    %266 = vector.broadcast %265 : f32 to vector<8x8xf32>
    %267 = arith.mulf %266, %256 : vector<8x8xf32>
    %268 = arith.addf %250, %267 : vector<8x8xf32>
    %c11_203 = arith.constant 11 : index
    %269 = memref.load %arg2[%c11_203] : memref<288xf32, #tpu.memory_space<smem>>
    %270 = vector.broadcast %269 : f32 to vector<8x8xf32>
    %271 = arith.mulf %270, %256 : vector<8x8xf32>
    %272 = arith.addf %254, %271 : vector<8x8xf32>
    %c3_204 = arith.constant 3 : index
    %c0_205 = arith.constant 0 : index
    %c0_206 = arith.constant 0 : index
    %273 = vector.load %arg8[%c3_204, %c0_205, %c0_206] : memref<32x9x9xf32, #tpu.memory_space<vmem>>, vector<1x8x8xf32>
    %274 = vector.shape_cast %273 : vector<1x8x8xf32> to vector<8x8xf32>
    %c12_207 = arith.constant 12 : index
    %275 = memref.load %arg2[%c12_207] : memref<288xf32, #tpu.memory_space<smem>>
    %276 = vector.broadcast %275 : f32 to vector<8x8xf32>
    %277 = arith.mulf %276, %274 : vector<8x8xf32>
    %278 = arith.addf %260, %277 : vector<8x8xf32>
    %c13_208 = arith.constant 13 : index
    %279 = memref.load %arg2[%c13_208] : memref<288xf32, #tpu.memory_space<smem>>
    %280 = vector.broadcast %279 : f32 to vector<8x8xf32>
    %281 = arith.mulf %280, %274 : vector<8x8xf32>
    %282 = arith.addf %264, %281 : vector<8x8xf32>
    %c14_209 = arith.constant 14 : index
    %283 = memref.load %arg2[%c14_209] : memref<288xf32, #tpu.memory_space<smem>>
    %284 = vector.broadcast %283 : f32 to vector<8x8xf32>
    %285 = arith.mulf %284, %274 : vector<8x8xf32>
    %286 = arith.addf %268, %285 : vector<8x8xf32>
    %c15_210 = arith.constant 15 : index
    %287 = memref.load %arg2[%c15_210] : memref<288xf32, #tpu.memory_space<smem>>
    %288 = vector.broadcast %287 : f32 to vector<8x8xf32>
    %289 = arith.mulf %288, %274 : vector<8x8xf32>
    %290 = arith.addf %272, %289 : vector<8x8xf32>
    %c4_211 = arith.constant 4 : index
    %c0_212 = arith.constant 0 : index
    %c0_213 = arith.constant 0 : index
    %291 = vector.load %arg8[%c4_211, %c0_212, %c0_213] : memref<32x9x9xf32, #tpu.memory_space<vmem>>, vector<1x8x8xf32>
    %292 = vector.shape_cast %291 : vector<1x8x8xf32> to vector<8x8xf32>
    %c16_214 = arith.constant 16 : index
    %293 = memref.load %arg2[%c16_214] : memref<288xf32, #tpu.memory_space<smem>>
    %294 = vector.broadcast %293 : f32 to vector<8x8xf32>
    %295 = arith.mulf %294, %292 : vector<8x8xf32>
    %296 = arith.addf %278, %295 : vector<8x8xf32>
    %c17_215 = arith.constant 17 : index
    %297 = memref.load %arg2[%c17_215] : memref<288xf32, #tpu.memory_space<smem>>
    %298 = vector.broadcast %297 : f32 to vector<8x8xf32>
    %299 = arith.mulf %298, %292 : vector<8x8xf32>
    %300 = arith.addf %282, %299 : vector<8x8xf32>
    %c18_216 = arith.constant 18 : index
    %301 = memref.load %arg2[%c18_216] : memref<288xf32, #tpu.memory_space<smem>>
    %302 = vector.broadcast %301 : f32 to vector<8x8xf32>
    %303 = arith.mulf %302, %292 : vector<8x8xf32>
    %304 = arith.addf %286, %303 : vector<8x8xf32>
    %c19_217 = arith.constant 19 : index
    %305 = memref.load %arg2[%c19_217] : memref<288xf32, #tpu.memory_space<smem>>
    %306 = vector.broadcast %305 : f32 to vector<8x8xf32>
    %307 = arith.mulf %306, %292 : vector<8x8xf32>
    %308 = arith.addf %290, %307 : vector<8x8xf32>
    %c5_218 = arith.constant 5 : index
    %c0_219 = arith.constant 0 : index
    %c0_220 = arith.constant 0 : index
    %309 = vector.load %arg8[%c5_218, %c0_219, %c0_220] : memref<32x9x9xf32, #tpu.memory_space<vmem>>, vector<1x8x8xf32>
    %310 = vector.shape_cast %309 : vector<1x8x8xf32> to vector<8x8xf32>
    %c20_221 = arith.constant 20 : index
    %311 = memref.load %arg2[%c20_221] : memref<288xf32, #tpu.memory_space<smem>>
    %312 = vector.broadcast %311 : f32 to vector<8x8xf32>
    %313 = arith.mulf %312, %310 : vector<8x8xf32>
    %314 = arith.addf %296, %313 : vector<8x8xf32>
    %c21_222 = arith.constant 21 : index
    %315 = memref.load %arg2[%c21_222] : memref<288xf32, #tpu.memory_space<smem>>
    %316 = vector.broadcast %315 : f32 to vector<8x8xf32>
    %317 = arith.mulf %316, %310 : vector<8x8xf32>
    %318 = arith.addf %300, %317 : vector<8x8xf32>
    %c22_223 = arith.constant 22 : index
    %319 = memref.load %arg2[%c22_223] : memref<288xf32, #tpu.memory_space<smem>>
    %320 = vector.broadcast %319 : f32 to vector<8x8xf32>
    %321 = arith.mulf %320, %310 : vector<8x8xf32>
    %322 = arith.addf %304, %321 : vector<8x8xf32>
    %c23_224 = arith.constant 23 : index
    %323 = memref.load %arg2[%c23_224] : memref<288xf32, #tpu.memory_space<smem>>
    %324 = vector.broadcast %323 : f32 to vector<8x8xf32>
    %325 = arith.mulf %324, %310 : vector<8x8xf32>
    %326 = arith.addf %308, %325 : vector<8x8xf32>
    %c6_225 = arith.constant 6 : index
    %c0_226 = arith.constant 0 : index
    %c0_227 = arith.constant 0 : index
    %327 = vector.load %arg8[%c6_225, %c0_226, %c0_227] : memref<32x9x9xf32, #tpu.memory_space<vmem>>, vector<1x8x8xf32>
    %328 = vector.shape_cast %327 : vector<1x8x8xf32> to vector<8x8xf32>
    %c24_228 = arith.constant 24 : index
    %329 = memref.load %arg2[%c24_228] : memref<288xf32, #tpu.memory_space<smem>>
    %330 = vector.broadcast %329 : f32 to vector<8x8xf32>
    %331 = arith.mulf %330, %328 : vector<8x8xf32>
    %332 = arith.addf %314, %331 : vector<8x8xf32>
    %c25_229 = arith.constant 25 : index
    %333 = memref.load %arg2[%c25_229] : memref<288xf32, #tpu.memory_space<smem>>
    %334 = vector.broadcast %333 : f32 to vector<8x8xf32>
    %335 = arith.mulf %334, %328 : vector<8x8xf32>
    %336 = arith.addf %318, %335 : vector<8x8xf32>
    %c26_230 = arith.constant 26 : index
    %337 = memref.load %arg2[%c26_230] : memref<288xf32, #tpu.memory_space<smem>>
    %338 = vector.broadcast %337 : f32 to vector<8x8xf32>
    %339 = arith.mulf %338, %328 : vector<8x8xf32>
    %340 = arith.addf %322, %339 : vector<8x8xf32>
    %c27_231 = arith.constant 27 : index
    %341 = memref.load %arg2[%c27_231] : memref<288xf32, #tpu.memory_space<smem>>
    %342 = vector.broadcast %341 : f32 to vector<8x8xf32>
    %343 = arith.mulf %342, %328 : vector<8x8xf32>
    %344 = arith.addf %326, %343 : vector<8x8xf32>
    %c7_232 = arith.constant 7 : index
    %c0_233 = arith.constant 0 : index
    %c0_234 = arith.constant 0 : index
    %345 = vector.load %arg8[%c7_232, %c0_233, %c0_234] : memref<32x9x9xf32, #tpu.memory_space<vmem>>, vector<1x8x8xf32>
    %346 = vector.shape_cast %345 : vector<1x8x8xf32> to vector<8x8xf32>
    %c28_235 = arith.constant 28 : index
    %347 = memref.load %arg2[%c28_235] : memref<288xf32, #tpu.memory_space<smem>>
    %348 = vector.broadcast %347 : f32 to vector<8x8xf32>
    %349 = arith.mulf %348, %346 : vector<8x8xf32>
    %350 = arith.addf %332, %349 : vector<8x8xf32>
    %c29_236 = arith.constant 29 : index
    %351 = memref.load %arg2[%c29_236] : memref<288xf32, #tpu.memory_space<smem>>
    %352 = vector.broadcast %351 : f32 to vector<8x8xf32>
    %353 = arith.mulf %352, %346 : vector<8x8xf32>
    %354 = arith.addf %336, %353 : vector<8x8xf32>
    %c30_237 = arith.constant 30 : index
    %355 = memref.load %arg2[%c30_237] : memref<288xf32, #tpu.memory_space<smem>>
    %356 = vector.broadcast %355 : f32 to vector<8x8xf32>
    %357 = arith.mulf %356, %346 : vector<8x8xf32>
    %358 = arith.addf %340, %357 : vector<8x8xf32>
    %c31_238 = arith.constant 31 : index
    %359 = memref.load %arg2[%c31_238] : memref<288xf32, #tpu.memory_space<smem>>
    %360 = vector.broadcast %359 : f32 to vector<8x8xf32>
    %361 = arith.mulf %360, %346 : vector<8x8xf32>
    %362 = arith.addf %344, %361 : vector<8x8xf32>
    %c8_239 = arith.constant 8 : index
    %c0_240 = arith.constant 0 : index
    %c0_241 = arith.constant 0 : index
    %363 = vector.load %arg8[%c8_239, %c0_240, %c0_241] : memref<32x9x9xf32, #tpu.memory_space<vmem>>, vector<1x8x8xf32>
    %364 = vector.shape_cast %363 : vector<1x8x8xf32> to vector<8x8xf32>
    %c32 = arith.constant 32 : index
    %365 = memref.load %arg2[%c32] : memref<288xf32, #tpu.memory_space<smem>>
    %366 = vector.broadcast %365 : f32 to vector<8x8xf32>
    %367 = arith.mulf %366, %364 : vector<8x8xf32>
    %368 = arith.addf %350, %367 : vector<8x8xf32>
    %c33 = arith.constant 33 : index
    %369 = memref.load %arg2[%c33] : memref<288xf32, #tpu.memory_space<smem>>
    %370 = vector.broadcast %369 : f32 to vector<8x8xf32>
    %371 = arith.mulf %370, %364 : vector<8x8xf32>
    %372 = arith.addf %354, %371 : vector<8x8xf32>
    %c34 = arith.constant 34 : index
    %373 = memref.load %arg2[%c34] : memref<288xf32, #tpu.memory_space<smem>>
    %374 = vector.broadcast %373 : f32 to vector<8x8xf32>
    %375 = arith.mulf %374, %364 : vector<8x8xf32>
    %376 = arith.addf %358, %375 : vector<8x8xf32>
    %c35 = arith.constant 35 : index
    %377 = memref.load %arg2[%c35] : memref<288xf32, #tpu.memory_space<smem>>
    %378 = vector.broadcast %377 : f32 to vector<8x8xf32>
    %379 = arith.mulf %378, %364 : vector<8x8xf32>
    %380 = arith.addf %362, %379 : vector<8x8xf32>
    %c9_242 = arith.constant 9 : index
    %c0_243 = arith.constant 0 : index
    %c0_244 = arith.constant 0 : index
    %381 = vector.load %arg8[%c9_242, %c0_243, %c0_244] : memref<32x9x9xf32, #tpu.memory_space<vmem>>, vector<1x8x8xf32>
    %382 = vector.shape_cast %381 : vector<1x8x8xf32> to vector<8x8xf32>
    %c36 = arith.constant 36 : index
    %383 = memref.load %arg2[%c36] : memref<288xf32, #tpu.memory_space<smem>>
    %384 = vector.broadcast %383 : f32 to vector<8x8xf32>
    %385 = arith.mulf %384, %382 : vector<8x8xf32>
    %386 = arith.addf %368, %385 : vector<8x8xf32>
    %c37 = arith.constant 37 : index
    %387 = memref.load %arg2[%c37] : memref<288xf32, #tpu.memory_space<smem>>
    %388 = vector.broadcast %387 : f32 to vector<8x8xf32>
    %389 = arith.mulf %388, %382 : vector<8x8xf32>
    %390 = arith.addf %372, %389 : vector<8x8xf32>
    %c38 = arith.constant 38 : index
    %391 = memref.load %arg2[%c38] : memref<288xf32, #tpu.memory_space<smem>>
    %392 = vector.broadcast %391 : f32 to vector<8x8xf32>
    %393 = arith.mulf %392, %382 : vector<8x8xf32>
    %394 = arith.addf %376, %393 : vector<8x8xf32>
    %c39 = arith.constant 39 : index
    %395 = memref.load %arg2[%c39] : memref<288xf32, #tpu.memory_space<smem>>
    %396 = vector.broadcast %395 : f32 to vector<8x8xf32>
    %397 = arith.mulf %396, %382 : vector<8x8xf32>
    %398 = arith.addf %380, %397 : vector<8x8xf32>
    %c10_245 = arith.constant 10 : index
    %c0_246 = arith.constant 0 : index
    %c0_247 = arith.constant 0 : index
    %399 = vector.load %arg8[%c10_245, %c0_246, %c0_247] : memref<32x9x9xf32, #tpu.memory_space<vmem>>, vector<1x8x8xf32>
    %400 = vector.shape_cast %399 : vector<1x8x8xf32> to vector<8x8xf32>
    %c40 = arith.constant 40 : index
    %401 = memref.load %arg2[%c40] : memref<288xf32, #tpu.memory_space<smem>>
    %402 = vector.broadcast %401 : f32 to vector<8x8xf32>
    %403 = arith.mulf %402, %400 : vector<8x8xf32>
    %404 = arith.addf %386, %403 : vector<8x8xf32>
    %c41 = arith.constant 41 : index
    %405 = memref.load %arg2[%c41] : memref<288xf32, #tpu.memory_space<smem>>
    %406 = vector.broadcast %405 : f32 to vector<8x8xf32>
    %407 = arith.mulf %406, %400 : vector<8x8xf32>
    %408 = arith.addf %390, %407 : vector<8x8xf32>
    %c42 = arith.constant 42 : index
    %409 = memref.load %arg2[%c42] : memref<288xf32, #tpu.memory_space<smem>>
    %410 = vector.broadcast %409 : f32 to vector<8x8xf32>
    %411 = arith.mulf %410, %400 : vector<8x8xf32>
    %412 = arith.addf %394, %411 : vector<8x8xf32>
    %c43 = arith.constant 43 : index
    %413 = memref.load %arg2[%c43] : memref<288xf32, #tpu.memory_space<smem>>
    %414 = vector.broadcast %413 : f32 to vector<8x8xf32>
    %415 = arith.mulf %414, %400 : vector<8x8xf32>
    %416 = arith.addf %398, %415 : vector<8x8xf32>
    %c11_248 = arith.constant 11 : index
    %c0_249 = arith.constant 0 : index
    %c0_250 = arith.constant 0 : index
    %417 = vector.load %arg8[%c11_248, %c0_249, %c0_250] : memref<32x9x9xf32, #tpu.memory_space<vmem>>, vector<1x8x8xf32>
    %418 = vector.shape_cast %417 : vector<1x8x8xf32> to vector<8x8xf32>
    %c44 = arith.constant 44 : index
    %419 = memref.load %arg2[%c44] : memref<288xf32, #tpu.memory_space<smem>>
    %420 = vector.broadcast %419 : f32 to vector<8x8xf32>
    %421 = arith.mulf %420, %418 : vector<8x8xf32>
    %422 = arith.addf %404, %421 : vector<8x8xf32>
    %c45 = arith.constant 45 : index
    %423 = memref.load %arg2[%c45] : memref<288xf32, #tpu.memory_space<smem>>
    %424 = vector.broadcast %423 : f32 to vector<8x8xf32>
    %425 = arith.mulf %424, %418 : vector<8x8xf32>
    %426 = arith.addf %408, %425 : vector<8x8xf32>
    %c46 = arith.constant 46 : index
    %427 = memref.load %arg2[%c46] : memref<288xf32, #tpu.memory_space<smem>>
    %428 = vector.broadcast %427 : f32 to vector<8x8xf32>
    %429 = arith.mulf %428, %418 : vector<8x8xf32>
    %430 = arith.addf %412, %429 : vector<8x8xf32>
    %c47 = arith.constant 47 : index
    %431 = memref.load %arg2[%c47] : memref<288xf32, #tpu.memory_space<smem>>
    %432 = vector.broadcast %431 : f32 to vector<8x8xf32>
    %433 = arith.mulf %432, %418 : vector<8x8xf32>
    %434 = arith.addf %416, %433 : vector<8x8xf32>
    %c12_251 = arith.constant 12 : index
    %c0_252 = arith.constant 0 : index
    %c0_253 = arith.constant 0 : index
    %435 = vector.load %arg8[%c12_251, %c0_252, %c0_253] : memref<32x9x9xf32, #tpu.memory_space<vmem>>, vector<1x8x8xf32>
    %436 = vector.shape_cast %435 : vector<1x8x8xf32> to vector<8x8xf32>
    %c48 = arith.constant 48 : index
    %437 = memref.load %arg2[%c48] : memref<288xf32, #tpu.memory_space<smem>>
    %438 = vector.broadcast %437 : f32 to vector<8x8xf32>
    %439 = arith.mulf %438, %436 : vector<8x8xf32>
    %440 = arith.addf %422, %439 : vector<8x8xf32>
    %c49 = arith.constant 49 : index
    %441 = memref.load %arg2[%c49] : memref<288xf32, #tpu.memory_space<smem>>
    %442 = vector.broadcast %441 : f32 to vector<8x8xf32>
    %443 = arith.mulf %442, %436 : vector<8x8xf32>
    %444 = arith.addf %426, %443 : vector<8x8xf32>
    %c50 = arith.constant 50 : index
    %445 = memref.load %arg2[%c50] : memref<288xf32, #tpu.memory_space<smem>>
    %446 = vector.broadcast %445 : f32 to vector<8x8xf32>
    %447 = arith.mulf %446, %436 : vector<8x8xf32>
    %448 = arith.addf %430, %447 : vector<8x8xf32>
    %c51 = arith.constant 51 : index
    %449 = memref.load %arg2[%c51] : memref<288xf32, #tpu.memory_space<smem>>
    %450 = vector.broadcast %449 : f32 to vector<8x8xf32>
    %451 = arith.mulf %450, %436 : vector<8x8xf32>
    %452 = arith.addf %434, %451 : vector<8x8xf32>
    %c13_254 = arith.constant 13 : index
    %c0_255 = arith.constant 0 : index
    %c0_256 = arith.constant 0 : index
    %453 = vector.load %arg8[%c13_254, %c0_255, %c0_256] : memref<32x9x9xf32, #tpu.memory_space<vmem>>, vector<1x8x8xf32>
    %454 = vector.shape_cast %453 : vector<1x8x8xf32> to vector<8x8xf32>
    %c52 = arith.constant 52 : index
    %455 = memref.load %arg2[%c52] : memref<288xf32, #tpu.memory_space<smem>>
    %456 = vector.broadcast %455 : f32 to vector<8x8xf32>
    %457 = arith.mulf %456, %454 : vector<8x8xf32>
    %458 = arith.addf %440, %457 : vector<8x8xf32>
    %c53 = arith.constant 53 : index
    %459 = memref.load %arg2[%c53] : memref<288xf32, #tpu.memory_space<smem>>
    %460 = vector.broadcast %459 : f32 to vector<8x8xf32>
    %461 = arith.mulf %460, %454 : vector<8x8xf32>
    %462 = arith.addf %444, %461 : vector<8x8xf32>
    %c54 = arith.constant 54 : index
    %463 = memref.load %arg2[%c54] : memref<288xf32, #tpu.memory_space<smem>>
    %464 = vector.broadcast %463 : f32 to vector<8x8xf32>
    %465 = arith.mulf %464, %454 : vector<8x8xf32>
    %466 = arith.addf %448, %465 : vector<8x8xf32>
    %c55 = arith.constant 55 : index
    %467 = memref.load %arg2[%c55] : memref<288xf32, #tpu.memory_space<smem>>
    %468 = vector.broadcast %467 : f32 to vector<8x8xf32>
    %469 = arith.mulf %468, %454 : vector<8x8xf32>
    %470 = arith.addf %452, %469 : vector<8x8xf32>
    %c14_257 = arith.constant 14 : index
    %c0_258 = arith.constant 0 : index
    %c0_259 = arith.constant 0 : index
    %471 = vector.load %arg8[%c14_257, %c0_258, %c0_259] : memref<32x9x9xf32, #tpu.memory_space<vmem>>, vector<1x8x8xf32>
    %472 = vector.shape_cast %471 : vector<1x8x8xf32> to vector<8x8xf32>
    %c56 = arith.constant 56 : index
    %473 = memref.load %arg2[%c56] : memref<288xf32, #tpu.memory_space<smem>>
    %474 = vector.broadcast %473 : f32 to vector<8x8xf32>
    %475 = arith.mulf %474, %472 : vector<8x8xf32>
    %476 = arith.addf %458, %475 : vector<8x8xf32>
    %c57 = arith.constant 57 : index
    %477 = memref.load %arg2[%c57] : memref<288xf32, #tpu.memory_space<smem>>
    %478 = vector.broadcast %477 : f32 to vector<8x8xf32>
    %479 = arith.mulf %478, %472 : vector<8x8xf32>
    %480 = arith.addf %462, %479 : vector<8x8xf32>
    %c58 = arith.constant 58 : index
    %481 = memref.load %arg2[%c58] : memref<288xf32, #tpu.memory_space<smem>>
    %482 = vector.broadcast %481 : f32 to vector<8x8xf32>
    %483 = arith.mulf %482, %472 : vector<8x8xf32>
    %484 = arith.addf %466, %483 : vector<8x8xf32>
    %c59 = arith.constant 59 : index
    %485 = memref.load %arg2[%c59] : memref<288xf32, #tpu.memory_space<smem>>
    %486 = vector.broadcast %485 : f32 to vector<8x8xf32>
    %487 = arith.mulf %486, %472 : vector<8x8xf32>
    %488 = arith.addf %470, %487 : vector<8x8xf32>
    %c15_260 = arith.constant 15 : index
    %c0_261 = arith.constant 0 : index
    %c0_262 = arith.constant 0 : index
    %489 = vector.load %arg8[%c15_260, %c0_261, %c0_262] : memref<32x9x9xf32, #tpu.memory_space<vmem>>, vector<1x8x8xf32>
    %490 = vector.shape_cast %489 : vector<1x8x8xf32> to vector<8x8xf32>
    %c60 = arith.constant 60 : index
    %491 = memref.load %arg2[%c60] : memref<288xf32, #tpu.memory_space<smem>>
    %492 = vector.broadcast %491 : f32 to vector<8x8xf32>
    %493 = arith.mulf %492, %490 : vector<8x8xf32>
    %494 = arith.addf %476, %493 : vector<8x8xf32>
    %c61 = arith.constant 61 : index
    %495 = memref.load %arg2[%c61] : memref<288xf32, #tpu.memory_space<smem>>
    %496 = vector.broadcast %495 : f32 to vector<8x8xf32>
    %497 = arith.mulf %496, %490 : vector<8x8xf32>
    %498 = arith.addf %480, %497 : vector<8x8xf32>
    %c62 = arith.constant 62 : index
    %499 = memref.load %arg2[%c62] : memref<288xf32, #tpu.memory_space<smem>>
    %500 = vector.broadcast %499 : f32 to vector<8x8xf32>
    %501 = arith.mulf %500, %490 : vector<8x8xf32>
    %502 = arith.addf %484, %501 : vector<8x8xf32>
    %c63 = arith.constant 63 : index
    %503 = memref.load %arg2[%c63] : memref<288xf32, #tpu.memory_space<smem>>
    %504 = vector.broadcast %503 : f32 to vector<8x8xf32>
    %505 = arith.mulf %504, %490 : vector<8x8xf32>
    %506 = arith.addf %488, %505 : vector<8x8xf32>
    %c0_263 = arith.constant 0 : index
    %c0_264 = arith.constant 0 : index
    %c1_265 = arith.constant 1 : index
    %507 = vector.load %arg8[%c0_263, %c0_264, %c1_265] : memref<32x9x9xf32, #tpu.memory_space<vmem>>, vector<1x8x8xf32>
    %508 = vector.shape_cast %507 : vector<1x8x8xf32> to vector<8x8xf32>
    %c64 = arith.constant 64 : index
    %509 = memref.load %arg2[%c64] : memref<288xf32, #tpu.memory_space<smem>>
    %510 = vector.broadcast %509 : f32 to vector<8x8xf32>
    %511 = arith.mulf %510, %508 : vector<8x8xf32>
    %512 = arith.addf %494, %511 : vector<8x8xf32>
    %c65 = arith.constant 65 : index
    %513 = memref.load %arg2[%c65] : memref<288xf32, #tpu.memory_space<smem>>
    %514 = vector.broadcast %513 : f32 to vector<8x8xf32>
    %515 = arith.mulf %514, %508 : vector<8x8xf32>
    %516 = arith.addf %498, %515 : vector<8x8xf32>
    %c66 = arith.constant 66 : index
    %517 = memref.load %arg2[%c66] : memref<288xf32, #tpu.memory_space<smem>>
    %518 = vector.broadcast %517 : f32 to vector<8x8xf32>
    %519 = arith.mulf %518, %508 : vector<8x8xf32>
    %520 = arith.addf %502, %519 : vector<8x8xf32>
    %c67 = arith.constant 67 : index
    %521 = memref.load %arg2[%c67] : memref<288xf32, #tpu.memory_space<smem>>
    %522 = vector.broadcast %521 : f32 to vector<8x8xf32>
    %523 = arith.mulf %522, %508 : vector<8x8xf32>
    %524 = arith.addf %506, %523 : vector<8x8xf32>
    %c1_266 = arith.constant 1 : index
    %c0_267 = arith.constant 0 : index
    %c1_268 = arith.constant 1 : index
    %525 = vector.load %arg8[%c1_266, %c0_267, %c1_268] : memref<32x9x9xf32, #tpu.memory_space<vmem>>, vector<1x8x8xf32>
    %526 = vector.shape_cast %525 : vector<1x8x8xf32> to vector<8x8xf32>
    %c68 = arith.constant 68 : index
    %527 = memref.load %arg2[%c68] : memref<288xf32, #tpu.memory_space<smem>>
    %528 = vector.broadcast %527 : f32 to vector<8x8xf32>
    %529 = arith.mulf %528, %526 : vector<8x8xf32>
    %530 = arith.addf %512, %529 : vector<8x8xf32>
    %c69 = arith.constant 69 : index
    %531 = memref.load %arg2[%c69] : memref<288xf32, #tpu.memory_space<smem>>
    %532 = vector.broadcast %531 : f32 to vector<8x8xf32>
    %533 = arith.mulf %532, %526 : vector<8x8xf32>
    %534 = arith.addf %516, %533 : vector<8x8xf32>
    %c70 = arith.constant 70 : index
    %535 = memref.load %arg2[%c70] : memref<288xf32, #tpu.memory_space<smem>>
    %536 = vector.broadcast %535 : f32 to vector<8x8xf32>
    %537 = arith.mulf %536, %526 : vector<8x8xf32>
    %538 = arith.addf %520, %537 : vector<8x8xf32>
    %c71 = arith.constant 71 : index
    %539 = memref.load %arg2[%c71] : memref<288xf32, #tpu.memory_space<smem>>
    %540 = vector.broadcast %539 : f32 to vector<8x8xf32>
    %541 = arith.mulf %540, %526 : vector<8x8xf32>
    %542 = arith.addf %524, %541 : vector<8x8xf32>
    %c2_269 = arith.constant 2 : index
    %c0_270 = arith.constant 0 : index
    %c1_271 = arith.constant 1 : index
    %543 = vector.load %arg8[%c2_269, %c0_270, %c1_271] : memref<32x9x9xf32, #tpu.memory_space<vmem>>, vector<1x8x8xf32>
    %544 = vector.shape_cast %543 : vector<1x8x8xf32> to vector<8x8xf32>
    %c72 = arith.constant 72 : index
    %545 = memref.load %arg2[%c72] : memref<288xf32, #tpu.memory_space<smem>>
    %546 = vector.broadcast %545 : f32 to vector<8x8xf32>
    %547 = arith.mulf %546, %544 : vector<8x8xf32>
    %548 = arith.addf %530, %547 : vector<8x8xf32>
    %c73 = arith.constant 73 : index
    %549 = memref.load %arg2[%c73] : memref<288xf32, #tpu.memory_space<smem>>
    %550 = vector.broadcast %549 : f32 to vector<8x8xf32>
    %551 = arith.mulf %550, %544 : vector<8x8xf32>
    %552 = arith.addf %534, %551 : vector<8x8xf32>
    %c74 = arith.constant 74 : index
    %553 = memref.load %arg2[%c74] : memref<288xf32, #tpu.memory_space<smem>>
    %554 = vector.broadcast %553 : f32 to vector<8x8xf32>
    %555 = arith.mulf %554, %544 : vector<8x8xf32>
    %556 = arith.addf %538, %555 : vector<8x8xf32>
    %c75 = arith.constant 75 : index
    %557 = memref.load %arg2[%c75] : memref<288xf32, #tpu.memory_space<smem>>
    %558 = vector.broadcast %557 : f32 to vector<8x8xf32>
    %559 = arith.mulf %558, %544 : vector<8x8xf32>
    %560 = arith.addf %542, %559 : vector<8x8xf32>
    %c3_272 = arith.constant 3 : index
    %c0_273 = arith.constant 0 : index
    %c1_274 = arith.constant 1 : index
    %561 = vector.load %arg8[%c3_272, %c0_273, %c1_274] : memref<32x9x9xf32, #tpu.memory_space<vmem>>, vector<1x8x8xf32>
    %562 = vector.shape_cast %561 : vector<1x8x8xf32> to vector<8x8xf32>
    %c76 = arith.constant 76 : index
    %563 = memref.load %arg2[%c76] : memref<288xf32, #tpu.memory_space<smem>>
    %564 = vector.broadcast %563 : f32 to vector<8x8xf32>
    %565 = arith.mulf %564, %562 : vector<8x8xf32>
    %566 = arith.addf %548, %565 : vector<8x8xf32>
    %c77 = arith.constant 77 : index
    %567 = memref.load %arg2[%c77] : memref<288xf32, #tpu.memory_space<smem>>
    %568 = vector.broadcast %567 : f32 to vector<8x8xf32>
    %569 = arith.mulf %568, %562 : vector<8x8xf32>
    %570 = arith.addf %552, %569 : vector<8x8xf32>
    %c78 = arith.constant 78 : index
    %571 = memref.load %arg2[%c78] : memref<288xf32, #tpu.memory_space<smem>>
    %572 = vector.broadcast %571 : f32 to vector<8x8xf32>
    %573 = arith.mulf %572, %562 : vector<8x8xf32>
    %574 = arith.addf %556, %573 : vector<8x8xf32>
    %c79 = arith.constant 79 : index
    %575 = memref.load %arg2[%c79] : memref<288xf32, #tpu.memory_space<smem>>
    %576 = vector.broadcast %575 : f32 to vector<8x8xf32>
    %577 = arith.mulf %576, %562 : vector<8x8xf32>
    %578 = arith.addf %560, %577 : vector<8x8xf32>
    %c4_275 = arith.constant 4 : index
    %c0_276 = arith.constant 0 : index
    %c1_277 = arith.constant 1 : index
    %579 = vector.load %arg8[%c4_275, %c0_276, %c1_277] : memref<32x9x9xf32, #tpu.memory_space<vmem>>, vector<1x8x8xf32>
    %580 = vector.shape_cast %579 : vector<1x8x8xf32> to vector<8x8xf32>
    %c80 = arith.constant 80 : index
    %581 = memref.load %arg2[%c80] : memref<288xf32, #tpu.memory_space<smem>>
    %582 = vector.broadcast %581 : f32 to vector<8x8xf32>
    %583 = arith.mulf %582, %580 : vector<8x8xf32>
    %584 = arith.addf %566, %583 : vector<8x8xf32>
    %c81 = arith.constant 81 : index
    %585 = memref.load %arg2[%c81] : memref<288xf32, #tpu.memory_space<smem>>
    %586 = vector.broadcast %585 : f32 to vector<8x8xf32>
    %587 = arith.mulf %586, %580 : vector<8x8xf32>
    %588 = arith.addf %570, %587 : vector<8x8xf32>
    %c82 = arith.constant 82 : index
    %589 = memref.load %arg2[%c82] : memref<288xf32, #tpu.memory_space<smem>>
    %590 = vector.broadcast %589 : f32 to vector<8x8xf32>
    %591 = arith.mulf %590, %580 : vector<8x8xf32>
    %592 = arith.addf %574, %591 : vector<8x8xf32>
    %c83 = arith.constant 83 : index
    %593 = memref.load %arg2[%c83] : memref<288xf32, #tpu.memory_space<smem>>
    %594 = vector.broadcast %593 : f32 to vector<8x8xf32>
    %595 = arith.mulf %594, %580 : vector<8x8xf32>
    %596 = arith.addf %578, %595 : vector<8x8xf32>
    %c5_278 = arith.constant 5 : index
    %c0_279 = arith.constant 0 : index
    %c1_280 = arith.constant 1 : index
    %597 = vector.load %arg8[%c5_278, %c0_279, %c1_280] : memref<32x9x9xf32, #tpu.memory_space<vmem>>, vector<1x8x8xf32>
    %598 = vector.shape_cast %597 : vector<1x8x8xf32> to vector<8x8xf32>
    %c84 = arith.constant 84 : index
    %599 = memref.load %arg2[%c84] : memref<288xf32, #tpu.memory_space<smem>>
    %600 = vector.broadcast %599 : f32 to vector<8x8xf32>
    %601 = arith.mulf %600, %598 : vector<8x8xf32>
    %602 = arith.addf %584, %601 : vector<8x8xf32>
    %c85 = arith.constant 85 : index
    %603 = memref.load %arg2[%c85] : memref<288xf32, #tpu.memory_space<smem>>
    %604 = vector.broadcast %603 : f32 to vector<8x8xf32>
    %605 = arith.mulf %604, %598 : vector<8x8xf32>
    %606 = arith.addf %588, %605 : vector<8x8xf32>
    %c86 = arith.constant 86 : index
    %607 = memref.load %arg2[%c86] : memref<288xf32, #tpu.memory_space<smem>>
    %608 = vector.broadcast %607 : f32 to vector<8x8xf32>
    %609 = arith.mulf %608, %598 : vector<8x8xf32>
    %610 = arith.addf %592, %609 : vector<8x8xf32>
    %c87 = arith.constant 87 : index
    %611 = memref.load %arg2[%c87] : memref<288xf32, #tpu.memory_space<smem>>
    %612 = vector.broadcast %611 : f32 to vector<8x8xf32>
    %613 = arith.mulf %612, %598 : vector<8x8xf32>
    %614 = arith.addf %596, %613 : vector<8x8xf32>
    %c6_281 = arith.constant 6 : index
    %c0_282 = arith.constant 0 : index
    %c1_283 = arith.constant 1 : index
    %615 = vector.load %arg8[%c6_281, %c0_282, %c1_283] : memref<32x9x9xf32, #tpu.memory_space<vmem>>, vector<1x8x8xf32>
    %616 = vector.shape_cast %615 : vector<1x8x8xf32> to vector<8x8xf32>
    %c88 = arith.constant 88 : index
    %617 = memref.load %arg2[%c88] : memref<288xf32, #tpu.memory_space<smem>>
    %618 = vector.broadcast %617 : f32 to vector<8x8xf32>
    %619 = arith.mulf %618, %616 : vector<8x8xf32>
    %620 = arith.addf %602, %619 : vector<8x8xf32>
    %c89 = arith.constant 89 : index
    %621 = memref.load %arg2[%c89] : memref<288xf32, #tpu.memory_space<smem>>
    %622 = vector.broadcast %621 : f32 to vector<8x8xf32>
    %623 = arith.mulf %622, %616 : vector<8x8xf32>
    %624 = arith.addf %606, %623 : vector<8x8xf32>
    %c90 = arith.constant 90 : index
    %625 = memref.load %arg2[%c90] : memref<288xf32, #tpu.memory_space<smem>>
    %626 = vector.broadcast %625 : f32 to vector<8x8xf32>
    %627 = arith.mulf %626, %616 : vector<8x8xf32>
    %628 = arith.addf %610, %627 : vector<8x8xf32>
    %c91 = arith.constant 91 : index
    %629 = memref.load %arg2[%c91] : memref<288xf32, #tpu.memory_space<smem>>
    %630 = vector.broadcast %629 : f32 to vector<8x8xf32>
    %631 = arith.mulf %630, %616 : vector<8x8xf32>
    %632 = arith.addf %614, %631 : vector<8x8xf32>
    %c7_284 = arith.constant 7 : index
    %c0_285 = arith.constant 0 : index
    %c1_286 = arith.constant 1 : index
    %633 = vector.load %arg8[%c7_284, %c0_285, %c1_286] : memref<32x9x9xf32, #tpu.memory_space<vmem>>, vector<1x8x8xf32>
    %634 = vector.shape_cast %633 : vector<1x8x8xf32> to vector<8x8xf32>
    %c92 = arith.constant 92 : index
    %635 = memref.load %arg2[%c92] : memref<288xf32, #tpu.memory_space<smem>>
    %636 = vector.broadcast %635 : f32 to vector<8x8xf32>
    %637 = arith.mulf %636, %634 : vector<8x8xf32>
    %638 = arith.addf %620, %637 : vector<8x8xf32>
    %c93 = arith.constant 93 : index
    %639 = memref.load %arg2[%c93] : memref<288xf32, #tpu.memory_space<smem>>
    %640 = vector.broadcast %639 : f32 to vector<8x8xf32>
    %641 = arith.mulf %640, %634 : vector<8x8xf32>
    %642 = arith.addf %624, %641 : vector<8x8xf32>
    %c94 = arith.constant 94 : index
    %643 = memref.load %arg2[%c94] : memref<288xf32, #tpu.memory_space<smem>>
    %644 = vector.broadcast %643 : f32 to vector<8x8xf32>
    %645 = arith.mulf %644, %634 : vector<8x8xf32>
    %646 = arith.addf %628, %645 : vector<8x8xf32>
    %c95 = arith.constant 95 : index
    %647 = memref.load %arg2[%c95] : memref<288xf32, #tpu.memory_space<smem>>
    %648 = vector.broadcast %647 : f32 to vector<8x8xf32>
    %649 = arith.mulf %648, %634 : vector<8x8xf32>
    %650 = arith.addf %632, %649 : vector<8x8xf32>
    %c16_287 = arith.constant 16 : index
    %c0_288 = arith.constant 0 : index
    %c0_289 = arith.constant 0 : index
    %651 = vector.load %arg8[%c16_287, %c0_288, %c0_289] : memref<32x9x9xf32, #tpu.memory_space<vmem>>, vector<1x8x8xf32>
    %652 = vector.shape_cast %651 : vector<1x8x8xf32> to vector<8x8xf32>
    %c96 = arith.constant 96 : index
    %653 = memref.load %arg2[%c96] : memref<288xf32, #tpu.memory_space<smem>>
    %654 = vector.broadcast %653 : f32 to vector<8x8xf32>
    %655 = arith.mulf %654, %652 : vector<8x8xf32>
    %656 = arith.addf %638, %655 : vector<8x8xf32>
    %c97 = arith.constant 97 : index
    %657 = memref.load %arg2[%c97] : memref<288xf32, #tpu.memory_space<smem>>
    %658 = vector.broadcast %657 : f32 to vector<8x8xf32>
    %659 = arith.mulf %658, %652 : vector<8x8xf32>
    %660 = arith.addf %642, %659 : vector<8x8xf32>
    %c98 = arith.constant 98 : index
    %661 = memref.load %arg2[%c98] : memref<288xf32, #tpu.memory_space<smem>>
    %662 = vector.broadcast %661 : f32 to vector<8x8xf32>
    %663 = arith.mulf %662, %652 : vector<8x8xf32>
    %664 = arith.addf %646, %663 : vector<8x8xf32>
    %c99 = arith.constant 99 : index
    %665 = memref.load %arg2[%c99] : memref<288xf32, #tpu.memory_space<smem>>
    %666 = vector.broadcast %665 : f32 to vector<8x8xf32>
    %667 = arith.mulf %666, %652 : vector<8x8xf32>
    %668 = arith.addf %650, %667 : vector<8x8xf32>
    %c17_290 = arith.constant 17 : index
    %c0_291 = arith.constant 0 : index
    %c0_292 = arith.constant 0 : index
    %669 = vector.load %arg8[%c17_290, %c0_291, %c0_292] : memref<32x9x9xf32, #tpu.memory_space<vmem>>, vector<1x8x8xf32>
    %670 = vector.shape_cast %669 : vector<1x8x8xf32> to vector<8x8xf32>
    %c100 = arith.constant 100 : index
    %671 = memref.load %arg2[%c100] : memref<288xf32, #tpu.memory_space<smem>>
    %672 = vector.broadcast %671 : f32 to vector<8x8xf32>
    %673 = arith.mulf %672, %670 : vector<8x8xf32>
    %674 = arith.addf %656, %673 : vector<8x8xf32>
    %c101 = arith.constant 101 : index
    %675 = memref.load %arg2[%c101] : memref<288xf32, #tpu.memory_space<smem>>
    %676 = vector.broadcast %675 : f32 to vector<8x8xf32>
    %677 = arith.mulf %676, %670 : vector<8x8xf32>
    %678 = arith.addf %660, %677 : vector<8x8xf32>
    %c102 = arith.constant 102 : index
    %679 = memref.load %arg2[%c102] : memref<288xf32, #tpu.memory_space<smem>>
    %680 = vector.broadcast %679 : f32 to vector<8x8xf32>
    %681 = arith.mulf %680, %670 : vector<8x8xf32>
    %682 = arith.addf %664, %681 : vector<8x8xf32>
    %c103 = arith.constant 103 : index
    %683 = memref.load %arg2[%c103] : memref<288xf32, #tpu.memory_space<smem>>
    %684 = vector.broadcast %683 : f32 to vector<8x8xf32>
    %685 = arith.mulf %684, %670 : vector<8x8xf32>
    %686 = arith.addf %668, %685 : vector<8x8xf32>
    %c18_293 = arith.constant 18 : index
    %c0_294 = arith.constant 0 : index
    %c0_295 = arith.constant 0 : index
    %687 = vector.load %arg8[%c18_293, %c0_294, %c0_295] : memref<32x9x9xf32, #tpu.memory_space<vmem>>, vector<1x8x8xf32>
    %688 = vector.shape_cast %687 : vector<1x8x8xf32> to vector<8x8xf32>
    %c104 = arith.constant 104 : index
    %689 = memref.load %arg2[%c104] : memref<288xf32, #tpu.memory_space<smem>>
    %690 = vector.broadcast %689 : f32 to vector<8x8xf32>
    %691 = arith.mulf %690, %688 : vector<8x8xf32>
    %692 = arith.addf %674, %691 : vector<8x8xf32>
    %c105 = arith.constant 105 : index
    %693 = memref.load %arg2[%c105] : memref<288xf32, #tpu.memory_space<smem>>
    %694 = vector.broadcast %693 : f32 to vector<8x8xf32>
    %695 = arith.mulf %694, %688 : vector<8x8xf32>
    %696 = arith.addf %678, %695 : vector<8x8xf32>
    %c106 = arith.constant 106 : index
    %697 = memref.load %arg2[%c106] : memref<288xf32, #tpu.memory_space<smem>>
    %698 = vector.broadcast %697 : f32 to vector<8x8xf32>
    %699 = arith.mulf %698, %688 : vector<8x8xf32>
    %700 = arith.addf %682, %699 : vector<8x8xf32>
    %c107 = arith.constant 107 : index
    %701 = memref.load %arg2[%c107] : memref<288xf32, #tpu.memory_space<smem>>
    %702 = vector.broadcast %701 : f32 to vector<8x8xf32>
    %703 = arith.mulf %702, %688 : vector<8x8xf32>
    %704 = arith.addf %686, %703 : vector<8x8xf32>
    %c19_296 = arith.constant 19 : index
    %c0_297 = arith.constant 0 : index
    %c0_298 = arith.constant 0 : index
    %705 = vector.load %arg8[%c19_296, %c0_297, %c0_298] : memref<32x9x9xf32, #tpu.memory_space<vmem>>, vector<1x8x8xf32>
    %706 = vector.shape_cast %705 : vector<1x8x8xf32> to vector<8x8xf32>
    %c108 = arith.constant 108 : index
    %707 = memref.load %arg2[%c108] : memref<288xf32, #tpu.memory_space<smem>>
    %708 = vector.broadcast %707 : f32 to vector<8x8xf32>
    %709 = arith.mulf %708, %706 : vector<8x8xf32>
    %710 = arith.addf %692, %709 : vector<8x8xf32>
    %c109 = arith.constant 109 : index
    %711 = memref.load %arg2[%c109] : memref<288xf32, #tpu.memory_space<smem>>
    %712 = vector.broadcast %711 : f32 to vector<8x8xf32>
    %713 = arith.mulf %712, %706 : vector<8x8xf32>
    %714 = arith.addf %696, %713 : vector<8x8xf32>
    %c110 = arith.constant 110 : index
    %715 = memref.load %arg2[%c110] : memref<288xf32, #tpu.memory_space<smem>>
    %716 = vector.broadcast %715 : f32 to vector<8x8xf32>
    %717 = arith.mulf %716, %706 : vector<8x8xf32>
    %718 = arith.addf %700, %717 : vector<8x8xf32>
    %c111 = arith.constant 111 : index
    %719 = memref.load %arg2[%c111] : memref<288xf32, #tpu.memory_space<smem>>
    %720 = vector.broadcast %719 : f32 to vector<8x8xf32>
    %721 = arith.mulf %720, %706 : vector<8x8xf32>
    %722 = arith.addf %704, %721 : vector<8x8xf32>
    %c20_299 = arith.constant 20 : index
    %c0_300 = arith.constant 0 : index
    %c0_301 = arith.constant 0 : index
    %723 = vector.load %arg8[%c20_299, %c0_300, %c0_301] : memref<32x9x9xf32, #tpu.memory_space<vmem>>, vector<1x8x8xf32>
    %724 = vector.shape_cast %723 : vector<1x8x8xf32> to vector<8x8xf32>
    %c112 = arith.constant 112 : index
    %725 = memref.load %arg2[%c112] : memref<288xf32, #tpu.memory_space<smem>>
    %726 = vector.broadcast %725 : f32 to vector<8x8xf32>
    %727 = arith.mulf %726, %724 : vector<8x8xf32>
    %728 = arith.addf %710, %727 : vector<8x8xf32>
    %c113 = arith.constant 113 : index
    %729 = memref.load %arg2[%c113] : memref<288xf32, #tpu.memory_space<smem>>
    %730 = vector.broadcast %729 : f32 to vector<8x8xf32>
    %731 = arith.mulf %730, %724 : vector<8x8xf32>
    %732 = arith.addf %714, %731 : vector<8x8xf32>
    %c114 = arith.constant 114 : index
    %733 = memref.load %arg2[%c114] : memref<288xf32, #tpu.memory_space<smem>>
    %734 = vector.broadcast %733 : f32 to vector<8x8xf32>
    %735 = arith.mulf %734, %724 : vector<8x8xf32>
    %736 = arith.addf %718, %735 : vector<8x8xf32>
    %c115 = arith.constant 115 : index
    %737 = memref.load %arg2[%c115] : memref<288xf32, #tpu.memory_space<smem>>
    %738 = vector.broadcast %737 : f32 to vector<8x8xf32>
    %739 = arith.mulf %738, %724 : vector<8x8xf32>
    %740 = arith.addf %722, %739 : vector<8x8xf32>
    %c21_302 = arith.constant 21 : index
    %c0_303 = arith.constant 0 : index
    %c0_304 = arith.constant 0 : index
    %741 = vector.load %arg8[%c21_302, %c0_303, %c0_304] : memref<32x9x9xf32, #tpu.memory_space<vmem>>, vector<1x8x8xf32>
    %742 = vector.shape_cast %741 : vector<1x8x8xf32> to vector<8x8xf32>
    %c116 = arith.constant 116 : index
    %743 = memref.load %arg2[%c116] : memref<288xf32, #tpu.memory_space<smem>>
    %744 = vector.broadcast %743 : f32 to vector<8x8xf32>
    %745 = arith.mulf %744, %742 : vector<8x8xf32>
    %746 = arith.addf %728, %745 : vector<8x8xf32>
    %c117 = arith.constant 117 : index
    %747 = memref.load %arg2[%c117] : memref<288xf32, #tpu.memory_space<smem>>
    %748 = vector.broadcast %747 : f32 to vector<8x8xf32>
    %749 = arith.mulf %748, %742 : vector<8x8xf32>
    %750 = arith.addf %732, %749 : vector<8x8xf32>
    %c118 = arith.constant 118 : index
    %751 = memref.load %arg2[%c118] : memref<288xf32, #tpu.memory_space<smem>>
    %752 = vector.broadcast %751 : f32 to vector<8x8xf32>
    %753 = arith.mulf %752, %742 : vector<8x8xf32>
    %754 = arith.addf %736, %753 : vector<8x8xf32>
    %c119 = arith.constant 119 : index
    %755 = memref.load %arg2[%c119] : memref<288xf32, #tpu.memory_space<smem>>
    %756 = vector.broadcast %755 : f32 to vector<8x8xf32>
    %757 = arith.mulf %756, %742 : vector<8x8xf32>
    %758 = arith.addf %740, %757 : vector<8x8xf32>
    %c22_305 = arith.constant 22 : index
    %c0_306 = arith.constant 0 : index
    %c0_307 = arith.constant 0 : index
    %759 = vector.load %arg8[%c22_305, %c0_306, %c0_307] : memref<32x9x9xf32, #tpu.memory_space<vmem>>, vector<1x8x8xf32>
    %760 = vector.shape_cast %759 : vector<1x8x8xf32> to vector<8x8xf32>
    %c120 = arith.constant 120 : index
    %761 = memref.load %arg2[%c120] : memref<288xf32, #tpu.memory_space<smem>>
    %762 = vector.broadcast %761 : f32 to vector<8x8xf32>
    %763 = arith.mulf %762, %760 : vector<8x8xf32>
    %764 = arith.addf %746, %763 : vector<8x8xf32>
    %c121 = arith.constant 121 : index
    %765 = memref.load %arg2[%c121] : memref<288xf32, #tpu.memory_space<smem>>
    %766 = vector.broadcast %765 : f32 to vector<8x8xf32>
    %767 = arith.mulf %766, %760 : vector<8x8xf32>
    %768 = arith.addf %750, %767 : vector<8x8xf32>
    %c122 = arith.constant 122 : index
    %769 = memref.load %arg2[%c122] : memref<288xf32, #tpu.memory_space<smem>>
    %770 = vector.broadcast %769 : f32 to vector<8x8xf32>
    %771 = arith.mulf %770, %760 : vector<8x8xf32>
    %772 = arith.addf %754, %771 : vector<8x8xf32>
    %c123 = arith.constant 123 : index
    %773 = memref.load %arg2[%c123] : memref<288xf32, #tpu.memory_space<smem>>
    %774 = vector.broadcast %773 : f32 to vector<8x8xf32>
    %775 = arith.mulf %774, %760 : vector<8x8xf32>
    %776 = arith.addf %758, %775 : vector<8x8xf32>
    %c23_308 = arith.constant 23 : index
    %c0_309 = arith.constant 0 : index
    %c0_310 = arith.constant 0 : index
    %777 = vector.load %arg8[%c23_308, %c0_309, %c0_310] : memref<32x9x9xf32, #tpu.memory_space<vmem>>, vector<1x8x8xf32>
    %778 = vector.shape_cast %777 : vector<1x8x8xf32> to vector<8x8xf32>
    %c124 = arith.constant 124 : index
    %779 = memref.load %arg2[%c124] : memref<288xf32, #tpu.memory_space<smem>>
    %780 = vector.broadcast %779 : f32 to vector<8x8xf32>
    %781 = arith.mulf %780, %778 : vector<8x8xf32>
    %782 = arith.addf %764, %781 : vector<8x8xf32>
    %c125 = arith.constant 125 : index
    %783 = memref.load %arg2[%c125] : memref<288xf32, #tpu.memory_space<smem>>
    %784 = vector.broadcast %783 : f32 to vector<8x8xf32>
    %785 = arith.mulf %784, %778 : vector<8x8xf32>
    %786 = arith.addf %768, %785 : vector<8x8xf32>
    %c126 = arith.constant 126 : index
    %787 = memref.load %arg2[%c126] : memref<288xf32, #tpu.memory_space<smem>>
    %788 = vector.broadcast %787 : f32 to vector<8x8xf32>
    %789 = arith.mulf %788, %778 : vector<8x8xf32>
    %790 = arith.addf %772, %789 : vector<8x8xf32>
    %c127 = arith.constant 127 : index
    %791 = memref.load %arg2[%c127] : memref<288xf32, #tpu.memory_space<smem>>
    %792 = vector.broadcast %791 : f32 to vector<8x8xf32>
    %793 = arith.mulf %792, %778 : vector<8x8xf32>
    %794 = arith.addf %776, %793 : vector<8x8xf32>
    %c24_311 = arith.constant 24 : index
    %c0_312 = arith.constant 0 : index
    %c0_313 = arith.constant 0 : index
    %795 = vector.load %arg8[%c24_311, %c0_312, %c0_313] : memref<32x9x9xf32, #tpu.memory_space<vmem>>, vector<1x8x8xf32>
    %796 = vector.shape_cast %795 : vector<1x8x8xf32> to vector<8x8xf32>
    %c128 = arith.constant 128 : index
    %797 = memref.load %arg2[%c128] : memref<288xf32, #tpu.memory_space<smem>>
    %798 = vector.broadcast %797 : f32 to vector<8x8xf32>
    %799 = arith.mulf %798, %796 : vector<8x8xf32>
    %800 = arith.addf %782, %799 : vector<8x8xf32>
    %c129 = arith.constant 129 : index
    %801 = memref.load %arg2[%c129] : memref<288xf32, #tpu.memory_space<smem>>
    %802 = vector.broadcast %801 : f32 to vector<8x8xf32>
    %803 = arith.mulf %802, %796 : vector<8x8xf32>
    %804 = arith.addf %786, %803 : vector<8x8xf32>
    %c130 = arith.constant 130 : index
    %805 = memref.load %arg2[%c130] : memref<288xf32, #tpu.memory_space<smem>>
    %806 = vector.broadcast %805 : f32 to vector<8x8xf32>
    %807 = arith.mulf %806, %796 : vector<8x8xf32>
    %808 = arith.addf %790, %807 : vector<8x8xf32>
    %c131 = arith.constant 131 : index
    %809 = memref.load %arg2[%c131] : memref<288xf32, #tpu.memory_space<smem>>
    %810 = vector.broadcast %809 : f32 to vector<8x8xf32>
    %811 = arith.mulf %810, %796 : vector<8x8xf32>
    %812 = arith.addf %794, %811 : vector<8x8xf32>
    %c25_314 = arith.constant 25 : index
    %c0_315 = arith.constant 0 : index
    %c0_316 = arith.constant 0 : index
    %813 = vector.load %arg8[%c25_314, %c0_315, %c0_316] : memref<32x9x9xf32, #tpu.memory_space<vmem>>, vector<1x8x8xf32>
    %814 = vector.shape_cast %813 : vector<1x8x8xf32> to vector<8x8xf32>
    %c132 = arith.constant 132 : index
    %815 = memref.load %arg2[%c132] : memref<288xf32, #tpu.memory_space<smem>>
    %816 = vector.broadcast %815 : f32 to vector<8x8xf32>
    %817 = arith.mulf %816, %814 : vector<8x8xf32>
    %818 = arith.addf %800, %817 : vector<8x8xf32>
    %c133 = arith.constant 133 : index
    %819 = memref.load %arg2[%c133] : memref<288xf32, #tpu.memory_space<smem>>
    %820 = vector.broadcast %819 : f32 to vector<8x8xf32>
    %821 = arith.mulf %820, %814 : vector<8x8xf32>
    %822 = arith.addf %804, %821 : vector<8x8xf32>
    %c134 = arith.constant 134 : index
    %823 = memref.load %arg2[%c134] : memref<288xf32, #tpu.memory_space<smem>>
    %824 = vector.broadcast %823 : f32 to vector<8x8xf32>
    %825 = arith.mulf %824, %814 : vector<8x8xf32>
    %826 = arith.addf %808, %825 : vector<8x8xf32>
    %c135 = arith.constant 135 : index
    %827 = memref.load %arg2[%c135] : memref<288xf32, #tpu.memory_space<smem>>
    %828 = vector.broadcast %827 : f32 to vector<8x8xf32>
    %829 = arith.mulf %828, %814 : vector<8x8xf32>
    %830 = arith.addf %812, %829 : vector<8x8xf32>
    %c26_317 = arith.constant 26 : index
    %c0_318 = arith.constant 0 : index
    %c0_319 = arith.constant 0 : index
    %831 = vector.load %arg8[%c26_317, %c0_318, %c0_319] : memref<32x9x9xf32, #tpu.memory_space<vmem>>, vector<1x8x8xf32>
    %832 = vector.shape_cast %831 : vector<1x8x8xf32> to vector<8x8xf32>
    %c136 = arith.constant 136 : index
    %833 = memref.load %arg2[%c136] : memref<288xf32, #tpu.memory_space<smem>>
    %834 = vector.broadcast %833 : f32 to vector<8x8xf32>
    %835 = arith.mulf %834, %832 : vector<8x8xf32>
    %836 = arith.addf %818, %835 : vector<8x8xf32>
    %c137 = arith.constant 137 : index
    %837 = memref.load %arg2[%c137] : memref<288xf32, #tpu.memory_space<smem>>
    %838 = vector.broadcast %837 : f32 to vector<8x8xf32>
    %839 = arith.mulf %838, %832 : vector<8x8xf32>
    %840 = arith.addf %822, %839 : vector<8x8xf32>
    %c138 = arith.constant 138 : index
    %841 = memref.load %arg2[%c138] : memref<288xf32, #tpu.memory_space<smem>>
    %842 = vector.broadcast %841 : f32 to vector<8x8xf32>
    %843 = arith.mulf %842, %832 : vector<8x8xf32>
    %844 = arith.addf %826, %843 : vector<8x8xf32>
    %c139 = arith.constant 139 : index
    %845 = memref.load %arg2[%c139] : memref<288xf32, #tpu.memory_space<smem>>
    %846 = vector.broadcast %845 : f32 to vector<8x8xf32>
    %847 = arith.mulf %846, %832 : vector<8x8xf32>
    %848 = arith.addf %830, %847 : vector<8x8xf32>
    %c27_320 = arith.constant 27 : index
    %c0_321 = arith.constant 0 : index
    %c0_322 = arith.constant 0 : index
    %849 = vector.load %arg8[%c27_320, %c0_321, %c0_322] : memref<32x9x9xf32, #tpu.memory_space<vmem>>, vector<1x8x8xf32>
    %850 = vector.shape_cast %849 : vector<1x8x8xf32> to vector<8x8xf32>
    %c140 = arith.constant 140 : index
    %851 = memref.load %arg2[%c140] : memref<288xf32, #tpu.memory_space<smem>>
    %852 = vector.broadcast %851 : f32 to vector<8x8xf32>
    %853 = arith.mulf %852, %850 : vector<8x8xf32>
    %854 = arith.addf %836, %853 : vector<8x8xf32>
    %c141 = arith.constant 141 : index
    %855 = memref.load %arg2[%c141] : memref<288xf32, #tpu.memory_space<smem>>
    %856 = vector.broadcast %855 : f32 to vector<8x8xf32>
    %857 = arith.mulf %856, %850 : vector<8x8xf32>
    %858 = arith.addf %840, %857 : vector<8x8xf32>
    %c142 = arith.constant 142 : index
    %859 = memref.load %arg2[%c142] : memref<288xf32, #tpu.memory_space<smem>>
    %860 = vector.broadcast %859 : f32 to vector<8x8xf32>
    %861 = arith.mulf %860, %850 : vector<8x8xf32>
    %862 = arith.addf %844, %861 : vector<8x8xf32>
    %c143 = arith.constant 143 : index
    %863 = memref.load %arg2[%c143] : memref<288xf32, #tpu.memory_space<smem>>
    %864 = vector.broadcast %863 : f32 to vector<8x8xf32>
    %865 = arith.mulf %864, %850 : vector<8x8xf32>
    %866 = arith.addf %848, %865 : vector<8x8xf32>
    %c28_323 = arith.constant 28 : index
    %c0_324 = arith.constant 0 : index
    %c0_325 = arith.constant 0 : index
    %867 = vector.load %arg8[%c28_323, %c0_324, %c0_325] : memref<32x9x9xf32, #tpu.memory_space<vmem>>, vector<1x8x8xf32>
    %868 = vector.shape_cast %867 : vector<1x8x8xf32> to vector<8x8xf32>
    %c144 = arith.constant 144 : index
    %869 = memref.load %arg2[%c144] : memref<288xf32, #tpu.memory_space<smem>>
    %870 = vector.broadcast %869 : f32 to vector<8x8xf32>
    %871 = arith.mulf %870, %868 : vector<8x8xf32>
    %872 = arith.addf %854, %871 : vector<8x8xf32>
    %c145 = arith.constant 145 : index
    %873 = memref.load %arg2[%c145] : memref<288xf32, #tpu.memory_space<smem>>
    %874 = vector.broadcast %873 : f32 to vector<8x8xf32>
    %875 = arith.mulf %874, %868 : vector<8x8xf32>
    %876 = arith.addf %858, %875 : vector<8x8xf32>
    %c146 = arith.constant 146 : index
    %877 = memref.load %arg2[%c146] : memref<288xf32, #tpu.memory_space<smem>>
    %878 = vector.broadcast %877 : f32 to vector<8x8xf32>
    %879 = arith.mulf %878, %868 : vector<8x8xf32>
    %880 = arith.addf %862, %879 : vector<8x8xf32>
    %c147 = arith.constant 147 : index
    %881 = memref.load %arg2[%c147] : memref<288xf32, #tpu.memory_space<smem>>
    %882 = vector.broadcast %881 : f32 to vector<8x8xf32>
    %883 = arith.mulf %882, %868 : vector<8x8xf32>
    %884 = arith.addf %866, %883 : vector<8x8xf32>
    %c29_326 = arith.constant 29 : index
    %c0_327 = arith.constant 0 : index
    %c0_328 = arith.constant 0 : index
    %885 = vector.load %arg8[%c29_326, %c0_327, %c0_328] : memref<32x9x9xf32, #tpu.memory_space<vmem>>, vector<1x8x8xf32>
    %886 = vector.shape_cast %885 : vector<1x8x8xf32> to vector<8x8xf32>
    %c148 = arith.constant 148 : index
    %887 = memref.load %arg2[%c148] : memref<288xf32, #tpu.memory_space<smem>>
    %888 = vector.broadcast %887 : f32 to vector<8x8xf32>
    %889 = arith.mulf %888, %886 : vector<8x8xf32>
    %890 = arith.addf %872, %889 : vector<8x8xf32>
    %c149 = arith.constant 149 : index
    %891 = memref.load %arg2[%c149] : memref<288xf32, #tpu.memory_space<smem>>
    %892 = vector.broadcast %891 : f32 to vector<8x8xf32>
    %893 = arith.mulf %892, %886 : vector<8x8xf32>
    %894 = arith.addf %876, %893 : vector<8x8xf32>
    %c150 = arith.constant 150 : index
    %895 = memref.load %arg2[%c150] : memref<288xf32, #tpu.memory_space<smem>>
    %896 = vector.broadcast %895 : f32 to vector<8x8xf32>
    %897 = arith.mulf %896, %886 : vector<8x8xf32>
    %898 = arith.addf %880, %897 : vector<8x8xf32>
    %c151 = arith.constant 151 : index
    %899 = memref.load %arg2[%c151] : memref<288xf32, #tpu.memory_space<smem>>
    %900 = vector.broadcast %899 : f32 to vector<8x8xf32>
    %901 = arith.mulf %900, %886 : vector<8x8xf32>
    %902 = arith.addf %884, %901 : vector<8x8xf32>
    %c30_329 = arith.constant 30 : index
    %c0_330 = arith.constant 0 : index
    %c0_331 = arith.constant 0 : index
    %903 = vector.load %arg8[%c30_329, %c0_330, %c0_331] : memref<32x9x9xf32, #tpu.memory_space<vmem>>, vector<1x8x8xf32>
    %904 = vector.shape_cast %903 : vector<1x8x8xf32> to vector<8x8xf32>
    %c152 = arith.constant 152 : index
    %905 = memref.load %arg2[%c152] : memref<288xf32, #tpu.memory_space<smem>>
    %906 = vector.broadcast %905 : f32 to vector<8x8xf32>
    %907 = arith.mulf %906, %904 : vector<8x8xf32>
    %908 = arith.addf %890, %907 : vector<8x8xf32>
    %c153 = arith.constant 153 : index
    %909 = memref.load %arg2[%c153] : memref<288xf32, #tpu.memory_space<smem>>
    %910 = vector.broadcast %909 : f32 to vector<8x8xf32>
    %911 = arith.mulf %910, %904 : vector<8x8xf32>
    %912 = arith.addf %894, %911 : vector<8x8xf32>
    %c154 = arith.constant 154 : index
    %913 = memref.load %arg2[%c154] : memref<288xf32, #tpu.memory_space<smem>>
    %914 = vector.broadcast %913 : f32 to vector<8x8xf32>
    %915 = arith.mulf %914, %904 : vector<8x8xf32>
    %916 = arith.addf %898, %915 : vector<8x8xf32>
    %c155 = arith.constant 155 : index
    %917 = memref.load %arg2[%c155] : memref<288xf32, #tpu.memory_space<smem>>
    %918 = vector.broadcast %917 : f32 to vector<8x8xf32>
    %919 = arith.mulf %918, %904 : vector<8x8xf32>
    %920 = arith.addf %902, %919 : vector<8x8xf32>
    %c31_332 = arith.constant 31 : index
    %c0_333 = arith.constant 0 : index
    %c0_334 = arith.constant 0 : index
    %921 = vector.load %arg8[%c31_332, %c0_333, %c0_334] : memref<32x9x9xf32, #tpu.memory_space<vmem>>, vector<1x8x8xf32>
    %922 = vector.shape_cast %921 : vector<1x8x8xf32> to vector<8x8xf32>
    %c156 = arith.constant 156 : index
    %923 = memref.load %arg2[%c156] : memref<288xf32, #tpu.memory_space<smem>>
    %924 = vector.broadcast %923 : f32 to vector<8x8xf32>
    %925 = arith.mulf %924, %922 : vector<8x8xf32>
    %926 = arith.addf %908, %925 : vector<8x8xf32>
    %c157 = arith.constant 157 : index
    %927 = memref.load %arg2[%c157] : memref<288xf32, #tpu.memory_space<smem>>
    %928 = vector.broadcast %927 : f32 to vector<8x8xf32>
    %929 = arith.mulf %928, %922 : vector<8x8xf32>
    %930 = arith.addf %912, %929 : vector<8x8xf32>
    %c158 = arith.constant 158 : index
    %931 = memref.load %arg2[%c158] : memref<288xf32, #tpu.memory_space<smem>>
    %932 = vector.broadcast %931 : f32 to vector<8x8xf32>
    %933 = arith.mulf %932, %922 : vector<8x8xf32>
    %934 = arith.addf %916, %933 : vector<8x8xf32>
    %c159 = arith.constant 159 : index
    %935 = memref.load %arg2[%c159] : memref<288xf32, #tpu.memory_space<smem>>
    %936 = vector.broadcast %935 : f32 to vector<8x8xf32>
    %937 = arith.mulf %936, %922 : vector<8x8xf32>
    %938 = arith.addf %920, %937 : vector<8x8xf32>
    %c16_335 = arith.constant 16 : index
    %c0_336 = arith.constant 0 : index
    %c1_337 = arith.constant 1 : index
    %939 = vector.load %arg8[%c16_335, %c0_336, %c1_337] : memref<32x9x9xf32, #tpu.memory_space<vmem>>, vector<1x8x8xf32>
    %940 = vector.shape_cast %939 : vector<1x8x8xf32> to vector<8x8xf32>
    %c160 = arith.constant 160 : index
    %941 = memref.load %arg2[%c160] : memref<288xf32, #tpu.memory_space<smem>>
    %942 = vector.broadcast %941 : f32 to vector<8x8xf32>
    %943 = arith.mulf %942, %940 : vector<8x8xf32>
    %944 = arith.addf %926, %943 : vector<8x8xf32>
    %c161 = arith.constant 161 : index
    %945 = memref.load %arg2[%c161] : memref<288xf32, #tpu.memory_space<smem>>
    %946 = vector.broadcast %945 : f32 to vector<8x8xf32>
    %947 = arith.mulf %946, %940 : vector<8x8xf32>
    %948 = arith.addf %930, %947 : vector<8x8xf32>
    %c162 = arith.constant 162 : index
    %949 = memref.load %arg2[%c162] : memref<288xf32, #tpu.memory_space<smem>>
    %950 = vector.broadcast %949 : f32 to vector<8x8xf32>
    %951 = arith.mulf %950, %940 : vector<8x8xf32>
    %952 = arith.addf %934, %951 : vector<8x8xf32>
    %c163 = arith.constant 163 : index
    %953 = memref.load %arg2[%c163] : memref<288xf32, #tpu.memory_space<smem>>
    %954 = vector.broadcast %953 : f32 to vector<8x8xf32>
    %955 = arith.mulf %954, %940 : vector<8x8xf32>
    %956 = arith.addf %938, %955 : vector<8x8xf32>
    %c17_338 = arith.constant 17 : index
    %c0_339 = arith.constant 0 : index
    %c1_340 = arith.constant 1 : index
    %957 = vector.load %arg8[%c17_338, %c0_339, %c1_340] : memref<32x9x9xf32, #tpu.memory_space<vmem>>, vector<1x8x8xf32>
    %958 = vector.shape_cast %957 : vector<1x8x8xf32> to vector<8x8xf32>
    %c164 = arith.constant 164 : index
    %959 = memref.load %arg2[%c164] : memref<288xf32, #tpu.memory_space<smem>>
    %960 = vector.broadcast %959 : f32 to vector<8x8xf32>
    %961 = arith.mulf %960, %958 : vector<8x8xf32>
    %962 = arith.addf %944, %961 : vector<8x8xf32>
    %c165 = arith.constant 165 : index
    %963 = memref.load %arg2[%c165] : memref<288xf32, #tpu.memory_space<smem>>
    %964 = vector.broadcast %963 : f32 to vector<8x8xf32>
    %965 = arith.mulf %964, %958 : vector<8x8xf32>
    %966 = arith.addf %948, %965 : vector<8x8xf32>
    %c166 = arith.constant 166 : index
    %967 = memref.load %arg2[%c166] : memref<288xf32, #tpu.memory_space<smem>>
    %968 = vector.broadcast %967 : f32 to vector<8x8xf32>
    %969 = arith.mulf %968, %958 : vector<8x8xf32>
    %970 = arith.addf %952, %969 : vector<8x8xf32>
    %c167 = arith.constant 167 : index
    %971 = memref.load %arg2[%c167] : memref<288xf32, #tpu.memory_space<smem>>
    %972 = vector.broadcast %971 : f32 to vector<8x8xf32>
    %973 = arith.mulf %972, %958 : vector<8x8xf32>
    %974 = arith.addf %956, %973 : vector<8x8xf32>
    %c18_341 = arith.constant 18 : index
    %c0_342 = arith.constant 0 : index
    %c1_343 = arith.constant 1 : index
    %975 = vector.load %arg8[%c18_341, %c0_342, %c1_343] : memref<32x9x9xf32, #tpu.memory_space<vmem>>, vector<1x8x8xf32>
    %976 = vector.shape_cast %975 : vector<1x8x8xf32> to vector<8x8xf32>
    %c168 = arith.constant 168 : index
    %977 = memref.load %arg2[%c168] : memref<288xf32, #tpu.memory_space<smem>>
    %978 = vector.broadcast %977 : f32 to vector<8x8xf32>
    %979 = arith.mulf %978, %976 : vector<8x8xf32>
    %980 = arith.addf %962, %979 : vector<8x8xf32>
    %c169 = arith.constant 169 : index
    %981 = memref.load %arg2[%c169] : memref<288xf32, #tpu.memory_space<smem>>
    %982 = vector.broadcast %981 : f32 to vector<8x8xf32>
    %983 = arith.mulf %982, %976 : vector<8x8xf32>
    %984 = arith.addf %966, %983 : vector<8x8xf32>
    %c170 = arith.constant 170 : index
    %985 = memref.load %arg2[%c170] : memref<288xf32, #tpu.memory_space<smem>>
    %986 = vector.broadcast %985 : f32 to vector<8x8xf32>
    %987 = arith.mulf %986, %976 : vector<8x8xf32>
    %988 = arith.addf %970, %987 : vector<8x8xf32>
    %c171 = arith.constant 171 : index
    %989 = memref.load %arg2[%c171] : memref<288xf32, #tpu.memory_space<smem>>
    %990 = vector.broadcast %989 : f32 to vector<8x8xf32>
    %991 = arith.mulf %990, %976 : vector<8x8xf32>
    %992 = arith.addf %974, %991 : vector<8x8xf32>
    %c19_344 = arith.constant 19 : index
    %c0_345 = arith.constant 0 : index
    %c1_346 = arith.constant 1 : index
    %993 = vector.load %arg8[%c19_344, %c0_345, %c1_346] : memref<32x9x9xf32, #tpu.memory_space<vmem>>, vector<1x8x8xf32>
    %994 = vector.shape_cast %993 : vector<1x8x8xf32> to vector<8x8xf32>
    %c172 = arith.constant 172 : index
    %995 = memref.load %arg2[%c172] : memref<288xf32, #tpu.memory_space<smem>>
    %996 = vector.broadcast %995 : f32 to vector<8x8xf32>
    %997 = arith.mulf %996, %994 : vector<8x8xf32>
    %998 = arith.addf %980, %997 : vector<8x8xf32>
    %c173 = arith.constant 173 : index
    %999 = memref.load %arg2[%c173] : memref<288xf32, #tpu.memory_space<smem>>
    %1000 = vector.broadcast %999 : f32 to vector<8x8xf32>
    %1001 = arith.mulf %1000, %994 : vector<8x8xf32>
    %1002 = arith.addf %984, %1001 : vector<8x8xf32>
    %c174 = arith.constant 174 : index
    %1003 = memref.load %arg2[%c174] : memref<288xf32, #tpu.memory_space<smem>>
    %1004 = vector.broadcast %1003 : f32 to vector<8x8xf32>
    %1005 = arith.mulf %1004, %994 : vector<8x8xf32>
    %1006 = arith.addf %988, %1005 : vector<8x8xf32>
    %c175 = arith.constant 175 : index
    %1007 = memref.load %arg2[%c175] : memref<288xf32, #tpu.memory_space<smem>>
    %1008 = vector.broadcast %1007 : f32 to vector<8x8xf32>
    %1009 = arith.mulf %1008, %994 : vector<8x8xf32>
    %1010 = arith.addf %992, %1009 : vector<8x8xf32>
    %c20_347 = arith.constant 20 : index
    %c0_348 = arith.constant 0 : index
    %c1_349 = arith.constant 1 : index
    %1011 = vector.load %arg8[%c20_347, %c0_348, %c1_349] : memref<32x9x9xf32, #tpu.memory_space<vmem>>, vector<1x8x8xf32>
    %1012 = vector.shape_cast %1011 : vector<1x8x8xf32> to vector<8x8xf32>
    %c176 = arith.constant 176 : index
    %1013 = memref.load %arg2[%c176] : memref<288xf32, #tpu.memory_space<smem>>
    %1014 = vector.broadcast %1013 : f32 to vector<8x8xf32>
    %1015 = arith.mulf %1014, %1012 : vector<8x8xf32>
    %1016 = arith.addf %998, %1015 : vector<8x8xf32>
    %c177 = arith.constant 177 : index
    %1017 = memref.load %arg2[%c177] : memref<288xf32, #tpu.memory_space<smem>>
    %1018 = vector.broadcast %1017 : f32 to vector<8x8xf32>
    %1019 = arith.mulf %1018, %1012 : vector<8x8xf32>
    %1020 = arith.addf %1002, %1019 : vector<8x8xf32>
    %c178 = arith.constant 178 : index
    %1021 = memref.load %arg2[%c178] : memref<288xf32, #tpu.memory_space<smem>>
    %1022 = vector.broadcast %1021 : f32 to vector<8x8xf32>
    %1023 = arith.mulf %1022, %1012 : vector<8x8xf32>
    %1024 = arith.addf %1006, %1023 : vector<8x8xf32>
    %c179 = arith.constant 179 : index
    %1025 = memref.load %arg2[%c179] : memref<288xf32, #tpu.memory_space<smem>>
    %1026 = vector.broadcast %1025 : f32 to vector<8x8xf32>
    %1027 = arith.mulf %1026, %1012 : vector<8x8xf32>
    %1028 = arith.addf %1010, %1027 : vector<8x8xf32>
    %c21_350 = arith.constant 21 : index
    %c0_351 = arith.constant 0 : index
    %c1_352 = arith.constant 1 : index
    %1029 = vector.load %arg8[%c21_350, %c0_351, %c1_352] : memref<32x9x9xf32, #tpu.memory_space<vmem>>, vector<1x8x8xf32>
    %1030 = vector.shape_cast %1029 : vector<1x8x8xf32> to vector<8x8xf32>
    %c180 = arith.constant 180 : index
    %1031 = memref.load %arg2[%c180] : memref<288xf32, #tpu.memory_space<smem>>
    %1032 = vector.broadcast %1031 : f32 to vector<8x8xf32>
    %1033 = arith.mulf %1032, %1030 : vector<8x8xf32>
    %1034 = arith.addf %1016, %1033 : vector<8x8xf32>
    %c181 = arith.constant 181 : index
    %1035 = memref.load %arg2[%c181] : memref<288xf32, #tpu.memory_space<smem>>
    %1036 = vector.broadcast %1035 : f32 to vector<8x8xf32>
    %1037 = arith.mulf %1036, %1030 : vector<8x8xf32>
    %1038 = arith.addf %1020, %1037 : vector<8x8xf32>
    %c182 = arith.constant 182 : index
    %1039 = memref.load %arg2[%c182] : memref<288xf32, #tpu.memory_space<smem>>
    %1040 = vector.broadcast %1039 : f32 to vector<8x8xf32>
    %1041 = arith.mulf %1040, %1030 : vector<8x8xf32>
    %1042 = arith.addf %1024, %1041 : vector<8x8xf32>
    %c183 = arith.constant 183 : index
    %1043 = memref.load %arg2[%c183] : memref<288xf32, #tpu.memory_space<smem>>
    %1044 = vector.broadcast %1043 : f32 to vector<8x8xf32>
    %1045 = arith.mulf %1044, %1030 : vector<8x8xf32>
    %1046 = arith.addf %1028, %1045 : vector<8x8xf32>
    %c22_353 = arith.constant 22 : index
    %c0_354 = arith.constant 0 : index
    %c1_355 = arith.constant 1 : index
    %1047 = vector.load %arg8[%c22_353, %c0_354, %c1_355] : memref<32x9x9xf32, #tpu.memory_space<vmem>>, vector<1x8x8xf32>
    %1048 = vector.shape_cast %1047 : vector<1x8x8xf32> to vector<8x8xf32>
    %c184 = arith.constant 184 : index
    %1049 = memref.load %arg2[%c184] : memref<288xf32, #tpu.memory_space<smem>>
    %1050 = vector.broadcast %1049 : f32 to vector<8x8xf32>
    %1051 = arith.mulf %1050, %1048 : vector<8x8xf32>
    %1052 = arith.addf %1034, %1051 : vector<8x8xf32>
    %c185 = arith.constant 185 : index
    %1053 = memref.load %arg2[%c185] : memref<288xf32, #tpu.memory_space<smem>>
    %1054 = vector.broadcast %1053 : f32 to vector<8x8xf32>
    %1055 = arith.mulf %1054, %1048 : vector<8x8xf32>
    %1056 = arith.addf %1038, %1055 : vector<8x8xf32>
    %c186 = arith.constant 186 : index
    %1057 = memref.load %arg2[%c186] : memref<288xf32, #tpu.memory_space<smem>>
    %1058 = vector.broadcast %1057 : f32 to vector<8x8xf32>
    %1059 = arith.mulf %1058, %1048 : vector<8x8xf32>
    %1060 = arith.addf %1042, %1059 : vector<8x8xf32>
    %c187 = arith.constant 187 : index
    %1061 = memref.load %arg2[%c187] : memref<288xf32, #tpu.memory_space<smem>>
    %1062 = vector.broadcast %1061 : f32 to vector<8x8xf32>
    %1063 = arith.mulf %1062, %1048 : vector<8x8xf32>
    %1064 = arith.addf %1046, %1063 : vector<8x8xf32>
    %c23_356 = arith.constant 23 : index
    %c0_357 = arith.constant 0 : index
    %c1_358 = arith.constant 1 : index
    %1065 = vector.load %arg8[%c23_356, %c0_357, %c1_358] : memref<32x9x9xf32, #tpu.memory_space<vmem>>, vector<1x8x8xf32>
    %1066 = vector.shape_cast %1065 : vector<1x8x8xf32> to vector<8x8xf32>
    %c188 = arith.constant 188 : index
    %1067 = memref.load %arg2[%c188] : memref<288xf32, #tpu.memory_space<smem>>
    %1068 = vector.broadcast %1067 : f32 to vector<8x8xf32>
    %1069 = arith.mulf %1068, %1066 : vector<8x8xf32>
    %1070 = arith.addf %1052, %1069 : vector<8x8xf32>
    %c189 = arith.constant 189 : index
    %1071 = memref.load %arg2[%c189] : memref<288xf32, #tpu.memory_space<smem>>
    %1072 = vector.broadcast %1071 : f32 to vector<8x8xf32>
    %1073 = arith.mulf %1072, %1066 : vector<8x8xf32>
    %1074 = arith.addf %1056, %1073 : vector<8x8xf32>
    %c190 = arith.constant 190 : index
    %1075 = memref.load %arg2[%c190] : memref<288xf32, #tpu.memory_space<smem>>
    %1076 = vector.broadcast %1075 : f32 to vector<8x8xf32>
    %1077 = arith.mulf %1076, %1066 : vector<8x8xf32>
    %1078 = arith.addf %1060, %1077 : vector<8x8xf32>
    %c191 = arith.constant 191 : index
    %1079 = memref.load %arg2[%c191] : memref<288xf32, #tpu.memory_space<smem>>
    %1080 = vector.broadcast %1079 : f32 to vector<8x8xf32>
    %1081 = arith.mulf %1080, %1066 : vector<8x8xf32>
    %1082 = arith.addf %1064, %1081 : vector<8x8xf32>
    %c0_359 = arith.constant 0 : index
    %c1_360 = arith.constant 1 : index
    %c0_361 = arith.constant 0 : index
    %1083 = vector.load %arg8[%c0_359, %c1_360, %c0_361] : memref<32x9x9xf32, #tpu.memory_space<vmem>>, vector<1x8x8xf32>
    %1084 = vector.shape_cast %1083 : vector<1x8x8xf32> to vector<8x8xf32>
    %c192 = arith.constant 192 : index
    %1085 = memref.load %arg2[%c192] : memref<288xf32, #tpu.memory_space<smem>>
    %1086 = vector.broadcast %1085 : f32 to vector<8x8xf32>
    %1087 = arith.mulf %1086, %1084 : vector<8x8xf32>
    %1088 = arith.addf %1070, %1087 : vector<8x8xf32>
    %c193 = arith.constant 193 : index
    %1089 = memref.load %arg2[%c193] : memref<288xf32, #tpu.memory_space<smem>>
    %1090 = vector.broadcast %1089 : f32 to vector<8x8xf32>
    %1091 = arith.mulf %1090, %1084 : vector<8x8xf32>
    %1092 = arith.addf %1074, %1091 : vector<8x8xf32>
    %c194 = arith.constant 194 : index
    %1093 = memref.load %arg2[%c194] : memref<288xf32, #tpu.memory_space<smem>>
    %1094 = vector.broadcast %1093 : f32 to vector<8x8xf32>
    %1095 = arith.mulf %1094, %1084 : vector<8x8xf32>
    %1096 = arith.addf %1078, %1095 : vector<8x8xf32>
    %c195 = arith.constant 195 : index
    %1097 = memref.load %arg2[%c195] : memref<288xf32, #tpu.memory_space<smem>>
    %1098 = vector.broadcast %1097 : f32 to vector<8x8xf32>
    %1099 = arith.mulf %1098, %1084 : vector<8x8xf32>
    %1100 = arith.addf %1082, %1099 : vector<8x8xf32>
    %c1_362 = arith.constant 1 : index
    %c1_363 = arith.constant 1 : index
    %c0_364 = arith.constant 0 : index
    %1101 = vector.load %arg8[%c1_362, %c1_363, %c0_364] : memref<32x9x9xf32, #tpu.memory_space<vmem>>, vector<1x8x8xf32>
    %1102 = vector.shape_cast %1101 : vector<1x8x8xf32> to vector<8x8xf32>
    %c196 = arith.constant 196 : index
    %1103 = memref.load %arg2[%c196] : memref<288xf32, #tpu.memory_space<smem>>
    %1104 = vector.broadcast %1103 : f32 to vector<8x8xf32>
    %1105 = arith.mulf %1104, %1102 : vector<8x8xf32>
    %1106 = arith.addf %1088, %1105 : vector<8x8xf32>
    %c197 = arith.constant 197 : index
    %1107 = memref.load %arg2[%c197] : memref<288xf32, #tpu.memory_space<smem>>
    %1108 = vector.broadcast %1107 : f32 to vector<8x8xf32>
    %1109 = arith.mulf %1108, %1102 : vector<8x8xf32>
    %1110 = arith.addf %1092, %1109 : vector<8x8xf32>
    %c198 = arith.constant 198 : index
    %1111 = memref.load %arg2[%c198] : memref<288xf32, #tpu.memory_space<smem>>
    %1112 = vector.broadcast %1111 : f32 to vector<8x8xf32>
    %1113 = arith.mulf %1112, %1102 : vector<8x8xf32>
    %1114 = arith.addf %1096, %1113 : vector<8x8xf32>
    %c199 = arith.constant 199 : index
    %1115 = memref.load %arg2[%c199] : memref<288xf32, #tpu.memory_space<smem>>
    %1116 = vector.broadcast %1115 : f32 to vector<8x8xf32>
    %1117 = arith.mulf %1116, %1102 : vector<8x8xf32>
    %1118 = arith.addf %1100, %1117 : vector<8x8xf32>
    %c2_365 = arith.constant 2 : index
    %c1_366 = arith.constant 1 : index
    %c0_367 = arith.constant 0 : index
    %1119 = vector.load %arg8[%c2_365, %c1_366, %c0_367] : memref<32x9x9xf32, #tpu.memory_space<vmem>>, vector<1x8x8xf32>
    %1120 = vector.shape_cast %1119 : vector<1x8x8xf32> to vector<8x8xf32>
    %c200 = arith.constant 200 : index
    %1121 = memref.load %arg2[%c200] : memref<288xf32, #tpu.memory_space<smem>>
    %1122 = vector.broadcast %1121 : f32 to vector<8x8xf32>
    %1123 = arith.mulf %1122, %1120 : vector<8x8xf32>
    %1124 = arith.addf %1106, %1123 : vector<8x8xf32>
    %c201 = arith.constant 201 : index
    %1125 = memref.load %arg2[%c201] : memref<288xf32, #tpu.memory_space<smem>>
    %1126 = vector.broadcast %1125 : f32 to vector<8x8xf32>
    %1127 = arith.mulf %1126, %1120 : vector<8x8xf32>
    %1128 = arith.addf %1110, %1127 : vector<8x8xf32>
    %c202 = arith.constant 202 : index
    %1129 = memref.load %arg2[%c202] : memref<288xf32, #tpu.memory_space<smem>>
    %1130 = vector.broadcast %1129 : f32 to vector<8x8xf32>
    %1131 = arith.mulf %1130, %1120 : vector<8x8xf32>
    %1132 = arith.addf %1114, %1131 : vector<8x8xf32>
    %c203 = arith.constant 203 : index
    %1133 = memref.load %arg2[%c203] : memref<288xf32, #tpu.memory_space<smem>>
    %1134 = vector.broadcast %1133 : f32 to vector<8x8xf32>
    %1135 = arith.mulf %1134, %1120 : vector<8x8xf32>
    %1136 = arith.addf %1118, %1135 : vector<8x8xf32>
    %c3_368 = arith.constant 3 : index
    %c1_369 = arith.constant 1 : index
    %c0_370 = arith.constant 0 : index
    %1137 = vector.load %arg8[%c3_368, %c1_369, %c0_370] : memref<32x9x9xf32, #tpu.memory_space<vmem>>, vector<1x8x8xf32>
    %1138 = vector.shape_cast %1137 : vector<1x8x8xf32> to vector<8x8xf32>
    %c204 = arith.constant 204 : index
    %1139 = memref.load %arg2[%c204] : memref<288xf32, #tpu.memory_space<smem>>
    %1140 = vector.broadcast %1139 : f32 to vector<8x8xf32>
    %1141 = arith.mulf %1140, %1138 : vector<8x8xf32>
    %1142 = arith.addf %1124, %1141 : vector<8x8xf32>
    %c205 = arith.constant 205 : index
    %1143 = memref.load %arg2[%c205] : memref<288xf32, #tpu.memory_space<smem>>
    %1144 = vector.broadcast %1143 : f32 to vector<8x8xf32>
    %1145 = arith.mulf %1144, %1138 : vector<8x8xf32>
    %1146 = arith.addf %1128, %1145 : vector<8x8xf32>
    %c206 = arith.constant 206 : index
    %1147 = memref.load %arg2[%c206] : memref<288xf32, #tpu.memory_space<smem>>
    %1148 = vector.broadcast %1147 : f32 to vector<8x8xf32>
    %1149 = arith.mulf %1148, %1138 : vector<8x8xf32>
    %1150 = arith.addf %1132, %1149 : vector<8x8xf32>
    %c207 = arith.constant 207 : index
    %1151 = memref.load %arg2[%c207] : memref<288xf32, #tpu.memory_space<smem>>
    %1152 = vector.broadcast %1151 : f32 to vector<8x8xf32>
    %1153 = arith.mulf %1152, %1138 : vector<8x8xf32>
    %1154 = arith.addf %1136, %1153 : vector<8x8xf32>
    %c4_371 = arith.constant 4 : index
    %c1_372 = arith.constant 1 : index
    %c0_373 = arith.constant 0 : index
    %1155 = vector.load %arg8[%c4_371, %c1_372, %c0_373] : memref<32x9x9xf32, #tpu.memory_space<vmem>>, vector<1x8x8xf32>
    %1156 = vector.shape_cast %1155 : vector<1x8x8xf32> to vector<8x8xf32>
    %c208 = arith.constant 208 : index
    %1157 = memref.load %arg2[%c208] : memref<288xf32, #tpu.memory_space<smem>>
    %1158 = vector.broadcast %1157 : f32 to vector<8x8xf32>
    %1159 = arith.mulf %1158, %1156 : vector<8x8xf32>
    %1160 = arith.addf %1142, %1159 : vector<8x8xf32>
    %c209 = arith.constant 209 : index
    %1161 = memref.load %arg2[%c209] : memref<288xf32, #tpu.memory_space<smem>>
    %1162 = vector.broadcast %1161 : f32 to vector<8x8xf32>
    %1163 = arith.mulf %1162, %1156 : vector<8x8xf32>
    %1164 = arith.addf %1146, %1163 : vector<8x8xf32>
    %c210 = arith.constant 210 : index
    %1165 = memref.load %arg2[%c210] : memref<288xf32, #tpu.memory_space<smem>>
    %1166 = vector.broadcast %1165 : f32 to vector<8x8xf32>
    %1167 = arith.mulf %1166, %1156 : vector<8x8xf32>
    %1168 = arith.addf %1150, %1167 : vector<8x8xf32>
    %c211 = arith.constant 211 : index
    %1169 = memref.load %arg2[%c211] : memref<288xf32, #tpu.memory_space<smem>>
    %1170 = vector.broadcast %1169 : f32 to vector<8x8xf32>
    %1171 = arith.mulf %1170, %1156 : vector<8x8xf32>
    %1172 = arith.addf %1154, %1171 : vector<8x8xf32>
    %c5_374 = arith.constant 5 : index
    %c1_375 = arith.constant 1 : index
    %c0_376 = arith.constant 0 : index
    %1173 = vector.load %arg8[%c5_374, %c1_375, %c0_376] : memref<32x9x9xf32, #tpu.memory_space<vmem>>, vector<1x8x8xf32>
    %1174 = vector.shape_cast %1173 : vector<1x8x8xf32> to vector<8x8xf32>
    %c212 = arith.constant 212 : index
    %1175 = memref.load %arg2[%c212] : memref<288xf32, #tpu.memory_space<smem>>
    %1176 = vector.broadcast %1175 : f32 to vector<8x8xf32>
    %1177 = arith.mulf %1176, %1174 : vector<8x8xf32>
    %1178 = arith.addf %1160, %1177 : vector<8x8xf32>
    %c213 = arith.constant 213 : index
    %1179 = memref.load %arg2[%c213] : memref<288xf32, #tpu.memory_space<smem>>
    %1180 = vector.broadcast %1179 : f32 to vector<8x8xf32>
    %1181 = arith.mulf %1180, %1174 : vector<8x8xf32>
    %1182 = arith.addf %1164, %1181 : vector<8x8xf32>
    %c214 = arith.constant 214 : index
    %1183 = memref.load %arg2[%c214] : memref<288xf32, #tpu.memory_space<smem>>
    %1184 = vector.broadcast %1183 : f32 to vector<8x8xf32>
    %1185 = arith.mulf %1184, %1174 : vector<8x8xf32>
    %1186 = arith.addf %1168, %1185 : vector<8x8xf32>
    %c215 = arith.constant 215 : index
    %1187 = memref.load %arg2[%c215] : memref<288xf32, #tpu.memory_space<smem>>
    %1188 = vector.broadcast %1187 : f32 to vector<8x8xf32>
    %1189 = arith.mulf %1188, %1174 : vector<8x8xf32>
    %1190 = arith.addf %1172, %1189 : vector<8x8xf32>
    %c6_377 = arith.constant 6 : index
    %c1_378 = arith.constant 1 : index
    %c0_379 = arith.constant 0 : index
    %1191 = vector.load %arg8[%c6_377, %c1_378, %c0_379] : memref<32x9x9xf32, #tpu.memory_space<vmem>>, vector<1x8x8xf32>
    %1192 = vector.shape_cast %1191 : vector<1x8x8xf32> to vector<8x8xf32>
    %c216 = arith.constant 216 : index
    %1193 = memref.load %arg2[%c216] : memref<288xf32, #tpu.memory_space<smem>>
    %1194 = vector.broadcast %1193 : f32 to vector<8x8xf32>
    %1195 = arith.mulf %1194, %1192 : vector<8x8xf32>
    %1196 = arith.addf %1178, %1195 : vector<8x8xf32>
    %c217 = arith.constant 217 : index
    %1197 = memref.load %arg2[%c217] : memref<288xf32, #tpu.memory_space<smem>>
    %1198 = vector.broadcast %1197 : f32 to vector<8x8xf32>
    %1199 = arith.mulf %1198, %1192 : vector<8x8xf32>
    %1200 = arith.addf %1182, %1199 : vector<8x8xf32>
    %c218 = arith.constant 218 : index
    %1201 = memref.load %arg2[%c218] : memref<288xf32, #tpu.memory_space<smem>>
    %1202 = vector.broadcast %1201 : f32 to vector<8x8xf32>
    %1203 = arith.mulf %1202, %1192 : vector<8x8xf32>
    %1204 = arith.addf %1186, %1203 : vector<8x8xf32>
    %c219 = arith.constant 219 : index
    %1205 = memref.load %arg2[%c219] : memref<288xf32, #tpu.memory_space<smem>>
    %1206 = vector.broadcast %1205 : f32 to vector<8x8xf32>
    %1207 = arith.mulf %1206, %1192 : vector<8x8xf32>
    %1208 = arith.addf %1190, %1207 : vector<8x8xf32>
    %c7_380 = arith.constant 7 : index
    %c1_381 = arith.constant 1 : index
    %c0_382 = arith.constant 0 : index
    %1209 = vector.load %arg8[%c7_380, %c1_381, %c0_382] : memref<32x9x9xf32, #tpu.memory_space<vmem>>, vector<1x8x8xf32>
    %1210 = vector.shape_cast %1209 : vector<1x8x8xf32> to vector<8x8xf32>
    %c220 = arith.constant 220 : index
    %1211 = memref.load %arg2[%c220] : memref<288xf32, #tpu.memory_space<smem>>
    %1212 = vector.broadcast %1211 : f32 to vector<8x8xf32>
    %1213 = arith.mulf %1212, %1210 : vector<8x8xf32>
    %1214 = arith.addf %1196, %1213 : vector<8x8xf32>
    %c221 = arith.constant 221 : index
    %1215 = memref.load %arg2[%c221] : memref<288xf32, #tpu.memory_space<smem>>
    %1216 = vector.broadcast %1215 : f32 to vector<8x8xf32>
    %1217 = arith.mulf %1216, %1210 : vector<8x8xf32>
    %1218 = arith.addf %1200, %1217 : vector<8x8xf32>
    %c222 = arith.constant 222 : index
    %1219 = memref.load %arg2[%c222] : memref<288xf32, #tpu.memory_space<smem>>
    %1220 = vector.broadcast %1219 : f32 to vector<8x8xf32>
    %1221 = arith.mulf %1220, %1210 : vector<8x8xf32>
    %1222 = arith.addf %1204, %1221 : vector<8x8xf32>
    %c223 = arith.constant 223 : index
    %1223 = memref.load %arg2[%c223] : memref<288xf32, #tpu.memory_space<smem>>
    %1224 = vector.broadcast %1223 : f32 to vector<8x8xf32>
    %1225 = arith.mulf %1224, %1210 : vector<8x8xf32>
    %1226 = arith.addf %1208, %1225 : vector<8x8xf32>
    %c8_383 = arith.constant 8 : index
    %c1_384 = arith.constant 1 : index
    %c0_385 = arith.constant 0 : index
    %1227 = vector.load %arg8[%c8_383, %c1_384, %c0_385] : memref<32x9x9xf32, #tpu.memory_space<vmem>>, vector<1x8x8xf32>
    %1228 = vector.shape_cast %1227 : vector<1x8x8xf32> to vector<8x8xf32>
    %c224 = arith.constant 224 : index
    %1229 = memref.load %arg2[%c224] : memref<288xf32, #tpu.memory_space<smem>>
    %1230 = vector.broadcast %1229 : f32 to vector<8x8xf32>
    %1231 = arith.mulf %1230, %1228 : vector<8x8xf32>
    %1232 = arith.addf %1214, %1231 : vector<8x8xf32>
    %c225 = arith.constant 225 : index
    %1233 = memref.load %arg2[%c225] : memref<288xf32, #tpu.memory_space<smem>>
    %1234 = vector.broadcast %1233 : f32 to vector<8x8xf32>
    %1235 = arith.mulf %1234, %1228 : vector<8x8xf32>
    %1236 = arith.addf %1218, %1235 : vector<8x8xf32>
    %c226 = arith.constant 226 : index
    %1237 = memref.load %arg2[%c226] : memref<288xf32, #tpu.memory_space<smem>>
    %1238 = vector.broadcast %1237 : f32 to vector<8x8xf32>
    %1239 = arith.mulf %1238, %1228 : vector<8x8xf32>
    %1240 = arith.addf %1222, %1239 : vector<8x8xf32>
    %c227 = arith.constant 227 : index
    %1241 = memref.load %arg2[%c227] : memref<288xf32, #tpu.memory_space<smem>>
    %1242 = vector.broadcast %1241 : f32 to vector<8x8xf32>
    %1243 = arith.mulf %1242, %1228 : vector<8x8xf32>
    %1244 = arith.addf %1226, %1243 : vector<8x8xf32>
    %c9_386 = arith.constant 9 : index
    %c1_387 = arith.constant 1 : index
    %c0_388 = arith.constant 0 : index
    %1245 = vector.load %arg8[%c9_386, %c1_387, %c0_388] : memref<32x9x9xf32, #tpu.memory_space<vmem>>, vector<1x8x8xf32>
    %1246 = vector.shape_cast %1245 : vector<1x8x8xf32> to vector<8x8xf32>
    %c228 = arith.constant 228 : index
    %1247 = memref.load %arg2[%c228] : memref<288xf32, #tpu.memory_space<smem>>
    %1248 = vector.broadcast %1247 : f32 to vector<8x8xf32>
    %1249 = arith.mulf %1248, %1246 : vector<8x8xf32>
    %1250 = arith.addf %1232, %1249 : vector<8x8xf32>
    %c229 = arith.constant 229 : index
    %1251 = memref.load %arg2[%c229] : memref<288xf32, #tpu.memory_space<smem>>
    %1252 = vector.broadcast %1251 : f32 to vector<8x8xf32>
    %1253 = arith.mulf %1252, %1246 : vector<8x8xf32>
    %1254 = arith.addf %1236, %1253 : vector<8x8xf32>
    %c230 = arith.constant 230 : index
    %1255 = memref.load %arg2[%c230] : memref<288xf32, #tpu.memory_space<smem>>
    %1256 = vector.broadcast %1255 : f32 to vector<8x8xf32>
    %1257 = arith.mulf %1256, %1246 : vector<8x8xf32>
    %1258 = arith.addf %1240, %1257 : vector<8x8xf32>
    %c231 = arith.constant 231 : index
    %1259 = memref.load %arg2[%c231] : memref<288xf32, #tpu.memory_space<smem>>
    %1260 = vector.broadcast %1259 : f32 to vector<8x8xf32>
    %1261 = arith.mulf %1260, %1246 : vector<8x8xf32>
    %1262 = arith.addf %1244, %1261 : vector<8x8xf32>
    %c10_389 = arith.constant 10 : index
    %c1_390 = arith.constant 1 : index
    %c0_391 = arith.constant 0 : index
    %1263 = vector.load %arg8[%c10_389, %c1_390, %c0_391] : memref<32x9x9xf32, #tpu.memory_space<vmem>>, vector<1x8x8xf32>
    %1264 = vector.shape_cast %1263 : vector<1x8x8xf32> to vector<8x8xf32>
    %c232 = arith.constant 232 : index
    %1265 = memref.load %arg2[%c232] : memref<288xf32, #tpu.memory_space<smem>>
    %1266 = vector.broadcast %1265 : f32 to vector<8x8xf32>
    %1267 = arith.mulf %1266, %1264 : vector<8x8xf32>
    %1268 = arith.addf %1250, %1267 : vector<8x8xf32>
    %c233 = arith.constant 233 : index
    %1269 = memref.load %arg2[%c233] : memref<288xf32, #tpu.memory_space<smem>>
    %1270 = vector.broadcast %1269 : f32 to vector<8x8xf32>
    %1271 = arith.mulf %1270, %1264 : vector<8x8xf32>
    %1272 = arith.addf %1254, %1271 : vector<8x8xf32>
    %c234 = arith.constant 234 : index
    %1273 = memref.load %arg2[%c234] : memref<288xf32, #tpu.memory_space<smem>>
    %1274 = vector.broadcast %1273 : f32 to vector<8x8xf32>
    %1275 = arith.mulf %1274, %1264 : vector<8x8xf32>
    %1276 = arith.addf %1258, %1275 : vector<8x8xf32>
    %c235 = arith.constant 235 : index
    %1277 = memref.load %arg2[%c235] : memref<288xf32, #tpu.memory_space<smem>>
    %1278 = vector.broadcast %1277 : f32 to vector<8x8xf32>
    %1279 = arith.mulf %1278, %1264 : vector<8x8xf32>
    %1280 = arith.addf %1262, %1279 : vector<8x8xf32>
    %c11_392 = arith.constant 11 : index
    %c1_393 = arith.constant 1 : index
    %c0_394 = arith.constant 0 : index
    %1281 = vector.load %arg8[%c11_392, %c1_393, %c0_394] : memref<32x9x9xf32, #tpu.memory_space<vmem>>, vector<1x8x8xf32>
    %1282 = vector.shape_cast %1281 : vector<1x8x8xf32> to vector<8x8xf32>
    %c236 = arith.constant 236 : index
    %1283 = memref.load %arg2[%c236] : memref<288xf32, #tpu.memory_space<smem>>
    %1284 = vector.broadcast %1283 : f32 to vector<8x8xf32>
    %1285 = arith.mulf %1284, %1282 : vector<8x8xf32>
    %1286 = arith.addf %1268, %1285 : vector<8x8xf32>
    %c237 = arith.constant 237 : index
    %1287 = memref.load %arg2[%c237] : memref<288xf32, #tpu.memory_space<smem>>
    %1288 = vector.broadcast %1287 : f32 to vector<8x8xf32>
    %1289 = arith.mulf %1288, %1282 : vector<8x8xf32>
    %1290 = arith.addf %1272, %1289 : vector<8x8xf32>
    %c238 = arith.constant 238 : index
    %1291 = memref.load %arg2[%c238] : memref<288xf32, #tpu.memory_space<smem>>
    %1292 = vector.broadcast %1291 : f32 to vector<8x8xf32>
    %1293 = arith.mulf %1292, %1282 : vector<8x8xf32>
    %1294 = arith.addf %1276, %1293 : vector<8x8xf32>
    %c239 = arith.constant 239 : index
    %1295 = memref.load %arg2[%c239] : memref<288xf32, #tpu.memory_space<smem>>
    %1296 = vector.broadcast %1295 : f32 to vector<8x8xf32>
    %1297 = arith.mulf %1296, %1282 : vector<8x8xf32>
    %1298 = arith.addf %1280, %1297 : vector<8x8xf32>
    %c12_395 = arith.constant 12 : index
    %c1_396 = arith.constant 1 : index
    %c0_397 = arith.constant 0 : index
    %1299 = vector.load %arg8[%c12_395, %c1_396, %c0_397] : memref<32x9x9xf32, #tpu.memory_space<vmem>>, vector<1x8x8xf32>
    %1300 = vector.shape_cast %1299 : vector<1x8x8xf32> to vector<8x8xf32>
    %c240 = arith.constant 240 : index
    %1301 = memref.load %arg2[%c240] : memref<288xf32, #tpu.memory_space<smem>>
    %1302 = vector.broadcast %1301 : f32 to vector<8x8xf32>
    %1303 = arith.mulf %1302, %1300 : vector<8x8xf32>
    %1304 = arith.addf %1286, %1303 : vector<8x8xf32>
    %c241 = arith.constant 241 : index
    %1305 = memref.load %arg2[%c241] : memref<288xf32, #tpu.memory_space<smem>>
    %1306 = vector.broadcast %1305 : f32 to vector<8x8xf32>
    %1307 = arith.mulf %1306, %1300 : vector<8x8xf32>
    %1308 = arith.addf %1290, %1307 : vector<8x8xf32>
    %c242 = arith.constant 242 : index
    %1309 = memref.load %arg2[%c242] : memref<288xf32, #tpu.memory_space<smem>>
    %1310 = vector.broadcast %1309 : f32 to vector<8x8xf32>
    %1311 = arith.mulf %1310, %1300 : vector<8x8xf32>
    %1312 = arith.addf %1294, %1311 : vector<8x8xf32>
    %c243 = arith.constant 243 : index
    %1313 = memref.load %arg2[%c243] : memref<288xf32, #tpu.memory_space<smem>>
    %1314 = vector.broadcast %1313 : f32 to vector<8x8xf32>
    %1315 = arith.mulf %1314, %1300 : vector<8x8xf32>
    %1316 = arith.addf %1298, %1315 : vector<8x8xf32>
    %c13_398 = arith.constant 13 : index
    %c1_399 = arith.constant 1 : index
    %c0_400 = arith.constant 0 : index
    %1317 = vector.load %arg8[%c13_398, %c1_399, %c0_400] : memref<32x9x9xf32, #tpu.memory_space<vmem>>, vector<1x8x8xf32>
    %1318 = vector.shape_cast %1317 : vector<1x8x8xf32> to vector<8x8xf32>
    %c244 = arith.constant 244 : index
    %1319 = memref.load %arg2[%c244] : memref<288xf32, #tpu.memory_space<smem>>
    %1320 = vector.broadcast %1319 : f32 to vector<8x8xf32>
    %1321 = arith.mulf %1320, %1318 : vector<8x8xf32>
    %1322 = arith.addf %1304, %1321 : vector<8x8xf32>
    %c245 = arith.constant 245 : index
    %1323 = memref.load %arg2[%c245] : memref<288xf32, #tpu.memory_space<smem>>
    %1324 = vector.broadcast %1323 : f32 to vector<8x8xf32>
    %1325 = arith.mulf %1324, %1318 : vector<8x8xf32>
    %1326 = arith.addf %1308, %1325 : vector<8x8xf32>
    %c246 = arith.constant 246 : index
    %1327 = memref.load %arg2[%c246] : memref<288xf32, #tpu.memory_space<smem>>
    %1328 = vector.broadcast %1327 : f32 to vector<8x8xf32>
    %1329 = arith.mulf %1328, %1318 : vector<8x8xf32>
    %1330 = arith.addf %1312, %1329 : vector<8x8xf32>
    %c247 = arith.constant 247 : index
    %1331 = memref.load %arg2[%c247] : memref<288xf32, #tpu.memory_space<smem>>
    %1332 = vector.broadcast %1331 : f32 to vector<8x8xf32>
    %1333 = arith.mulf %1332, %1318 : vector<8x8xf32>
    %1334 = arith.addf %1316, %1333 : vector<8x8xf32>
    %c14_401 = arith.constant 14 : index
    %c1_402 = arith.constant 1 : index
    %c0_403 = arith.constant 0 : index
    %1335 = vector.load %arg8[%c14_401, %c1_402, %c0_403] : memref<32x9x9xf32, #tpu.memory_space<vmem>>, vector<1x8x8xf32>
    %1336 = vector.shape_cast %1335 : vector<1x8x8xf32> to vector<8x8xf32>
    %c248 = arith.constant 248 : index
    %1337 = memref.load %arg2[%c248] : memref<288xf32, #tpu.memory_space<smem>>
    %1338 = vector.broadcast %1337 : f32 to vector<8x8xf32>
    %1339 = arith.mulf %1338, %1336 : vector<8x8xf32>
    %1340 = arith.addf %1322, %1339 : vector<8x8xf32>
    %c249 = arith.constant 249 : index
    %1341 = memref.load %arg2[%c249] : memref<288xf32, #tpu.memory_space<smem>>
    %1342 = vector.broadcast %1341 : f32 to vector<8x8xf32>
    %1343 = arith.mulf %1342, %1336 : vector<8x8xf32>
    %1344 = arith.addf %1326, %1343 : vector<8x8xf32>
    %c250 = arith.constant 250 : index
    %1345 = memref.load %arg2[%c250] : memref<288xf32, #tpu.memory_space<smem>>
    %1346 = vector.broadcast %1345 : f32 to vector<8x8xf32>
    %1347 = arith.mulf %1346, %1336 : vector<8x8xf32>
    %1348 = arith.addf %1330, %1347 : vector<8x8xf32>
    %c251 = arith.constant 251 : index
    %1349 = memref.load %arg2[%c251] : memref<288xf32, #tpu.memory_space<smem>>
    %1350 = vector.broadcast %1349 : f32 to vector<8x8xf32>
    %1351 = arith.mulf %1350, %1336 : vector<8x8xf32>
    %1352 = arith.addf %1334, %1351 : vector<8x8xf32>
    %c15_404 = arith.constant 15 : index
    %c1_405 = arith.constant 1 : index
    %c0_406 = arith.constant 0 : index
    %1353 = vector.load %arg8[%c15_404, %c1_405, %c0_406] : memref<32x9x9xf32, #tpu.memory_space<vmem>>, vector<1x8x8xf32>
    %1354 = vector.shape_cast %1353 : vector<1x8x8xf32> to vector<8x8xf32>
    %c252 = arith.constant 252 : index
    %1355 = memref.load %arg2[%c252] : memref<288xf32, #tpu.memory_space<smem>>
    %1356 = vector.broadcast %1355 : f32 to vector<8x8xf32>
    %1357 = arith.mulf %1356, %1354 : vector<8x8xf32>
    %1358 = arith.addf %1340, %1357 : vector<8x8xf32>
    %c253 = arith.constant 253 : index
    %1359 = memref.load %arg2[%c253] : memref<288xf32, #tpu.memory_space<smem>>
    %1360 = vector.broadcast %1359 : f32 to vector<8x8xf32>
    %1361 = arith.mulf %1360, %1354 : vector<8x8xf32>
    %1362 = arith.addf %1344, %1361 : vector<8x8xf32>
    %c254 = arith.constant 254 : index
    %1363 = memref.load %arg2[%c254] : memref<288xf32, #tpu.memory_space<smem>>
    %1364 = vector.broadcast %1363 : f32 to vector<8x8xf32>
    %1365 = arith.mulf %1364, %1354 : vector<8x8xf32>
    %1366 = arith.addf %1348, %1365 : vector<8x8xf32>
    %c255 = arith.constant 255 : index
    %1367 = memref.load %arg2[%c255] : memref<288xf32, #tpu.memory_space<smem>>
    %1368 = vector.broadcast %1367 : f32 to vector<8x8xf32>
    %1369 = arith.mulf %1368, %1354 : vector<8x8xf32>
    %1370 = arith.addf %1352, %1369 : vector<8x8xf32>
    %c0_407 = arith.constant 0 : index
    %c1_408 = arith.constant 1 : index
    %c1_409 = arith.constant 1 : index
    %1371 = vector.load %arg8[%c0_407, %c1_408, %c1_409] : memref<32x9x9xf32, #tpu.memory_space<vmem>>, vector<1x8x8xf32>
    %1372 = vector.shape_cast %1371 : vector<1x8x8xf32> to vector<8x8xf32>
    %c256 = arith.constant 256 : index
    %1373 = memref.load %arg2[%c256] : memref<288xf32, #tpu.memory_space<smem>>
    %1374 = vector.broadcast %1373 : f32 to vector<8x8xf32>
    %1375 = arith.mulf %1374, %1372 : vector<8x8xf32>
    %1376 = arith.addf %1358, %1375 : vector<8x8xf32>
    %c257 = arith.constant 257 : index
    %1377 = memref.load %arg2[%c257] : memref<288xf32, #tpu.memory_space<smem>>
    %1378 = vector.broadcast %1377 : f32 to vector<8x8xf32>
    %1379 = arith.mulf %1378, %1372 : vector<8x8xf32>
    %1380 = arith.addf %1362, %1379 : vector<8x8xf32>
    %c258 = arith.constant 258 : index
    %1381 = memref.load %arg2[%c258] : memref<288xf32, #tpu.memory_space<smem>>
    %1382 = vector.broadcast %1381 : f32 to vector<8x8xf32>
    %1383 = arith.mulf %1382, %1372 : vector<8x8xf32>
    %1384 = arith.addf %1366, %1383 : vector<8x8xf32>
    %c259 = arith.constant 259 : index
    %1385 = memref.load %arg2[%c259] : memref<288xf32, #tpu.memory_space<smem>>
    %1386 = vector.broadcast %1385 : f32 to vector<8x8xf32>
    %1387 = arith.mulf %1386, %1372 : vector<8x8xf32>
    %1388 = arith.addf %1370, %1387 : vector<8x8xf32>
    %c1_410 = arith.constant 1 : index
    %c1_411 = arith.constant 1 : index
    %c1_412 = arith.constant 1 : index
    %1389 = vector.load %arg8[%c1_410, %c1_411, %c1_412] : memref<32x9x9xf32, #tpu.memory_space<vmem>>, vector<1x8x8xf32>
    %1390 = vector.shape_cast %1389 : vector<1x8x8xf32> to vector<8x8xf32>
    %c260 = arith.constant 260 : index
    %1391 = memref.load %arg2[%c260] : memref<288xf32, #tpu.memory_space<smem>>
    %1392 = vector.broadcast %1391 : f32 to vector<8x8xf32>
    %1393 = arith.mulf %1392, %1390 : vector<8x8xf32>
    %1394 = arith.addf %1376, %1393 : vector<8x8xf32>
    %c261 = arith.constant 261 : index
    %1395 = memref.load %arg2[%c261] : memref<288xf32, #tpu.memory_space<smem>>
    %1396 = vector.broadcast %1395 : f32 to vector<8x8xf32>
    %1397 = arith.mulf %1396, %1390 : vector<8x8xf32>
    %1398 = arith.addf %1380, %1397 : vector<8x8xf32>
    %c262 = arith.constant 262 : index
    %1399 = memref.load %arg2[%c262] : memref<288xf32, #tpu.memory_space<smem>>
    %1400 = vector.broadcast %1399 : f32 to vector<8x8xf32>
    %1401 = arith.mulf %1400, %1390 : vector<8x8xf32>
    %1402 = arith.addf %1384, %1401 : vector<8x8xf32>
    %c263 = arith.constant 263 : index
    %1403 = memref.load %arg2[%c263] : memref<288xf32, #tpu.memory_space<smem>>
    %1404 = vector.broadcast %1403 : f32 to vector<8x8xf32>
    %1405 = arith.mulf %1404, %1390 : vector<8x8xf32>
    %1406 = arith.addf %1388, %1405 : vector<8x8xf32>
    %c2_413 = arith.constant 2 : index
    %c1_414 = arith.constant 1 : index
    %c1_415 = arith.constant 1 : index
    %1407 = vector.load %arg8[%c2_413, %c1_414, %c1_415] : memref<32x9x9xf32, #tpu.memory_space<vmem>>, vector<1x8x8xf32>
    %1408 = vector.shape_cast %1407 : vector<1x8x8xf32> to vector<8x8xf32>
    %c264 = arith.constant 264 : index
    %1409 = memref.load %arg2[%c264] : memref<288xf32, #tpu.memory_space<smem>>
    %1410 = vector.broadcast %1409 : f32 to vector<8x8xf32>
    %1411 = arith.mulf %1410, %1408 : vector<8x8xf32>
    %1412 = arith.addf %1394, %1411 : vector<8x8xf32>
    %c265 = arith.constant 265 : index
    %1413 = memref.load %arg2[%c265] : memref<288xf32, #tpu.memory_space<smem>>
    %1414 = vector.broadcast %1413 : f32 to vector<8x8xf32>
    %1415 = arith.mulf %1414, %1408 : vector<8x8xf32>
    %1416 = arith.addf %1398, %1415 : vector<8x8xf32>
    %c266 = arith.constant 266 : index
    %1417 = memref.load %arg2[%c266] : memref<288xf32, #tpu.memory_space<smem>>
    %1418 = vector.broadcast %1417 : f32 to vector<8x8xf32>
    %1419 = arith.mulf %1418, %1408 : vector<8x8xf32>
    %1420 = arith.addf %1402, %1419 : vector<8x8xf32>
    %c267 = arith.constant 267 : index
    %1421 = memref.load %arg2[%c267] : memref<288xf32, #tpu.memory_space<smem>>
    %1422 = vector.broadcast %1421 : f32 to vector<8x8xf32>
    %1423 = arith.mulf %1422, %1408 : vector<8x8xf32>
    %1424 = arith.addf %1406, %1423 : vector<8x8xf32>
    %c3_416 = arith.constant 3 : index
    %c1_417 = arith.constant 1 : index
    %c1_418 = arith.constant 1 : index
    %1425 = vector.load %arg8[%c3_416, %c1_417, %c1_418] : memref<32x9x9xf32, #tpu.memory_space<vmem>>, vector<1x8x8xf32>
    %1426 = vector.shape_cast %1425 : vector<1x8x8xf32> to vector<8x8xf32>
    %c268 = arith.constant 268 : index
    %1427 = memref.load %arg2[%c268] : memref<288xf32, #tpu.memory_space<smem>>
    %1428 = vector.broadcast %1427 : f32 to vector<8x8xf32>
    %1429 = arith.mulf %1428, %1426 : vector<8x8xf32>
    %1430 = arith.addf %1412, %1429 : vector<8x8xf32>
    %c269 = arith.constant 269 : index
    %1431 = memref.load %arg2[%c269] : memref<288xf32, #tpu.memory_space<smem>>
    %1432 = vector.broadcast %1431 : f32 to vector<8x8xf32>
    %1433 = arith.mulf %1432, %1426 : vector<8x8xf32>
    %1434 = arith.addf %1416, %1433 : vector<8x8xf32>
    %c270 = arith.constant 270 : index
    %1435 = memref.load %arg2[%c270] : memref<288xf32, #tpu.memory_space<smem>>
    %1436 = vector.broadcast %1435 : f32 to vector<8x8xf32>
    %1437 = arith.mulf %1436, %1426 : vector<8x8xf32>
    %1438 = arith.addf %1420, %1437 : vector<8x8xf32>
    %c271 = arith.constant 271 : index
    %1439 = memref.load %arg2[%c271] : memref<288xf32, #tpu.memory_space<smem>>
    %1440 = vector.broadcast %1439 : f32 to vector<8x8xf32>
    %1441 = arith.mulf %1440, %1426 : vector<8x8xf32>
    %1442 = arith.addf %1424, %1441 : vector<8x8xf32>
    %c4_419 = arith.constant 4 : index
    %c1_420 = arith.constant 1 : index
    %c1_421 = arith.constant 1 : index
    %1443 = vector.load %arg8[%c4_419, %c1_420, %c1_421] : memref<32x9x9xf32, #tpu.memory_space<vmem>>, vector<1x8x8xf32>
    %1444 = vector.shape_cast %1443 : vector<1x8x8xf32> to vector<8x8xf32>
    %c272 = arith.constant 272 : index
    %1445 = memref.load %arg2[%c272] : memref<288xf32, #tpu.memory_space<smem>>
    %1446 = vector.broadcast %1445 : f32 to vector<8x8xf32>
    %1447 = arith.mulf %1446, %1444 : vector<8x8xf32>
    %1448 = arith.addf %1430, %1447 : vector<8x8xf32>
    %c273 = arith.constant 273 : index
    %1449 = memref.load %arg2[%c273] : memref<288xf32, #tpu.memory_space<smem>>
    %1450 = vector.broadcast %1449 : f32 to vector<8x8xf32>
    %1451 = arith.mulf %1450, %1444 : vector<8x8xf32>
    %1452 = arith.addf %1434, %1451 : vector<8x8xf32>
    %c274 = arith.constant 274 : index
    %1453 = memref.load %arg2[%c274] : memref<288xf32, #tpu.memory_space<smem>>
    %1454 = vector.broadcast %1453 : f32 to vector<8x8xf32>
    %1455 = arith.mulf %1454, %1444 : vector<8x8xf32>
    %1456 = arith.addf %1438, %1455 : vector<8x8xf32>
    %c275 = arith.constant 275 : index
    %1457 = memref.load %arg2[%c275] : memref<288xf32, #tpu.memory_space<smem>>
    %1458 = vector.broadcast %1457 : f32 to vector<8x8xf32>
    %1459 = arith.mulf %1458, %1444 : vector<8x8xf32>
    %1460 = arith.addf %1442, %1459 : vector<8x8xf32>
    %c5_422 = arith.constant 5 : index
    %c1_423 = arith.constant 1 : index
    %c1_424 = arith.constant 1 : index
    %1461 = vector.load %arg8[%c5_422, %c1_423, %c1_424] : memref<32x9x9xf32, #tpu.memory_space<vmem>>, vector<1x8x8xf32>
    %1462 = vector.shape_cast %1461 : vector<1x8x8xf32> to vector<8x8xf32>
    %c276 = arith.constant 276 : index
    %1463 = memref.load %arg2[%c276] : memref<288xf32, #tpu.memory_space<smem>>
    %1464 = vector.broadcast %1463 : f32 to vector<8x8xf32>
    %1465 = arith.mulf %1464, %1462 : vector<8x8xf32>
    %1466 = arith.addf %1448, %1465 : vector<8x8xf32>
    %c277 = arith.constant 277 : index
    %1467 = memref.load %arg2[%c277] : memref<288xf32, #tpu.memory_space<smem>>
    %1468 = vector.broadcast %1467 : f32 to vector<8x8xf32>
    %1469 = arith.mulf %1468, %1462 : vector<8x8xf32>
    %1470 = arith.addf %1452, %1469 : vector<8x8xf32>
    %c278 = arith.constant 278 : index
    %1471 = memref.load %arg2[%c278] : memref<288xf32, #tpu.memory_space<smem>>
    %1472 = vector.broadcast %1471 : f32 to vector<8x8xf32>
    %1473 = arith.mulf %1472, %1462 : vector<8x8xf32>
    %1474 = arith.addf %1456, %1473 : vector<8x8xf32>
    %c279 = arith.constant 279 : index
    %1475 = memref.load %arg2[%c279] : memref<288xf32, #tpu.memory_space<smem>>
    %1476 = vector.broadcast %1475 : f32 to vector<8x8xf32>
    %1477 = arith.mulf %1476, %1462 : vector<8x8xf32>
    %1478 = arith.addf %1460, %1477 : vector<8x8xf32>
    %c6_425 = arith.constant 6 : index
    %c1_426 = arith.constant 1 : index
    %c1_427 = arith.constant 1 : index
    %1479 = vector.load %arg8[%c6_425, %c1_426, %c1_427] : memref<32x9x9xf32, #tpu.memory_space<vmem>>, vector<1x8x8xf32>
    %1480 = vector.shape_cast %1479 : vector<1x8x8xf32> to vector<8x8xf32>
    %c280 = arith.constant 280 : index
    %1481 = memref.load %arg2[%c280] : memref<288xf32, #tpu.memory_space<smem>>
    %1482 = vector.broadcast %1481 : f32 to vector<8x8xf32>
    %1483 = arith.mulf %1482, %1480 : vector<8x8xf32>
    %1484 = arith.addf %1466, %1483 : vector<8x8xf32>
    %c281 = arith.constant 281 : index
    %1485 = memref.load %arg2[%c281] : memref<288xf32, #tpu.memory_space<smem>>
    %1486 = vector.broadcast %1485 : f32 to vector<8x8xf32>
    %1487 = arith.mulf %1486, %1480 : vector<8x8xf32>
    %1488 = arith.addf %1470, %1487 : vector<8x8xf32>
    %c282 = arith.constant 282 : index
    %1489 = memref.load %arg2[%c282] : memref<288xf32, #tpu.memory_space<smem>>
    %1490 = vector.broadcast %1489 : f32 to vector<8x8xf32>
    %1491 = arith.mulf %1490, %1480 : vector<8x8xf32>
    %1492 = arith.addf %1474, %1491 : vector<8x8xf32>
    %c283 = arith.constant 283 : index
    %1493 = memref.load %arg2[%c283] : memref<288xf32, #tpu.memory_space<smem>>
    %1494 = vector.broadcast %1493 : f32 to vector<8x8xf32>
    %1495 = arith.mulf %1494, %1480 : vector<8x8xf32>
    %1496 = arith.addf %1478, %1495 : vector<8x8xf32>
    %c7_428 = arith.constant 7 : index
    %c1_429 = arith.constant 1 : index
    %c1_430 = arith.constant 1 : index
    %1497 = vector.load %arg8[%c7_428, %c1_429, %c1_430] : memref<32x9x9xf32, #tpu.memory_space<vmem>>, vector<1x8x8xf32>
    %1498 = vector.shape_cast %1497 : vector<1x8x8xf32> to vector<8x8xf32>
    %c284 = arith.constant 284 : index
    %1499 = memref.load %arg2[%c284] : memref<288xf32, #tpu.memory_space<smem>>
    %1500 = vector.broadcast %1499 : f32 to vector<8x8xf32>
    %1501 = arith.mulf %1500, %1498 : vector<8x8xf32>
    %1502 = arith.addf %1484, %1501 : vector<8x8xf32>
    %c285 = arith.constant 285 : index
    %1503 = memref.load %arg2[%c285] : memref<288xf32, #tpu.memory_space<smem>>
    %1504 = vector.broadcast %1503 : f32 to vector<8x8xf32>
    %1505 = arith.mulf %1504, %1498 : vector<8x8xf32>
    %1506 = arith.addf %1488, %1505 : vector<8x8xf32>
    %c286 = arith.constant 286 : index
    %1507 = memref.load %arg2[%c286] : memref<288xf32, #tpu.memory_space<smem>>
    %1508 = vector.broadcast %1507 : f32 to vector<8x8xf32>
    %1509 = arith.mulf %1508, %1498 : vector<8x8xf32>
    %1510 = arith.addf %1492, %1509 : vector<8x8xf32>
    %c287 = arith.constant 287 : index
    %1511 = memref.load %arg2[%c287] : memref<288xf32, #tpu.memory_space<smem>>
    %1512 = vector.broadcast %1511 : f32 to vector<8x8xf32>
    %1513 = arith.mulf %1512, %1498 : vector<8x8xf32>
    %1514 = arith.addf %1496, %1513 : vector<8x8xf32>
    %cst_431 = arith.constant 0.00999999977 : f32
    %1515 = vector.broadcast %cst_431 : f32 to vector<8x8xf32>
    %1516 = arith.mulf %1515, %1502 : vector<8x8xf32>
    %1517 = arith.maximumf %1502, %1516 : vector<8x8xf32>
    %c0_432 = arith.constant 0 : index
    %c1_433 = arith.constant 1 : index
    %c1_434 = arith.constant 1 : index
    %1518 = vector.load %arg9[%c0_432, %c1_433, %c1_434] : memref<4x10x10xf32, #tpu.memory_space<vmem>>, vector<1x8x8xf32>
    %1519 = vector.shape_cast %1518 : vector<1x8x8xf32> to vector<8x8xf32>
    %1520 = vector.shape_cast %1517 : vector<8x8xf32> to vector<1x8x8xf32>
    tpu.vector_store %arg9[%c0_432, %c1_433, %c1_434], %1520 {strides = array<i32>} : memref<4x10x10xf32, #tpu.memory_space<vmem>>, vector<1x8x8xf32>,
    %cst_435 = arith.constant 0.00999999977 : f32
    %1521 = vector.broadcast %cst_435 : f32 to vector<8x8xf32>
    %1522 = arith.mulf %1521, %1506 : vector<8x8xf32>
    %1523 = arith.maximumf %1506, %1522 : vector<8x8xf32>
    %c1_436 = arith.constant 1 : index
    %c1_437 = arith.constant 1 : index
    %c1_438 = arith.constant 1 : index
    %1524 = vector.load %arg9[%c1_436, %c1_437, %c1_438] : memref<4x10x10xf32, #tpu.memory_space<vmem>>, vector<1x8x8xf32>
    %1525 = vector.shape_cast %1524 : vector<1x8x8xf32> to vector<8x8xf32>
    %1526 = vector.shape_cast %1523 : vector<8x8xf32> to vector<1x8x8xf32>
    tpu.vector_store %arg9[%c1_436, %c1_437, %c1_438], %1526 {strides = array<i32>} : memref<4x10x10xf32, #tpu.memory_space<vmem>>, vector<1x8x8xf32>,
    %cst_439 = arith.constant 0.00999999977 : f32
    %1527 = vector.broadcast %cst_439 : f32 to vector<8x8xf32>
    %1528 = arith.mulf %1527, %1510 : vector<8x8xf32>
    %1529 = arith.maximumf %1510, %1528 : vector<8x8xf32>
    %c2_440 = arith.constant 2 : index
    %c1_441 = arith.constant 1 : index
    %c1_442 = arith.constant 1 : index
    %1530 = vector.load %arg9[%c2_440, %c1_441, %c1_442] : memref<4x10x10xf32, #tpu.memory_space<vmem>>, vector<1x8x8xf32>
    %1531 = vector.shape_cast %1530 : vector<1x8x8xf32> to vector<8x8xf32>
    %1532 = vector.shape_cast %1529 : vector<8x8xf32> to vector<1x8x8xf32>
    tpu.vector_store %arg9[%c2_440, %c1_441, %c1_442], %1532 {strides = array<i32>} : memref<4x10x10xf32, #tpu.memory_space<vmem>>, vector<1x8x8xf32>,
    %cst_443 = arith.constant 0.00999999977 : f32
    %1533 = vector.broadcast %cst_443 : f32 to vector<8x8xf32>
    %1534 = arith.mulf %1533, %1514 : vector<8x8xf32>
    %1535 = arith.maximumf %1514, %1534 : vector<8x8xf32>
    %c3_444 = arith.constant 3 : index
    %c1_445 = arith.constant 1 : index
    %c1_446 = arith.constant 1 : index
    %1536 = vector.load %arg9[%c3_444, %c1_445, %c1_446] : memref<4x10x10xf32, #tpu.memory_space<vmem>>, vector<1x8x8xf32>
    %1537 = vector.shape_cast %1536 : vector<1x8x8xf32> to vector<8x8xf32>
    %1538 = vector.shape_cast %1535 : vector<8x8xf32> to vector<1x8x8xf32>
    tpu.vector_store %arg9[%c3_444, %c1_445, %c1_446], %1538 {strides = array<i32>} : memref<4x10x10xf32, #tpu.memory_space<vmem>>, vector<1x8x8xf32>,
    %c0_447 = arith.constant 0 : index
    %1539 = memref.load %arg5[%c0_447] : memref<2xf32, #tpu.memory_space<smem>>
    %1540 = vector.broadcast %1539 : f32 to vector<8x8xf32>
    %c1_448 = arith.constant 1 : index
    %1541 = memref.load %arg5[%c1_448] : memref<2xf32, #tpu.memory_space<smem>>
    %1542 = vector.broadcast %1541 : f32 to vector<8x8xf32>
    %c0_449 = arith.constant 0 : index
    %c0_450 = arith.constant 0 : index
    %c0_451 = arith.constant 0 : index
    %1543 = vector.load %arg9[%c0_449, %c0_450, %c0_451] : memref<4x10x10xf32, #tpu.memory_space<vmem>>, vector<1x8x8xf32>
    %1544 = vector.shape_cast %1543 : vector<1x8x8xf32> to vector<8x8xf32>
    %c0_452 = arith.constant 0 : index
    %1545 = memref.load %arg4[%c0_452] : memref<72xf32, #tpu.memory_space<smem>>
    %1546 = vector.broadcast %1545 : f32 to vector<8x8xf32>
    %1547 = arith.mulf %1546, %1544 : vector<8x8xf32>
    %1548 = arith.addf %1540, %1547 : vector<8x8xf32>
    %c1_453 = arith.constant 1 : index
    %1549 = memref.load %arg4[%c1_453] : memref<72xf32, #tpu.memory_space<smem>>
    %1550 = vector.broadcast %1549 : f32 to vector<8x8xf32>
    %1551 = arith.mulf %1550, %1544 : vector<8x8xf32>
    %1552 = arith.addf %1542, %1551 : vector<8x8xf32>
    %c1_454 = arith.constant 1 : index
    %c0_455 = arith.constant 0 : index
    %c0_456 = arith.constant 0 : index
    %1553 = vector.load %arg9[%c1_454, %c0_455, %c0_456] : memref<4x10x10xf32, #tpu.memory_space<vmem>>, vector<1x8x8xf32>
    %1554 = vector.shape_cast %1553 : vector<1x8x8xf32> to vector<8x8xf32>
    %c2_457 = arith.constant 2 : index
    %1555 = memref.load %arg4[%c2_457] : memref<72xf32, #tpu.memory_space<smem>>
    %1556 = vector.broadcast %1555 : f32 to vector<8x8xf32>
    %1557 = arith.mulf %1556, %1554 : vector<8x8xf32>
    %1558 = arith.addf %1548, %1557 : vector<8x8xf32>
    %c3_458 = arith.constant 3 : index
    %1559 = memref.load %arg4[%c3_458] : memref<72xf32, #tpu.memory_space<smem>>
    %1560 = vector.broadcast %1559 : f32 to vector<8x8xf32>
    %1561 = arith.mulf %1560, %1554 : vector<8x8xf32>
    %1562 = arith.addf %1552, %1561 : vector<8x8xf32>
    %c2_459 = arith.constant 2 : index
    %c0_460 = arith.constant 0 : index
    %c0_461 = arith.constant 0 : index
    %1563 = vector.load %arg9[%c2_459, %c0_460, %c0_461] : memref<4x10x10xf32, #tpu.memory_space<vmem>>, vector<1x8x8xf32>
    %1564 = vector.shape_cast %1563 : vector<1x8x8xf32> to vector<8x8xf32>
    %c4_462 = arith.constant 4 : index
    %1565 = memref.load %arg4[%c4_462] : memref<72xf32, #tpu.memory_space<smem>>
    %1566 = vector.broadcast %1565 : f32 to vector<8x8xf32>
    %1567 = arith.mulf %1566, %1564 : vector<8x8xf32>
    %1568 = arith.addf %1558, %1567 : vector<8x8xf32>
    %c5_463 = arith.constant 5 : index
    %1569 = memref.load %arg4[%c5_463] : memref<72xf32, #tpu.memory_space<smem>>
    %1570 = vector.broadcast %1569 : f32 to vector<8x8xf32>
    %1571 = arith.mulf %1570, %1564 : vector<8x8xf32>
    %1572 = arith.addf %1562, %1571 : vector<8x8xf32>
    %c3_464 = arith.constant 3 : index
    %c0_465 = arith.constant 0 : index
    %c0_466 = arith.constant 0 : index
    %1573 = vector.load %arg9[%c3_464, %c0_465, %c0_466] : memref<4x10x10xf32, #tpu.memory_space<vmem>>, vector<1x8x8xf32>
    %1574 = vector.shape_cast %1573 : vector<1x8x8xf32> to vector<8x8xf32>
    %c6_467 = arith.constant 6 : index
    %1575 = memref.load %arg4[%c6_467] : memref<72xf32, #tpu.memory_space<smem>>
    %1576 = vector.broadcast %1575 : f32 to vector<8x8xf32>
    %1577 = arith.mulf %1576, %1574 : vector<8x8xf32>
    %1578 = arith.addf %1568, %1577 : vector<8x8xf32>
    %c7_468 = arith.constant 7 : index
    %1579 = memref.load %arg4[%c7_468] : memref<72xf32, #tpu.memory_space<smem>>
    %1580 = vector.broadcast %1579 : f32 to vector<8x8xf32>
    %1581 = arith.mulf %1580, %1574 : vector<8x8xf32>
    %1582 = arith.addf %1572, %1581 : vector<8x8xf32>
    %c0_469 = arith.constant 0 : index
    %c0_470 = arith.constant 0 : index
    %c1_471 = arith.constant 1 : index
    %1583 = vector.load %arg9[%c0_469, %c0_470, %c1_471] : memref<4x10x10xf32, #tpu.memory_space<vmem>>, vector<1x8x8xf32>
    %1584 = vector.shape_cast %1583 : vector<1x8x8xf32> to vector<8x8xf32>
    %c8_472 = arith.constant 8 : index
    %1585 = memref.load %arg4[%c8_472] : memref<72xf32, #tpu.memory_space<smem>>
    %1586 = vector.broadcast %1585 : f32 to vector<8x8xf32>
    %1587 = arith.mulf %1586, %1584 : vector<8x8xf32>
    %1588 = arith.addf %1578, %1587 : vector<8x8xf32>
    %c9_473 = arith.constant 9 : index
    %1589 = memref.load %arg4[%c9_473] : memref<72xf32, #tpu.memory_space<smem>>
    %1590 = vector.broadcast %1589 : f32 to vector<8x8xf32>
    %1591 = arith.mulf %1590, %1584 : vector<8x8xf32>
    %1592 = arith.addf %1582, %1591 : vector<8x8xf32>
    %c1_474 = arith.constant 1 : index
    %c0_475 = arith.constant 0 : index
    %c1_476 = arith.constant 1 : index
    %1593 = vector.load %arg9[%c1_474, %c0_475, %c1_476] : memref<4x10x10xf32, #tpu.memory_space<vmem>>, vector<1x8x8xf32>
    %1594 = vector.shape_cast %1593 : vector<1x8x8xf32> to vector<8x8xf32>
    %c10_477 = arith.constant 10 : index
    %1595 = memref.load %arg4[%c10_477] : memref<72xf32, #tpu.memory_space<smem>>
    %1596 = vector.broadcast %1595 : f32 to vector<8x8xf32>
    %1597 = arith.mulf %1596, %1594 : vector<8x8xf32>
    %1598 = arith.addf %1588, %1597 : vector<8x8xf32>
    %c11_478 = arith.constant 11 : index
    %1599 = memref.load %arg4[%c11_478] : memref<72xf32, #tpu.memory_space<smem>>
    %1600 = vector.broadcast %1599 : f32 to vector<8x8xf32>
    %1601 = arith.mulf %1600, %1594 : vector<8x8xf32>
    %1602 = arith.addf %1592, %1601 : vector<8x8xf32>
    %c2_479 = arith.constant 2 : index
    %c0_480 = arith.constant 0 : index
    %c1_481 = arith.constant 1 : index
    %1603 = vector.load %arg9[%c2_479, %c0_480, %c1_481] : memref<4x10x10xf32, #tpu.memory_space<vmem>>, vector<1x8x8xf32>
    %1604 = vector.shape_cast %1603 : vector<1x8x8xf32> to vector<8x8xf32>
    %c12_482 = arith.constant 12 : index
    %1605 = memref.load %arg4[%c12_482] : memref<72xf32, #tpu.memory_space<smem>>
    %1606 = vector.broadcast %1605 : f32 to vector<8x8xf32>
    %1607 = arith.mulf %1606, %1604 : vector<8x8xf32>
    %1608 = arith.addf %1598, %1607 : vector<8x8xf32>
    %c13_483 = arith.constant 13 : index
    %1609 = memref.load %arg4[%c13_483] : memref<72xf32, #tpu.memory_space<smem>>
    %1610 = vector.broadcast %1609 : f32 to vector<8x8xf32>
    %1611 = arith.mulf %1610, %1604 : vector<8x8xf32>
    %1612 = arith.addf %1602, %1611 : vector<8x8xf32>
    %c3_484 = arith.constant 3 : index
    %c0_485 = arith.constant 0 : index
    %c1_486 = arith.constant 1 : index
    %1613 = vector.load %arg9[%c3_484, %c0_485, %c1_486] : memref<4x10x10xf32, #tpu.memory_space<vmem>>, vector<1x8x8xf32>
    %1614 = vector.shape_cast %1613 : vector<1x8x8xf32> to vector<8x8xf32>
    %c14_487 = arith.constant 14 : index
    %1615 = memref.load %arg4[%c14_487] : memref<72xf32, #tpu.memory_space<smem>>
    %1616 = vector.broadcast %1615 : f32 to vector<8x8xf32>
    %1617 = arith.mulf %1616, %1614 : vector<8x8xf32>
    %1618 = arith.addf %1608, %1617 : vector<8x8xf32>
    %c15_488 = arith.constant 15 : index
    %1619 = memref.load %arg4[%c15_488] : memref<72xf32, #tpu.memory_space<smem>>
    %1620 = vector.broadcast %1619 : f32 to vector<8x8xf32>
    %1621 = arith.mulf %1620, %1614 : vector<8x8xf32>
    %1622 = arith.addf %1612, %1621 : vector<8x8xf32>
    %c0_489 = arith.constant 0 : index
    %c0_490 = arith.constant 0 : index
    %c2_491 = arith.constant 2 : index
    %1623 = vector.load %arg9[%c0_489, %c0_490, %c2_491] : memref<4x10x10xf32, #tpu.memory_space<vmem>>, vector<1x8x8xf32>
    %1624 = vector.shape_cast %1623 : vector<1x8x8xf32> to vector<8x8xf32>
    %c16_492 = arith.constant 16 : index
    %1625 = memref.load %arg4[%c16_492] : memref<72xf32, #tpu.memory_space<smem>>
    %1626 = vector.broadcast %1625 : f32 to vector<8x8xf32>
    %1627 = arith.mulf %1626, %1624 : vector<8x8xf32>
    %1628 = arith.addf %1618, %1627 : vector<8x8xf32>
    %c17_493 = arith.constant 17 : index
    %1629 = memref.load %arg4[%c17_493] : memref<72xf32, #tpu.memory_space<smem>>
    %1630 = vector.broadcast %1629 : f32 to vector<8x8xf32>
    %1631 = arith.mulf %1630, %1624 : vector<8x8xf32>
    %1632 = arith.addf %1622, %1631 : vector<8x8xf32>
    %c1_494 = arith.constant 1 : index
    %c0_495 = arith.constant 0 : index
    %c2_496 = arith.constant 2 : index
    %1633 = vector.load %arg9[%c1_494, %c0_495, %c2_496] : memref<4x10x10xf32, #tpu.memory_space<vmem>>, vector<1x8x8xf32>
    %1634 = vector.shape_cast %1633 : vector<1x8x8xf32> to vector<8x8xf32>
    %c18_497 = arith.constant 18 : index
    %1635 = memref.load %arg4[%c18_497] : memref<72xf32, #tpu.memory_space<smem>>
    %1636 = vector.broadcast %1635 : f32 to vector<8x8xf32>
    %1637 = arith.mulf %1636, %1634 : vector<8x8xf32>
    %1638 = arith.addf %1628, %1637 : vector<8x8xf32>
    %c19_498 = arith.constant 19 : index
    %1639 = memref.load %arg4[%c19_498] : memref<72xf32, #tpu.memory_space<smem>>
    %1640 = vector.broadcast %1639 : f32 to vector<8x8xf32>
    %1641 = arith.mulf %1640, %1634 : vector<8x8xf32>
    %1642 = arith.addf %1632, %1641 : vector<8x8xf32>
    %c2_499 = arith.constant 2 : index
    %c0_500 = arith.constant 0 : index
    %c2_501 = arith.constant 2 : index
    %1643 = vector.load %arg9[%c2_499, %c0_500, %c2_501] : memref<4x10x10xf32, #tpu.memory_space<vmem>>, vector<1x8x8xf32>
    %1644 = vector.shape_cast %1643 : vector<1x8x8xf32> to vector<8x8xf32>
    %c20_502 = arith.constant 20 : index
    %1645 = memref.load %arg4[%c20_502] : memref<72xf32, #tpu.memory_space<smem>>
    %1646 = vector.broadcast %1645 : f32 to vector<8x8xf32>
    %1647 = arith.mulf %1646, %1644 : vector<8x8xf32>
    %1648 = arith.addf %1638, %1647 : vector<8x8xf32>
    %c21_503 = arith.constant 21 : index
    %1649 = memref.load %arg4[%c21_503] : memref<72xf32, #tpu.memory_space<smem>>
    %1650 = vector.broadcast %1649 : f32 to vector<8x8xf32>
    %1651 = arith.mulf %1650, %1644 : vector<8x8xf32>
    %1652 = arith.addf %1642, %1651 : vector<8x8xf32>
    %c3_504 = arith.constant 3 : index
    %c0_505 = arith.constant 0 : index
    %c2_506 = arith.constant 2 : index
    %1653 = vector.load %arg9[%c3_504, %c0_505, %c2_506] : memref<4x10x10xf32, #tpu.memory_space<vmem>>, vector<1x8x8xf32>
    %1654 = vector.shape_cast %1653 : vector<1x8x8xf32> to vector<8x8xf32>
    %c22_507 = arith.constant 22 : index
    %1655 = memref.load %arg4[%c22_507] : memref<72xf32, #tpu.memory_space<smem>>
    %1656 = vector.broadcast %1655 : f32 to vector<8x8xf32>
    %1657 = arith.mulf %1656, %1654 : vector<8x8xf32>
    %1658 = arith.addf %1648, %1657 : vector<8x8xf32>
    %c23_508 = arith.constant 23 : index
    %1659 = memref.load %arg4[%c23_508] : memref<72xf32, #tpu.memory_space<smem>>
    %1660 = vector.broadcast %1659 : f32 to vector<8x8xf32>
    %1661 = arith.mulf %1660, %1654 : vector<8x8xf32>
    %1662 = arith.addf %1652, %1661 : vector<8x8xf32>
    %c0_509 = arith.constant 0 : index
    %c1_510 = arith.constant 1 : index
    %c0_511 = arith.constant 0 : index
    %1663 = vector.load %arg9[%c0_509, %c1_510, %c0_511] : memref<4x10x10xf32, #tpu.memory_space<vmem>>, vector<1x8x8xf32>
    %1664 = vector.shape_cast %1663 : vector<1x8x8xf32> to vector<8x8xf32>
    %c24_512 = arith.constant 24 : index
    %1665 = memref.load %arg4[%c24_512] : memref<72xf32, #tpu.memory_space<smem>>
    %1666 = vector.broadcast %1665 : f32 to vector<8x8xf32>
    %1667 = arith.mulf %1666, %1664 : vector<8x8xf32>
    %1668 = arith.addf %1658, %1667 : vector<8x8xf32>
    %c25_513 = arith.constant 25 : index
    %1669 = memref.load %arg4[%c25_513] : memref<72xf32, #tpu.memory_space<smem>>
    %1670 = vector.broadcast %1669 : f32 to vector<8x8xf32>
    %1671 = arith.mulf %1670, %1664 : vector<8x8xf32>
    %1672 = arith.addf %1662, %1671 : vector<8x8xf32>
    %c1_514 = arith.constant 1 : index
    %c1_515 = arith.constant 1 : index
    %c0_516 = arith.constant 0 : index
    %1673 = vector.load %arg9[%c1_514, %c1_515, %c0_516] : memref<4x10x10xf32, #tpu.memory_space<vmem>>, vector<1x8x8xf32>
    %1674 = vector.shape_cast %1673 : vector<1x8x8xf32> to vector<8x8xf32>
    %c26_517 = arith.constant 26 : index
    %1675 = memref.load %arg4[%c26_517] : memref<72xf32, #tpu.memory_space<smem>>
    %1676 = vector.broadcast %1675 : f32 to vector<8x8xf32>
    %1677 = arith.mulf %1676, %1674 : vector<8x8xf32>
    %1678 = arith.addf %1668, %1677 : vector<8x8xf32>
    %c27_518 = arith.constant 27 : index
    %1679 = memref.load %arg4[%c27_518] : memref<72xf32, #tpu.memory_space<smem>>
    %1680 = vector.broadcast %1679 : f32 to vector<8x8xf32>
    %1681 = arith.mulf %1680, %1674 : vector<8x8xf32>
    %1682 = arith.addf %1672, %1681 : vector<8x8xf32>
    %c2_519 = arith.constant 2 : index
    %c1_520 = arith.constant 1 : index
    %c0_521 = arith.constant 0 : index
    %1683 = vector.load %arg9[%c2_519, %c1_520, %c0_521] : memref<4x10x10xf32, #tpu.memory_space<vmem>>, vector<1x8x8xf32>
    %1684 = vector.shape_cast %1683 : vector<1x8x8xf32> to vector<8x8xf32>
    %c28_522 = arith.constant 28 : index
    %1685 = memref.load %arg4[%c28_522] : memref<72xf32, #tpu.memory_space<smem>>
    %1686 = vector.broadcast %1685 : f32 to vector<8x8xf32>
    %1687 = arith.mulf %1686, %1684 : vector<8x8xf32>
    %1688 = arith.addf %1678, %1687 : vector<8x8xf32>
    %c29_523 = arith.constant 29 : index
    %1689 = memref.load %arg4[%c29_523] : memref<72xf32, #tpu.memory_space<smem>>
    %1690 = vector.broadcast %1689 : f32 to vector<8x8xf32>
    %1691 = arith.mulf %1690, %1684 : vector<8x8xf32>
    %1692 = arith.addf %1682, %1691 : vector<8x8xf32>
    %c3_524 = arith.constant 3 : index
    %c1_525 = arith.constant 1 : index
    %c0_526 = arith.constant 0 : index
    %1693 = vector.load %arg9[%c3_524, %c1_525, %c0_526] : memref<4x10x10xf32, #tpu.memory_space<vmem>>, vector<1x8x8xf32>
    %1694 = vector.shape_cast %1693 : vector<1x8x8xf32> to vector<8x8xf32>
    %c30_527 = arith.constant 30 : index
    %1695 = memref.load %arg4[%c30_527] : memref<72xf32, #tpu.memory_space<smem>>
    %1696 = vector.broadcast %1695 : f32 to vector<8x8xf32>
    %1697 = arith.mulf %1696, %1694 : vector<8x8xf32>
    %1698 = arith.addf %1688, %1697 : vector<8x8xf32>
    %c31_528 = arith.constant 31 : index
    %1699 = memref.load %arg4[%c31_528] : memref<72xf32, #tpu.memory_space<smem>>
    %1700 = vector.broadcast %1699 : f32 to vector<8x8xf32>
    %1701 = arith.mulf %1700, %1694 : vector<8x8xf32>
    %1702 = arith.addf %1692, %1701 : vector<8x8xf32>
    %c0_529 = arith.constant 0 : index
    %c1_530 = arith.constant 1 : index
    %c1_531 = arith.constant 1 : index
    %1703 = vector.load %arg9[%c0_529, %c1_530, %c1_531] : memref<4x10x10xf32, #tpu.memory_space<vmem>>, vector<1x8x8xf32>
    %1704 = vector.shape_cast %1703 : vector<1x8x8xf32> to vector<8x8xf32>
    %c32_532 = arith.constant 32 : index
    %1705 = memref.load %arg4[%c32_532] : memref<72xf32, #tpu.memory_space<smem>>
    %1706 = vector.broadcast %1705 : f32 to vector<8x8xf32>
    %1707 = arith.mulf %1706, %1704 : vector<8x8xf32>
    %1708 = arith.addf %1698, %1707 : vector<8x8xf32>
    %c33_533 = arith.constant 33 : index
    %1709 = memref.load %arg4[%c33_533] : memref<72xf32, #tpu.memory_space<smem>>
    %1710 = vector.broadcast %1709 : f32 to vector<8x8xf32>
    %1711 = arith.mulf %1710, %1704 : vector<8x8xf32>
    %1712 = arith.addf %1702, %1711 : vector<8x8xf32>
    %c1_534 = arith.constant 1 : index
    %c1_535 = arith.constant 1 : index
    %c1_536 = arith.constant 1 : index
    %1713 = vector.load %arg9[%c1_534, %c1_535, %c1_536] : memref<4x10x10xf32, #tpu.memory_space<vmem>>, vector<1x8x8xf32>
    %1714 = vector.shape_cast %1713 : vector<1x8x8xf32> to vector<8x8xf32>
    %c34_537 = arith.constant 34 : index
    %1715 = memref.load %arg4[%c34_537] : memref<72xf32, #tpu.memory_space<smem>>
    %1716 = vector.broadcast %1715 : f32 to vector<8x8xf32>
    %1717 = arith.mulf %1716, %1714 : vector<8x8xf32>
    %1718 = arith.addf %1708, %1717 : vector<8x8xf32>
    %c35_538 = arith.constant 35 : index
    %1719 = memref.load %arg4[%c35_538] : memref<72xf32, #tpu.memory_space<smem>>
    %1720 = vector.broadcast %1719 : f32 to vector<8x8xf32>
    %1721 = arith.mulf %1720, %1714 : vector<8x8xf32>
    %1722 = arith.addf %1712, %1721 : vector<8x8xf32>
    %c2_539 = arith.constant 2 : index
    %c1_540 = arith.constant 1 : index
    %c1_541 = arith.constant 1 : index
    %1723 = vector.load %arg9[%c2_539, %c1_540, %c1_541] : memref<4x10x10xf32, #tpu.memory_space<vmem>>, vector<1x8x8xf32>
    %1724 = vector.shape_cast %1723 : vector<1x8x8xf32> to vector<8x8xf32>
    %c36_542 = arith.constant 36 : index
    %1725 = memref.load %arg4[%c36_542] : memref<72xf32, #tpu.memory_space<smem>>
    %1726 = vector.broadcast %1725 : f32 to vector<8x8xf32>
    %1727 = arith.mulf %1726, %1724 : vector<8x8xf32>
    %1728 = arith.addf %1718, %1727 : vector<8x8xf32>
    %c37_543 = arith.constant 37 : index
    %1729 = memref.load %arg4[%c37_543] : memref<72xf32, #tpu.memory_space<smem>>
    %1730 = vector.broadcast %1729 : f32 to vector<8x8xf32>
    %1731 = arith.mulf %1730, %1724 : vector<8x8xf32>
    %1732 = arith.addf %1722, %1731 : vector<8x8xf32>
    %c3_544 = arith.constant 3 : index
    %c1_545 = arith.constant 1 : index
    %c1_546 = arith.constant 1 : index
    %1733 = vector.load %arg9[%c3_544, %c1_545, %c1_546] : memref<4x10x10xf32, #tpu.memory_space<vmem>>, vector<1x8x8xf32>
    %1734 = vector.shape_cast %1733 : vector<1x8x8xf32> to vector<8x8xf32>
    %c38_547 = arith.constant 38 : index
    %1735 = memref.load %arg4[%c38_547] : memref<72xf32, #tpu.memory_space<smem>>
    %1736 = vector.broadcast %1735 : f32 to vector<8x8xf32>
    %1737 = arith.mulf %1736, %1734 : vector<8x8xf32>
    %1738 = arith.addf %1728, %1737 : vector<8x8xf32>
    %c39_548 = arith.constant 39 : index
    %1739 = memref.load %arg4[%c39_548] : memref<72xf32, #tpu.memory_space<smem>>
    %1740 = vector.broadcast %1739 : f32 to vector<8x8xf32>
    %1741 = arith.mulf %1740, %1734 : vector<8x8xf32>
    %1742 = arith.addf %1732, %1741 : vector<8x8xf32>
    %c0_549 = arith.constant 0 : index
    %c1_550 = arith.constant 1 : index
    %c2_551 = arith.constant 2 : index
    %1743 = vector.load %arg9[%c0_549, %c1_550, %c2_551] : memref<4x10x10xf32, #tpu.memory_space<vmem>>, vector<1x8x8xf32>
    %1744 = vector.shape_cast %1743 : vector<1x8x8xf32> to vector<8x8xf32>
    %c40_552 = arith.constant 40 : index
    %1745 = memref.load %arg4[%c40_552] : memref<72xf32, #tpu.memory_space<smem>>
    %1746 = vector.broadcast %1745 : f32 to vector<8x8xf32>
    %1747 = arith.mulf %1746, %1744 : vector<8x8xf32>
    %1748 = arith.addf %1738, %1747 : vector<8x8xf32>
    %c41_553 = arith.constant 41 : index
    %1749 = memref.load %arg4[%c41_553] : memref<72xf32, #tpu.memory_space<smem>>
    %1750 = vector.broadcast %1749 : f32 to vector<8x8xf32>
    %1751 = arith.mulf %1750, %1744 : vector<8x8xf32>
    %1752 = arith.addf %1742, %1751 : vector<8x8xf32>
    %c1_554 = arith.constant 1 : index
    %c1_555 = arith.constant 1 : index
    %c2_556 = arith.constant 2 : index
    %1753 = vector.load %arg9[%c1_554, %c1_555, %c2_556] : memref<4x10x10xf32, #tpu.memory_space<vmem>>, vector<1x8x8xf32>
    %1754 = vector.shape_cast %1753 : vector<1x8x8xf32> to vector<8x8xf32>
    %c42_557 = arith.constant 42 : index
    %1755 = memref.load %arg4[%c42_557] : memref<72xf32, #tpu.memory_space<smem>>
    %1756 = vector.broadcast %1755 : f32 to vector<8x8xf32>
    %1757 = arith.mulf %1756, %1754 : vector<8x8xf32>
    %1758 = arith.addf %1748, %1757 : vector<8x8xf32>
    %c43_558 = arith.constant 43 : index
    %1759 = memref.load %arg4[%c43_558] : memref<72xf32, #tpu.memory_space<smem>>
    %1760 = vector.broadcast %1759 : f32 to vector<8x8xf32>
    %1761 = arith.mulf %1760, %1754 : vector<8x8xf32>
    %1762 = arith.addf %1752, %1761 : vector<8x8xf32>
    %c2_559 = arith.constant 2 : index
    %c1_560 = arith.constant 1 : index
    %c2_561 = arith.constant 2 : index
    %1763 = vector.load %arg9[%c2_559, %c1_560, %c2_561] : memref<4x10x10xf32, #tpu.memory_space<vmem>>, vector<1x8x8xf32>
    %1764 = vector.shape_cast %1763 : vector<1x8x8xf32> to vector<8x8xf32>
    %c44_562 = arith.constant 44 : index
    %1765 = memref.load %arg4[%c44_562] : memref<72xf32, #tpu.memory_space<smem>>
    %1766 = vector.broadcast %1765 : f32 to vector<8x8xf32>
    %1767 = arith.mulf %1766, %1764 : vector<8x8xf32>
    %1768 = arith.addf %1758, %1767 : vector<8x8xf32>
    %c45_563 = arith.constant 45 : index
    %1769 = memref.load %arg4[%c45_563] : memref<72xf32, #tpu.memory_space<smem>>
    %1770 = vector.broadcast %1769 : f32 to vector<8x8xf32>
    %1771 = arith.mulf %1770, %1764 : vector<8x8xf32>
    %1772 = arith.addf %1762, %1771 : vector<8x8xf32>
    %c3_564 = arith.constant 3 : index
    %c1_565 = arith.constant 1 : index
    %c2_566 = arith.constant 2 : index
    %1773 = vector.load %arg9[%c3_564, %c1_565, %c2_566] : memref<4x10x10xf32, #tpu.memory_space<vmem>>, vector<1x8x8xf32>
    %1774 = vector.shape_cast %1773 : vector<1x8x8xf32> to vector<8x8xf32>
    %c46_567 = arith.constant 46 : index
    %1775 = memref.load %arg4[%c46_567] : memref<72xf32, #tpu.memory_space<smem>>
    %1776 = vector.broadcast %1775 : f32 to vector<8x8xf32>
    %1777 = arith.mulf %1776, %1774 : vector<8x8xf32>
    %1778 = arith.addf %1768, %1777 : vector<8x8xf32>
    %c47_568 = arith.constant 47 : index
    %1779 = memref.load %arg4[%c47_568] : memref<72xf32, #tpu.memory_space<smem>>
    %1780 = vector.broadcast %1779 : f32 to vector<8x8xf32>
    %1781 = arith.mulf %1780, %1774 : vector<8x8xf32>
    %1782 = arith.addf %1772, %1781 : vector<8x8xf32>
    %c0_569 = arith.constant 0 : index
    %c2_570 = arith.constant 2 : index
    %c0_571 = arith.constant 0 : index
    %1783 = vector.load %arg9[%c0_569, %c2_570, %c0_571] : memref<4x10x10xf32, #tpu.memory_space<vmem>>, vector<1x8x8xf32>
    %1784 = vector.shape_cast %1783 : vector<1x8x8xf32> to vector<8x8xf32>
    %c48_572 = arith.constant 48 : index
    %1785 = memref.load %arg4[%c48_572] : memref<72xf32, #tpu.memory_space<smem>>
    %1786 = vector.broadcast %1785 : f32 to vector<8x8xf32>
    %1787 = arith.mulf %1786, %1784 : vector<8x8xf32>
    %1788 = arith.addf %1778, %1787 : vector<8x8xf32>
    %c49_573 = arith.constant 49 : index
    %1789 = memref.load %arg4[%c49_573] : memref<72xf32, #tpu.memory_space<smem>>
    %1790 = vector.broadcast %1789 : f32 to vector<8x8xf32>
    %1791 = arith.mulf %1790, %1784 : vector<8x8xf32>
    %1792 = arith.addf %1782, %1791 : vector<8x8xf32>
    %c1_574 = arith.constant 1 : index
    %c2_575 = arith.constant 2 : index
    %c0_576 = arith.constant 0 : index
    %1793 = vector.load %arg9[%c1_574, %c2_575, %c0_576] : memref<4x10x10xf32, #tpu.memory_space<vmem>>, vector<1x8x8xf32>
    %1794 = vector.shape_cast %1793 : vector<1x8x8xf32> to vector<8x8xf32>
    %c50_577 = arith.constant 50 : index
    %1795 = memref.load %arg4[%c50_577] : memref<72xf32, #tpu.memory_space<smem>>
    %1796 = vector.broadcast %1795 : f32 to vector<8x8xf32>
    %1797 = arith.mulf %1796, %1794 : vector<8x8xf32>
    %1798 = arith.addf %1788, %1797 : vector<8x8xf32>
    %c51_578 = arith.constant 51 : index
    %1799 = memref.load %arg4[%c51_578] : memref<72xf32, #tpu.memory_space<smem>>
    %1800 = vector.broadcast %1799 : f32 to vector<8x8xf32>
    %1801 = arith.mulf %1800, %1794 : vector<8x8xf32>
    %1802 = arith.addf %1792, %1801 : vector<8x8xf32>
    %c2_579 = arith.constant 2 : index
    %c2_580 = arith.constant 2 : index
    %c0_581 = arith.constant 0 : index
    %1803 = vector.load %arg9[%c2_579, %c2_580, %c0_581] : memref<4x10x10xf32, #tpu.memory_space<vmem>>, vector<1x8x8xf32>
    %1804 = vector.shape_cast %1803 : vector<1x8x8xf32> to vector<8x8xf32>
    %c52_582 = arith.constant 52 : index
    %1805 = memref.load %arg4[%c52_582] : memref<72xf32, #tpu.memory_space<smem>>
    %1806 = vector.broadcast %1805 : f32 to vector<8x8xf32>
    %1807 = arith.mulf %1806, %1804 : vector<8x8xf32>
    %1808 = arith.addf %1798, %1807 : vector<8x8xf32>
    %c53_583 = arith.constant 53 : index
    %1809 = memref.load %arg4[%c53_583] : memref<72xf32, #tpu.memory_space<smem>>
    %1810 = vector.broadcast %1809 : f32 to vector<8x8xf32>
    %1811 = arith.mulf %1810, %1804 : vector<8x8xf32>
    %1812 = arith.addf %1802, %1811 : vector<8x8xf32>
    %c3_584 = arith.constant 3 : index
    %c2_585 = arith.constant 2 : index
    %c0_586 = arith.constant 0 : index
    %1813 = vector.load %arg9[%c3_584, %c2_585, %c0_586] : memref<4x10x10xf32, #tpu.memory_space<vmem>>, vector<1x8x8xf32>
    %1814 = vector.shape_cast %1813 : vector<1x8x8xf32> to vector<8x8xf32>
    %c54_587 = arith.constant 54 : index
    %1815 = memref.load %arg4[%c54_587] : memref<72xf32, #tpu.memory_space<smem>>
    %1816 = vector.broadcast %1815 : f32 to vector<8x8xf32>
    %1817 = arith.mulf %1816, %1814 : vector<8x8xf32>
    %1818 = arith.addf %1808, %1817 : vector<8x8xf32>
    %c55_588 = arith.constant 55 : index
    %1819 = memref.load %arg4[%c55_588] : memref<72xf32, #tpu.memory_space<smem>>
    %1820 = vector.broadcast %1819 : f32 to vector<8x8xf32>
    %1821 = arith.mulf %1820, %1814 : vector<8x8xf32>
    %1822 = arith.addf %1812, %1821 : vector<8x8xf32>
    %c0_589 = arith.constant 0 : index
    %c2_590 = arith.constant 2 : index
    %c1_591 = arith.constant 1 : index
    %1823 = vector.load %arg9[%c0_589, %c2_590, %c1_591] : memref<4x10x10xf32, #tpu.memory_space<vmem>>, vector<1x8x8xf32>
    %1824 = vector.shape_cast %1823 : vector<1x8x8xf32> to vector<8x8xf32>
    %c56_592 = arith.constant 56 : index
    %1825 = memref.load %arg4[%c56_592] : memref<72xf32, #tpu.memory_space<smem>>
    %1826 = vector.broadcast %1825 : f32 to vector<8x8xf32>
    %1827 = arith.mulf %1826, %1824 : vector<8x8xf32>
    %1828 = arith.addf %1818, %1827 : vector<8x8xf32>
    %c57_593 = arith.constant 57 : index
    %1829 = memref.load %arg4[%c57_593] : memref<72xf32, #tpu.memory_space<smem>>
    %1830 = vector.broadcast %1829 : f32 to vector<8x8xf32>
    %1831 = arith.mulf %1830, %1824 : vector<8x8xf32>
    %1832 = arith.addf %1822, %1831 : vector<8x8xf32>
    %c1_594 = arith.constant 1 : index
    %c2_595 = arith.constant 2 : index
    %c1_596 = arith.constant 1 : index
    %1833 = vector.load %arg9[%c1_594, %c2_595, %c1_596] : memref<4x10x10xf32, #tpu.memory_space<vmem>>, vector<1x8x8xf32>
    %1834 = vector.shape_cast %1833 : vector<1x8x8xf32> to vector<8x8xf32>
    %c58_597 = arith.constant 58 : index
    %1835 = memref.load %arg4[%c58_597] : memref<72xf32, #tpu.memory_space<smem>>
    %1836 = vector.broadcast %1835 : f32 to vector<8x8xf32>
    %1837 = arith.mulf %1836, %1834 : vector<8x8xf32>
    %1838 = arith.addf %1828, %1837 : vector<8x8xf32>
    %c59_598 = arith.constant 59 : index
    %1839 = memref.load %arg4[%c59_598] : memref<72xf32, #tpu.memory_space<smem>>
    %1840 = vector.broadcast %1839 : f32 to vector<8x8xf32>
    %1841 = arith.mulf %1840, %1834 : vector<8x8xf32>
    %1842 = arith.addf %1832, %1841 : vector<8x8xf32>
    %c2_599 = arith.constant 2 : index
    %c2_600 = arith.constant 2 : index
    %c1_601 = arith.constant 1 : index
    %1843 = vector.load %arg9[%c2_599, %c2_600, %c1_601] : memref<4x10x10xf32, #tpu.memory_space<vmem>>, vector<1x8x8xf32>
    %1844 = vector.shape_cast %1843 : vector<1x8x8xf32> to vector<8x8xf32>
    %c60_602 = arith.constant 60 : index
    %1845 = memref.load %arg4[%c60_602] : memref<72xf32, #tpu.memory_space<smem>>
    %1846 = vector.broadcast %1845 : f32 to vector<8x8xf32>
    %1847 = arith.mulf %1846, %1844 : vector<8x8xf32>
    %1848 = arith.addf %1838, %1847 : vector<8x8xf32>
    %c61_603 = arith.constant 61 : index
    %1849 = memref.load %arg4[%c61_603] : memref<72xf32, #tpu.memory_space<smem>>
    %1850 = vector.broadcast %1849 : f32 to vector<8x8xf32>
    %1851 = arith.mulf %1850, %1844 : vector<8x8xf32>
    %1852 = arith.addf %1842, %1851 : vector<8x8xf32>
    %c3_604 = arith.constant 3 : index
    %c2_605 = arith.constant 2 : index
    %c1_606 = arith.constant 1 : index
    %1853 = vector.load %arg9[%c3_604, %c2_605, %c1_606] : memref<4x10x10xf32, #tpu.memory_space<vmem>>, vector<1x8x8xf32>
    %1854 = vector.shape_cast %1853 : vector<1x8x8xf32> to vector<8x8xf32>
    %c62_607 = arith.constant 62 : index
    %1855 = memref.load %arg4[%c62_607] : memref<72xf32, #tpu.memory_space<smem>>
    %1856 = vector.broadcast %1855 : f32 to vector<8x8xf32>
    %1857 = arith.mulf %1856, %1854 : vector<8x8xf32>
    %1858 = arith.addf %1848, %1857 : vector<8x8xf32>
    %c63_608 = arith.constant 63 : index
    %1859 = memref.load %arg4[%c63_608] : memref<72xf32, #tpu.memory_space<smem>>
    %1860 = vector.broadcast %1859 : f32 to vector<8x8xf32>
    %1861 = arith.mulf %1860, %1854 : vector<8x8xf32>
    %1862 = arith.addf %1852, %1861 : vector<8x8xf32>
    %c0_609 = arith.constant 0 : index
    %c2_610 = arith.constant 2 : index
    %c2_611 = arith.constant 2 : index
    %1863 = vector.load %arg9[%c0_609, %c2_610, %c2_611] : memref<4x10x10xf32, #tpu.memory_space<vmem>>, vector<1x8x8xf32>
    %1864 = vector.shape_cast %1863 : vector<1x8x8xf32> to vector<8x8xf32>
    %c64_612 = arith.constant 64 : index
    %1865 = memref.load %arg4[%c64_612] : memref<72xf32, #tpu.memory_space<smem>>
    %1866 = vector.broadcast %1865 : f32 to vector<8x8xf32>
    %1867 = arith.mulf %1866, %1864 : vector<8x8xf32>
    %1868 = arith.addf %1858, %1867 : vector<8x8xf32>
    %c65_613 = arith.constant 65 : index
    %1869 = memref.load %arg4[%c65_613] : memref<72xf32, #tpu.memory_space<smem>>
    %1870 = vector.broadcast %1869 : f32 to vector<8x8xf32>
    %1871 = arith.mulf %1870, %1864 : vector<8x8xf32>
    %1872 = arith.addf %1862, %1871 : vector<8x8xf32>
    %c1_614 = arith.constant 1 : index
    %c2_615 = arith.constant 2 : index
    %c2_616 = arith.constant 2 : index
    %1873 = vector.load %arg9[%c1_614, %c2_615, %c2_616] : memref<4x10x10xf32, #tpu.memory_space<vmem>>, vector<1x8x8xf32>
    %1874 = vector.shape_cast %1873 : vector<1x8x8xf32> to vector<8x8xf32>
    %c66_617 = arith.constant 66 : index
    %1875 = memref.load %arg4[%c66_617] : memref<72xf32, #tpu.memory_space<smem>>
    %1876 = vector.broadcast %1875 : f32 to vector<8x8xf32>
    %1877 = arith.mulf %1876, %1874 : vector<8x8xf32>
    %1878 = arith.addf %1868, %1877 : vector<8x8xf32>
    %c67_618 = arith.constant 67 : index
    %1879 = memref.load %arg4[%c67_618] : memref<72xf32, #tpu.memory_space<smem>>
    %1880 = vector.broadcast %1879 : f32 to vector<8x8xf32>
    %1881 = arith.mulf %1880, %1874 : vector<8x8xf32>
    %1882 = arith.addf %1872, %1881 : vector<8x8xf32>
    %c2_619 = arith.constant 2 : index
    %c2_620 = arith.constant 2 : index
    %c2_621 = arith.constant 2 : index
    %1883 = vector.load %arg9[%c2_619, %c2_620, %c2_621] : memref<4x10x10xf32, #tpu.memory_space<vmem>>, vector<1x8x8xf32>
    %1884 = vector.shape_cast %1883 : vector<1x8x8xf32> to vector<8x8xf32>
    %c68_622 = arith.constant 68 : index
    %1885 = memref.load %arg4[%c68_622] : memref<72xf32, #tpu.memory_space<smem>>
    %1886 = vector.broadcast %1885 : f32 to vector<8x8xf32>
    %1887 = arith.mulf %1886, %1884 : vector<8x8xf32>
    %1888 = arith.addf %1878, %1887 : vector<8x8xf32>
    %c69_623 = arith.constant 69 : index
    %1889 = memref.load %arg4[%c69_623] : memref<72xf32, #tpu.memory_space<smem>>
    %1890 = vector.broadcast %1889 : f32 to vector<8x8xf32>
    %1891 = arith.mulf %1890, %1884 : vector<8x8xf32>
    %1892 = arith.addf %1882, %1891 : vector<8x8xf32>
    %c3_624 = arith.constant 3 : index
    %c2_625 = arith.constant 2 : index
    %c2_626 = arith.constant 2 : index
    %1893 = vector.load %arg9[%c3_624, %c2_625, %c2_626] : memref<4x10x10xf32, #tpu.memory_space<vmem>>, vector<1x8x8xf32>
    %1894 = vector.shape_cast %1893 : vector<1x8x8xf32> to vector<8x8xf32>
    %c70_627 = arith.constant 70 : index
    %1895 = memref.load %arg4[%c70_627] : memref<72xf32, #tpu.memory_space<smem>>
    %1896 = vector.broadcast %1895 : f32 to vector<8x8xf32>
    %1897 = arith.mulf %1896, %1894 : vector<8x8xf32>
    %1898 = arith.addf %1888, %1897 : vector<8x8xf32>
    %c71_628 = arith.constant 71 : index
    %1899 = memref.load %arg4[%c71_628] : memref<72xf32, #tpu.memory_space<smem>>
    %1900 = vector.broadcast %1899 : f32 to vector<8x8xf32>
    %1901 = arith.mulf %1900, %1894 : vector<8x8xf32>
    %1902 = arith.addf %1892, %1901 : vector<8x8xf32>
    %cst_629 = arith.constant 0.00999999977 : f32
    %1903 = vector.broadcast %cst_629 : f32 to vector<8x8xf32>
    %1904 = arith.mulf %1903, %1898 : vector<8x8xf32>
    %1905 = arith.maximumf %1898, %1904 : vector<8x8xf32>
    %c0_630 = arith.constant 0 : index
    %c0_631 = arith.constant 0 : index
    %c0_632 = arith.constant 0 : index
    %c0_633 = arith.constant 0 : index
    %1906 = vector.load %arg6[%c0_630, %c0_631, %c0_632, %c0_633] : memref<1x2x8x8xf32, #tpu.memory_space<vmem>>, vector<1x1x8x8xf32>
    %1907 = vector.shape_cast %1906 : vector<1x1x8x8xf32> to vector<8x8xf32>
    %1908 = vector.shape_cast %1905 : vector<8x8xf32> to vector<1x1x8x8xf32>
    tpu.vector_store %arg6[%c0_630, %c0_631, %c0_632, %c0_633], %1908 {strides = array<i32>} : memref<1x2x8x8xf32, #tpu.memory_space<vmem>>, vector<1x1x8x8xf32>,
    %cst_634 = arith.constant 0.00999999977 : f32
    %1909 = vector.broadcast %cst_634 : f32 to vector<8x8xf32>
    %1910 = arith.mulf %1909, %1902 : vector<8x8xf32>
    %1911 = arith.maximumf %1902, %1910 : vector<8x8xf32>
    %c0_635 = arith.constant 0 : index
    %c1_636 = arith.constant 1 : index
    %c0_637 = arith.constant 0 : index
    %c0_638 = arith.constant 0 : index
    %1912 = vector.load %arg6[%c0_635, %c1_636, %c0_637, %c0_638] : memref<1x2x8x8xf32, #tpu.memory_space<vmem>>, vector<1x1x8x8xf32>
    %1913 = vector.shape_cast %1912 : vector<1x1x8x8xf32> to vector<8x8xf32>
    %1914 = vector.shape_cast %1911 : vector<8x8xf32> to vector<1x1x8x8xf32>
    tpu.vector_store %arg6[%c0_635, %c1_636, %c0_637, %c0_638], %1914 {strides = array<i32>} : memref<1x2x8x8xf32, #tpu.memory_space<vmem>>, vector<1x1x8x8xf32>,
    return
  }
  func.func @transform_0(%arg0: i32) -> (i32, i32, i32, i32) {
    %c0_i32 = arith.constant 0 : i32
    %c0_i32_0 = arith.constant 0 : i32
    %c0_i32_1 = arith.constant 0 : i32
    %c0_i32_2 = arith.constant 0 : i32
    return %arg0, %c0_i32, %c0_i32_0, %c0_i32_1 : i32, i32, i32, i32
  }
  func.func @transform_1(%arg0: i32) -> i32 {
    %c0_i32 = arith.constant 0 : i32
    %c0_i32_0 = arith.constant 0 : i32
    return %c0_i32 : i32
  }
  func.func @transform_2(%arg0: i32) -> i32 {
    %c0_i32 = arith.constant 0 : i32
    %c0_i32_0 = arith.constant 0 : i32
    return %c0_i32 : i32
  }
  func.func @transform_3(%arg0: i32) -> i32 {
    %c0_i32 = arith.constant 0 : i32
    %c0_i32_0 = arith.constant 0 : i32
    return %c0_i32 : i32
  }
  func.func @transform_4(%arg0: i32) -> i32 {
    %c0_i32 = arith.constant 0 : i32
    %c0_i32_0 = arith.constant 0 : i32
    return %c0_i32 : i32
  }
  func.func @transform_5(%arg0: i32) -> (i32, i32, i32, i32) {
    %c0_i32 = arith.constant 0 : i32
    %c0_i32_0 = arith.constant 0 : i32
    %c0_i32_1 = arith.constant 0 : i32
    %c0_i32_2 = arith.constant 0 : i32
    return %arg0, %c0_i32, %c0_i32_0, %c0_i32_1 : i32, i32, i32, i32
  }
}

</mosaic_0001>

<bundles_post_ra>
// kernel: stride_module_forward.1
= control target key start
LH: loop header
LB: loop body
LE: loop exit
PB: predicated region body
PF: predicated region fallthrough
CT: control target
= control target key end

     0   :  { %s11106_s0 = inlined_call_operand.vmem [shape: f32[2,8,16,16], index: 0, kind: input, shape index: {}]   ;;  %s11107_s1 = inlined_call_operand.vmem [shape: f32[288], index: 1, kind: input, shape index: {}]   ;;  %s11108_s2 = inlined_call_operand.vmem [shape: f32[4], index: 2, kind: input, shape index: {}]   ;;  %s11109_s3 = inlined_call_operand.vmem [shape: f32[72], index: 3, kind: input, shape index: {}]   ;;  %s11110_s4 = inlined_call_operand.vmem [shape: f32[2], index: 4, kind: input, shape index: {}]   ;;  %s11111_s5 = inlined_call_operand.hbm [shape: f32[2,2,8,8], index: 5, kind: output, shape index: {}]  }
   0x1   :  { %11135 = sst [smem:[#allocation69_spill]] %s11106_s0 }
   0x2   :  { %11136 = sst [smem:[#allocation70_spill]] %s11107_s1 }
   0x3   :  { %11137 = sst [smem:[#allocation71_spill]] %s11108_s2 }
   0x4   :  { %11138 = sst [smem:[#allocation72_spill]] %s11109_s3 }
   0x5   :  { %11139 = sst [smem:[#allocation73_spill]] %s11110_s4 }
   0x6   :  { %11140 = sst [smem:[#allocation74_spill]] %s11111_s5 }
   0x7   :  { %10 = vsyncpa [#allocation7], 0 }
   0x8   :  { %11 = vsyncpa [#allocation9], 0 }
   0x9   :  { %12 = vsyncpa [#allocation12], 0 }
   0xa   :  { %13 = vsyncpa [#allocation6], 0 }
   0xb   :  { %15 = vsyncpa [#allocation6 + $0x1], 0  ;;  %s8353_s18 = smov 0   ;;  %s8355_s19 = smov 0  }
   0xc   :  { %s8357_s20 = smov 0   ;;  %s8359_s21 = smov 0  }
   0xd LB: > { %11141 = sst [smem:[#allocation18_spill]] %s8296_s18  ;;  %s8374_s22 = sadd.s32 4294967295, %s8308_s21   ;;  %s8308_s21 = sphi %s8359_s21, %s11277_s21   ;;  %s8304_s20 = sphi %s8357_s20, %s11280_s20   ;;  %s8300_s19 = sphi %s8355_s19, %s11279_s19   ;;  %s8296_s18 = sphi %s8353_s18, %s11278_s18  }
   0xe   : > { %11142 = sst [smem:[#allocation19_spill]] %s8300_s19  ;;  %s6703_s23 = sadd.s32 4294967294, %s8308_s21  }
   0xf   : > { %11143 = sst [smem:[#allocation20_spill]] %s8304_s20  ;;  %s8378_s24 = sadd.s32 1, %s8308_s21  }
  0x10   : > { %11144 = sst [smem:[#allocation21_spill]] %s8308_s21  ;;  %s138_s25 = sadd.s32 1, %s8304_s20 }
  0x11   : > { %11145 = sst [smem:[#allocation22_spill]] %s8374_s22  ;;  %s135_s26 = ssub.s32 %s8308_s21, %s8378_s24 }
  0x12   : > { %11146 = sst [smem:[#allocation23_spill]] %s8378_s24  ;;  %p148_p0 = scmp.ne.s32.totalorder %s8304_s20, %s8300_s19 }
  0x13   : > { %p136_p1 = scmp.eq.s32.totalorder %s135_s26, 0  ;;  %p149_p2 = scmp.eq.s32.totalorder %s8374_s22, 1 }
  0x14   : > { %p154_p3 = scmp.ne.s32.totalorder %s8300_s19, %s8296_s18  ;;  %p155_p4 = scmp.eq.s32.totalorder %s6703_s23, 1 }
  0x15   : > { %s8389_s27 = scalar_select %p136_p1, %s8304_s20, %s138_s25  }
  0x16   : > { %p8391_p5 = por %p149_p2, %p148_p0  ;;  %p8395_p6 = por %p155_p4, %p154_p3 }
  0x17   : > { %11147 = sst [smem:[#allocation24_spill]] %s8389_s27  ;;  %p6704_p7 = scmp.ge.s32.totalorder %s8308_s21, 1 }
  0x18   : > { %s11148_s28 = scalar_select %p8391_p5, 1, 0 }
  0x19   : > { %s11150_s29 = scalar_select %p8395_p6, 1, 0 }
  0x1a   : > { %11149 = sst [smem:[#allocation25_spill]] %s11148_s28  ;;  %p162_p8 = scmp.lt.s32.totalorder %s8308_s21, 3 }
  0x1b   : > { %11151 = sst [smem:[#allocation26_spill]] %s11150_s29  ;;  %p11112_p9 = scmp.eq.s32.totalorder %s8374_s22, 0 }
  0x1c   : > { %p8402_p10 = pnand %p6704_p7, %p162_p8  ;;  %s11153_s2 = sld [smem:[#allocation71_spill]] }
  0x1d   : > { %s11154_s1 = sld [smem:[#allocation70_spill]] }
  0x1e   : > { %s11152_s30 = scalar_select %p8402_p10, 1, 0 }
  0x1f   : > { %p8092_p11 = pneg %p8402_p10  ;;  %s11156_s3 = sld [smem:[#allocation72_spill]] }
  0x20   : > { %s11157_s4 = sld [smem:[#allocation73_spill]] }
  0x21   : > { %p8416_p12 = pnand %p11112_p9, %p8092_p11 }
  0x22   : > { %s186_s8 = sshll.u32 %s11153_s2, 4  ;;  %s187_s8 = int_to_ptr.vmem [resolvable:$true] %s186_s8 }
  0x23   : > { %s175_s11 = sshll.u32 %s11154_s1, 4  ;;  %s8176_s25 = scalar_lea.vmem %s187_s8, 16  ;;  %s176_s11 = int_to_ptr.vmem [resolvable:$true] %s175_s11 }
  0x24   : > { %p8177_p13 = scmp.ne.s32.totalorder %s187_s8, %s8176_s25  ;;  %p8178_p0 = pneg %p8416_p12 }
  0x25   : > { %s197_s15 = sshll.u32 %s11156_s3, 4  ;;  %p8184_p3 = scmp.lt.s32.totalorder %s187_s8, %s187_s8  ;;  %s8423_s15 = int_to_ptr.vmem [resolvable:$true] %s197_s15 }
  0x26   : > { %s208_s23 = sshll.u32 %s11157_s4, 4  ;;  %p8179_p1 = pnand %p8178_p0, %p8177_p13  ;;  %s209_s23 = int_to_ptr.vmem [resolvable:$true] %s208_s23 }
  0x27   : > { %p8185_p4 = scmp.lt.s32.totalorder %s8176_s25, %s8176_s25 }
  0x28   : > { %p8180_p2 = pneg %p8179_p1 }
  0x29   : > { %p8186_p7 = por %p8185_p4, %p8184_p3 }
  0x2b   : > { %p8187_p8 = pnand %p8186_p7, %p8180_p2 }
  0x2d   : > { %8190 = shalt.err (!%p8187_p8)
}
  0x2e   : > { %s8310_s26 = smov [#allocation8]   ;;  %s8191_s6 = scalar_lea.vmem %s176_s11, 48 }
  0x2f   : > { %8098 = dma.vmem_to_smem (!%p8416_p12), %s187_s8, 16, %s8310_s26, [#allocation9]  }
  0x30   : > { %p8192_p11 = scmp.ne.s32.totalorder %s176_s11, %s8191_s6  ;;  %s8198_s7 = scalar_lea.vmem %s176_s11, 64 }
  0x31   : > { %p8199_p5 = scmp.lt.s32.totalorder %s176_s11, %s176_s11  ;;  %p8200_p13 = scmp.lt.s32.totalorder %s8198_s7, %s8191_s6 }
  0x32   : > { %p8194_p9 = pnand %p8192_p11, %p8178_p0 }
  0x33   : > { %p8201_p1 = por %p8200_p13, %p8199_p5 }
  0x34   : > { %p8195_p6 = pneg %p8194_p9 }
  0x36   : > { %p8202_p10 = pnand %p8201_p1, %p8195_p6 }
  0x38   : > { %8205 = shalt.err (!%p8202_p10)
}
  0x39   : > { %s8311_s9 = smov [#allocation5]   ;;  %s8206_s8 = scalar_lea.vmem %s8423_s15, 16 }
  0x3a   : > { %8095 = dma.vmem_to_smem (!%p8416_p12), %s176_s11, 48, %s8311_s9, [#allocation7]  }
  0x3b   : > { %p8207_p2 = scmp.ne.s32.totalorder %s8423_s15, %s8206_s8  ;;  %p8214_p4 = scmp.lt.s32.totalorder %s8423_s15, %s8423_s15 }
  0x3c   : > { %p8215_p7 = scmp.lt.s32.totalorder %s8206_s8, %s8206_s8 }
  0x3d   : > { %p8209_p3 = pnand %p8207_p2, %p8178_p0 }
  0x3e   : > { %p8216_p5 = por %p8215_p7, %p8214_p4 }
  0x3f   : > { %p8210_p9 = pneg %p8209_p3 }
  0x41   : > { %p8217_p6 = pnand %p8216_p5, %p8210_p9 }
  0x43   : > { %8220 = shalt.err (!%p8217_p6)
}
  0x44   : > { %s8312_s10 = smov [#allocation10]   ;;  %s8221_s14 = scalar_lea.vmem %s209_s23, 16 }
  0x45   : > { %8101 = dma.vmem_to_smem (!%p8416_p12), %s8423_s15, 16, %s8312_s10, [#allocation9]  }
  0x46   : > { %p8222_p10 = scmp.ne.s32.totalorder %s209_s23, %s8221_s14  ;;  %p8229_p13 = scmp.lt.s32.totalorder %s209_s23, %s209_s23 }
  0x47   : > { %p8230_p1 = scmp.lt.s32.totalorder %s8221_s14, %s8221_s14 }
  0x48   : > { %p8224_p8 = pnand %p8222_p10, %p8178_p0 }
  0x49   : > { %p8231_p2 = por %p8230_p1, %p8229_p13 }
  0x4a   : > { %p8225_p11 = pneg %p8224_p8 }
  0x4c   : > { %p8232_p3 = pnand %p8231_p2, %p8225_p11 }
  0x4e   : > { %8235 = shalt.err (!%p8232_p3)
}
  0x4f   : > { %s8313_s16 = smov [#allocation11]   ;;  %p11158_p9 = scmp.ne.s32.totalorder %s11152_s30, 0 }
  0x50   : > { %8104 = dma.vmem_to_smem (!%p8416_p12), %s209_s23, 16, %s8313_s16, [#allocation12]  }
  0x51   : > { %229 = sbr.rel (%p11158_p9) target bundleno = 2774 (0xad6), region = 40 }
  0x56   : > { %p11159_p4 = scmp.eq.s32.totalorder %s8374_s22, 0 }
  0x58   : > { %8279 = dma.done.wait (%p11159_p4), [#allocation7], 48   ;;  %p11160_p7 = pmov %p11159_p4 }
  0x59   : > { %p11161_p0 = pmov %p11159_p4 }
  0x5a   : > { %8281 = vsyncadd (%p11160_p7), [#allocation7], 4294967248 }
  0x5b   : > { %8283 = dma.done.wait (%p11161_p0), [#allocation9], 32   ;;  %p11162_p5 = pmov %p11161_p0 }
  0x5c   : > { %p11163_p6 = pmov %p11161_p0 }
  0x5d   : > { %8285 = vsyncadd (%p11162_p5), [#allocation9], 4294967264 }
  0x5e   : > { %8287 = dma.done.wait (%p11163_p6), [#allocation12], 16   ;;  %p11164_p12 = pmov %p11161_p0 }
  0x60   : > { %8289 = vsyncadd (%p11164_p12), [#allocation12], 4294967280 }
  0x61   : > { %247 = sfence }
  0x62   : > { %p270_p10 = scmp.lt.s32.totalorder %s8374_s22, 1  ;;  %vm275_vm0 = vcmask 139264   ;;  %vm292_vm1 = vcmask 7168   ;;  %vm318_vm2 = vcmask 146568   ;;  %v11133_v0 = vmov 0.0   ;;  %s11165_s0 = sld [smem:[#allocation69_spill]] }
  0x63   : > { %276 = vst.msk [vmem:[#allocation2] sm:$0x1] %vm275_vm0, %v11133_v0  ;;  %277 = vst.msk [vmem:[#allocation2 + $0x18] sm:$0x1] %vm275_vm0, %v11133_v0  ;;  %7546 = vmatprep.subr.mxu0 %v11133_v0  ;;  %7561 = vmatprep.subr.mxu1 %v11133_v0  ;;  %v441_v1 = vlaneseq  ;;  %vm295_vm3 = vcmask 1024   ;;  %vm321_vm4 = vcmask 140424  }
  0x64   : > { %294 = vst.msk [vmem:[#allocation2 + $0x8] sm:$0xff] %vm292_vm1, %v11133_v0  ;;  %298 = vst.msk [vmem:[#allocation2 + $0x20] sm:$0xff] %vm292_vm1, %v11133_v0  ;;  %s8527_s30 = scalar_select %p270_p10, %s8374_s22, 1  ;;  %vm8315_vm5 = vmmov 0   ;;  %vm496_vm6 = vcmask 1041408   ;;  %v8317_v21 = vmov 1.0  }
  0x65   : > { %278 = vst.msk [vmem:[#allocation2 + $0x30] sm:$0x1] %vm275_vm0, %v11133_v0  ;;  %279 = vst.msk [vmem:[#allocation2 + $0x48] sm:$0x1] %vm275_vm0, %v11133_v0  ;;  %v442_v2 = vshrl.u32 %v441_v1, 7  ;;  %v8593_v3 = vand.u32 127, %v441_v1  ;;  %7552 = vmatprep.mubr.msk.f32.mxu0 %vm8315_vm5, %v11133_v0  ;;  %7567 = vmatprep.mubr.msk.f32.mxu1 %vm8315_vm5, %v11133_v0 }
  0x66   : > { %280 = vst.msk [vmem:[#allocation2 + $0x60] sm:$0x1] %vm275_vm0, %v11133_v0  ;;  %281 = vst.msk [vmem:[#allocation2 + $0x78] sm:$0x1] %vm275_vm0, %v11133_v0  ;;  %s7288_s12 = sshll.u32 %s8527_s30, 7  ;;  %s11115_s25 = smov 1  }
  0x67   : > { %282 = vst.msk [vmem:[#allocation2 + $0x90] sm:$0x1] %vm275_vm0, %v11133_v0  ;;  %283 = vst.msk [vmem:[#allocation2 + $0xa8] sm:$0x1] %vm275_vm0, %v11133_v0  ;;  %v446_v4 = vmul.u32 2, %v442_v2  ;;  %v462_v5 = vadd.s32 16, %v442_v2 }
  0x68   : > { %284 = vst.msk [vmem:[#allocation2 + $0x11] sm:$0x1] %vm275_vm0, %v11133_v0  ;;  %285 = vst.msk [vmem:[#allocation2 + $0x29] sm:$0x1] %vm275_vm0, %v11133_v0  ;;  %s8619_s23 = scalar_lea.vmem %s11165_s0, %s7288_s12  ;;  %v463_v6 = vmul.u32 2, %v8593_v3  ;;  %v443_v7 = vadd.s32 8, %v442_v2 }
  0x69   : > { %286 = vst.msk [vmem:[#allocation2 + $0x41] sm:$0x1] %vm275_vm0, %v11133_v0  ;;  %287 = vst.msk [vmem:[#allocation2 + $0x59] sm:$0x1] %vm275_vm0, %v11133_v0  ;;  %v344_v8 = vld [vmem:[%s8619_s23] sm:$0xff]  ;;  %vm8625_vm7 = vcmp.eq.s32.totalorder %v8593_v3, %v446_v4  ;;  %v8629_v10 = vadd.s32 1, %v446_v4 }
  0x6a   : > { %288 = vst.msk [vmem:[#allocation2 + $0x71] sm:$0x1] %vm275_vm0, %v11133_v0  ;;  %289 = vst.msk [vmem:[#allocation2 + $0x89] sm:$0x1] %vm275_vm0, %v11133_v0  ;;  %376 = vrot.lane.b32.xlu0 %v344_v8, %s11115_s25  ;;  %vm466_vm8 = vcmp.eq.s32.totalorder %v462_v5, %v463_v6  ;;  %v473_v11 = vadd.s32 1, %v463_v6  ;;  %v345_v12 = vld [vmem:[%s8619_s23 + $0x8] sm:$0xff]  ;;  %vm8639_vm11 = vcmp.eq.s32.totalorder %v443_v7, %v463_v6 }
  0x6b   : > { %290 = vst.msk [vmem:[#allocation2 + $0xa1] sm:$0x1] %vm275_vm0, %v11133_v0  ;;  %291 = vst.msk [vmem:[#allocation2 + $0xb9] sm:$0x1] %vm275_vm0, %v11133_v0  ;;  %v8633_v13 = vsel %vm466_vm8, 1.0, %v11133_v0  ;;  %v447_v14 = vmul.u32 2, %v443_v7  ;;  %vm456_vm9 = vcmp.eq.s32.totalorder %v8593_v3, %v8629_v10  ;;  %vm8661_vm14 = vcmp.eq.s32.totalorder %v442_v2, %v463_v6 }
  0x6c   : > { %301 = vst.msk [vmem:[#allocation2 + $0x38] sm:$0xff] %vm292_vm1, %v11133_v0  ;;  %304 = vst.msk [vmem:[#allocation2 + $0x50] sm:$0xff] %vm292_vm1, %v11133_v0  ;;  %7547 = vmatpush3.msk.msra.mxu0 %vm496_vm6, %v8633_v13  ;;  %vm476_vm10 = vcmp.eq.s32.totalorder %v462_v5, %v473_v11  ;;  %vm8654_vm13 = vcmp.eq.s32.totalorder %v443_v7, %v473_v11  ;;  %vm8671_vm0 = vcmp.eq.s32.totalorder %v442_v2, %v473_v11  ;;  %v346_v23 = vld [vmem:[%s8619_s23 + $0x10] sm:$0xff]  ;;  %v347_v24 = vld [vmem:[%s8619_s23 + $0x18] sm:$0xff]  ;;  %vm747_vm8 = vcmask 72704   ;;  %s6987_s26 = sld [smem:[#allocation5 + $0x41]] }
  0x6d   : > { %307 = vst.msk [vmem:[#allocation2 + $0x68] sm:$0xff] %vm292_vm1, %v11133_v0  ;;  %310 = vst.msk [vmem:[#allocation2 + $0x80] sm:$0xff] %vm292_vm1, %v11133_v0  ;;  %v8644_v16 = vsel %vm476_vm10, 1.0, %v11133_v0  ;;  %7548 = vmatprep.subr.mxu0 %v11133_v0  ;;  %vm8648_vm12 = vcmp.eq.s32.totalorder %v8593_v3, %v447_v14  ;;  %v8652_v18 = vadd.s32 1, %v447_v14  ;;  %380 = vrot.lane.b32.xlu1 %v346_v23, %s11115_s25  ;;  %v8707_v29 = vsel %vm8625_vm7, 1.0, %v11133_v0  ;;  %v349_v33 = vld [vmem:[%s8619_s23 + $0x28] sm:$0xff] }
  0x6e   : > { %313 = vst.msk [vmem:[#allocation2 + $0x98] sm:$0xff] %vm292_vm1, %v11133_v0  ;;  %316 = vst.msk [vmem:[#allocation2 + $0xb0] sm:$0xff] %vm292_vm1, %v11133_v0  ;;  %378 = vrot.lane.b32.xlu0 %v345_v12, %s11115_s25  ;;  %7562 = vmatpush3.msk.msra.mxu1 %vm496_vm6, %v8644_v16  ;;  %v348_v34 = vld [vmem:[%s8619_s23 + $0x20] sm:$0xff]  ;;  %v351_v35 = vld [vmem:[%s8619_s23 + $0x38] sm:$0xff]  ;;  %v8736_v51 = vsel %vm8648_vm12, 1.0, %v11133_v0  ;;  %v8750_v52 = vsel %vm456_vm9, 1.0, %v11133_v0 }
  0x6f   : > { %293 = vst.msk [vmem:[#allocation2] sm:$0xff] %vm292_vm1, %v11133_v0  ;;  %297 = vst.msk [vmem:[#allocation2 + $0x18] sm:$0xff] %vm292_vm1, %v11133_v0  ;;  %7563 = vmatprep.subr.mxu1 %v11133_v0  ;;  %vm457_vm15 = vcmp.eq.s32.totalorder %v8593_v3, %v8652_v18  ;;  %7549 = vmatpush3.msk.msra.mxu0 %vm8639_vm11, %v8317_v21  ;;  %v350_v36 = vld [vmem:[%s8619_s23 + $0x30] sm:$0xff]  ;;  %v353_v37 = vld [vmem:[%s8619_s23 + $0x48] sm:$0xff]  ;;  %vm749_vm7 = vcmask 65536   ;;  %s6986_s6 = sld [smem:[#allocation5 + $0x40]] }
  0x70   : > { %320 = vst.msk [vmem:[#allocation2 + $0x8] sm:$0xff] %vm318_vm2, %v11133_v0  ;;  %324 = vst.msk [vmem:[#allocation2 + $0x20] sm:$0xff] %vm318_vm2, %v11133_v0  ;;  %7564 = vmatpush3.msk.msra.mxu1 %vm8654_vm13, %v8317_v21  ;;  %7550 = vmatprep.subr.mxu0 %v11133_v0  ;;  %v352_v38 = vld [vmem:[%s8619_s23 + $0x40] sm:$0xff]  ;;  %v8756_v53 = vsel %vm457_vm15, 1.0, %v11133_v0  ;;  %v355_v57 = vld [vmem:[%s8619_s23 + $0x58] sm:$0xff]  ;;  %s6988_s7 = sld [smem:[#allocation5 + $0x42]] }
  0x71   : > { %300 = vst.msk [vmem:[#allocation2 + $0x30] sm:$0xff] %vm292_vm1, %v11133_v0  ;;  %303 = vst.msk [vmem:[#allocation2 + $0x48] sm:$0xff] %vm292_vm1, %v11133_v0  ;;  %7565 = vmatprep.subr.mxu1 %v11133_v0  ;;  %7551 = vmatpush3.msk.msra.mxu0 %vm8661_vm14, %v8317_v21  ;;  %v354_v58 = vld [vmem:[%s8619_s23 + $0x50] sm:$0xff]  ;;  %v357_v59 = vld [vmem:[%s8619_s23 + $0x68] sm:$0xff]  ;;  %s6989_s9 = sld [smem:[#allocation5 + $0x43]]  ;;  %s11117_s13 = smov 127  }
  0x72   : > { %306 = vst.msk [vmem:[#allocation2 + $0x60] sm:$0xff] %vm292_vm1, %v11133_v0  ;;  %309 = vst.msk [vmem:[#allocation2 + $0x78] sm:$0xff] %vm292_vm1, %v11133_v0  ;;  %7566 = vmatpush3.msk.msra.mxu1 %vm8671_vm0, %v8317_v21  ;;  %382 = vrot.lane.b32.xlu1 %v347_v24, %s11115_s25  ;;  %v356_v60 = vld [vmem:[%s8619_s23 + $0x60] sm:$0xff]  ;;  %v359_v61 = vld [vmem:[%s8619_s23 + $0x78] sm:$0xff]  ;;  %s8838_s8 = sld [smem:[#allocation5 + $0xa1]]  ;;  %vm4450_vm9 = vcmask 74824  }
  0x73   : > { %312 = vst.msk [vmem:[#allocation2 + $0x90] sm:$0xff] %vm292_vm1, %v11133_v0  ;;  %315 = vst.msk [vmem:[#allocation2 + $0xa8] sm:$0xff] %vm292_vm1, %v11133_v0  ;;  %384 = vrot.lane.b32.xlu0 %v348_v34, %s11115_s25  ;;  %v358_v62 = vld [vmem:[%s8619_s23 + $0x70] sm:$0xff]  ;;  %s7082_s10 = sld [smem:[#allocation5 + $0xa0]] }
  0x74   : > { %327 = vst.msk [vmem:[#allocation2 + $0x38] sm:$0xff] %vm318_vm2, %v11133_v0  ;;  %330 = vst.msk [vmem:[#allocation2 + $0x50] sm:$0xff] %vm318_vm2, %v11133_v0  ;;  %s8850_s11 = sld [smem:[#allocation5 + $0xa2]] }
  0x75   : > { %333 = vst.msk [vmem:[#allocation2 + $0x68] sm:$0xff] %vm318_vm2, %v11133_v0  ;;  %336 = vst.msk [vmem:[#allocation2 + $0x80] sm:$0xff] %vm318_vm2, %v11133_v0  ;;  %s7085_s14 = sld [smem:[#allocation5 + $0xa3]] }
  0x76   : > { %339 = vst.msk [vmem:[#allocation2 + $0x98] sm:$0xff] %vm318_vm2, %v11133_v0  ;;  %342 = vst.msk [vmem:[#allocation2 + $0xb0] sm:$0xff] %vm318_vm2, %v11133_v0  ;;  %386 = vrot.lane.b32.xlu1 %v349_v33, %s11115_s25  ;;  %v4755_v33 = vstv %s6988_s7  ;;  %s4467_s16 = sld [smem:[#allocation5]] }
  0x77   : > { %296 = vst.msk [vmem:[#allocation2 + $0x10] sm:$0x3] %vm295_vm3, %v11133_v0  ;;  %299 = vst.msk [vmem:[#allocation2 + $0x28] sm:$0x3] %vm295_vm3, %v11133_v0  ;;  %388 = vrot.lane.b32.xlu0 %v350_v36, %s11115_s25  ;;  %v4763_v34 = vstv %s6989_s9  ;;  %s8924_s30 = sld [smem:[#allocation5 + $0x1]] }
  0x78   : > { %302 = vst.msk [vmem:[#allocation2 + $0x40] sm:$0x3] %vm295_vm3, %v11133_v0  ;;  %305 = vst.msk [vmem:[#allocation2 + $0x58] sm:$0x3] %vm295_vm3, %v11133_v0  ;;  %s8926_s12 = sld [smem:[#allocation5 + $0x2]] }
  0x79   : > { %308 = vst.msk [vmem:[#allocation2 + $0x70] sm:$0x3] %vm295_vm3, %v11133_v0  ;;  %311 = vst.msk [vmem:[#allocation2 + $0x88] sm:$0x3] %vm295_vm3, %v11133_v0  ;;  %s8928_s15 = sld [smem:[#allocation5 + $0x3]] }
  0x7a   : > { %314 = vst.msk [vmem:[#allocation2 + $0xa0] sm:$0x3] %vm295_vm3, %v11133_v0  ;;  %317 = vst.msk [vmem:[#allocation2 + $0xb8] sm:$0x3] %vm295_vm3, %v11133_v0  ;;  %390 = vrot.lane.b32.xlu1 %v351_v35, %s11115_s25  ;;  %s8930_s17 = sld [smem:[#allocation8]] }
  0x7b   : > { %319 = vst.msk [vmem:[#allocation2] sm:$0xff] %vm318_vm2, %v11133_v0  ;;  %323 = vst.msk [vmem:[#allocation2 + $0x18] sm:$0xff] %vm318_vm2, %v11133_v0  ;;  %392 = vrot.lane.b32.xlu0 %v352_v38, %s11115_s25  ;;  %s8932_s23 = sld [smem:[#allocation8 + $0x1]] }
  0x7c   : > { %326 = vst.msk [vmem:[#allocation2 + $0x30] sm:$0xff] %vm318_vm2, %v11133_v0  ;;  %329 = vst.msk [vmem:[#allocation2 + $0x48] sm:$0xff] %vm318_vm2, %v11133_v0  ;;  %s8938_s7 = sld [smem:[#allocation5 + $0x46]] }
  0x7d   : > { %332 = vst.msk [vmem:[#allocation2 + $0x60] sm:$0xff] %vm318_vm2, %v11133_v0  ;;  %335 = vst.msk [vmem:[#allocation2 + $0x78] sm:$0xff] %vm318_vm2, %v11133_v0  ;;  %s8940_s9 = sld [smem:[#allocation5 + $0x44]] }
  0x7e   : > { %338 = vst.msk [vmem:[#allocation2 + $0x90] sm:$0xff] %vm318_vm2, %v11133_v0  ;;  %341 = vst.msk [vmem:[#allocation2 + $0xa8] sm:$0xff] %vm318_vm2, %v11133_v0  ;;  %vm424_vm2 = vcmask 138248   ;;  %394 = vrot.lane.b32.xlu1 %v353_v37, %s11115_s25  ;;  %s8964_s0 = sld [smem:[#allocation5 + $0x47]] }
  0x7f   : > { %322 = vst.msk [vmem:[#allocation2 + $0x10] sm:$0x3] %vm321_vm4, %v11133_v0  ;;  %325 = vst.msk [vmem:[#allocation2 + $0x28] sm:$0x3] %vm321_vm4, %v11133_v0  ;;  %396 = vrot.lane.b32.xlu0 %v354_v58, %s11115_s25  ;;  %s9551_s1 = sld [smem:[#allocation5 + $0xae]] }
  0x80   : > { %328 = vst.msk [vmem:[#allocation2 + $0x40] sm:$0x3] %vm321_vm4, %v11133_v0  ;;  %331 = vst.msk [vmem:[#allocation2 + $0x58] sm:$0x3] %vm321_vm4, %v11133_v0  ;;  %s7015_s2 = sld [smem:[#allocation5 + $0x5d]] }
  0x81   : > { %334 = vst.msk [vmem:[#allocation2 + $0x70] sm:$0x3] %vm321_vm4, %v11133_v0  ;;  %337 = vst.msk [vmem:[#allocation2 + $0x88] sm:$0x3] %vm321_vm4, %v11133_v0  ;;  %s7014_s3 = sld [smem:[#allocation5 + $0x5c]] }
  0x82   : > { %340 = vst.msk [vmem:[#allocation2 + $0xa0] sm:$0x3] %vm321_vm4, %v11133_v0  ;;  %343 = vst.msk [vmem:[#allocation2 + $0xb8] sm:$0x3] %vm321_vm4, %v11133_v0  ;;  %vm486_vm4 = vcmask 146432   ;;  %398 = vrot.lane.b32.xlu1 %v355_v57, %s11115_s25  ;;  %s9553_s4 = sld [smem:[#allocation5 + $0x5e]] }
  0x83   : > { %400 = vrot.lane.b32.xlu0 %v356_v60, %s11115_s25  ;;  %s9556_s27 = sld [smem:[#allocation5 + $0x1c]] }
  0x84   : > { %s9559_s20 = sld [smem:[#allocation5 + $0x1d]] }
  0x85   : > { %s9562_s24 = sld [smem:[#allocation5 + $0x1e]] }
  0x86   : > { %402 = vrot.lane.b32.xlu1 %v357_v59, %s11115_s25  ;;  %s9565_s29 = sld [smem:[#allocation5 + $0x1f]] }
  0x87   : > { %404 = vrot.lane.b32.xlu0 %v358_v62, %s11115_s25  ;;  %s9567_s18 = sld [smem:[#allocation5 + $0x80]] }
  0x88   : > { %s9569_s21 = sld [smem:[#allocation5 + $0xe0]] }
  0x89   : > { %s9571_s5 = sld [smem:[#allocation5 + $0xb1]] }
  0x8a   : > { %406 = vrot.lane.b32.xlu1 %v359_v61, %s11115_s25  ;;  %s8954_s25 = sld [smem:[#allocation5 + $0x45]] }
  0x8b   : > { %s9573_s28 = sld [smem:[#allocation5 + $0x5f]] }
  0x8c   : > { %s9577_s22 = sld [smem:[#allocation5 + $0x81]] }
  0x8d   : > { %s9581_s19 = sld [smem:[#allocation5 + $0x82]] }
  0x8e   : > { %11179 = sst [smem:[#allocation27_spill]] %s9569_s21 }
  0x8f   : > { %s9673_s21 = sld [smem:[#allocation5 + $0x65]] }
  0x92   : > { %11180 = sst [smem:[#allocation28_spill]] %s9577_s22 }
  0x93   : > { %11181 = sst [smem:[#allocation29_spill]] %s9581_s19 }
  0x94   : > { %s9671_s19 = sld [smem:[#allocation5 + $0x64]] }
  0x95   : > { %11188 = sst [smem:[#allocation36_spill]] %s9673_s21 }
  0x96   : > { %s9688_s21 = sld [smem:[#allocation5 + $0xc4]] }
  0x97   : > { %s9692_s22 = sld [smem:[#allocation5 + $0xc5]] }
  0x9a   : > { %11187 = sst [smem:[#allocation35_spill]] %s9671_s19 }
  0x9b   : > { %s9686_s19 = sld [smem:[#allocation5 + $0x67]] }
  0x9c   : > { %11191 = sst [smem:[#allocation39_spill]] %s9688_s21 }
  0x9d   : > { %11192 = sst [smem:[#allocation40_spill]] %s9692_s22 }
  0x9e   : > { %s9704_s21 = sld [smem:[#allocation5 + $0x24]] }
  0x9f   : > { %s9708_s22 = sld [smem:[#allocation5 + $0x25]] }
  0xa1   : > { %11190 = sst [smem:[#allocation38_spill]] %s9686_s19 }
  0xa2   : > { %s9761_s19 = sld [smem:[#allocation5 + $0x28]] }
  0xdc   : > { %v377_v25 = vpop.permute.xlu0 %376 }
  0xdd   : > { %425 = vst.msk [vmem:[#allocation2 + $0x1] sm:$0xff] %vm424_vm2, %v377_v25 }
  0xdf   : > { %v381_v31 = vpop.permute.xlu1 %380 }
  0xe0   : > { %v379_v26 = vpop.permute.xlu0 %378  ;;  %427 = vst.msk [vmem:[#allocation2 + $0x19] sm:$0xff] %vm424_vm2, %v381_v31 }
  0xe1   : > { %426 = vst.msk [vmem:[#allocation2 + $0x9] sm:$0xff] %vm424_vm2, %v379_v26  ;;  %v4747_v26 = vstv %s6987_s26  ;;  %s8934_s26 = sld [smem:[#allocation8 + $0x2]] }
  0xe4   : > { %v483_v27 = vld [vmem:[#allocation2] sm:$0xff]  ;;  %v383_v32 = vpop.permute.xlu1 %382 }
  0xe5   : > { %7553 = vmatmul.mubr.msk.f32.vlgmr.msra.gmra.mxu0 %vm486_vm4, %v483_v27  ;;  %7568 = vmatmul.mubr.msk.f32.vlgmr.msra.gmra.mxu1 %vm486_vm4, %v483_v27  ;;  %428 = vst.msk [vmem:[#allocation2 + $0x21] sm:$0xff] %vm424_vm2, %v383_v32  ;;  %v385_v1 = vpop.permute.xlu0 %384  ;;  %v4739_v27 = vstv %s6986_s6  ;;  %s8936_s6 = sld [smem:[#allocation8 + $0x3]] }
  0xe6   : > { %7555 = vmatprep.mubr.msk.f32.mxu0 %vm8315_vm5, %v11133_v0  ;;  %7570 = vmatprep.mubr.msk.f32.mxu1 %vm8315_vm5, %v11133_v0  ;;  %429 = vst.msk [vmem:[#allocation2 + $0x31] sm:$0xff] %vm424_vm2, %v385_v1 }
  0xe7   : > { %v995_v54 = vld [vmem:[#allocation2 + $0x18] sm:$0xff] }
  0xe8   : > { %v484_v28 = vld [vmem:[#allocation2 + $0x8] sm:$0xff]  ;;  %v485_v30 = vld [vmem:[#allocation2 + $0x10] sm:$0x3]  ;;  %v387_v63 = vpop.permute.xlu1 %386 }
  0xe9   : > { %7556 = vmatmul.mubr.msk.f32.gmra.mxu0 %vm486_vm4, %v484_v28  ;;  %7571 = vmatmul.mubr.msk.f32.gmra.mxu1 %vm486_vm4, %v484_v28  ;;  %430 = vst.msk [vmem:[#allocation2 + $0x39] sm:$0xff] %vm424_vm2, %v387_v63  ;;  %v389_v3 = vpop.permute.xlu0 %388 }
  0xea   : > { %7558 = vmatprep.mubr.msk.f32.mxu0 %vm8315_vm5, %v11133_v0  ;;  %7573 = vmatprep.mubr.msk.f32.mxu1 %vm8315_vm5, %v11133_v0  ;;  %431 = vst.msk [vmem:[#allocation2 + $0x49] sm:$0xff] %vm424_vm2, %v389_v3 }
  0xec   : > { %v996_v55 = vld [vmem:[#allocation2 + $0x20] sm:$0xff]  ;;  %v997_v56 = vld [vmem:[#allocation2 + $0x28] sm:$0x3]  ;;  %v391_v2 = vpop.permute.xlu1 %390 }
  0xed   : > { %7559 = vmatmul.mubr.msk.f32.gmra.mxu0 %vm486_vm4, %v485_v30  ;;  %7574 = vmatmul.mubr.msk.f32.gmra.mxu1 %vm486_vm4, %v485_v30  ;;  %432 = vst.msk [vmem:[#allocation2 + $0x51] sm:$0xff] %vm424_vm2, %v391_v2  ;;  %v393_v5 = vpop.permute.xlu0 %392  ;;  %v1486_v61 = vld [vmem:[#allocation2 + $0x30] sm:$0xff] }
  0xee   : > { %7582 = vmatprep.mubr.msk.f32.mxu0 %vm486_vm4, %v8707_v29  ;;  %7591 = vmatprep.mubr.msk.f32.mxu1 %vm486_vm4, %v8707_v29  ;;  %433 = vst.msk [vmem:[#allocation2 + $0x61] sm:$0xff] %vm424_vm2, %v393_v5  ;;  %v4468_v5 = vstv %s4467_s16  ;;  %s11178_s16 = smov 127  }
  0xf0   : > { %v395_v4 = vpop.permute.xlu1 %394  ;;  %v1487_v62 = vld [vmem:[#allocation2 + $0x38] sm:$0xff]  ;;  %v1488_v63 = vld [vmem:[#allocation2 + $0x40] sm:$0x3] }
  0xf1   : > { %434 = vst.msk [vmem:[#allocation2 + $0x69] sm:$0xff] %vm424_vm2, %v395_v4  ;;  %v397_v7 = vpop.permute.xlu0 %396 }
  0xf2   : > { %435 = vst.msk [vmem:[#allocation2 + $0x79] sm:$0xff] %vm424_vm2, %v397_v7  ;;  %v4476_v7 = vstv %s8926_s12  ;;  %s6994_s12 = sld [smem:[#allocation5 + $0x48]] }
  0xf4   : > { %v399_v6 = vpop.permute.xlu1 %398 }
  0xf5   : > { %436 = vst.msk [vmem:[#allocation2 + $0x81] sm:$0xff] %vm424_vm2, %v399_v6  ;;  %v401_v9 = vpop.permute.xlu0 %400  ;;  %v4472_v6 = vstv %s8924_s30  ;;  %s6995_s30 = sld [smem:[#allocation5 + $0x49]] }
  0xf6   : > { %437 = vst.msk [vmem:[#allocation2 + $0x91] sm:$0xff] %vm424_vm2, %v401_v9 }
  0xf8   : > { %v403_v8 = vpop.permute.xlu1 %402 }
  0xf9   : > { %438 = vst.msk [vmem:[#allocation2 + $0x99] sm:$0xff] %vm424_vm2, %v403_v8  ;;  %v405_v11 = vpop.permute.xlu0 %404  ;;  %v4480_v8 = vstv %s8928_s15  ;;  %s9062_s15 = sld [smem:[#allocation5 + $0x4b]] }
  0xfa   : > { %439 = vst.msk [vmem:[#allocation2 + $0xa9] sm:$0xff] %vm424_vm2, %v405_v11  ;;  %v4787_v11 = vstv %s8938_s7  ;;  %s6996_s7 = sld [smem:[#allocation5 + $0x4a]] }
  0xfc   : > { %v407_v10 = vpop.permute.xlu1 %406 }
  0xfd   : > { %440 = vst.msk [vmem:[#allocation2 + $0xb1] sm:$0xff] %vm424_vm2, %v407_v10 }
 0x104   : > { %v3942_v15 = vld [vmem:[#allocation2 + $0xb0] sm:$0xff] }
 0x1a5   : > { %v566_v39 = vpop.f32.mrf.mxu0  ;;  %v649_v40 = vpop.f32.mrf.mxu1 }
 0x1a7   : > { %v7554_v41 = vpop.f32.mrf.mxu0  ;;  %v7569_v42 = vpop.f32.mrf.mxu1 }
 0x1a8   : > { %v5267_v41 = vstv %s7082_s10  ;;  %s8945_s10 = sld [smem:[#allocation5 + $0x5]] }
 0x1a9   : > { %v571_v43 = vpop.f32.mrf.mxu0  ;;  %v654_v44 = vpop.f32.mrf.mxu1 }
 0x1ab   : > { %v7557_v45 = vpop.f32.mrf.mxu0  ;;  %v7572_v46 = vpop.f32.mrf.mxu1 }
 0x1ad   : > { %v576_v47 = vpop.f32.mrf.mxu0  ;;  %v659_v48 = vpop.f32.mrf.mxu1 }
 0x1ae   : > { %7576 = vmatprep.subr.msk.mxu0 %vm496_vm6, %v576_v47  ;;  %7585 = vmatprep.subr.msk.mxu1 %vm496_vm6, %v659_v48 }
 0x1af   : > { %v7560_v49 = vpop.f32.mrf.mxu0  ;;  %v7575_v50 = vpop.f32.mrf.mxu1  ;;  %7577 = vmatpush3.msk.msra.mxu0 %vm496_vm6, %v576_v47  ;;  %7586 = vmatpush3.msk.msra.mxu1 %vm496_vm6, %v659_v48 }
 0x1b0   : > { %7578 = vmatprep.subr.mxu0 %v571_v43  ;;  %7587 = vmatprep.subr.mxu1 %v654_v44 }
 0x1b1   : > { %7579 = vmatpush3.msra.mxu0 %v571_v43  ;;  %7588 = vmatpush3.msra.mxu1 %v654_v44 }
 0x1b2   : > { %7580 = vmatprep.subr.mxu0 %v566_v39  ;;  %7589 = vmatprep.subr.mxu1 %v649_v40 }
 0x1b3   : > { %7581 = vmatpush3.msra.mxu0 %v566_v39  ;;  %7590 = vmatpush3.msra.mxu1 %v649_v40 }
 0x1b4   : > { %7583 = vmatmul.mubr.msk.f32.vlgmr.msra.gmra.mxu0 %vm486_vm4, %v8736_v51  ;;  %7594 = vmatprep.subr.msk.mxu0 %vm496_vm6, %v576_v47 }
 0x1b5   : > { %7603 = vmatprep.subr.msk.mxu1 %vm496_vm6, %v659_v48  ;;  %7592 = vmatmul.mubr.msk.f32.vlgmr.msra.gmra.mxu1 %vm486_vm4, %v8736_v51 }
 0x1b6   : > { %7595 = vmatpush3.msk.msra.mxu0 %vm496_vm6, %v576_v47  ;;  %7604 = vmatpush3.msk.msra.mxu1 %vm496_vm6, %v659_v48 }
 0x1b7   : > { %7596 = vmatprep.subr.mxu0 %v571_v43  ;;  %7605 = vmatprep.subr.mxu1 %v654_v44 }
 0x1b8   : > { %7597 = vmatpush3.msra.mxu0 %v571_v43  ;;  %7606 = vmatpush3.msra.mxu1 %v654_v44 }
 0x1b9   : > { %7598 = vmatprep.subr.mxu0 %v566_v39  ;;  %7607 = vmatprep.subr.mxu1 %v649_v40 }
 0x1ba   : > { %7599 = vmatpush3.msra.mxu0 %v566_v39  ;;  %7600 = vmatprep.mubr.msk.f32.mxu0 %vm486_vm4, %v8750_v52 }
 0x1bb   : > { %7608 = vmatpush3.msra.mxu1 %v649_v40  ;;  %7601 = vmatmul.mubr.msk.f32.vlgmr.msra.gmra.mxu0 %vm486_vm4, %v8756_v53  ;;  %v5275_v40 = vstv %s8838_s8  ;;  %s8942_s8 = sld [smem:[#allocation5 + $0x4]] }
 0x1bc   : > { %7609 = vmatprep.mubr.msk.f32.mxu1 %vm486_vm4, %v8750_v52  ;;  %7612 = vmatprep.subr.mxu0 %v11133_v0 }
 0x1bd   : > { %7627 = vmatprep.subr.mxu1 %v11133_v0  ;;  %7610 = vmatmul.mubr.msk.f32.vlgmr.msra.gmra.mxu1 %vm486_vm4, %v8756_v53 }
 0x1be   : > { %7613 = vmatpush3.msk.msra.mxu0 %vm496_vm6, %v8633_v13  ;;  %7628 = vmatpush3.msk.msra.mxu1 %vm496_vm6, %v8644_v16 }
 0x1bf   : > { %7614 = vmatprep.subr.mxu0 %v11133_v0  ;;  %7629 = vmatprep.subr.mxu1 %v11133_v0 }
 0x1c0   : > { %7615 = vmatpush3.msk.msra.mxu0 %vm8639_vm11, %v8317_v21  ;;  %7630 = vmatpush3.msk.msra.mxu1 %vm8654_vm13, %v8317_v21 }
 0x1c1   : > { %7616 = vmatprep.subr.mxu0 %v11133_v0  ;;  %7631 = vmatprep.subr.mxu1 %v11133_v0 }
 0x1c2   : > { %7617 = vmatpush3.msk.msra.mxu0 %vm8661_vm14, %v8317_v21  ;;  %7618 = vmatprep.mubr.msk.f32.mxu0 %vm8315_vm5, %v11133_v0 }
 0x1c3   : > { %7632 = vmatpush3.msk.msra.mxu1 %vm8671_vm0, %v8317_v21  ;;  %7633 = vmatprep.mubr.msk.f32.mxu1 %vm8315_vm5, %v11133_v0 }
 0x1c4   : > { %7619 = vmatmul.mubr.msk.f32.vlgmr.msra.gmra.mxu0 %vm486_vm4, %v995_v54  ;;  %7634 = vmatmul.mubr.msk.f32.vlgmr.msra.gmra.mxu1 %vm486_vm4, %v995_v54 }
 0x1c5   : > { %7621 = vmatprep.mubr.msk.f32.mxu0 %vm8315_vm5, %v11133_v0  ;;  %7636 = vmatprep.mubr.msk.f32.mxu1 %vm8315_vm5, %v11133_v0 }
 0x1c8   : > { %7622 = vmatmul.mubr.msk.f32.gmra.mxu0 %vm486_vm4, %v996_v55  ;;  %7637 = vmatmul.mubr.msk.f32.gmra.mxu1 %vm486_vm4, %v996_v55  ;;  %v5283_v55 = vstv %s8850_s11  ;;  %s8948_s11 = sld [smem:[#allocation5 + $0x6]] }
 0x1c9   : > { %7624 = vmatprep.mubr.msk.f32.mxu0 %vm8315_vm5, %v11133_v0  ;;  %7639 = vmatprep.mubr.msk.f32.mxu1 %vm8315_vm5, %v11133_v0 }
 0x1cc   : > { %7625 = vmatmul.mubr.msk.f32.gmra.mxu0 %vm486_vm4, %v997_v56  ;;  %7640 = vmatmul.mubr.msk.f32.gmra.mxu1 %vm486_vm4, %v997_v56  ;;  %v5291_v56 = vstv %s7085_s14  ;;  %s8951_s14 = sld [smem:[#allocation5 + $0x7]] }
 0x1cd   : > { %7648 = vmatprep.mubr.msk.f32.mxu0 %vm486_vm4, %v8707_v29  ;;  %7657 = vmatprep.mubr.msk.f32.mxu1 %vm486_vm4, %v8707_v29 }
 0x274   : > { %v7584_v12 = vpop.f32.mrf.mxu0 }
 0x275   : > { %750 = vst.msk [vmem:[#allocation3 + $0x8] sm:$0x1] %vm749_vm7, %v7584_v12  ;;  %v7593_v14 = vpop.f32.mrf.mxu1  ;;  %v4771_v12 = vstv %s8940_s9  ;;  %s9074_s9 = sld [smem:[#allocation5 + $0xa9]] }
 0x276   : > { %v738_v17 = vpop.f32.mrf.mxu0  ;;  %831 = vst.msk [vmem:[#allocation3 + $0x88] sm:$0x1] %vm749_vm7, %v7593_v14  ;;  %v4459_v14 = vstv %s8930_s17  ;;  %s9064_s17 = sld [smem:[#allocation5 + $0x8]] }
 0x277   : > { %748 = vst.msk [vmem:[#allocation3] sm:$0xff] %vm747_vm8, %v738_v17  ;;  %v820_v18 = vpop.f32.mrf.mxu1 }
 0x278   : > { %830 = vst.msk [vmem:[#allocation3 + $0x80] sm:$0xff] %vm747_vm8, %v820_v18 }
 0x27b   : > { %v7602_v23 = vpop.f32.mrf.mxu0 }
 0x27d   : > { %v904_v24 = vpop.f32.mrf.mxu0  ;;  %v7611_v25 = vpop.f32.mrf.mxu1 }
 0x27e   : > { %v8840_v28 = vld [vmem:[#allocation3] sm:$0xff]  ;;  %914 = vst.msk [vmem:[#allocation3 + $0x100] sm:$0xff] %vm747_vm8, %v904_v24  ;;  %v4461_v24 = vstv %s8932_s23  ;;  %v4463_v25 = vstv %s8934_s26  ;;  %s9067_s23 = sld [smem:[#allocation5 + $0x9]] }
 0x27f   : > { %v982_v30 = vpop.f32.mrf.mxu1  ;;  %v4748_v31 = vmul.f32 %v4747_v26, %v8840_v28  ;;  %v4740_v32 = vmul.f32 %v4739_v27, %v8840_v28  ;;  %v4756_v37 = vmul.f32 %v4755_v33, %v8840_v28  ;;  %v4764_v38 = vmul.f32 %v4763_v34, %v8840_v28  ;;  %s9069_s26 = sld [smem:[#allocation5 + $0xa]] }
 0x280   : > { %992 = vst.msk [vmem:[#allocation3 + $0x180] sm:$0xff] %vm747_vm8, %v982_v30  ;;  %v4469_v10 = vmul.f32 %v4468_v5, %v8840_v28  ;;  %v4473_v17 = vmul.f32 %v4472_v6, %v8840_v28  ;;  %v4465_v26 = vstv %s8936_s6  ;;  %v4477_v27 = vmul.f32 %v4476_v7, %v8840_v28  ;;  %s6933_s6 = sld [smem:[#allocation5 + $0xb]] }
 0x281   : > { %4750 = vrot.lane.b32.xlu1 %v4748_v31, %s11117_s13  ;;  %4742 = vrot.lane.b32.xlu0 %v4740_v32, %s11117_s13  ;;  %v4481_v30 = vmul.f32 %v4480_v8, %v8840_v28  ;;  %v4485_v32 = vstv %s8942_s8  ;;  %v4489_v33 = vstv %s8945_s10  ;;  %s9076_s8 = sld [smem:[#allocation5 + $0xa8]] }
 0x282   : > { %s9085_s10 = sld [smem:[#allocation5 + $0xab]] }
 0x284   : > { %v1073_v35 = vpop.f32.mrf.mxu0  ;;  %v1153_v36 = vpop.f32.mrf.mxu1 }
 0x285   : > { %v4994_v39 = vld [vmem:[#allocation3 + $0x100] sm:$0xff]  ;;  %4758 = vrot.lane.b32.xlu1 %v4756_v37, %s11117_s13  ;;  %4766 = vrot.lane.b32.xlu0 %v4764_v38, %s11117_s13  ;;  %v4493_v37 = vstv %s8948_s11  ;;  %v4497_v38 = vstv %s8951_s14  ;;  %s7092_s11 = sld [smem:[#allocation5 + $0xaa]] }
 0x286   : > { %v7620_v42 = vpop.f32.mrf.mxu0  ;;  %v7635_v43 = vpop.f32.mrf.mxu1  ;;  %v5276_v46 = vmul.f32 %v5275_v40, %v4994_v39  ;;  %v5268_v47 = vmul.f32 %v5267_v41, %v4994_v39  ;;  %v5284_v59 = vmul.f32 %v5283_v55, %v4994_v39  ;;  %v5292_v60 = vmul.f32 %v5291_v56, %v4994_v39  ;;  %s6999_s14 = sld [smem:[#allocation5 + $0x4d]] }
 0x287   : > { %v4779_v39 = vstv %s8954_s25  ;;  %v4470_v40 = vadd.f32 %v4469_v10, %v4459_v14  ;;  %v4474_v41 = vadd.f32 %v4473_v17, %v4461_v24  ;;  %v4478_v43 = vadd.f32 %v4477_v27, %v4463_v25  ;;  %s7086_s25 = sld [smem:[#allocation5 + $0xa4]]  ;;  %v1979_v24 = vld [vmem:[#allocation2 + $0x58] sm:$0x3] }
 0x288   : > { %v1078_v44 = vpop.f32.mrf.mxu0  ;;  %v1158_v45 = vpop.f32.mrf.mxu1  ;;  %v4795_v56 = vstv %s8964_s0  ;;  %s7089_s0 = sld [smem:[#allocation5 + $0xa7]] }
 0x289   : > { %5278 = vrot.lane.b32.xlu1 %v5276_v46, %s11117_s13  ;;  %5270 = vrot.lane.b32.xlu0 %v5268_v47, %s11117_s13 }
 0x28a   : > { %v7623_v48 = vpop.f32.mrf.mxu0  ;;  %v7638_v49 = vpop.f32.mrf.mxu1 }
 0x28c   : > { %v1083_v50 = vpop.f32.mrf.mxu0  ;;  %v1163_v54 = vpop.f32.mrf.mxu1 }
 0x28d   : > { %7642 = vmatprep.subr.msk.mxu0 %vm496_vm6, %v1083_v50  ;;  %7651 = vmatprep.subr.msk.mxu1 %vm496_vm6, %v1163_v54  ;;  %v5299_v7 = vstv %s7086_s25  ;;  %s6998_s25 = sld [smem:[#allocation5 + $0x4c]] }
 0x28e   : > { %v7626_v57 = vpop.f32.mrf.mxu0  ;;  %v7641_v58 = vpop.f32.mrf.mxu1  ;;  %7643 = vmatpush3.msk.msra.mxu0 %vm496_vm6, %v1083_v50  ;;  %7652 = vmatpush3.msk.msra.mxu1 %vm496_vm6, %v1163_v54  ;;  %v5323_v14 = vstv %s7089_s0  ;;  %s9175_s0 = sld [smem:[#allocation5 + $0xc]] }
 0x28f   : > { %7644 = vmatprep.subr.mxu0 %v1078_v44  ;;  %7653 = vmatprep.subr.mxu1 %v1158_v45 }
 0x290   : > { %7645 = vmatpush3.msra.mxu0 %v1078_v44  ;;  %7654 = vmatpush3.msra.mxu1 %v1158_v45 }
 0x291   : > { %7646 = vmatprep.subr.mxu0 %v1073_v35  ;;  %7655 = vmatprep.subr.mxu1 %v1153_v36 }
 0x292   : > { %5286 = vrot.lane.b32.xlu1 %v5284_v59, %s11117_s13  ;;  %5294 = vrot.lane.b32.xlu0 %v5292_v60, %s11117_s13  ;;  %s8959_s13 = sld [smem:[#allocation5 + $0xa6]] }
 0x293   : > { %7647 = vmatpush3.msra.mxu0 %v1073_v35  ;;  %7656 = vmatpush3.msra.mxu1 %v1153_v36 }
 0x294   : > { %7649 = vmatmul.mubr.msk.f32.vlgmr.msra.gmra.mxu0 %vm486_vm4, %v8736_v51  ;;  %7660 = vmatprep.subr.msk.mxu0 %vm496_vm6, %v1083_v50 }
 0x295   : > { %7669 = vmatprep.subr.msk.mxu1 %vm496_vm6, %v1163_v54  ;;  %7658 = vmatmul.mubr.msk.f32.vlgmr.msra.gmra.mxu1 %vm486_vm4, %v8736_v51 }
 0x296   : > { %7661 = vmatpush3.msk.msra.mxu0 %vm496_vm6, %v1083_v50  ;;  %7670 = vmatpush3.msk.msra.mxu1 %vm496_vm6, %v1163_v54 }
 0x297   : > { %7662 = vmatprep.subr.mxu0 %v1078_v44  ;;  %7671 = vmatprep.subr.mxu1 %v1158_v45 }
 0x298   : > { %7663 = vmatpush3.msra.mxu0 %v1078_v44  ;;  %7672 = vmatpush3.msra.mxu1 %v1158_v45  ;;  %v4482_v45 = vadd.f32 %v4481_v30, %v4465_v26  ;;  %v5315_v48 = vstv %s8959_s13  ;;  %s7087_s13 = sld [smem:[#allocation5 + $0xa5]] }
 0x299   : > { %7664 = vmatprep.subr.mxu0 %v1073_v35  ;;  %7673 = vmatprep.subr.mxu1 %v1153_v36 }
 0x29a   : > { %7665 = vmatpush3.msra.mxu0 %v1073_v35  ;;  %7666 = vmatprep.mubr.msk.f32.mxu0 %vm486_vm4, %v8750_v52 }
 0x29b   : > { %7674 = vmatpush3.msra.mxu1 %v1153_v36  ;;  %7667 = vmatmul.mubr.msk.f32.vlgmr.msra.gmra.mxu0 %vm486_vm4, %v8756_v53 }
 0x29c   : > { %7675 = vmatprep.mubr.msk.f32.mxu1 %vm486_vm4, %v8750_v52  ;;  %7678 = vmatprep.subr.mxu0 %v11133_v0 }
 0x29d   : > { %7693 = vmatprep.subr.mxu1 %v11133_v0  ;;  %7676 = vmatmul.mubr.msk.f32.vlgmr.msra.gmra.mxu1 %vm486_vm4, %v8756_v53 }
 0x29e   : > { %7679 = vmatpush3.msk.msra.mxu0 %vm496_vm6, %v8633_v13  ;;  %7694 = vmatpush3.msk.msra.mxu1 %vm496_vm6, %v8644_v16 }
 0x29f   : > { %7680 = vmatprep.subr.mxu0 %v11133_v0  ;;  %7695 = vmatprep.subr.mxu1 %v11133_v0 }
 0x2a0   : > { %7681 = vmatpush3.msk.msra.mxu0 %vm8639_vm11, %v8317_v21  ;;  %7696 = vmatpush3.msk.msra.mxu1 %vm8654_vm13, %v8317_v21 }
 0x2a1   : > { %7682 = vmatprep.subr.mxu0 %v11133_v0  ;;  %7697 = vmatprep.subr.mxu1 %v11133_v0 }
 0x2a2   : > { %7683 = vmatpush3.msk.msra.mxu0 %vm8661_vm14, %v8317_v21  ;;  %7684 = vmatprep.mubr.msk.f32.mxu0 %vm8315_vm5, %v11133_v0 }
 0x2a3   : > { %7698 = vmatpush3.msk.msra.mxu1 %vm8671_vm0, %v8317_v21  ;;  %7699 = vmatprep.mubr.msk.f32.mxu1 %vm8315_vm5, %v11133_v0 }
 0x2a4   : > { %7685 = vmatmul.mubr.msk.f32.vlgmr.msra.gmra.mxu0 %vm486_vm4, %v1486_v61  ;;  %7700 = vmatmul.mubr.msk.f32.vlgmr.msra.gmra.mxu1 %vm486_vm4, %v1486_v61 }
 0x2a5   : > { %7687 = vmatprep.mubr.msk.f32.mxu0 %vm8315_vm5, %v11133_v0  ;;  %7702 = vmatprep.mubr.msk.f32.mxu1 %vm8315_vm5, %v11133_v0 }
 0x2a8   : > { %7688 = vmatmul.mubr.msk.f32.gmra.mxu0 %vm486_vm4, %v1487_v62  ;;  %7703 = vmatmul.mubr.msk.f32.gmra.mxu1 %vm486_vm4, %v1487_v62 }
 0x2a9   : > { %7690 = vmatprep.mubr.msk.f32.mxu0 %vm8315_vm5, %v11133_v0  ;;  %7705 = vmatprep.mubr.msk.f32.mxu1 %vm8315_vm5, %v11133_v0 }
 0x2ac   : > { %7691 = vmatmul.mubr.msk.f32.gmra.mxu0 %vm486_vm4, %v1488_v63  ;;  %7706 = vmatmul.mubr.msk.f32.gmra.mxu1 %vm486_vm4, %v1488_v63 }
 0x2ad   : > { %7714 = vmatprep.mubr.msk.f32.mxu0 %vm486_vm4, %v8707_v29  ;;  %7723 = vmatprep.mubr.msk.f32.mxu1 %vm486_vm4, %v8707_v29 }
 0x354   : > { %v7650_v1 = vpop.f32.mrf.mxu0 }
 0x355   : > { %1247 = vst.msk [vmem:[#allocation3 + $0x18] sm:$0x1] %vm749_vm7, %v7650_v1  ;;  %v7659_v2 = vpop.f32.mrf.mxu1 }
 0x356   : > { %v1236_v3 = vpop.f32.mrf.mxu0  ;;  %1328 = vst.msk [vmem:[#allocation3 + $0x98] sm:$0x1] %vm749_vm7, %v7659_v2 }
 0x357   : > { %1246 = vst.msk [vmem:[#allocation3 + $0x10] sm:$0xff] %vm747_vm8, %v1236_v3  ;;  %v1317_v4 = vpop.f32.mrf.mxu1 }
 0x358   : > { %1327 = vst.msk [vmem:[#allocation3 + $0x90] sm:$0xff] %vm747_vm8, %v1317_v4 }
 0x35b   : > { %v7668_v9 = vpop.f32.mrf.mxu0 }
 0x35d   : > { %v1395_v18 = vpop.f32.mrf.mxu0  ;;  %v7677_v23 = vpop.f32.mrf.mxu1 }
 0x35e   : > { %1405 = vst.msk [vmem:[#allocation3 + $0x110] sm:$0xff] %vm747_vm8, %v1395_v18  ;;  %v4483_v31 = vld [vmem:[#allocation3 + $0x10] sm:$0xff]  ;;  %v1977_v18 = vld [vmem:[#allocation2 + $0x48] sm:$0xff] }
 0x35f   : > { %v1473_v34 = vpop.f32.mrf.mxu1  ;;  %v4788_v35 = vmul.f32 %v4787_v11, %v4483_v31  ;;  %v4772_v36 = vmul.f32 %v4771_v12, %v4483_v31  ;;  %v4486_v28 = vmul.f32 %v4485_v32, %v4483_v31  ;;  %v4490_v42 = vmul.f32 %v4489_v33, %v4483_v31  ;;  %v1978_v23 = vld [vmem:[#allocation2 + $0x50] sm:$0xff] }
 0x360   : > { %1483 = vst.msk [vmem:[#allocation3 + $0x190] sm:$0xff] %vm747_vm8, %v1473_v34  ;;  %v4494_v44 = vmul.f32 %v4493_v37, %v4483_v31  ;;  %v4498_v46 = vmul.f32 %v4497_v38, %v4483_v31  ;;  %v4780_v47 = vmul.f32 %v4779_v39, %v4483_v31  ;;  %v4796_v63 = vmul.f32 %v4795_v56, %v4483_v31 }
 0x361   : > { %4790 = vrot.lane.b32.xlu1 %v4788_v35, %s11178_s16  ;;  %4774 = vrot.lane.b32.xlu0 %v4772_v36, %s11178_s16  ;;  %v8983_v49 = vadd.f32 %v4486_v28, %v4470_v40  ;;  %v8985_v50 = vadd.f32 %v4490_v42, %v4474_v41  ;;  %v5307_v11 = vstv %s7087_s13  ;;  %v4811_v31 = vstv %s6995_s30  ;;  %s9173_s13 = sld [smem:[#allocation5 + $0x4f]] }
 0x362   : > { %v8988_v57 = vadd.f32 %v4494_v44, %v4478_v43  ;;  %v8990_v58 = vadd.f32 %v4498_v46, %v4482_v45  ;;  %v4803_v32 = vstv %s6994_s12  ;;  %v4502_v35 = vstv %s9064_s17  ;;  %s9178_s30 = sld [smem:[#allocation5 + $0xd]] }
 0x363   : > { %v4506_v36 = vstv %s9067_s23  ;;  %v4510_v28 = vstv %s9069_s26  ;;  %v4514_v41 = vstv %s6933_s6  ;;  %v4827_v42 = vstv %s9062_s15  ;;  %s6936_s12 = sld [smem:[#allocation5 + $0xe]] }
 0x364   : > { %v1564_v54 = vpop.f32.mrf.mxu0  ;;  %v1644_v55 = vpop.f32.mrf.mxu1  ;;  %v4819_v43 = vstv %s6996_s7  ;;  %s6937_s15 = sld [smem:[#allocation5 + $0xf]] }
 0x365   : > { %4782 = vrot.lane.b32.xlu0 %v4780_v47, %s11178_s16  ;;  %v5011_v59 = vld [vmem:[#allocation3 + $0x110] sm:$0xff]  ;;  %s7000_s17 = sld [smem:[#allocation5 + $0x4e]] }
 0x366   : > { %v7686_v60 = vpop.f32.mrf.mxu0  ;;  %v7701_v61 = vpop.f32.mrf.mxu1  ;;  %v5316_v62 = vmul.f32 %v5315_v48, %v5011_v59  ;;  %v5300_v10 = vmul.f32 %v5299_v7, %v5011_v59  ;;  %v5308_v12 = vmul.f32 %v5307_v11, %v5011_v59  ;;  %v5324_v17 = vmul.f32 %v5323_v14, %v5011_v59  ;;  %s9183_s23 = sld [smem:[#allocation5 + $0xad]] }
 0x367   : > { %v5347_v11 = vstv %s7092_s11  ;;  %s9185_s26 = sld [smem:[#allocation5 + $0xac]] }
 0x368   : > { %v1569_v1 = vpop.f32.mrf.mxu0  ;;  %v1649_v2 = vpop.f32.mrf.mxu1  ;;  %5318 = vrot.lane.b32.xlu1 %v5316_v62, %s11178_s16  ;;  %s7003_s6 = sld [smem:[#allocation5 + $0x51]] }
 0x369   : > { %4798 = vrot.lane.b32.xlu0 %v4796_v63, %s11178_s16  ;;  %v5339_v63 = vstv %s9074_s9  ;;  %s7002_s7 = sld [smem:[#allocation5 + $0x50]] }
 0x36a   : > { %v7689_v3 = vpop.f32.mrf.mxu0  ;;  %v7704_v4 = vpop.f32.mrf.mxu1  ;;  %s9280_s9 = sld [smem:[#allocation5 + $0x53]] }
 0x36b   : > { %s6940_s11 = sld [smem:[#allocation5 + $0x12]] }
 0x36c   : > { %v1574_v5 = vpop.f32.mrf.mxu0  ;;  %v1654_v6 = vpop.f32.mrf.mxu1 }
 0x36d   : > { %7708 = vmatprep.subr.msk.mxu0 %vm496_vm6, %v1574_v5  ;;  %7717 = vmatprep.subr.msk.mxu1 %vm496_vm6, %v1654_v6 }
 0x36e   : > { %v7692_v8 = vpop.f32.mrf.mxu0  ;;  %v7707_v9 = vpop.f32.mrf.mxu1  ;;  %7709 = vmatpush3.msk.msra.mxu0 %vm496_vm6, %v1574_v5  ;;  %7718 = vmatpush3.msk.msra.mxu1 %vm496_vm6, %v1654_v6 }
 0x36f   : > { %7710 = vmatprep.subr.mxu0 %v1569_v1  ;;  %7719 = vmatprep.subr.mxu1 %v1649_v2 }
 0x370   : > { %7711 = vmatpush3.msra.mxu0 %v1569_v1  ;;  %7720 = vmatpush3.msra.mxu1 %v1649_v2 }
 0x371   : > { %5302 = vrot.lane.b32.xlu0 %v5300_v10, %s11178_s16  ;;  %7712 = vmatprep.subr.mxu0 %v1564_v54 }
 0x372   : > { %7721 = vmatprep.subr.mxu1 %v1644_v55  ;;  %7713 = vmatpush3.msra.mxu0 %v1564_v54 }
 0x373   : > { %7722 = vmatpush3.msra.mxu1 %v1644_v55  ;;  %7715 = vmatmul.mubr.msk.f32.vlgmr.msra.gmra.mxu0 %vm486_vm4, %v8736_v51 }
 0x374   : > { %7726 = vmatprep.subr.msk.mxu0 %vm496_vm6, %v1574_v5  ;;  %7735 = vmatprep.subr.msk.mxu1 %vm496_vm6, %v1654_v6 }
 0x375   : > { %7724 = vmatmul.mubr.msk.f32.vlgmr.msra.gmra.mxu1 %vm486_vm4, %v8736_v51  ;;  %7727 = vmatpush3.msk.msra.mxu0 %vm496_vm6, %v1574_v5 }
 0x376   : > { %7736 = vmatpush3.msk.msra.mxu1 %vm496_vm6, %v1654_v6  ;;  %5310 = vrot.lane.b32.xlu0 %v5308_v12, %s11178_s16 }
 0x377   : > { %7728 = vmatprep.subr.mxu0 %v1569_v1  ;;  %7737 = vmatprep.subr.mxu1 %v1649_v2 }
 0x378   : > { %7729 = vmatpush3.msra.mxu0 %v1569_v1  ;;  %7738 = vmatpush3.msra.mxu1 %v1649_v2  ;;  %v5331_v1 = vstv %s9076_s8  ;;  %s9282_s8 = sld [smem:[#allocation5 + $0x10]] }
 0x379   : > { %7730 = vmatprep.subr.mxu0 %v1564_v54  ;;  %7739 = vmatprep.subr.mxu1 %v1644_v55 }
 0x37a   : > { %7731 = vmatpush3.msra.mxu0 %v1564_v54  ;;  %7732 = vmatprep.mubr.msk.f32.mxu0 %vm486_vm4, %v8750_v52 }
 0x37b   : > { %7740 = vmatpush3.msra.mxu1 %v1644_v55  ;;  %5326 = vrot.lane.b32.xlu0 %v5324_v17, %s11178_s16 }
 0x37c   : > { %7733 = vmatmul.mubr.msk.f32.vlgmr.msra.gmra.mxu0 %vm486_vm4, %v8756_v53  ;;  %7741 = vmatprep.mubr.msk.f32.mxu1 %vm486_vm4, %v8750_v52 }
 0x37d   : > { %7744 = vmatprep.subr.mxu0 %v11133_v0  ;;  %7759 = vmatprep.subr.mxu1 %v11133_v0 }
 0x37e   : > { %7742 = vmatmul.mubr.msk.f32.vlgmr.msra.gmra.mxu1 %vm486_vm4, %v8756_v53  ;;  %7745 = vmatpush3.msk.msra.mxu0 %vm496_vm6, %v8633_v13 }
 0x37f   : > { %7760 = vmatpush3.msk.msra.mxu1 %vm496_vm6, %v8644_v16  ;;  %7746 = vmatprep.subr.mxu0 %v11133_v0 }
 0x380   : > { %7761 = vmatprep.subr.mxu1 %v11133_v0  ;;  %7747 = vmatpush3.msk.msra.mxu0 %vm8639_vm11, %v8317_v21 }
 0x381   : > { %7762 = vmatpush3.msk.msra.mxu1 %vm8654_vm13, %v8317_v21  ;;  %7748 = vmatprep.subr.mxu0 %v11133_v0 }
 0x382   : > { %7763 = vmatprep.subr.mxu1 %v11133_v0  ;;  %7749 = vmatpush3.msk.msra.mxu0 %vm8661_vm14, %v8317_v21 }
 0x383   : > { %7750 = vmatprep.mubr.msk.f32.mxu0 %vm8315_vm5, %v11133_v0  ;;  %7764 = vmatpush3.msk.msra.mxu1 %vm8671_vm0, %v8317_v21 }
 0x384   : > { %7765 = vmatprep.mubr.msk.f32.mxu1 %vm8315_vm5, %v11133_v0  ;;  %7751 = vmatmul.mubr.msk.f32.vlgmr.msra.gmra.mxu0 %vm486_vm4, %v1977_v18 }
 0x385   : > { %7766 = vmatmul.mubr.msk.f32.vlgmr.msra.gmra.mxu1 %vm486_vm4, %v1977_v18  ;;  %7753 = vmatprep.mubr.msk.f32.mxu0 %vm8315_vm5, %v11133_v0 }
 0x386   : > { %7768 = vmatprep.mubr.msk.f32.mxu1 %vm8315_vm5, %v11133_v0 }
 0x388   : > { %7754 = vmatmul.mubr.msk.f32.gmra.mxu0 %vm486_vm4, %v1978_v23 }
 0x389   : > { %7769 = vmatmul.mubr.msk.f32.gmra.mxu1 %vm486_vm4, %v1978_v23  ;;  %7756 = vmatprep.mubr.msk.f32.mxu0 %vm8315_vm5, %v11133_v0  ;;  %v2468_v23 = vld [vmem:[#allocation2 + $0x60] sm:$0xff] }
 0x38a   : > { %7771 = vmatprep.mubr.msk.f32.mxu1 %vm8315_vm5, %v11133_v0 }
 0x38c   : > { %7757 = vmatmul.mubr.msk.f32.gmra.mxu0 %vm486_vm4, %v1979_v24 }
 0x38d   : > { %7772 = vmatmul.mubr.msk.f32.gmra.mxu1 %vm486_vm4, %v1979_v24  ;;  %7780 = vmatprep.mubr.msk.f32.mxu0 %vm486_vm4, %v8707_v29  ;;  %v2469_v24 = vld [vmem:[#allocation2 + $0x68] sm:$0xff] }
 0x38e   : > { %7789 = vmatprep.mubr.msk.f32.mxu1 %vm486_vm4, %v8707_v29 }
 0x433   : > { %v7716_v25 = vpop.f32.mrf.mxu0 }
 0x434   : > { %1738 = vst.msk [vmem:[#allocation3 + $0x28] sm:$0x1] %vm749_vm7, %v7716_v25  ;;  %v2470_v25 = vld [vmem:[#allocation2 + $0x70] sm:$0x3] }
 0x435   : > { %v1727_v26 = vpop.f32.mrf.mxu0  ;;  %v7725_v27 = vpop.f32.mrf.mxu1 }
 0x436   : > { %1737 = vst.msk [vmem:[#allocation3 + $0x20] sm:$0xff] %vm747_vm8, %v1727_v26 }
 0x437   : > { %1819 = vst.msk [vmem:[#allocation3 + $0xa8] sm:$0x1] %vm749_vm7, %v7725_v27  ;;  %v1808_v30 = vpop.f32.mrf.mxu1 }
 0x438   : > { %1818 = vst.msk [vmem:[#allocation3 + $0xa0] sm:$0xff] %vm747_vm8, %v1808_v30 }
 0x43c   : > { %v7734_v33 = vpop.f32.mrf.mxu0 }
 0x43d   : > { %v4500_v34 = vld [vmem:[#allocation3 + $0x20] sm:$0xff]  ;;  %v4843_v33 = vstv %s6999_s14  ;;  %s6941_s14 = sld [smem:[#allocation5 + $0x13]] }
 0x43e   : > { %v1886_v37 = vpop.f32.mrf.mxu0  ;;  %v7743_v38 = vpop.f32.mrf.mxu1  ;;  %v4812_v39 = vmul.f32 %v4811_v31, %v4500_v34  ;;  %v4804_v40 = vmul.f32 %v4803_v32, %v4500_v34  ;;  %v4503_v45 = vmul.f32 %v4502_v35, %v4500_v34  ;;  %v4507_v46 = vmul.f32 %v4506_v36, %v4500_v34 }
 0x43f   : > { %1896 = vst.msk [vmem:[#allocation3 + $0x120] sm:$0xff] %vm747_vm8, %v1886_v37  ;;  %v4511_v47 = vmul.f32 %v4510_v28, %v4500_v34  ;;  %v4515_v48 = vmul.f32 %v4514_v41, %v4500_v34  ;;  %v4828_v54 = vmul.f32 %v4827_v42, %v4500_v34  ;;  %v4820_v55 = vmul.f32 %v4819_v43, %v4500_v34 }
 0x440   : > { %v1964_v44 = vpop.f32.mrf.mxu1  ;;  %4814 = vrot.lane.b32.xlu0 %v4812_v39, %s11178_s16  ;;  %4806 = vrot.lane.b32.xlu1 %v4804_v40, %s11178_s16  ;;  %v9089_v56 = vadd.f32 %v4503_v45, %v8983_v49  ;;  %v9092_v59 = vadd.f32 %v4507_v46, %v8985_v50  ;;  %v4835_v34 = vstv %s6998_s25  ;;  %v4519_v38 = vstv %s9175_s0  ;;  %s7004_s25 = sld [smem:[#allocation5 + $0x52]] }
 0x441   : > { %1974 = vst.msk [vmem:[#allocation3 + $0x1a0] sm:$0xff] %vm747_vm8, %v1964_v44  ;;  %v9095_v60 = vadd.f32 %v4511_v47, %v8988_v57  ;;  %v9098_v61 = vadd.f32 %v4515_v48, %v8990_v58  ;;  %v5355_v57 = vstv %s9085_s10  ;;  %v4523_v39 = vstv %s9178_s30  ;;  %s6939_s10 = sld [smem:[#allocation5 + $0x11]] }
 0x442   : > { %v4527_v42 = vstv %s6936_s12  ;;  %v4531_v43 = vstv %s6937_s15  ;;  %v4859_v44 = vstv %s9173_s13  ;;  %v4851_v45 = vstv %s7000_s17  ;;  %s9288_s13 = sld [smem:[#allocation5 + $0xb0]] }
 0x443   : > { %s7007_s0 = sld [smem:[#allocation5 + $0x55]] }
 0x444   : > { %v2055_v62 = vpop.f32.mrf.mxu0  ;;  %4830 = vrot.lane.b32.xlu0 %v4828_v54, %s11178_s16  ;;  %4822 = vrot.lane.b32.xlu1 %v4820_v55, %s11178_s16  ;;  %s7006_s30 = sld [smem:[#allocation5 + $0x54]] }
 0x445   : > { %v2135_v49 = vpop.f32.mrf.mxu1  ;;  %s9379_s12 = sld [smem:[#allocation5 + $0x57]] }
 0x446   : > { %v7752_v2 = vpop.f32.mrf.mxu0  ;;  %v5028_v3 = vld [vmem:[#allocation3 + $0x120] sm:$0xff]  ;;  %s9381_s15 = sld [smem:[#allocation5 + $0x14]] }
 0x447   : > { %v7767_v50 = vpop.f32.mrf.mxu1  ;;  %v5340_v4 = vmul.f32 %v5339_v63, %v5028_v3  ;;  %v5332_v5 = vmul.f32 %v5331_v1, %v5028_v3  ;;  %v5356_v9 = vmul.f32 %v5355_v57, %v5028_v3  ;;  %v5348_v18 = vmul.f32 %v5347_v11, %v5028_v3  ;;  %s6943_s17 = sld [smem:[#allocation5 + $0x15]] }
 0x448   : > { %v2060_v6 = vpop.f32.mrf.mxu0  ;;  %v5371_v3 = vstv %s9183_s23  ;;  %v5363_v50 = vstv %s9185_s26  ;;  %s6944_s23 = sld [smem:[#allocation5 + $0x16]] }
 0x449   : > { %v2140_v7 = vpop.f32.mrf.mxu1  ;;  %5342 = vrot.lane.b32.xlu0 %v5340_v4, %s11178_s16  ;;  %5334 = vrot.lane.b32.xlu1 %v5332_v5, %s11178_s16  ;;  %s6945_s26 = sld [smem:[#allocation5 + $0x17]] }
 0x44a   : > { %v7755_v58 = vpop.f32.mrf.mxu0 }
 0x44b   : > { %v7770_v8 = vpop.f32.mrf.mxu1 }
 0x44c   : > { %v2065_v10 = vpop.f32.mrf.mxu0 }
 0x44d   : > { %v2145_v12 = vpop.f32.mrf.mxu1  ;;  %7774 = vmatprep.subr.msk.mxu0 %vm496_vm6, %v2065_v10  ;;  %5358 = vrot.lane.b32.xlu0 %v5356_v9, %s11178_s16 }
 0x44e   : > { %7783 = vmatprep.subr.msk.mxu1 %vm496_vm6, %v2145_v12  ;;  %v7758_v14 = vpop.f32.mrf.mxu0  ;;  %7775 = vmatpush3.msk.msra.mxu0 %vm496_vm6, %v2065_v10 }
 0x44f   : > { %v7773_v17 = vpop.f32.mrf.mxu1  ;;  %7784 = vmatpush3.msk.msra.mxu1 %vm496_vm6, %v2145_v12  ;;  %7776 = vmatprep.subr.mxu0 %v2060_v6  ;;  %v2959_v14 = vld [vmem:[#allocation2 + $0x78] sm:$0xff] }
 0x450   : > { %7785 = vmatprep.subr.mxu1 %v2140_v7  ;;  %7777 = vmatpush3.msra.mxu0 %v2060_v6  ;;  %v2960_v17 = vld [vmem:[#allocation2 + $0x80] sm:$0xff] }
 0x451   : > { %7786 = vmatpush3.msra.mxu1 %v2140_v7  ;;  %5350 = vrot.lane.b32.xlu1 %v5348_v18, %s11178_s16  ;;  %v2961_v18 = vld [vmem:[#allocation2 + $0x88] sm:$0x3] }
 0x452   : > { %7778 = vmatprep.subr.mxu0 %v2055_v62  ;;  %7787 = vmatprep.subr.mxu1 %v2135_v49 }
 0x453   : > { %7779 = vmatpush3.msra.mxu0 %v2055_v62  ;;  %7788 = vmatpush3.msra.mxu1 %v2135_v49 }
 0x454   : > { %7781 = vmatmul.mubr.msk.f32.vlgmr.msra.gmra.mxu0 %vm486_vm4, %v8736_v51  ;;  %7792 = vmatprep.subr.msk.mxu0 %vm496_vm6, %v2065_v10 }
 0x455   : > { %7801 = vmatprep.subr.msk.mxu1 %vm496_vm6, %v2145_v12  ;;  %7790 = vmatmul.mubr.msk.f32.vlgmr.msra.gmra.mxu1 %vm486_vm4, %v8736_v51 }
 0x456   : > { %7793 = vmatpush3.msk.msra.mxu0 %vm496_vm6, %v2065_v10  ;;  %7802 = vmatpush3.msk.msra.mxu1 %vm496_vm6, %v2145_v12 }
 0x457   : > { %7794 = vmatprep.subr.mxu0 %v2060_v6  ;;  %7803 = vmatprep.subr.mxu1 %v2140_v7 }
 0x458   : > { %7795 = vmatpush3.msra.mxu0 %v2060_v6  ;;  %7804 = vmatpush3.msra.mxu1 %v2140_v7 }
 0x459   : > { %7796 = vmatprep.subr.mxu0 %v2055_v62  ;;  %7805 = vmatprep.subr.mxu1 %v2135_v49 }
 0x45a   : > { %7797 = vmatpush3.msra.mxu0 %v2055_v62  ;;  %7798 = vmatprep.mubr.msk.f32.mxu0 %vm486_vm4, %v8750_v52 }
 0x45b   : > { %7806 = vmatpush3.msra.mxu1 %v2135_v49  ;;  %7799 = vmatmul.mubr.msk.f32.vlgmr.msra.gmra.mxu0 %vm486_vm4, %v8756_v53 }
 0x45c   : > { %7807 = vmatprep.mubr.msk.f32.mxu1 %vm486_vm4, %v8750_v52  ;;  %7810 = vmatprep.subr.mxu0 %v11133_v0 }
 0x45d   : > { %7825 = vmatprep.subr.mxu1 %v11133_v0  ;;  %7808 = vmatmul.mubr.msk.f32.vlgmr.msra.gmra.mxu1 %vm486_vm4, %v8756_v53 }
 0x45e   : > { %7811 = vmatpush3.msk.msra.mxu0 %vm496_vm6, %v8633_v13  ;;  %7826 = vmatpush3.msk.msra.mxu1 %vm496_vm6, %v8644_v16 }
 0x45f   : > { %7812 = vmatprep.subr.mxu0 %v11133_v0  ;;  %7827 = vmatprep.subr.mxu1 %v11133_v0 }
 0x460   : > { %7813 = vmatpush3.msk.msra.mxu0 %vm8639_vm11, %v8317_v21  ;;  %7828 = vmatpush3.msk.msra.mxu1 %vm8654_vm13, %v8317_v21 }
 0x461   : > { %7814 = vmatprep.subr.mxu0 %v11133_v0  ;;  %7829 = vmatprep.subr.mxu1 %v11133_v0 }
 0x462   : > { %7815 = vmatpush3.msk.msra.mxu0 %vm8661_vm14, %v8317_v21  ;;  %7816 = vmatprep.mubr.msk.f32.mxu0 %vm8315_vm5, %v11133_v0 }
 0x463   : > { %7830 = vmatpush3.msk.msra.mxu1 %vm8671_vm0, %v8317_v21  ;;  %7831 = vmatprep.mubr.msk.f32.mxu1 %vm8315_vm5, %v11133_v0 }
 0x464   : > { %7817 = vmatmul.mubr.msk.f32.vlgmr.msra.gmra.mxu0 %vm486_vm4, %v2468_v23  ;;  %7832 = vmatmul.mubr.msk.f32.vlgmr.msra.gmra.mxu1 %vm486_vm4, %v2468_v23 }
 0x465   : > { %7819 = vmatprep.mubr.msk.f32.mxu0 %vm8315_vm5, %v11133_v0  ;;  %7834 = vmatprep.mubr.msk.f32.mxu1 %vm8315_vm5, %v11133_v0 }
 0x468   : > { %7820 = vmatmul.mubr.msk.f32.gmra.mxu0 %vm486_vm4, %v2469_v24  ;;  %7835 = vmatmul.mubr.msk.f32.gmra.mxu1 %vm486_vm4, %v2469_v24 }
 0x469   : > { %7822 = vmatprep.mubr.msk.f32.mxu0 %vm8315_vm5, %v11133_v0  ;;  %7837 = vmatprep.mubr.msk.f32.mxu1 %vm8315_vm5, %v11133_v0 }
 0x46c   : > { %7823 = vmatmul.mubr.msk.f32.gmra.mxu0 %vm486_vm4, %v2470_v25  ;;  %7838 = vmatmul.mubr.msk.f32.gmra.mxu1 %vm486_vm4, %v2470_v25 }
 0x46d   : > { %7846 = vmatprep.mubr.msk.f32.mxu0 %vm486_vm4, %v8707_v29  ;;  %7855 = vmatprep.mubr.msk.f32.mxu1 %vm486_vm4, %v8707_v29 }
 0x514   : > { %v7782_v26 = vpop.f32.mrf.mxu0 }
 0x515   : > { %2229 = vst.msk [vmem:[#allocation3 + $0x38] sm:$0x1] %vm749_vm7, %v7782_v26  ;;  %v7791_v27 = vpop.f32.mrf.mxu1 }
 0x516   : > { %v2218_v30 = vpop.f32.mrf.mxu0  ;;  %2310 = vst.msk [vmem:[#allocation3 + $0xb8] sm:$0x1] %vm749_vm7, %v7791_v27 }
 0x517   : > { %2228 = vst.msk [vmem:[#allocation3 + $0x30] sm:$0xff] %vm747_vm8, %v2218_v30  ;;  %v2299_v31 = vpop.f32.mrf.mxu1  ;;  %v4875_v30 = vstv %s7003_s6  ;;  %s7008_s6 = sld [smem:[#allocation5 + $0x56]] }
 0x518   : > { %2309 = vst.msk [vmem:[#allocation3 + $0xb0] sm:$0xff] %vm747_vm8, %v2299_v31  ;;  %v4867_v31 = vstv %s7002_s7  ;;  %s7011_s7 = sld [smem:[#allocation5 + $0x59]] }
 0x51b   : > { %v7800_v32 = vpop.f32.mrf.mxu0 }
 0x51d   : > { %v2377_v35 = vpop.f32.mrf.mxu0  ;;  %v7809_v36 = vpop.f32.mrf.mxu1 }
 0x51e   : > { %2387 = vst.msk [vmem:[#allocation3 + $0x130] sm:$0xff] %vm747_vm8, %v2377_v35  ;;  %v4517_v37 = vld [vmem:[#allocation3 + $0x30] sm:$0xff]  ;;  %v4536_v35 = vstv %s9282_s8  ;;  %v4540_v36 = vstv %s6939_s10  ;;  %s9471_s8 = sld [smem:[#allocation5 + $0x18]] }
 0x51f   : > { %v2455_v40 = vpop.f32.mrf.mxu1  ;;  %v4844_v28 = vmul.f32 %v4843_v33, %v4517_v37  ;;  %v4836_v41 = vmul.f32 %v4835_v34, %v4517_v37  ;;  %v4520_v46 = vmul.f32 %v4519_v38, %v4517_v37  ;;  %v4524_v47 = vmul.f32 %v4523_v39, %v4517_v37  ;;  %s6947_s10 = sld [smem:[#allocation5 + $0x19]] }
 0x520   : > { %2465 = vst.msk [vmem:[#allocation3 + $0x1b0] sm:$0xff] %vm747_vm8, %v2455_v40  ;;  %v4528_v48 = vmul.f32 %v4527_v42, %v4517_v37  ;;  %v4532_v54 = vmul.f32 %v4531_v43, %v4517_v37  ;;  %v4860_v55 = vmul.f32 %v4859_v44, %v4517_v37  ;;  %v4852_v62 = vmul.f32 %v4851_v45, %v4517_v37 }
 0x521   : > { %4846 = vrot.lane.b32.xlu0 %v4844_v28, %s11178_s16  ;;  %4838 = vrot.lane.b32.xlu1 %v4836_v41, %s11178_s16  ;;  %v9195_v63 = vadd.f32 %v4520_v46, %v9089_v56  ;;  %v9198_v1 = vadd.f32 %v4524_v47, %v9092_v59  ;;  %v4544_v40 = vstv %s6940_s11  ;;  %v4548_v28 = vstv %s6941_s14  ;;  %s6948_s11 = sld [smem:[#allocation5 + $0x1a]] }
 0x522   : > { %v9203_v4 = vadd.f32 %v4528_v48, %v9095_v60  ;;  %v9206_v5 = vadd.f32 %v4532_v54, %v9098_v61  ;;  %v4891_v41 = vstv %s9280_s9  ;;  %v4883_v42 = vstv %s7004_s25  ;;  %s7010_s9 = sld [smem:[#allocation5 + $0x58]] }
 0x523   : > { %s6949_s14 = sld [smem:[#allocation5 + $0x1b]] }
 0x524   : > { %v2546_v49 = vpop.f32.mrf.mxu0  ;;  %v2626_v2 = vpop.f32.mrf.mxu1  ;;  %s7012_s25 = sld [smem:[#allocation5 + $0x5a]] }
 0x525   : > { %4862 = vrot.lane.b32.xlu0 %v4860_v55, %s11178_s16  ;;  %4854 = vrot.lane.b32.xlu1 %v4852_v62, %s11178_s16  ;;  %v9210_v6 = vld [vmem:[#allocation3 + $0x130] sm:$0xff] }
 0x526   : > { %v7818_v56 = vpop.f32.mrf.mxu0  ;;  %v7833_v57 = vpop.f32.mrf.mxu1  ;;  %v5372_v59 = vmul.f32 %v5371_v3, %v9210_v6  ;;  %v5364_v7 = vmul.f32 %v5363_v50, %v9210_v6 }
 0x528   : > { %v2551_v58 = vpop.f32.mrf.mxu0  ;;  %v2631_v8 = vpop.f32.mrf.mxu1 }
 0x529   : > { %5374 = vrot.lane.b32.xlu0 %v5372_v59, %s11178_s16  ;;  %5366 = vrot.lane.b32.xlu1 %v5364_v7, %s11178_s16 }
 0x52a   : > { %v7821_v60 = vpop.f32.mrf.mxu0  ;;  %v7836_v61 = vpop.f32.mrf.mxu1 }
 0x52c   : > { %v2556_v9 = vpop.f32.mrf.mxu0  ;;  %v2636_v10 = vpop.f32.mrf.mxu1 }
 0x52d   : > { %7840 = vmatprep.subr.msk.mxu0 %vm496_vm6, %v2556_v9  ;;  %7849 = vmatprep.subr.msk.mxu1 %vm496_vm6, %v2636_v10 }
 0x52e   : > { %v7824_v11 = vpop.f32.mrf.mxu0  ;;  %v7839_v12 = vpop.f32.mrf.mxu1  ;;  %7841 = vmatpush3.msk.msra.mxu0 %vm496_vm6, %v2556_v9  ;;  %7850 = vmatpush3.msk.msra.mxu1 %vm496_vm6, %v2636_v10 }
 0x52f   : > { %7842 = vmatprep.subr.mxu0 %v2551_v58  ;;  %7851 = vmatprep.subr.mxu1 %v2631_v8  ;;  %v3452_v11 = vld [vmem:[#allocation2 + $0xa0] sm:$0x3] }
 0x530   : > { %7843 = vmatpush3.msra.mxu0 %v2551_v58  ;;  %7852 = vmatpush3.msra.mxu1 %v2631_v8 }
 0x531   : > { %7844 = vmatprep.subr.mxu0 %v2546_v49  ;;  %7853 = vmatprep.subr.mxu1 %v2626_v2 }
 0x532   : > { %7845 = vmatpush3.msra.mxu0 %v2546_v49  ;;  %7854 = vmatpush3.msra.mxu1 %v2626_v2 }
 0x533   : > { %7847 = vmatmul.mubr.msk.f32.vlgmr.msra.gmra.mxu0 %vm486_vm4, %v8736_v51  ;;  %7858 = vmatprep.subr.msk.mxu0 %vm496_vm6, %v2556_v9 }
 0x534   : > { %7867 = vmatprep.subr.msk.mxu1 %vm496_vm6, %v2636_v10  ;;  %7856 = vmatmul.mubr.msk.f32.vlgmr.msra.gmra.mxu1 %vm486_vm4, %v8736_v51 }
 0x535   : > { %7859 = vmatpush3.msk.msra.mxu0 %vm496_vm6, %v2556_v9  ;;  %7868 = vmatpush3.msk.msra.mxu1 %vm496_vm6, %v2636_v10  ;;  %v3450_v9 = vld [vmem:[#allocation2 + $0x90] sm:$0xff]  ;;  %v3451_v10 = vld [vmem:[#allocation2 + $0x98] sm:$0xff] }
 0x536   : > { %7860 = vmatprep.subr.mxu0 %v2551_v58  ;;  %7869 = vmatprep.subr.mxu1 %v2631_v8 }
 0x537   : > { %7861 = vmatpush3.msra.mxu0 %v2551_v58  ;;  %7870 = vmatpush3.msra.mxu1 %v2631_v8 }
 0x538   : > { %7862 = vmatprep.subr.mxu0 %v2546_v49  ;;  %7871 = vmatprep.subr.mxu1 %v2626_v2 }
 0x539   : > { %7863 = vmatpush3.msra.mxu0 %v2546_v49  ;;  %7864 = vmatprep.mubr.msk.f32.mxu0 %vm486_vm4, %v8750_v52 }
 0x53a   : > { %7872 = vmatpush3.msra.mxu1 %v2626_v2  ;;  %7865 = vmatmul.mubr.msk.f32.vlgmr.msra.gmra.mxu0 %vm486_vm4, %v8756_v53  ;;  %v5395_v2 = vstv %s9288_s13  ;;  %s9477_s13 = sld [smem:[#allocation5 + $0x5b]] }
 0x53b   : > { %7873 = vmatprep.mubr.msk.f32.mxu1 %vm486_vm4, %v8750_v52  ;;  %7876 = vmatprep.subr.mxu0 %v11133_v0 }
 0x53c   : > { %7891 = vmatprep.subr.mxu1 %v11133_v0  ;;  %7874 = vmatmul.mubr.msk.f32.vlgmr.msra.gmra.mxu1 %vm486_vm4, %v8756_v53 }
 0x53d   : > { %7877 = vmatpush3.msk.msra.mxu0 %vm496_vm6, %v8633_v13  ;;  %7892 = vmatpush3.msk.msra.mxu1 %vm496_vm6, %v8644_v16 }
 0x53e   : > { %7878 = vmatprep.subr.mxu0 %v11133_v0  ;;  %7893 = vmatprep.subr.mxu1 %v11133_v0 }
 0x53f   : > { %7879 = vmatpush3.msk.msra.mxu0 %vm8639_vm11, %v8317_v21  ;;  %7894 = vmatpush3.msk.msra.mxu1 %vm8654_vm13, %v8317_v21 }
 0x540   : > { %7880 = vmatprep.subr.mxu0 %v11133_v0  ;;  %7895 = vmatprep.subr.mxu1 %v11133_v0 }
 0x541   : > { %7881 = vmatpush3.msk.msra.mxu0 %vm8661_vm14, %v8317_v21  ;;  %7882 = vmatprep.mubr.msk.f32.mxu0 %vm8315_vm5, %v11133_v0 }
 0x542   : > { %7896 = vmatpush3.msk.msra.mxu1 %vm8671_vm0, %v8317_v21  ;;  %7897 = vmatprep.mubr.msk.f32.mxu1 %vm8315_vm5, %v11133_v0 }
 0x543   : > { %7883 = vmatmul.mubr.msk.f32.vlgmr.msra.gmra.mxu0 %vm486_vm4, %v2959_v14  ;;  %7898 = vmatmul.mubr.msk.f32.vlgmr.msra.gmra.mxu1 %vm486_vm4, %v2959_v14 }
 0x544   : > { %7885 = vmatprep.mubr.msk.f32.mxu0 %vm8315_vm5, %v11133_v0  ;;  %7900 = vmatprep.mubr.msk.f32.mxu1 %vm8315_vm5, %v11133_v0 }
 0x547   : > { %7886 = vmatmul.mubr.msk.f32.gmra.mxu0 %vm486_vm4, %v2960_v17  ;;  %7901 = vmatmul.mubr.msk.f32.gmra.mxu1 %vm486_vm4, %v2960_v17 }
 0x548   : > { %7888 = vmatprep.mubr.msk.f32.mxu0 %vm8315_vm5, %v11133_v0  ;;  %7903 = vmatprep.mubr.msk.f32.mxu1 %vm8315_vm5, %v11133_v0 }
 0x54b   : > { %7889 = vmatmul.mubr.msk.f32.gmra.mxu0 %vm486_vm4, %v2961_v18  ;;  %7904 = vmatmul.mubr.msk.f32.gmra.mxu1 %vm486_vm4, %v2961_v18 }
 0x54c   : > { %7912 = vmatprep.mubr.msk.f32.mxu0 %vm486_vm4, %v8707_v29  ;;  %7921 = vmatprep.mubr.msk.f32.mxu1 %vm486_vm4, %v8707_v29 }
 0x5f3   : > { %v7848_v23 = vpop.f32.mrf.mxu0 }
 0x5f4   : > { %2720 = vst.msk [vmem:[#allocation3 + $0x48] sm:$0x1] %vm749_vm7, %v7848_v23  ;;  %v7857_v24 = vpop.f32.mrf.mxu1 }
 0x5f5   : > { %v2709_v25 = vpop.f32.mrf.mxu0  ;;  %2801 = vst.msk [vmem:[#allocation3 + $0xc8] sm:$0x1] %vm749_vm7, %v7857_v24  ;;  %v4907_v24 = vstv %s7007_s0  ;;  %s9519_s0 = sld [smem:[#allocation5 + $0x100]] }
 0x5f6   : > { %2719 = vst.msk [vmem:[#allocation3 + $0x40] sm:$0xff] %vm747_vm8, %v2709_v25  ;;  %v2790_v26 = vpop.f32.mrf.mxu1  ;;  %v4899_v25 = vstv %s7006_s30  ;;  %s9521_s30 = sld [smem:[#allocation5 + $0x101]] }
 0x5f7   : > { %2800 = vst.msk [vmem:[#allocation3 + $0xc0] sm:$0xff] %vm747_vm8, %v2790_v26 }
 0x5fa   : > { %v7866_v27 = vpop.f32.mrf.mxu0 }
 0x5fc   : > { %v2868_v32 = vpop.f32.mrf.mxu0  ;;  %v7875_v33 = vpop.f32.mrf.mxu1 }
 0x5fd   : > { %2878 = vst.msk [vmem:[#allocation3 + $0x140] sm:$0xff] %vm747_vm8, %v2868_v32  ;;  %v4534_v34 = vld [vmem:[#allocation3 + $0x40] sm:$0xff]  ;;  %v4557_v32 = vstv %s6943_s17  ;;  %s9527_s17 = sld [smem:[#allocation5 + $0x60]] }
 0x5fe   : > { %v2946_v37 = vpop.f32.mrf.mxu1  ;;  %v4876_v38 = vmul.f32 %v4875_v30, %v4534_v34  ;;  %v4868_v39 = vmul.f32 %v4867_v31, %v4534_v34  ;;  %v4537_v43 = vmul.f32 %v4536_v35, %v4534_v34  ;;  %v4541_v44 = vmul.f32 %v4540_v36, %v4534_v34 }
 0x5ff   : > { %2956 = vst.msk [vmem:[#allocation3 + $0x1c0] sm:$0xff] %vm747_vm8, %v2946_v37  ;;  %v4545_v45 = vmul.f32 %v4544_v40, %v4534_v34  ;;  %v4549_v46 = vmul.f32 %v4548_v28, %v4534_v34  ;;  %v4892_v47 = vmul.f32 %v4891_v41, %v4534_v34  ;;  %v4884_v48 = vmul.f32 %v4883_v42, %v4534_v34 }
 0x600   : > { %4878 = vrot.lane.b32.xlu0 %v4876_v38, %s11178_s16  ;;  %4870 = vrot.lane.b32.xlu1 %v4868_v39, %s11178_s16  ;;  %v9297_v54 = vadd.f32 %v4537_v43, %v9195_v63  ;;  %v9300_v55 = vadd.f32 %v4541_v44, %v9198_v1  ;;  %v4553_v31 = vstv %s9381_s15  ;;  %v4561_v36 = vstv %s6944_s23  ;;  %s9525_s15 = sld [smem:[#allocation5 + $0x103]] }
 0x601   : > { %v9304_v3 = vadd.f32 %v4545_v45, %v9203_v4  ;;  %v9307_v50 = vadd.f32 %v4549_v46, %v9206_v5  ;;  %v4565_v37 = vstv %s6945_s26  ;;  %v4923_v38 = vstv %s9379_s12  ;;  %s9523_s12 = sld [smem:[#allocation5 + $0x102]] }
 0x602   : > { %v4915_v39 = vstv %s7008_s6  ;;  %s9529_s23 = sld [smem:[#allocation5 + $0x61]] }
 0x603   : > { %v3037_v62 = vpop.f32.mrf.mxu0  ;;  %v3117_v49 = vpop.f32.mrf.mxu1  ;;  %s9531_s26 = sld [smem:[#allocation5 + $0x62]] }
 0x604   : > { %4894 = vrot.lane.b32.xlu0 %v4892_v47, %s11178_s16  ;;  %4886 = vrot.lane.b32.xlu1 %v4884_v48, %s11178_s16  ;;  %v9311_v56 = vld [vmem:[#allocation3 + $0x140] sm:$0xff]  ;;  %s9533_s6 = sld [smem:[#allocation5 + $0x63]] }
 0x605   : > { %v7884_v63 = vpop.f32.mrf.mxu0  ;;  %v7899_v57 = vpop.f32.mrf.mxu1  ;;  %v5396_v1 = vmul.f32 %v5395_v2, %v9311_v56 }
 0x607   : > { %v3042_v59 = vpop.f32.mrf.mxu0  ;;  %v3122_v7 = vpop.f32.mrf.mxu1 }
 0x608   : > { %5398 = vrot.lane.b32.xlu1 %v5396_v1, %s11178_s16 }
 0x609   : > { %v7887_v58 = vpop.f32.mrf.mxu0  ;;  %v7902_v4 = vpop.f32.mrf.mxu1 }
 0x60a   : > { %v4931_v4 = vstv %s7010_s9  ;;  %s9537_s9 = sld [smem:[#allocation5 + $0xc1]] }
 0x60b   : > { %v3047_v8 = vpop.f32.mrf.mxu0  ;;  %v3127_v60 = vpop.f32.mrf.mxu1 }
 0x60c   : > { %7906 = vmatprep.subr.msk.mxu0 %vm496_vm6, %v3047_v8  ;;  %7915 = vmatprep.subr.msk.mxu1 %vm496_vm6, %v3127_v60 }
 0x60d   : > { %v7890_v5 = vpop.f32.mrf.mxu0  ;;  %v7905_v61 = vpop.f32.mrf.mxu1  ;;  %7907 = vmatpush3.msk.msra.mxu0 %vm496_vm6, %v3047_v8  ;;  %7916 = vmatpush3.msk.msra.mxu1 %vm496_vm6, %v3127_v60 }
 0x60e   : > { %7908 = vmatprep.subr.mxu0 %v3042_v59  ;;  %7917 = vmatprep.subr.mxu1 %v3122_v7  ;;  %v4570_v61 = vstv %s9471_s8  ;;  %s9539_s8 = sld [smem:[#allocation5 + $0xc2]] }
 0x60f   : > { %7909 = vmatpush3.msra.mxu0 %v3042_v59  ;;  %7918 = vmatpush3.msra.mxu1 %v3122_v7 }
 0x610   : > { %7910 = vmatprep.subr.mxu0 %v3037_v62  ;;  %7919 = vmatprep.subr.mxu1 %v3117_v49 }
 0x611   : > { %7911 = vmatpush3.msra.mxu0 %v3037_v62  ;;  %7920 = vmatpush3.msra.mxu1 %v3117_v49 }
 0x612   : > { %7913 = vmatmul.mubr.msk.f32.vlgmr.msra.gmra.mxu0 %vm486_vm4, %v8736_v51  ;;  %7924 = vmatprep.subr.msk.mxu0 %vm496_vm6, %v3047_v8 }
 0x613   : > { %7933 = vmatprep.subr.msk.mxu1 %vm496_vm6, %v3127_v60  ;;  %7922 = vmatmul.mubr.msk.f32.vlgmr.msra.gmra.mxu1 %vm486_vm4, %v8736_v51 }
 0x614   : > { %7925 = vmatpush3.msk.msra.mxu0 %vm496_vm6, %v3047_v8  ;;  %7934 = vmatpush3.msk.msra.mxu1 %vm496_vm6, %v3127_v60 }
 0x615   : > { %7926 = vmatprep.subr.mxu0 %v3042_v59  ;;  %7935 = vmatprep.subr.mxu1 %v3122_v7 }
 0x616   : > { %7927 = vmatpush3.msra.mxu0 %v3042_v59  ;;  %7936 = vmatpush3.msra.mxu1 %v3122_v7 }
 0x617   : > { %7928 = vmatprep.subr.mxu0 %v3037_v62  ;;  %7937 = vmatprep.subr.mxu1 %v3117_v49 }
 0x618   : > { %7929 = vmatpush3.msra.mxu0 %v3037_v62  ;;  %7930 = vmatprep.mubr.msk.f32.mxu0 %vm486_vm4, %v8750_v52 }
 0x619   : > { %7938 = vmatpush3.msra.mxu1 %v3117_v49  ;;  %7931 = vmatmul.mubr.msk.f32.vlgmr.msra.gmra.mxu0 %vm486_vm4, %v8756_v53 }
 0x61a   : > { %7939 = vmatprep.mubr.msk.f32.mxu1 %vm486_vm4, %v8750_v52  ;;  %7942 = vmatprep.subr.mxu0 %v11133_v0 }
 0x61b   : > { %7957 = vmatprep.subr.mxu1 %v11133_v0  ;;  %7940 = vmatmul.mubr.msk.f32.vlgmr.msra.gmra.mxu1 %vm486_vm4, %v8756_v53 }
 0x61c   : > { %7943 = vmatpush3.msk.msra.mxu0 %vm496_vm6, %v8633_v13  ;;  %7958 = vmatpush3.msk.msra.mxu1 %vm496_vm6, %v8644_v16 }
 0x61d   : > { %7944 = vmatprep.subr.mxu0 %v11133_v0  ;;  %7959 = vmatprep.subr.mxu1 %v11133_v0 }
 0x61e   : > { %7945 = vmatpush3.msk.msra.mxu0 %vm8639_vm11, %v8317_v21  ;;  %7960 = vmatpush3.msk.msra.mxu1 %vm8654_vm13, %v8317_v21 }
 0x61f   : > { %7946 = vmatprep.subr.mxu0 %v11133_v0  ;;  %7961 = vmatprep.subr.mxu1 %v11133_v0 }
 0x620   : > { %7947 = vmatpush3.msk.msra.mxu0 %vm8661_vm14, %v8317_v21  ;;  %7948 = vmatprep.mubr.msk.f32.mxu0 %vm8315_vm5, %v11133_v0 }
 0x621   : > { %7962 = vmatpush3.msk.msra.mxu1 %vm8671_vm0, %v8317_v21  ;;  %7963 = vmatprep.mubr.msk.f32.mxu1 %vm8315_vm5, %v11133_v0 }
 0x622   : > { %7949 = vmatmul.mubr.msk.f32.vlgmr.msra.gmra.mxu0 %vm486_vm4, %v3450_v9  ;;  %7964 = vmatmul.mubr.msk.f32.vlgmr.msra.gmra.mxu1 %vm486_vm4, %v3450_v9  ;;  %v4574_v9 = vstv %s6947_s10  ;;  %s9541_s10 = sld [smem:[#allocation5 + $0xc3]] }
 0x623   : > { %7951 = vmatprep.mubr.msk.f32.mxu0 %vm8315_vm5, %v11133_v0  ;;  %7966 = vmatprep.mubr.msk.f32.mxu1 %vm8315_vm5, %v11133_v0 }
 0x626   : > { %7952 = vmatmul.mubr.msk.f32.gmra.mxu0 %vm486_vm4, %v3451_v10  ;;  %7967 = vmatmul.mubr.msk.f32.gmra.mxu1 %vm486_vm4, %v3451_v10 }
 0x627   : > { %7954 = vmatprep.mubr.msk.f32.mxu0 %vm8315_vm5, %v11133_v0  ;;  %7969 = vmatprep.mubr.msk.f32.mxu1 %vm8315_vm5, %v11133_v0 }
 0x62a   : > { %7955 = vmatmul.mubr.msk.f32.gmra.mxu0 %vm486_vm4, %v3452_v11  ;;  %7970 = vmatmul.mubr.msk.f32.gmra.mxu1 %vm486_vm4, %v3452_v11 }
 0x62b   : > { %7978 = vmatprep.mubr.msk.f32.mxu0 %vm486_vm4, %v8707_v29  ;;  %7987 = vmatprep.mubr.msk.f32.mxu1 %vm486_vm4, %v8707_v29 }
 0x6d2   : > { %v7914_v12 = vpop.f32.mrf.mxu0 }
 0x6d3   : > { %3211 = vst.msk [vmem:[#allocation3 + $0x58] sm:$0x1] %vm749_vm7, %v7914_v12  ;;  %v7923_v14 = vpop.f32.mrf.mxu1 }
 0x6d4   : > { %v3200_v17 = vpop.f32.mrf.mxu0  ;;  %3292 = vst.msk [vmem:[#allocation3 + $0xd8] sm:$0x1] %vm749_vm7, %v7923_v14  ;;  %v4578_v14 = vstv %s6948_s11  ;;  %s9543_s11 = sld [smem:[#allocation5 + $0x20]] }
 0x6d5   : > { %3210 = vst.msk [vmem:[#allocation3 + $0x50] sm:$0xff] %vm747_vm8, %v3200_v17  ;;  %v3281_v18 = vpop.f32.mrf.mxu1  ;;  %v4582_v17 = vstv %s6949_s14  ;;  %s9545_s14 = sld [smem:[#allocation5 + $0x21]] }
 0x6d6   : > { %3291 = vst.msk [vmem:[#allocation3 + $0xd0] sm:$0xff] %vm747_vm8, %v3281_v18  ;;  %v4947_v18 = vstv %s7012_s25  ;;  %s9547_s25 = sld [smem:[#allocation5 + $0x22]] }
 0x6d9   : > { %v7932_v23 = vpop.f32.mrf.mxu0 }
 0x6db   : > { %v3359_v26 = vpop.f32.mrf.mxu0  ;;  %v7941_v27 = vpop.f32.mrf.mxu1 }
 0x6dc   : > { %3369 = vst.msk [vmem:[#allocation3 + $0x150] sm:$0xff] %vm747_vm8, %v3359_v26  ;;  %v4551_v30 = vld [vmem:[#allocation3 + $0x50] sm:$0xff] }
 0x6dd   : > { %v3437_v33 = vpop.f32.mrf.mxu1  ;;  %v4908_v34 = vmul.f32 %v4907_v24, %v4551_v30  ;;  %v4900_v35 = vmul.f32 %v4899_v25, %v4551_v30  ;;  %v4554_v40 = vmul.f32 %v4553_v31, %v4551_v30  ;;  %v4558_v28 = vmul.f32 %v4557_v32, %v4551_v30 }
 0x6de   : > { %3447 = vst.msk [vmem:[#allocation3 + $0x1d0] sm:$0xff] %vm747_vm8, %v3437_v33  ;;  %v4562_v41 = vmul.f32 %v4561_v36, %v4551_v30  ;;  %v4566_v42 = vmul.f32 %v4565_v37, %v4551_v30  ;;  %v4924_v43 = vmul.f32 %v4923_v38, %v4551_v30  ;;  %v4916_v44 = vmul.f32 %v4915_v39, %v4551_v30 }
 0x6df   : > { %4910 = vrot.lane.b32.xlu0 %v4908_v34, %s11178_s16  ;;  %4902 = vrot.lane.b32.xlu1 %v4900_v35, %s11178_s16  ;;  %v9394_v45 = vadd.f32 %v4554_v40, %v9297_v54  ;;  %v9397_v46 = vadd.f32 %v4558_v28, %v9300_v55  ;;  %v4955_v34 = vstv %s9477_s13  ;;  %s9549_s13 = sld [smem:[#allocation5 + $0x23]] }
 0x6e0   : > { %v9400_v62 = vadd.f32 %v4562_v41, %v9304_v3  ;;  %v9403_v49 = vadd.f32 %v4566_v42, %v9307_v50  ;;  %v4939_v50 = vstv %s7011_s7  ;;  %s9535_s7 = sld [smem:[#allocation5 + $0xc0]] }
 0x6e2   : > { %v3528_v47 = vpop.f32.mrf.mxu0  ;;  %v3608_v48 = vpop.f32.mrf.mxu1 }
 0x6e3   : > { %4926 = vrot.lane.b32.xlu0 %v4924_v43, %s11178_s16  ;;  %4918 = vrot.lane.b32.xlu1 %v4916_v44, %s11178_s16 }
 0x6e4   : > { %v7950_v2 = vpop.f32.mrf.mxu0  ;;  %v7965_v63 = vpop.f32.mrf.mxu1 }
 0x6e5   : > { %v9575_v2 = vpop.permute.xlu0 %4742 }
 0x6e6   : > { %v3533_v57 = vpop.f32.mrf.mxu0  ;;  %v3613_v54 = vpop.f32.mrf.mxu1 }
 0x6e8   : > { %v7953_v1 = vpop.f32.mrf.mxu0  ;;  %v7968_v59 = vpop.f32.mrf.mxu1 }
 0x6e9   : > { %v4591_v1 = vstv %s9559_s20  ;;  %s9594_s20 = sld [smem:[#allocation5 + $0x83]] }
 0x6ea   : > { %v3538_v55 = vpop.f32.mrf.mxu0  ;;  %v3618_v7 = vpop.f32.mrf.mxu1 }
 0x6eb   : > { %7972 = vmatprep.subr.msk.mxu0 %vm496_vm6, %v3538_v55  ;;  %7981 = vmatprep.subr.msk.mxu1 %vm496_vm6, %v3618_v7 }
 0x6ec   : > { %v7956_v3 = vpop.f32.mrf.mxu0  ;;  %v7971_v58 = vpop.f32.mrf.mxu1  ;;  %7973 = vmatpush3.msk.msra.mxu0 %vm496_vm6, %v3538_v55  ;;  %7982 = vmatpush3.msk.msra.mxu1 %vm496_vm6, %v3618_v7 }
 0x6ed   : > { %7974 = vmatprep.subr.mxu0 %v3533_v57  ;;  %7983 = vmatprep.subr.mxu1 %v3613_v54  ;;  %v4595_v3 = vstv %s9562_s24  ;;  %v4979_v58 = vstv %s9553_s4  ;;  %s9601_s4 = sld [smem:[#allocation5 + $0xb2]] }
 0x6ee   : > { %7975 = vmatpush3.msra.mxu0 %v3533_v57  ;;  %7984 = vmatpush3.msra.mxu1 %v3613_v54  ;;  %s9611_s24 = sld [smem:[#allocation5 + $0xb5]] }
 0x6ef   : > { %7976 = vmatprep.subr.mxu0 %v3528_v47  ;;  %7985 = vmatprep.subr.mxu1 %v3608_v48  ;;  %11182 = sst [smem:[#allocation30_spill]] %s9594_s20 }
 0x6f0   : > { %7977 = vmatpush3.msra.mxu0 %v3528_v47  ;;  %7986 = vmatpush3.msra.mxu1 %v3608_v48  ;;  %s9655_s20 = sld [smem:[#allocation5 + $0x107]] }
 0x6f1   : > { %7979 = vmatmul.mubr.msk.f32.vlgmr.msra.gmra.mxu0 %vm486_vm4, %v8736_v51  ;;  %7990 = vmatprep.subr.msk.mxu0 %vm496_vm6, %v3538_v55 }
 0x6f2   : > { %7999 = vmatprep.subr.msk.mxu1 %vm496_vm6, %v3618_v7  ;;  %7988 = vmatmul.mubr.msk.f32.vlgmr.msra.gmra.mxu1 %vm486_vm4, %v8736_v51 }
 0x6f3   : > { %7991 = vmatpush3.msk.msra.mxu0 %vm496_vm6, %v3538_v55  ;;  %8000 = vmatpush3.msk.msra.mxu1 %vm496_vm6, %v3618_v7  ;;  %v5379_v7 = vstv %s9551_s1  ;;  %s9597_s1 = sld [smem:[#allocation5 + $0xe1]] }
 0x6f4   : > { %7992 = vmatprep.subr.mxu0 %v3533_v57  ;;  %8001 = vmatprep.subr.mxu1 %v3613_v54 }
 0x6f5   : > { %7993 = vmatpush3.msra.mxu0 %v3533_v57  ;;  %8002 = vmatpush3.msra.mxu1 %v3613_v54  ;;  %v4587_v54 = vstv %s9556_s27  ;;  %s9623_s27 = sld [smem:[#allocation5 + $0xe2]] }
 0x6f6   : > { %7994 = vmatprep.subr.mxu0 %v3528_v47  ;;  %8003 = vmatprep.subr.mxu1 %v3608_v48 }
 0x6f7   : > { %7995 = vmatpush3.msra.mxu0 %v3528_v47  ;;  %7996 = vmatprep.mubr.msk.f32.mxu0 %vm486_vm4, %v8750_v52 }
 0x6f8   : > { %8004 = vmatpush3.msra.mxu1 %v3608_v48  ;;  %7997 = vmatmul.mubr.msk.f32.vlgmr.msra.gmra.mxu0 %vm486_vm4, %v8756_v53  ;;  %v4971_v48 = vstv %s7015_s2  ;;  %s9584_s2 = sld [smem:[#allocation5 + $0xaf]] }
 0x6f9   : > { %8005 = vmatprep.mubr.msk.f32.mxu1 %vm486_vm4, %v8750_v52  ;;  %8008 = vmatprep.subr.mxu0 %v11133_v0  ;;  %11183 = sst [smem:[#allocation31_spill]] %s9597_s1 }
 0x6fa   : > { %8023 = vmatprep.subr.mxu1 %v11133_v0  ;;  %8006 = vmatmul.mubr.msk.f32.vlgmr.msra.gmra.mxu1 %vm486_vm4, %v8756_v53  ;;  %s9653_s1 = sld [smem:[#allocation5 + $0x106]] }
 0x6fb   : > { %8009 = vmatpush3.msk.msra.mxu0 %vm496_vm6, %v8633_v13  ;;  %8024 = vmatpush3.msk.msra.mxu1 %vm496_vm6, %v8644_v16  ;;  %v3941_v13 = vld [vmem:[#allocation2 + $0xa8] sm:$0xff]  ;;  %v3943_v16 = vld [vmem:[#allocation2 + $0xb8] sm:$0x3]  ;;  %11184 = sst [smem:[#allocation32_spill]] %s9623_s27 }
 0x6fc   : > { %8010 = vmatprep.subr.mxu0 %v11133_v0  ;;  %8025 = vmatprep.subr.mxu1 %v11133_v0  ;;  %s9638_s27 = sld [smem:[#allocation5 + $0x104]] }
 0x6fd   : > { %8011 = vmatpush3.msk.msra.mxu0 %vm8639_vm11, %v8317_v21  ;;  %8026 = vmatpush3.msk.msra.mxu1 %vm8654_vm13, %v8317_v21 }
 0x6fe   : > { %8012 = vmatprep.subr.mxu0 %v11133_v0  ;;  %8027 = vmatprep.subr.mxu1 %v11133_v0 }
 0x6ff   : > { %8013 = vmatpush3.msk.msra.mxu0 %vm8661_vm14, %v8317_v21  ;;  %8014 = vmatprep.mubr.msk.f32.mxu0 %vm8315_vm5, %v11133_v0 }
 0x700   : > { %8028 = vmatpush3.msk.msra.mxu1 %vm8671_vm0, %v8317_v21  ;;  %8029 = vmatprep.mubr.msk.f32.mxu1 %vm8315_vm5, %v11133_v0 }
 0x701   : > { %8015 = vmatmul.mubr.msk.f32.vlgmr.msra.gmra.mxu0 %vm486_vm4, %v3941_v13  ;;  %8030 = vmatmul.mubr.msk.f32.vlgmr.msra.gmra.mxu1 %vm486_vm4, %v3941_v13  ;;  %v4599_v13 = vstv %s9565_s29  ;;  %s9625_s29 = sld [smem:[#allocation5 + $0xe3]] }
 0x702   : > { %8017 = vmatprep.mubr.msk.f32.mxu0 %vm8315_vm5, %v11133_v0  ;;  %8032 = vmatprep.mubr.msk.f32.mxu1 %vm8315_vm5, %v11133_v0 }
 0x705   : > { %8018 = vmatmul.mubr.msk.f32.gmra.mxu0 %vm486_vm4, %v3942_v15  ;;  %8033 = vmatmul.mubr.msk.f32.gmra.mxu1 %vm486_vm4, %v3942_v15 }
 0x706   : > { %8020 = vmatprep.mubr.msk.f32.mxu0 %vm8315_vm5, %v11133_v0  ;;  %8035 = vmatprep.mubr.msk.f32.mxu1 %vm8315_vm5, %v11133_v0  ;;  %vm4431_vm5 = vcmask 73728  }
 0x707   : > { %11185 = sst [smem:[#allocation33_spill]] %s9625_s29 }
 0x708   : > { %s9640_s29 = sld [smem:[#allocation5 + $0x105]] }
 0x709   : > { %8021 = vmatmul.mubr.msk.f32.gmra.mxu0 %vm486_vm4, %v3943_v16  ;;  %8036 = vmatmul.mubr.msk.f32.gmra.mxu1 %vm486_vm4, %v3943_v16 }
 0x70a   : > { %8044 = vmatprep.mubr.msk.f32.mxu0 %vm486_vm4, %v8707_v29  ;;  %8053 = vmatprep.mubr.msk.f32.mxu1 %vm486_vm4, %v8707_v29 }
 0x7b1   : > { %v7980_v19 = vpop.f32.mrf.mxu0 }
 0x7b2   : > { %3702 = vst.msk [vmem:[#allocation3 + $0x68] sm:$0x1] %vm749_vm7, %v7980_v19  ;;  %v7989_v20 = vpop.f32.mrf.mxu1  ;;  %v5380_v19 = vmul.f32 %v5379_v7, %v9210_v6 }
 0x7b3   : > { %v3691_v21 = vpop.f32.mrf.mxu0  ;;  %3783 = vst.msk [vmem:[#allocation3 + $0xe8] sm:$0x1] %vm749_vm7, %v7989_v20 }
 0x7b4   : > { %3701 = vst.msk [vmem:[#allocation3 + $0x60] sm:$0xff] %vm747_vm8, %v3691_v21  ;;  %v3772_v22 = vpop.f32.mrf.mxu1  ;;  %v9599_v21 = vpop.permute.xlu0 %4766 }
 0x7b5   : > { %3782 = vst.msk [vmem:[#allocation3 + $0xe0] sm:$0xff] %vm747_vm8, %v3772_v22 }
 0x7b8   : > { %v7998_v29 = vpop.f32.mrf.mxu0 }
 0x7ba   : > { %v3850_v8 = vpop.f32.mrf.mxu0  ;;  %v8007_v60 = vpop.f32.mrf.mxu1 }
 0x7bb   : > { %3860 = vst.msk [vmem:[#allocation3 + $0x160] sm:$0xff] %vm747_vm8, %v3850_v8  ;;  %v4568_v5 = vld [vmem:[#allocation3 + $0x60] sm:$0xff]  ;;  %v5403_v8 = vstv %s9571_s5  ;;  %v4987_v60 = vstv %s9573_s28  ;;  %s9628_s5 = sld [smem:[#allocation5 + $0xb3]] }
 0x7bc   : > { %v3928_v10 = vpop.f32.mrf.mxu1  ;;  %v4940_v11 = vmul.f32 %v4939_v50, %v4568_v5  ;;  %v4932_v12 = vmul.f32 %v4931_v4, %v4568_v5  ;;  %v4571_v23 = vmul.f32 %v4570_v61, %v4568_v5  ;;  %v4575_v24 = vmul.f32 %v4574_v9, %v4568_v5  ;;  %v9616_v61 = vpop.permute.xlu1 %4750  ;;  %s9632_s28 = sld [smem:[#allocation5 + $0xb8]] }
 0x7bd   : > { %3938 = vst.msk [vmem:[#allocation3 + $0x1e0] sm:$0xff] %vm747_vm8, %v3928_v10  ;;  %v4579_v25 = vmul.f32 %v4578_v14, %v4568_v5  ;;  %v4583_v26 = vmul.f32 %v4582_v17, %v4568_v5  ;;  %v4948_v27 = vmul.f32 %v4947_v18, %v4568_v5  ;;  %v4956_v39 = vmul.f32 %v4955_v34, %v4568_v5  ;;  %v5079_v14 = vld [vmem:[#allocation3 + $0x150] sm:$0xff]  ;;  %v9634_v18 = vpop.permute.xlu0 %5270 }
 0x7be   : > { %4942 = vrot.lane.b32.xlu0 %v4940_v11, %s11178_s16  ;;  %4934 = vrot.lane.b32.xlu1 %v4932_v12, %s11178_s16  ;;  %v9485_v30 = vadd.f32 %v4571_v23, %v9394_v45  ;;  %v9488_v31 = vadd.f32 %v4575_v24, %v9397_v46  ;;  %v5404_v10 = vmul.f32 %v5403_v8, %v9311_v56  ;;  %v5387_v12 = vstv %s9584_s2  ;;  %s9645_s2 = sld [smem:[#allocation5 + $0xb6]] }
 0x7bf   : > { %v9492_v35 = vadd.f32 %v4579_v25, %v9400_v62  ;;  %v9495_v36 = vadd.f32 %v4583_v26, %v9403_v49  ;;  %v4963_v62 = vstv %s7014_s3  ;;  %s9589_s3 = sld [smem:[#allocation5 + $0xb4]]  ;;  %v5388_v24 = vmul.f32 %v5387_v12, %v9210_v6 }
 0x7c0   : > { %v9642_v23 = vpop.permute.xlu1 %4758  ;;  %v5435_v26 = vstv %s9611_s24  ;;  %s9660_s24 = sld [smem:[#allocation5 + $0xb7]] }
 0x7c1   : > { %v4019_v32 = vpop.f32.mrf.mxu0  ;;  %v4099_v33 = vpop.f32.mrf.mxu1  ;;  %v5419_v34 = vstv %s9628_s5  ;;  %s9678_s5 = sld [smem:[#allocation5 + $0x66]] }
 0x7c2   : > { %4950 = vrot.lane.b32.xlu1 %v4948_v27, %s11178_s16  ;;  %v5411_v27 = vstv %s9601_s4  ;;  %v9657_v6 = vpop.permute.xlu0 %5294  ;;  %s9665_s4 = sld [smem:[#allocation5 + $0xba]] }
 0x7c3   : > { %v8016_v37 = vpop.f32.mrf.mxu0  ;;  %v8031_v38 = vpop.f32.mrf.mxu1  ;;  %11186 = vst [vmem:[#allocation34_spill] sm:$0xff] %v9657_v6  ;;  %v11215_v6 = vstv %s9533_s6  ;;  %s10062_s6 = sld [smem:[#allocation5 + $0x11d]] }
 0x7c4   : > { %v9667_v37 = vpop.permute.xlu1 %5278 }
 0x7c5   : > { %v4024_v40 = vpop.f32.mrf.mxu0  ;;  %v4104_v28 = vpop.f32.mrf.mxu1  ;;  %v5427_v17 = vstv %s9589_s3  ;;  %s9649_s3 = sld [smem:[#allocation5 + $0xb9]] }
 0x7c6   : > { %4958 = vrot.lane.b32.xlu1 %v4956_v39, %s11178_s16  ;;  %v5428_v25 = vmul.f32 %v5427_v17, %v5079_v14  ;;  %v9675_v38 = vpop.permute.xlu0 %4774  ;;  %v5420_v39 = vmul.f32 %v5419_v34, %v9311_v56  ;;  %v5000_v34 = vstv %s9529_s23  ;;  %s9832_s23 = sld [smem:[#allocation5 + $0x110]] }
 0x7c7   : > { %v8019_v41 = vpop.f32.mrf.mxu0  ;;  %v8034_v42 = vpop.f32.mrf.mxu1  ;;  %11189 = sst [smem:[#allocation37_spill]] %s9678_s5 }
 0x7c8   : > { %v5443_v41 = vstv %s9645_s2  ;;  %v9690_v42 = vpop.permute.xlu1 %5286  ;;  %s9696_s2 = sld [smem:[#allocation5 + $0xc6]] }
 0x7c9   : > { %v4029_v43 = vpop.f32.mrf.mxu0  ;;  %v4109_v44 = vpop.f32.mrf.mxu1  ;;  %s9775_s5 = sld [smem:[#allocation5 + $0x2a]] }
 0x7ca   : > { %8038 = vmatprep.subr.msk.mxu0 %vm496_vm6, %v4029_v43  ;;  %8047 = vmatprep.subr.msk.mxu1 %vm496_vm6, %v4109_v44 }
 0x7cb   : > { %v8022_v45 = vpop.f32.mrf.mxu0  ;;  %v8037_v46 = vpop.f32.mrf.mxu1  ;;  %8039 = vmatpush3.msk.msra.mxu0 %vm496_vm6, %v4029_v43  ;;  %8048 = vmatpush3.msk.msra.mxu1 %vm496_vm6, %v4109_v44 }
 0x7cc   : > { %8040 = vmatprep.subr.mxu0 %v4024_v40  ;;  %8049 = vmatprep.subr.mxu1 %v4104_v28  ;;  %v5475_v45 = vstv %s9665_s4  ;;  %v9698_v46 = vpop.permute.xlu0 %4782  ;;  %s9718_s4 = sld [smem:[#allocation5 + $0x27]] }
 0x7cd   : > { %8041 = vmatpush3.msra.mxu0 %v4024_v40  ;;  %8050 = vmatpush3.msra.mxu1 %v4104_v28 }
 0x7ce   : > { %8042 = vmatprep.subr.mxu0 %v4019_v32  ;;  %8051 = vmatprep.subr.mxu1 %v4099_v33  ;;  %11193 = sst [smem:[#allocation41_spill]] %s9696_s2 }
 0x7cf   : > { %8043 = vmatpush3.msra.mxu0 %v4019_v32  ;;  %8052 = vmatpush3.msra.mxu1 %v4099_v33  ;;  %s9739_s2 = sld [smem:[#allocation5 + $0x109]] }
 0x7d0   : > { %8045 = vmatmul.mubr.msk.f32.vlgmr.msra.gmra.mxu0 %vm486_vm4, %v8736_v51  ;;  %8056 = vmatprep.subr.msk.mxu0 %vm496_vm6, %v4029_v43  ;;  %11199 = sst [smem:[#allocation47_spill]] %s9775_s5 }
 0x7d1   : > { %8065 = vmatprep.subr.msk.mxu1 %vm496_vm6, %v4109_v44  ;;  %8054 = vmatmul.mubr.msk.f32.vlgmr.msra.gmra.mxu1 %vm486_vm4, %v8736_v51  ;;  %s9789_s5 = sld [smem:[#allocation5 + $0x10c]] }
 0x7d2   : > { %8057 = vmatpush3.msk.msra.mxu0 %vm496_vm6, %v4029_v43  ;;  %8066 = vmatpush3.msk.msra.mxu1 %vm496_vm6, %v4109_v44  ;;  %v5451_v44 = vstv %s9660_s24  ;;  %s9714_s24 = sld [smem:[#allocation5 + $0x26]]  ;;  %vm4448_vm6 = vcmask 80968  }
 0x7d3   : > { %8058 = vmatprep.subr.mxu0 %v4024_v40  ;;  %8067 = vmatprep.subr.mxu1 %v4104_v28 }
 0x7d4   : > { %8059 = vmatpush3.msra.mxu0 %v4024_v40  ;;  %8068 = vmatpush3.msra.mxu1 %v4104_v28  ;;  %v5467_v28 = vstv %s9649_s3  ;;  %s9702_s3 = sld [smem:[#allocation5 + $0xc7]] }
 0x7d5   : > { %8060 = vmatprep.subr.mxu0 %v4019_v32  ;;  %8069 = vmatprep.subr.mxu1 %v4099_v33 }
 0x7d6   : > { %8061 = vmatpush3.msra.mxu0 %v4019_v32  ;;  %8070 = vmatpush3.msra.mxu1 %v4099_v33  ;;  %v5436_v32 = vmul.f32 %v5435_v26, %v5079_v14  ;;  %v5412_v33 = vmul.f32 %v5411_v27, %v9311_v56  ;;  %v5444_v56 = vmul.f32 %v5443_v41, %v5079_v14 }
 0x7d7   : > { %8062 = vmatprep.mubr.msk.f32.mxu0 %vm486_vm4, %v8750_v52  ;;  %8071 = vmatprep.mubr.msk.f32.mxu1 %vm486_vm4, %v8750_v52 }
 0x7d8   : > { %8063 = vmatmul.mubr.msk.f32.vlgmr.msra.gmra.mxu0 %vm486_vm4, %v8756_v53  ;;  %8072 = vmatmul.mubr.msk.f32.vlgmr.msra.gmra.mxu1 %vm486_vm4, %v8756_v53 }
 0x7da   : > { %11194 = sst [smem:[#allocation42_spill]] %s9702_s3 }
 0x7db   : > { %s9720_s3 = sld [smem:[#allocation5 + $0x84]] }
 0x7e1   : > { %11195 = sst [smem:[#allocation43_spill]] %s9720_s3 }
 0x7e2   : > { %s9737_s3 = sld [smem:[#allocation5 + $0x85]] }
 0x7e8   : > { %11197 = sst [smem:[#allocation45_spill]] %s9737_s3 }
 0x7e9   : > { %s9757_s3 = sld [smem:[#allocation5 + $0x10b]] }
 0x7ef   : > { %11198 = sst [smem:[#allocation46_spill]] %s9757_s3 }
 0x7f0   : > { %s9791_s3 = sld [smem:[#allocation5 + $0x10d]] }
 0x890   : > { %v8046_v51 = vpop.f32.mrf.mxu0 }
 0x891   : > { %4193 = vst.msk [vmem:[#allocation3 + $0x78] sm:$0x1] %vm749_vm7, %v8046_v51  ;;  %v8055_v52 = vpop.f32.mrf.mxu1  ;;  %v9706_v51 = vpop.permute.xlu1 %4790 }
 0x892   : > { %v4182_v53 = vpop.f32.mrf.mxu0  ;;  %4274 = vst.msk [vmem:[#allocation3 + $0xf8] sm:$0x1] %vm749_vm7, %v8055_v52  ;;  %v5452_v52 = vmul.f32 %v5451_v44, %v5079_v14  ;;  %v4616_v44 = vstv %s9549_s13  ;;  %s9899_s13 = sld [smem:[#allocation5 + $0x114]] }
 0x893   : > { %4192 = vst.msk [vmem:[#allocation3 + $0x70] sm:$0xff] %vm747_vm8, %v4182_v53  ;;  %v4263_v47 = vpop.f32.mrf.mxu1 }
 0x894   : > { %4273 = vst.msk [vmem:[#allocation3 + $0xf0] sm:$0xff] %vm747_vm8, %v4263_v47  ;;  %v9710_v47 = vld [vmem:[#allocation3 + $0x1] sm:$0xff] }
 0x898   : > { %v8064_v49 = vpop.f32.mrf.mxu0 }
 0x899   : > { %v9722_v49 = vpop.permute.xlu1 %5318 }
 0x89a   : > { %v4585_v63 = vld [vmem:[#allocation3 + $0x70] sm:$0xff]  ;;  %v4341_v57 = vpop.f32.mrf.mxu0 }
 0x89b   : > { %v4972_v59 = vmul.f32 %v4971_v48, %v4585_v63  ;;  %v4964_v55 = vmul.f32 %v4963_v62, %v4585_v63  ;;  %4351 = vst.msk [vmem:[#allocation3 + $0x170] sm:$0xff] %vm747_vm8, %v4341_v57  ;;  %v4588_v15 = vmul.f32 %v4587_v54, %v4585_v63  ;;  %v4592_v16 = vmul.f32 %v4591_v1, %v4585_v63  ;;  %v9729_v1 = vld [vmem:[#allocation3 + $0x11] sm:$0xff] }
 0x89c   : > { %v4596_v20 = vmul.f32 %v4595_v3, %v4585_v63  ;;  %v4980_v22 = vmul.f32 %v4979_v58, %v4585_v63  ;;  %v4600_v4 = vmul.f32 %v4599_v13, %v4585_v63  ;;  %v4988_v11 = vmul.f32 %v4987_v60, %v4585_v63  ;;  %v9724_v63 = vpop.permute.xlu0 %4798 }
 0x89d   : > { %4974 = vrot.lane.b32.xlu0 %v4972_v59, %s11178_s16  ;;  %4966 = vrot.lane.b32.xlu1 %v4964_v55, %s11178_s16  ;;  %v9604_v29 = vadd.f32 %v4588_v15, %v9485_v30  ;;  %v9607_v50 = vadd.f32 %v4592_v16, %v9488_v31  ;;  %v8073_v30 = vpop.f32.mrf.mxu1  ;;  %v5795_v48 = vstv %s9519_s0  ;;  %s9727_s0 = sld [smem:[#allocation5 + $0xe5]]  ;;  %v5827_v59 = vstv %s9638_s27  ;;  %v9741_v7 = vpop.permute.xlu1 %4806 }
 0x89e   : > { %v9614_v5 = vadd.f32 %v4596_v20, %v9492_v35  ;;  %v9621_v9 = vadd.f32 %v4600_v4, %v9495_v36  ;;  %v5096_v35 = vld [vmem:[#allocation3 + $0x160] sm:$0xff]  ;;  %v5459_v36 = vstv %s9632_s28  ;;  %s9682_s28 = sld [smem:[#allocation5 + $0xbb]]  ;;  %v5796_v57 = vmul.f32 %v5795_v48, %v9710_v47 }
 0x89f   : > { %v4419_v31 = vpop.f32.mrf.mxu1  ;;  %v5460_v40 = vmul.f32 %v5459_v36, %v5096_v35  ;;  %v5468_v43 = vmul.f32 %v5467_v28, %v5096_v35  ;;  %v5476_v53 = vmul.f32 %v5475_v45, %v5096_v35  ;;  %v5803_v55 = vstv %s9521_s30  ;;  %s9745_s27 = sld [smem:[#allocation5 + $0xbd]]  ;;  %v9764_v4 = vld [vmem:[#allocation3 + $0x21] sm:$0xff] }
 0x8a0   : > { %4429 = vst.msk [vmem:[#allocation3 + $0x1f0] sm:$0xff] %vm747_vm8, %v4419_v31  ;;  %v5828_v3 = vmul.f32 %v5827_v59, %v9729_v1  ;;  %v5804_v58 = vmul.f32 %v5803_v55, %v9710_v47  ;;  %v5835_v13 = vstv %s9640_s29  ;;  %v5811_v15 = vstv %s9523_s12  ;;  %s9749_s30 = sld [smem:[#allocation5 + $0xbc]]  ;;  %v9751_v16 = vpop.permute.xlu0 %5302 }
 0x8a1   : > { %4982 = vrot.lane.b32.xlu0 %v4980_v22, %s11178_s16  ;;  %5382 = vrot.lane.b32.xlu1 %v5380_v19, %s11178_s16  ;;  %v5836_v19 = vmul.f32 %v5835_v13, %v9729_v1  ;;  %v5812_v20 = vmul.f32 %v5811_v15, %v9710_v47  ;;  %v5819_v22 = vstv %s9525_s15  ;;  %s9767_s12 = sld [smem:[#allocation5 + $0xbe]]  ;;  %v9769_v60 = vpop.permute.xlu1 %4822  ;;  %v5843_v31 = vstv %s9653_s1 }
 0x8a2   : > { %s9773_s29 = sld [smem:[#allocation5 + $0x29]]  ;;  %v5113_v14 = vld [vmem:[#allocation3 + $0x170] sm:$0xff]  ;;  %v4604_v36 = vstv %s9543_s11  ;;  %v5524_v28 = vstv %s9535_s7  ;;  %v5867_v45 = vstv %s9739_s2  ;;  %v5528_v48 = vstv %s9537_s9 }
 0x8a3   : > { %11196 = sst [smem:[#allocation44_spill]] %s9727_s0  ;;  %v5532_v59 = vstv %s9539_s8  ;;  %v5536_v55 = vstv %s9541_s10  ;;  %v9841_v15 = vmul.f32 %v5524_v28, %v9710_v47  ;;  %v9873_v28 = vld [vmem:[#allocation3 + $0x100] sm:$0xff] }
 0x8a4   : > { %v5483_v62 = vstv %s9682_s28  ;;  %s9733_s28 = sld [smem:[#allocation5 + $0x108]] }
 0x8a5   : > { %5406 = vrot.lane.b32.xlu0 %v5404_v10, %s11178_s16  ;;  %4990 = vrot.lane.b32.xlu1 %v4988_v11, %s11178_s16  ;;  %v5484_v54 = vmul.f32 %v5483_v62, %v5096_v35  ;;  %s9755_s0 = sld [smem:[#allocation5 + $0x10a]]  ;;  %v9777_v10 = vpop.permute.xlu0 %5310  ;;  %v5820_v11 = vmul.f32 %v5819_v22, %v9710_v47  ;;  %v5499_v17 = vstv %s9745_s27  ;;  %v4602_v35 = vld [vmem:[#allocation3 + $0x80] sm:$0xff]  ;;  %11203 = vst [vmem:[#allocation51_spill] sm:$0xff] %v9841_v15  ;;  %v5851_v22 = vstv %s9655_s20 }
 0x8a6   : > { %s9781_s15 = sld [smem:[#allocation5 + $0x2b]]  ;;  %v5500_v26 = vmul.f32 %v5499_v17, %v5113_v14  ;;  %v9838_v13 = vmul.f32 %v4616_v44, %v4602_v35  ;;  %v5891_v17 = vstv %s9789_s5 }
 0x8a7   : > { %s9795_s27 = sld [smem:[#allocation5 + $0x10e]]  ;;  %v5507_v30 = vstv %s9767_s12 }
 0x8a8   : > { %s9811_s1 = sld [smem:[#allocation5 + $0x2d]]  ;;  %v5508_v41 = vmul.f32 %v5507_v30, %v5113_v14 }
 0x8a9   : > { %5390 = vrot.lane.b32.xlu0 %v5388_v24, %s11178_s16  ;;  %5430 = vrot.lane.b32.xlu1 %v5428_v25, %s11178_s16  ;;  %v5491_v24 = vstv %s9749_s30  ;;  %v9793_v25 = vpop.permute.xlu1 %5334  ;;  %s9799_s30 = sld [smem:[#allocation5 + $0x10f]] }
 0x8aa   : > { %v5859_v8 = vstv %s9733_s28  ;;  %s9785_s28 = sld [smem:[#allocation5 + $0xbf]]  ;;  %v5492_v27 = vmul.f32 %v5491_v24, %v5113_v14  ;;  %v4621_v24 = vstv %s9704_s21 }
 0x8ab   : > { %v5860_v12 = vmul.f32 %v5859_v8, %v9764_v4  ;;  %s9817_s12 = sld [smem:[#allocation5 + $0x2e]]  ;;  %v9848_v8 = vmul.f32 %v5528_v48, %v9710_v47  ;;  %v5875_v48 = vstv %s9755_s0 }
 0x8ac   : > { %11200 = sst [smem:[#allocation48_spill]] %s9781_s15 }
 0x8ad   : > { %5438 = vrot.lane.b32.xlu0 %v5436_v32, %s11178_s16  ;;  %5414 = vrot.lane.b32.xlu1 %v5412_v33, %s11178_s16  ;;  %v9801_v32 = vpop.permute.xlu0 %5326  ;;  %s9805_s15 = sld [smem:[#allocation5 + $0x2c]]  ;;  %v4996_v33 = vstv %s9527_s17  ;;  %11204 = vst [vmem:[#allocation52_spill] sm:$0xff] %v9848_v8 }
 0x8ae   : > { %11201 = vst [vmem:[#allocation49_spill] sm:$0xff] %v9801_v32  ;;  %s9822_s17 = sld [smem:[#allocation5 + $0x2f]] }
 0x8af   : > { %s9836_s7 = sld [smem:[#allocation5 + $0x111]] }
 0x8b0   : > { %s9845_s9 = sld [smem:[#allocation5 + $0x112]] }
 0x8b1   : > { %5422 = vrot.lane.b32.xlu0 %v5420_v39, %s11178_s16  ;;  %5462 = vrot.lane.b32.xlu1 %v5460_v40, %s11178_s16  ;;  %v4608_v39 = vstv %s9545_s14  ;;  %v5004_v40 = vstv %s9531_s26  ;;  %v9826_v62 = vpop.permute.xlu0 %4814  ;;  %s9853_s8 = sld [smem:[#allocation5 + $0x113]] }
 0x8b2   : > { %s9864_s10 = sld [smem:[#allocation5 + $0x30]] }
 0x8b3   : > { %s9878_s21 = sld [smem:[#allocation5 + $0x31]] }
 0x8b4   : > { %s9887_s11 = sld [smem:[#allocation5 + $0x32]] }
 0x8b5   : > { %5470 = vrot.lane.b32.xlu0 %v5468_v43, %s11178_s16  ;;  %5446 = vrot.lane.b32.xlu1 %v5444_v56, %s11178_s16  ;;  %v5844_v43 = vmul.f32 %v5843_v31, %v9729_v1  ;;  %v4612_v56 = vstv %s9547_s25  ;;  %s11208_s14 = sld [smem:[#allocation47_spill]] }
 0x8b6   : > { %s9894_s25 = sld [smem:[#allocation5 + $0x33]] }
 0x8b7   : > { %s9902_s20 = sld [smem:[#allocation5 + $0x115]] }
 0x8b8   : > { %s11209_s5 = sld [smem:[#allocation48_spill]] }
 0x8b9   : > { %5454 = vrot.lane.b32.xlu0 %v5452_v52, %s11178_s16  ;;  %5478 = vrot.lane.b32.xlu1 %v5476_v53, %s11178_s16  ;;  %v5515_v52 = vstv %s9785_s28  ;;  %s9922_s26 = sld [smem:[#allocation5 + $0x35]] }
 0x8ba   : > { %s9928_s2 = sld [smem:[#allocation5 + $0x36]] }
 0x8bb   : > { %s9952_s0 = sld [smem:[#allocation5 + $0x3d]] }
 0x8bc   : > { %s9974_s28 = sld [smem:[#allocation5 + $0x3a]] }
 0x8bd   : > { %5798 = vrot.lane.b32.xlu0 %v5796_v57, %s11178_s16  ;;  %5486 = vrot.lane.b32.xlu1 %v5484_v54, %s11178_s16  ;;  %v9828_v57 = vpop.permute.xlu1 %5350  ;;  %v4605_v54 = vmul.f32 %v4604_v36, %v4602_v35  ;;  %v9870_v36 = vmul.f32 %v5536_v55, %v9710_v47 }
 0x8be   : > { %11202 = vst [vmem:[#allocation50_spill] sm:$0xff] %v9828_v57  ;;  %v10050_v57 = vmul.f32 %v9873_v28, %v11215_v6 }
 0x8bf   : > { %v4606_v31 = vadd.f32 %v4605_v54, %v9604_v29  ;;  %11206 = vst [vmem:[#allocation54_spill] sm:$0xff] %v9870_v36  ;;  %v9881_v29 = vmul.f32 %v9873_v28, %v5000_v34  ;;  %v4638_v54 = vstv %s9761_s19  ;;  %s9914_s19 = sld [smem:[#allocation5 + $0x34]] }
 0x8c1   : > { %5830 = vrot.lane.b32.xlu0 %v5828_v3, %s11178_s16  ;;  %5806 = vrot.lane.b32.xlu1 %v5804_v58, %s11178_s16  ;;  %v4609_v3 = vmul.f32 %v4608_v39, %v4602_v35  ;;  %v4613_v58 = vmul.f32 %v4612_v56, %v4602_v35  ;;  %v9860_v30 = vpop.permute.xlu1 %4838  ;;  %v5852_v39 = vmul.f32 %v5851_v22, %v9729_v1  ;;  %v4646_v22 = vstv %s11208_s14  ;;  %s11217_s14 = sld [smem:[#allocation30_spill]] }
 0x8c3   : > { %v4610_v35 = vadd.f32 %v4609_v3, %v9607_v50  ;;  %v4629_v50 = vstv %s9714_s24  ;;  %s9938_s24 = sld [smem:[#allocation5 + $0x39]] }
 0x8c5   : > { %5838 = vrot.lane.b32.xlu0 %v5836_v19, %s11178_s16  ;;  %5814 = vrot.lane.b32.xlu1 %v5812_v20, %s11178_s16  ;;  %v5868_v19 = vmul.f32 %v5867_v45, %v9764_v4  ;;  %v5516_v20 = vmul.f32 %v5515_v52, %v5113_v14  ;;  %v4633_v45 = vstv %s9718_s4  ;;  %v4636_v52 = vld [vmem:[#allocation3 + $0xa0] sm:$0xff]  ;;  %s9945_s4 = sld [smem:[#allocation5 + $0x3c]] }
 0x8c9   : > { %5822 = vrot.lane.b32.xlu0 %v5820_v11, %s11178_s16  ;;  %5862 = vrot.lane.b32.xlu1 %v5860_v12, %s11178_s16  ;;  %v4619_v11 = vld [vmem:[#allocation3 + $0x90] sm:$0xff] }
 0x8ca   : > { %v9850_v12 = vld [vmem:[#allocation3 + $0x31] sm:$0xff]  ;;  %v4622_v56 = vmul.f32 %v4621_v24, %v4619_v11  ;;  %v4634_v24 = vmul.f32 %v4633_v45, %v4619_v11 }
 0x8cc   : > { %v4623_v55 = vadd.f32 %v4622_v56, %v4606_v31  ;;  %v5876_v31 = vmul.f32 %v5875_v48, %v9764_v4  ;;  %v4659_v56 = vstv %s9811_s1  ;;  %v4650_v48 = vstv %s11209_s5  ;;  %s9992_s1 = sld [smem:[#allocation5 + $0x116]] }
 0x8cd   : > { %5502 = vrot.lane.b32.xlu0 %v5500_v26, %s11178_s16  ;;  %5494 = vrot.lane.b32.xlu1 %v5492_v27, %s11178_s16  ;;  %v4625_v26 = vstv %s9708_s22  ;;  %v9858_v27 = vmul.f32 %v5532_v59, %v9710_v47  ;;  %s11207_s22 = sld [smem:[#allocation46_spill]]  ;;  %v5892_v47 = vmul.f32 %v5891_v17, %v9850_v12  ;;  %v4642_v59 = vstv %s9773_s29 }
 0x8ce   : > { %v4626_v44 = vmul.f32 %v4625_v26, %v4619_v11  ;;  %v9908_v17 = vmul.f32 %v9873_v28, %v5004_v40  ;;  %v9910_v26 = vpop.permute.xlu1 %4854  ;;  %v5923_v40 = vstv %s9832_s23  ;;  %s9957_s29 = sld [smem:[#allocation5 + $0x37]] }
 0x8cf   : > { %11205 = vst [vmem:[#allocation53_spill] sm:$0xff] %v9858_v27  ;;  %s10012_s23 = sld [smem:[#allocation5 + $0x117]] }
 0x8d0   : > { %v4627_v3 = vadd.f32 %v4626_v44, %v4610_v35  ;;  %v4639_v35 = vmul.f32 %v4638_v54, %v4636_v52  ;;  %v5907_v54 = vstv %s9795_s27  ;;  %s9981_s27 = sld [smem:[#allocation5 + $0x3e]] }
 0x8d1   : > { %5510 = vrot.lane.b32.xlu0 %v5508_v41, %s11178_s16  ;;  %5846 = vrot.lane.b32.xlu1 %v5844_v43, %s11178_s16  ;;  %v9876_v41 = vmul.f32 %v9873_v28, %v4996_v33  ;;  %v9884_v43 = vpop.permute.xlu0 %4830  ;;  %v5899_v33 = vstv %s9791_s3  ;;  %s9933_s3 = sld [smem:[#allocation5 + $0x38]] }
 0x8d2   : > { %v4640_v45 = vadd.f32 %v4639_v35, %v4623_v55  ;;  %v4663_v55 = vstv %s9817_s12  ;;  %v4676_v35 = vstv %s9878_s21  ;;  %s9996_s12 = sld [smem:[#allocation5 + $0x119]] }
 0x8d3   : > { %v5883_v34 = vstv %s11207_s22  ;;  %s10039_s21 = sld [smem:[#allocation5 + $0x87]] }
 0x8d4   : > { %s10052_s22 = sld [smem:[#allocation5 + $0xe4]] }
 0x8d5   : > { %5870 = vrot.lane.b32.xlu0 %v5868_v19, %s11178_s16  ;;  %5518 = vrot.lane.b32.xlu1 %v5516_v20, %s11178_s16  ;;  %v4614_v19 = vadd.f32 %v4613_v58, %v9614_v5  ;;  %v4630_v20 = vmul.f32 %v4629_v50, %v4619_v11  ;;  %v4643_v5 = vmul.f32 %v4642_v59, %v4636_v52  ;;  %v9917_v50 = vld [vmem:[#allocation3 + $0x41] sm:$0xff]  ;;  %v4655_v11 = vstv %s9805_s15  ;;  %v9924_v44 = vpop.permute.xlu0 %5342  ;;  %s9962_s15 = sld [smem:[#allocation5 + $0x118]] }
 0x8d6   : > { %v5884_v58 = vmul.f32 %v5883_v34, %v9764_v4  ;;  %v5915_v59 = vstv %s9799_s30  ;;  %v4647_v34 = vmul.f32 %v4646_v22, %v4636_v52  ;;  %v5924_v0 = vmul.f32 %v5923_v40, %v9917_v50  ;;  %v9948_v22 = vpop.permute.xlu1 %5366  ;;  %s9985_s30 = sld [smem:[#allocation5 + $0x86]] }
 0x8d7   : > { %v4631_v4 = vadd.f32 %v4630_v20, %v4614_v19  ;;  %v9942_v19 = vld [vmem:[#allocation3 + $0xc0] sm:$0xff]  ;;  %v4672_v20 = vstv %s9864_s10  ;;  %11210 = vst [vmem:[#allocation55_spill] sm:$0xff] %v9948_v22  ;;  %s11213_s10 = sld [smem:[#allocation27_spill]] }
 0x8d8   : > { %s10084_s5 = sld [smem:[#allocation5 + $0x11b]] }
 0x8d9   : > { %5854 = vrot.lane.b32.xlu0 %v5852_v39, %s11178_s16  ;;  %5894 = vrot.lane.b32.xlu1 %v5892_v47, %s11178_s16  ;;  %v5900_v39 = vmul.f32 %v5899_v33, %v9850_v12  ;;  %v4653_v47 = vld [vmem:[#allocation3 + $0xb0] sm:$0xff]  ;;  %v4644_v33 = vadd.f32 %v4643_v5, %v4627_v3  ;;  %v5931_v3 = vstv %s9836_s7  ;;  %v4651_v5 = vmul.f32 %v4650_v48, %v4636_v52  ;;  %v9959_v14 = vpop.permute.xlu0 %5358  ;;  %s10024_s7 = sld [smem:[#allocation5 + $0x3f]] }
 0x8da   : > { %v4660_v53 = vmul.f32 %v4659_v56, %v4653_v47  ;;  %v4648_v40 = vadd.f32 %v4647_v34, %v4631_v4  ;;  %v5908_v56 = vmul.f32 %v5907_v54, %v9850_v12  ;;  %v5916_v52 = vmul.f32 %v5915_v59, %v9850_v12  ;;  %11211 = vst [vmem:[#allocation56_spill] sm:$0xff] %v9959_v14  ;;  %v9967_v4 = vld [vmem:[#allocation3 + $0x51] sm:$0xff] }
 0x8db   : > { %v4664_v48 = vmul.f32 %v4663_v55, %v4653_v47  ;;  %v5955_v12 = vstv %s9899_s13  ;;  %v9970_v54 = vld [vmem:[#allocation3 + $0xd0] sm:$0xff]  ;;  %v4693_v59 = vstv %s9922_s26  ;;  %v4701_v14 = vstv %s9957_s29  ;;  %s10071_s13 = sld [smem:[#allocation5 + $0xe7]] }
 0x8dc   : > { %s11221_s26 = sld [smem:[#allocation33_spill]] }
 0x8dd   : > { %5902 = vrot.lane.b32.xlu0 %v5900_v39, %s11178_s16  ;;  %5878 = vrot.lane.b32.xlu1 %v5876_v31, %s11178_s16  ;;  %v4618_v39 = vadd.f32 %v9838_v13, %v9621_v9  ;;  %v4656_v31 = vmul.f32 %v4655_v11, %v4653_v47  ;;  %v4661_v13 = vadd.f32 %v4660_v53, %v4644_v33  ;;  %v4667_v11 = vstv %s9822_s17  ;;  %s10009_s17 = sld [smem:[#allocation5 + $0x3b]] }
 0x8de   : > { %v4673_v53 = vmul.f32 %v4672_v20, %v9942_v19  ;;  %v4680_v33 = vstv %s9887_s11  ;;  %v4668_v34 = vmul.f32 %v4667_v11, %v4653_v47  ;;  %v4665_v20 = vadd.f32 %v4664_v48, %v4648_v40  ;;  %v9998_v48 = vld [vmem:[#allocation3 + $0xe0] sm:$0xff]  ;;  %s10056_s11 = sld [smem:[#allocation5 + $0x11a]] }
 0x8df   : > { %v4657_v9 = vadd.f32 %v4656_v31, %v4640_v45  ;;  %v4677_v45 = vmul.f32 %v4676_v35, %v9942_v19  ;;  %v5939_v31 = vstv %s9845_s9  ;;  %v5947_v35 = vstv %s9853_s8  ;;  %s11212_s9 = sld [smem:[#allocation28_spill]] }
 0x8e0   : > { %v4681_v47 = vmul.f32 %v4680_v33, %v9942_v19  ;;  %v4684_v11 = vstv %s9894_s25  ;;  %v4694_v40 = vmul.f32 %v4693_v59, %v9970_v54  ;;  %v10006_v33 = vld [vmem:[#allocation3 + $0xf0] sm:$0xff]  ;;  %v5940_v8 = vmul.f32 %v5939_v31, %v9917_v50  ;;  %s10029_s8 = sld [smem:[#allocation5 + $0x11c]] }
 0x8e1   : > { %5886 = vrot.lane.b32.xlu0 %v5884_v58, %s11178_s16  ;;  %5926 = vrot.lane.b32.xlu1 %v5924_v0, %s11178_s16  ;;  %v4635_v58 = vadd.f32 %v4634_v24, %v4618_v39  ;;  %v5932_v0 = vmul.f32 %v5931_v3, %v9917_v50  ;;  %v4689_v24 = vstv %s9914_s19  ;;  %v9976_v39 = vpop.permute.xlu1 %4870  ;;  %v4674_v55 = vadd.f32 %v4673_v53, %v4657_v9  ;;  %s11219_s25 = sld [smem:[#allocation31_spill]] }
 0x8e2   : > { %v4678_v3 = vadd.f32 %v4677_v45, %v4661_v13  ;;  %v5963_v9 = vstv %s9902_s20  ;;  %v4690_v13 = vmul.f32 %v4689_v24, %v9970_v54  ;;  %v4706_v53 = vstv %s9933_s3  ;;  %s11220_s20 = sld [smem:[#allocation32_spill]] }
 0x8e3   : > { %v4652_v36 = vadd.f32 %v4651_v5, %v4635_v58  ;;  %v4723_v45 = vstv %s9945_s4  ;;  %v4710_v5 = vstv %s9938_s24  ;;  %v4697_v58 = vstv %s9928_s2  ;;  %s10078_s19 = sld [smem:[#allocation5 + $0xe6]] }
 0x8e4   : > { %v4695_v27 = vadd.f32 %v4694_v40, %v4678_v3  ;;  %v4727_v24 = vstv %s9952_s0  ;;  %v4682_v59 = vadd.f32 %v4681_v47, %v4665_v20  ;;  %v4685_v15 = vmul.f32 %v4684_v11, %v9942_v19  ;;  %v10020_v3 = vld [vmem:[#allocation3 + $0x180] sm:$0xff]  ;;  %s10092_s2 = sld [smem:[#allocation5 + $0x11e]] }
 0x8e5   : > { %5934 = vrot.lane.b32.xlu0 %v5932_v0, %s11178_s16  ;;  %5910 = vrot.lane.b32.xlu1 %v5908_v56, %s11178_s16  ;;  %v9988_v0 = vpop.permute.xlu0 %4846  ;;  %v5956_v56 = vmul.f32 %v5955_v12, %v9967_v4  ;;  %v4691_v12 = vadd.f32 %v4690_v13, %v4674_v55  ;;  %v10016_v32 = vpop.permute.xlu1 %4886  ;;  %v4707_v55 = vmul.f32 %v4706_v53, %v9998_v48  ;;  %v10026_v19 = vld [vmem:[#allocation3 + $0x61] sm:$0xff]  ;;  %v4714_v11 = vstv %s9974_s28  ;;  %s10100_s3 = sld [smem:[#allocation5 + $0x68]] }
 0x8e6   : > { %v4711_v20 = vmul.f32 %v4710_v5, %v9998_v48  ;;  %v4698_v31 = vmul.f32 %v4697_v58, %v9970_v54  ;;  %v4728_v47 = vmul.f32 %v4727_v24, %v10006_v33  ;;  %v4731_v5 = vstv %s9981_s27  ;;  %s10105_s24 = sld [smem:[#allocation5 + $0x69]] }
 0x8e7   : > { %v4708_v13 = vadd.f32 %v4707_v55, %v4691_v12  ;;  %v5136_v24 = vstv %s11212_s9  ;;  %v4715_v12 = vmul.f32 %v4714_v11, %v9998_v48  ;;  %v5995_v55 = vstv %s9996_s12  ;;  %s11222_s4 = sld [smem:[#allocation35_spill]] }
 0x8e8   : > { %v4712_v40 = vadd.f32 %v4711_v20, %v4695_v27  ;;  %v4699_v53 = vadd.f32 %v4698_v31, %v4682_v59  ;;  %v5660_v59 = vstv %s11213_s10  ;;  %v5971_v20 = vstv %s9992_s1  ;;  %s11224_s0 = sld [smem:[#allocation36_spill]] }
 0x8e9   : > { %5918 = vrot.lane.b32.xlu0 %v5916_v52, %s11178_s16  ;;  %5958 = vrot.lane.b32.xlu1 %v5956_v56, %s11178_s16  ;;  %v4669_v52 = vadd.f32 %v4668_v34, %v4652_v36  ;;  %v5964_v56 = vmul.f32 %v5963_v9, %v9967_v4  ;;  %v5987_v36 = vstv %s9962_s15  ;;  %v4724_v34 = vmul.f32 %v4723_v45, %v10006_v33  ;;  %v10034_v9 = vpop.permute.xlu0 %4862  ;;  %v10066_v28 = vpop.permute.xlu1 %5398  ;;  %s10117_s29 = sld [smem:[#allocation5 + $0x6a]] }
 0x8ea   : > { %v11214_v45 = vstv %s9567_s18  ;;  %v5988_v27 = vmul.f32 %v5987_v36, %v10026_v19  ;;  %s11216_s18 = sld [smem:[#allocation29_spill]]  ;;  %v4732_v6 = vmul.f32 %v4731_v5, %v10006_v33  ;;  %11218 = vst [vmem:[#allocation57_spill] sm:$0xff] %v10066_v28  ;;  %v4718_v31 = vstv %s10009_s17 }
 0x8eb   : > { %v10044_v58 = vmul.f32 %v11214_v45, %v10020_v3  ;;  %v10074_v36 = vmul.f32 %v5136_v24, %v10020_v3  ;;  %v5979_v45 = vstv %s10012_s23  ;;  %v10089_v24 = vld [vmem:[#allocation3 + $0x71] sm:$0xff]  ;;  %v5672_v28 = vstv %s11221_s26  ;;  %s11225_s15 = sld [smem:[#allocation37_spill]] }
 0x8ec   : > { %s11226_s28 = sld [smem:[#allocation38_spill]] }
 0x8ed   : > { %5966 = vrot.lane.b32.xlu0 %v5964_v56, %s11178_s16  ;;  %5942 = vrot.lane.b32.xlu1 %v5940_v8, %s11178_s16  ;;  %v4686_v56 = vadd.f32 %v4685_v15, %v4669_v52  ;;  %v5948_v8 = vmul.f32 %v5947_v35, %v9917_v50  ;;  %v4702_v15 = vmul.f32 %v4701_v14, %v9970_v54  ;;  %v5144_v54 = vstv %s11217_s14  ;;  %v10080_v5 = vpop.permute.xlu0 %5374  ;;  %s10126_s27 = sld [smem:[#allocation5 + $0x11f]] }
 0x8ee   : > { %v4725_v50 = vadd.f32 %v4724_v34, %v4708_v13  ;;  %v4729_v35 = vadd.f32 %v4728_v47, %v4712_v40  ;;  %v4716_v52 = vadd.f32 %v4715_v12, %v4699_v53  ;;  %v5996_v34 = vmul.f32 %v5995_v55, %v10026_v19  ;;  %v5658_v40 = vld [vmem:[#allocation3 + $0x81] sm:$0xff]  ;;  %v10096_v12 = vpop.permute.xlu1 %4902  ;;  %s11230_s1 = sld [smem:[#allocation39_spill]] }
 0x8ef   : > { %v4703_v11 = vadd.f32 %v4702_v15, %v4686_v56  ;;  %v5972_v47 = vmul.f32 %v5971_v20, %v9967_v4  ;;  %v4735_v13 = vstv %s10024_s7  ;;  %v5664_v53 = vstv %s11219_s25  ;;  %s11231_s12 = sld [smem:[#allocation40_spill]] }
 0x8f0   : > { %v5140_v14 = vstv %s11216_s18  ;;  %v4719_v56 = vmul.f32 %v4718_v31, %v9998_v48  ;;  %v4745_v55 = vadd.f32 %v9575_v2, %v4725_v50  ;;  %v4753_v20 = vadd.f32 %v9616_v61, %v4729_v35  ;;  %s11232_s17 = sld [smem:[#allocation41_spill]] }
 0x8f1   : > { %5950 = vrot.lane.b32.xlu0 %v5948_v8, %s11178_s16  ;;  %5990 = vrot.lane.b32.xlu1 %v5988_v27, %s11178_s16  ;;  %v6019_v8 = vstv %s10029_s8  ;;  %v5668_v27 = vstv %s11220_s20  ;;  %v4733_v15 = vadd.f32 %v4732_v6, %v4716_v52  ;;  %v10108_v48 = vmul.f32 %v5140_v14, %v10020_v3  ;;  %v10113_v22 = vpop.permute.xlu0 %4878  ;;  %s10138_s23 = sld [smem:[#allocation5 + $0x6b]] }
 0x8f2   : > { %v4736_v31 = vmul.f32 %v4735_v13, %v10006_v33  ;;  %v5980_v2 = vmul.f32 %v5979_v45, %v9967_v4  ;;  %v6020_v50 = vmul.f32 %v6019_v8, %v10089_v24  ;;  %v10120_v61 = vmul.f32 %v5144_v54, %v10020_v3  ;;  %s11233_s7 = sld [smem:[#allocation42_spill]] }
 0x8f3   : > { %v10122_v6 = vmul.f32 %v5664_v53, %v5658_v40  ;;  %v6027_v33 = vstv %s10062_s6  ;;  %v6003_v35 = vstv %s10056_s11  ;;  %v10130_v52 = vmul.f32 %v5672_v28, %v5658_v40  ;;  %s11234_s9 = sld [smem:[#allocation43_spill]]  ;;  %v10145_v53 = vpop.permute.xlu1 %4918 }
 0x8f4   : > { %v5013_v4 = vstv %s11222_s4  ;;  %v4777_v3 = vadd.f32 %v9675_v38, %v4745_v55  ;;  %v4785_v14 = vadd.f32 %v9698_v46, %v4753_v20  ;;  %v4761_v54 = vadd.f32 %v9642_v23, %v4733_v15  ;;  %s10143_s8 = sld [smem:[#allocation5 + $0xc8]] }
 0x8f5   : > { %5998 = vrot.lane.b32.xlu0 %v5996_v34, %s11178_s16  ;;  %5974 = vrot.lane.b32.xlu1 %v5972_v47, %s11178_s16  ;;  %v4720_v34 = vadd.f32 %v4719_v56, %v4703_v11  ;;  %v10111_v47 = vmul.f32 %v5660_v59, %v5658_v40  ;;  %11227 = vst [vmem:[#allocation59_spill] sm:$0xff] %v10122_v6  ;;  %11229 = vst [vmem:[#allocation61_spill] sm:$0xff] %v10130_v52  ;;  %v5017_v28 = vstv %s11224_s0  ;;  %s10149_s10 = sld [smem:[#allocation5 + $0x88]]  ;;  %v10159_v20 = vpop.permute.xlu0 %4894 }
 0x8f6   : > { %v10128_v59 = vmul.f32 %v5668_v27, %v5658_v40  ;;  %v5021_v11 = vstv %s11225_s15  ;;  %v5025_v13 = vstv %s11226_s28  ;;  %v6028_v38 = vmul.f32 %v6027_v33, %v10089_v24  ;;  %s10155_s11 = sld [smem:[#allocation5 + $0x89]] }
 0x8f7   : > { %11223 = vst [vmem:[#allocation58_spill] sm:$0xff] %v10111_v47  ;;  %v4737_v40 = vadd.f32 %v4736_v31, %v4720_v34  ;;  %v6004_v45 = vmul.f32 %v6003_v35, %v10026_v19  ;;  %v5541_v23 = vstv %s11230_s1  ;;  %v5545_v46 = vstv %s11231_s12  ;;  %s11235_s18 = sld [smem:[#allocation45_spill]]  ;;  %v10172_v33 = vpop.permute.xlu1 %4934 }
 0x8f8   : > { %11228 = vst [vmem:[#allocation60_spill] sm:$0xff] %v10128_v59  ;;  %v6035_v8 = vstv %s10092_s2  ;;  %v6011_v56 = vstv %s10084_s5  ;;  %v5549_v27 = vstv %s11232_s17  ;;  %v4809_v31 = vadd.f32 %v9741_v7, %v4777_v3  ;;  %s10167_s14 = sld [smem:[#allocation5 + $0x8a]] }
 0x8f9   : > { %5982 = vrot.lane.b32.xlu0 %v5980_v2, %s11178_s16  ;;  %6022 = vrot.lane.b32.xlu1 %v6020_v50, %s11178_s16  ;;  %v5149_v15 = vstv %s11234_s9  ;;  %v4817_v34 = vadd.f32 %v9826_v62, %v4785_v14  ;;  %v4793_v2 = vadd.f32 %v9706_v51, %v4761_v54  ;;  %v4769_v50 = vadd.f32 %v9599_v21, %v4737_v40  ;;  %s10170_s6 = sld [smem:[#allocation5 + $0x8b]] }
 0x8fa   : > { %v6036_v35 = vmul.f32 %v6035_v8, %v10089_v24  ;;  %v6012_v7 = vmul.f32 %v6011_v56, %v10026_v19  ;;  %s10176_s25 = sld [smem:[#allocation5 + $0x6c]]  ;;  %v5157_v51 = vstv %s9985_s30  ;;  %v11236_v3 = vmov 0.0   ;;  %v5147_v19 = vld [vmem:[#allocation3 + $0x190] sm:$0xff] }
 0x8fb   : > { %4433 = vst.msk [vmem:[#allocation4 + $0x10] sm:$0x1] %vm4431_vm5, %v11236_v3  ;;  %4437 = vst.msk [vmem:[#allocation4 + $0x19] sm:$0x1] %vm4431_vm5, %v11236_v3  ;;  %v6043_v21 = vstv %s10126_s27  ;;  %s10197_s30 = sld [smem:[#allocation5 + $0x6d]]  ;;  %v10200_v14 = vmul.f32 %v5541_v23, %v9729_v1  ;;  %v10203_v54 = vmul.f32 %v5545_v46, %v9729_v1  ;;  %v10206_v40 = vmul.f32 %v5549_v27, %v9729_v1 }
 0x8fc   : > { %4432 = vst.msk [vmem:[#allocation4] sm:$0x1] %vm4431_vm5, %v11236_v3  ;;  %4434 = vst.msk [vmem:[#allocation4 + $0x20] sm:$0x1] %vm4431_vm5, %v11236_v3  ;;  %s10236_s20 = sld [smem:[#allocation5 + $0x6e]]  ;;  %v5161_v56 = vstv %s10039_s21  ;;  %v4801_v27 = vadd.f32 %v9724_v63, %v4769_v50  ;;  %v10278_v63 = vpop.permute.xlu1 %4950 }
 0x8fd   : > { %6030 = vrot.lane.b32.xlu0 %v6028_v38, %s11178_s16  ;;  %6006 = vrot.lane.b32.xlu1 %v6004_v45, %s11178_s16  ;;  %v5153_v62 = vstv %s11235_s18  ;;  %4435 = vst.msk [vmem:[#allocation4 + $0x30] sm:$0x1] %vm4431_vm5, %v11236_v3  ;;  %4436 = vst.msk [vmem:[#allocation4 + $0x9] sm:$0x1] %vm4431_vm5, %v11236_v3  ;;  %v10224_v38 = vpop.permute.xlu0 %4910  ;;  %v8163_v45 = vld [vmem:[#allocation3 + $0x110] sm:$0xff]  ;;  %s11239_s5 = sld [smem:[#allocation44_spill]] }
 0x8fe   : > { %4438 = vst.msk [vmem:[#allocation4 + $0x29] sm:$0x1] %vm4431_vm5, %v11236_v3  ;;  %4439 = vst.msk [vmem:[#allocation4 + $0x39] sm:$0x1] %vm4431_vm5, %v11236_v3  ;;  %v10230_v23 = vmul.f32 %v8163_v45, %v5013_v4  ;;  %v10232_v46 = vmul.f32 %v8163_v45, %v5017_v28  ;;  %v10234_v8 = vmul.f32 %v8163_v45, %v5021_v11  ;;  %s10258_s21 = sld [smem:[#allocation5 + $0x6f]] }
 0x8ff   : > { %11237 = vst [vmem:[#allocation62_spill] sm:$0xff] %v10203_v54  ;;  %11238 = vst [vmem:[#allocation63_spill] sm:$0xff] %v10206_v40  ;;  %v4841_v4 = vadd.f32 %v9860_v30, %v4809_v31  ;;  %v4849_v28 = vadd.f32 %v9988_v0, %v4817_v34  ;;  %v4825_v11 = vadd.f32 %v9769_v60, %v4793_v2  ;;  %s10270_s26 = sld [smem:[#allocation5 + $0x8e]]  ;;  %v5675_v60 = vld [vmem:[#allocation3 + $0x91] sm:$0xff]  ;;  %v5677_v0 = vstv %s10052_s22 }
 0x900   : > { %4442 = vst.msk [vmem:[#allocation4 + $0x10] sm:$0xff] %vm292_vm1, %v11236_v3  ;;  %4440 = vst.msk [vmem:[#allocation4] sm:$0xff] %vm292_vm1, %v11236_v3  ;;  %v10264_v55 = vmul.f32 %v5153_v62, %v5147_v19  ;;  %s10272_s2 = sld [smem:[#allocation5 + $0x8d]]  ;;  %v5689_v31 = vstv %s10071_s13  ;;  %v5685_v34 = vstv %s10078_s19  ;;  %v10284_v2 = vmul.f32 %v5161_v56, %v5147_v19  ;;  %v10330_v52 = vpop.permute.xlu1 %4958 }
 0x901   : > { %4443 = vst.msk [vmem:[#allocation4 + $0x18] sm:$0x3] %vm295_vm3, %v11236_v3  ;;  %4441 = vst.msk [vmem:[#allocation4 + $0x8] sm:$0x3] %vm295_vm3, %v11236_v3  ;;  %6038 = vrot.lane.b32.xlu0 %v6036_v35, %s11178_s16  ;;  %6014 = vrot.lane.b32.xlu1 %v6012_v7, %s11178_s16  ;;  %v6044_v35 = vmul.f32 %v6043_v21, %v10089_v24  ;;  %v10262_v7 = vmul.f32 %v5149_v15, %v5147_v19  ;;  %v5030_v24 = vstv %s10100_s3  ;;  %s10286_s4 = sld [smem:[#allocation5 + $0x8f]] }
 0x902   : > { %4444 = vst.msk [vmem:[#allocation4 + $0x20] sm:$0xff] %vm292_vm1, %v11236_v3  ;;  %4446 = vst.msk [vmem:[#allocation4 + $0x30] sm:$0xff] %vm292_vm1, %v11236_v3  ;;  %v10282_v15 = vmul.f32 %v5157_v51, %v5147_v19  ;;  %v4873_v62 = vadd.f32 %v9976_v39, %v4841_v4  ;;  %v4881_v21 = vadd.f32 %v10113_v22, %v4849_v28  ;;  %s10297_s22 = sld [smem:[#allocation5 + $0x8c]]  ;;  %v10299_v19 = vpop.permute.xlu0 %4926  ;;  %v5166_v4 = vstv %s10149_s10 }
 0x903   : > { %4445 = vst.msk [vmem:[#allocation4 + $0x28] sm:$0x3] %vm295_vm3, %v11236_v3  ;;  %4447 = vst.msk [vmem:[#allocation4 + $0x38] sm:$0x3] %vm295_vm3, %v11236_v3  ;;  %v5681_v30 = vstv %s11239_s5  ;;  %v4833_v51 = vadd.f32 %v9884_v43, %v4801_v27  ;;  %s10301_s13 = sld [smem:[#allocation5 + $0x70]]  ;;  %v10305_v56 = vmul.f32 %v5677_v0, %v5675_v60  ;;  %v10307_v39 = vmul.f32 %v5689_v31, %v5675_v60  ;;  %v8164_v27 = vld [vmem:[#allocation3 + $0x120] sm:$0xff] }
 0x904   : > { %4452 = vst.msk [vmem:[#allocation4 + $0x10] sm:$0xff] %vm4448_vm6, %v11236_v3  ;;  %4449 = vst.msk [vmem:[#allocation4] sm:$0xff] %vm4448_vm6, %v11236_v3  ;;  %v10309_v22 = vmul.f32 %v5685_v34, %v5675_v60  ;;  %v5034_v43 = vstv %s10105_s24  ;;  %s10313_s19 = sld [smem:[#allocation5 + $0x71]]  ;;  %v5038_v28 = vstv %s10117_s29  ;;  %v5178_v0 = vstv %s10170_s6 }
 0x905   : > { %4453 = vst.msk [vmem:[#allocation4 + $0x18] sm:$0x3] %vm4450_vm9, %v11236_v3  ;;  %4451 = vst.msk [vmem:[#allocation4 + $0x8] sm:$0x3] %vm4450_vm9, %v11236_v3  ;;  %6046 = vrot.lane.b32.xlu1 %v6044_v35, %s11178_s16  ;;  %v10317_v35 = vmul.f32 %v8164_v27, %v5030_v24  ;;  %s10320_s3 = sld [smem:[#allocation5 + $0x72]]  ;;  %v4905_v31 = vadd.f32 %v10096_v12, %v4873_v62  ;;  %v5035_v12 = vmul.f32 %v8164_v27, %v5034_v43  ;;  %vm6056_vm1 = vcmask 72712  }
 0x906   : > { %4454 = vst.msk [vmem:[#allocation4 + $0x20] sm:$0xff] %vm4448_vm6, %v11236_v3  ;;  %4456 = vst.msk [vmem:[#allocation4 + $0x30] sm:$0xff] %vm4448_vm6, %v11236_v3  ;;  %s10327_s24 = sld [smem:[#allocation5 + $0x73]]  ;;  %v4943_v24 = vpop.permute.xlu0 %4942  ;;  %v10336_v62 = vmul.f32 %v8164_v27, %v5038_v28  ;;  %v5055_v59 = vstv %s10236_s20  ;;  %v5191_v43 = vstv %s10270_s26  ;;  %v5187_v6 = vstv %s10272_s2 }
 0x907   : > { %4455 = vst.msk [vmem:[#allocation4 + $0x28] sm:$0x3] %vm4450_vm9, %v11236_v3  ;;  %4457 = vst.msk [vmem:[#allocation4 + $0x38] sm:$0x3] %vm4450_vm9, %v11236_v3  ;;  %v10268_v3 = vmul.f32 %v8163_v45, %v5025_v13  ;;  %v11240_v13 = vstv %s11233_s7  ;;  %v4857_v45 = vadd.f32 %v9910_v26, %v4825_v11  ;;  %v5164_v26 = vld [vmem:[#allocation3 + $0x1a0] sm:$0xff]  ;;  %v5042_v11 = vstv %s10138_s23  ;;  %s10332_s0 = sld [smem:[#allocation5 + $0x74]] }
 0x908   : > { %v10291_v50 = vmul.f32 %v11240_v13, %v9729_v1  ;;  %v10303_v1 = vmul.f32 %v5681_v30, %v5675_v60  ;;  %11243 = vst [vmem:[#allocation66_spill] sm:$0xff] %v10305_v56  ;;  %11244 = vst [vmem:[#allocation67_spill] sm:$0xff] %v10307_v39  ;;  %v5170_v13 = vstv %s10155_s11  ;;  %v5174_v30 = vstv %s10167_s14  ;;  %s10341_s29 = sld [smem:[#allocation5 + $0x75]] }
 0x909   : > { %11245 = vst [vmem:[#allocation68_spill] sm:$0xff] %v10309_v22  ;;  %v4913_v60 = vadd.f32 %v10224_v38, %v4881_v21  ;;  %v4889_v34 = vadd.f32 %v10016_v32, %v4857_v45  ;;  %v4865_v39 = vadd.f32 %v10034_v9, %v4833_v51  ;;  %v10334_v22 = vmul.f32 %v5166_v4, %v5164_v26  ;;  %s10351_s15 = sld [smem:[#allocation5 + $0x76]] }
 0x90a   : > { %11241 = vst [vmem:[#allocation64_spill] sm:$0xff] %v10291_v50  ;;  %11242 = vst [vmem:[#allocation65_spill] sm:$0xff] %v10303_v1  ;;  %v10338_v38 = vmul.f32 %v8164_v27, %v5042_v11  ;;  %v5047_v32 = vstv %s10176_s25  ;;  %v10343_v21 = vmul.f32 %v5170_v13, %v5164_v26  ;;  %v10345_v9 = vmul.f32 %v5174_v30, %v5164_v26  ;;  %s10355_s28 = sld [smem:[#allocation5 + $0x78]]  ;;  %v5181_v13 = vld [vmem:[#allocation3 + $0x1b0] sm:$0xff] }
 0x90b   : > { %v10347_v45 = vmul.f32 %v5178_v0, %v5164_v26  ;;  %v5051_v51 = vstv %s10197_s30  ;;  %v5059_v4 = vstv %s10258_s21  ;;  %v4937_v28 = vadd.f32 %v10172_v33, %v4905_v31  ;;  %v8165_v30 = vld [vmem:[#allocation3 + $0x130] sm:$0xff]  ;;  %s10360_s27 = sld [smem:[#allocation5 + $0x79]] }
 0x90c   : > { %v4945_v11 = vadd.f32 %v4943_v24, %v4913_v60  ;;  %v4921_v27 = vadd.f32 %v10145_v53, %v4889_v34  ;;  %v4897_v26 = vadd.f32 %v10159_v20, %v4865_v39  ;;  %v5048_v0 = vmul.f32 %v8165_v30, %v5047_v32  ;;  %s10365_s1 = sld [smem:[#allocation5 + $0x7c]] }
 0x90d   : > { %v5195_v47 = vstv %s10286_s4  ;;  %v5183_v50 = vstv %s10297_s22  ;;  %v5052_v31 = vmul.f32 %v8165_v30, %v5051_v51  ;;  %v10367_v60 = vmul.f32 %v8165_v30, %v5055_v59  ;;  %s10371_s12 = sld [smem:[#allocation5 + $0x7d]] }
 0x90e   : > { %v5064_v20 = vstv %s10301_s13  ;;  %v5068_v39 = vstv %s10313_s19  ;;  %v10373_v34 = vmul.f32 %v8165_v30, %v5059_v4  ;;  %v10375_v24 = vmul.f32 %v5191_v43, %v5181_v13  ;;  %s10380_s17 = sld [smem:[#allocation5 + $0x77]] }
 0x90f   : > { %v4967_v56 = vpop.permute.xlu1 %4966  ;;  %v4975_v1 = vpop.permute.xlu0 %4974  ;;  %v4953_v54 = vadd.f32 %v10278_v63, %v4921_v27  ;;  %v4929_v59 = vadd.f32 %v10299_v19, %v4897_v26  ;;  %s10386_s23 = sld [smem:[#allocation5 + $0x7a]]  ;;  %v10388_v4 = vmul.f32 %v5187_v6, %v5181_v13  ;;  %v10390_v43 = vmul.f32 %v5195_v47, %v5181_v13 }
 0x910   : > { %v4969_v33 = vadd.f32 %v4967_v56, %v4937_v28  ;;  %v4977_v53 = vadd.f32 %v4975_v1, %v4945_v11  ;;  %v5072_v56 = vstv %s10320_s3  ;;  %v5076_v28 = vstv %s10327_s24  ;;  %s10397_s7 = sld [smem:[#allocation5 + $0x92]]  ;;  %v8166_v11 = vld [vmem:[#allocation3 + $0x140] sm:$0xff] }
 0x911   : > { %v5065_v27 = vmul.f32 %v8166_v11, %v5064_v20  ;;  %v5081_v26 = vstv %s10332_s0  ;;  %v5069_v6 = vmul.f32 %v8166_v11, %v5068_v39  ;;  %v5085_v30 = vstv %s10341_s29  ;;  %s10401_s9 = sld [smem:[#allocation5 + $0x7e]] }
 0x912   : > { %v4998_v32 = vadd.f32 %v9876_v41, %v4969_v33  ;;  %v5002_v40 = vadd.f32 %v9881_v29, %v4977_v53  ;;  %v10392_v41 = vmul.f32 %v5183_v50, %v5181_v13  ;;  %s10406_s10 = sld [smem:[#allocation5 + $0x91]]  ;;  %v5073_v13 = vmul.f32 %v8166_v11, %v5072_v56 }
 0x913   : > { %v10383_v1 = vpop.permute.xlu1 %5382  ;;  %v4983_v51 = vpop.permute.xlu0 %4982  ;;  %v5089_v33 = vstv %s10351_s15  ;;  %s10411_s11 = sld [smem:[#allocation5 + $0x7b]]  ;;  %v5119_v56 = vstv %s10371_s12  ;;  %vm6580_vm3 = vcmask 64512  }
 0x914   : > { %v5015_v29 = vadd.f32 %v10230_v23, %v4998_v32  ;;  %v5019_v63 = vadd.f32 %v10232_v46, %v5002_v40  ;;  %v4985_v19 = vadd.f32 %v4983_v51, %v4953_v54  ;;  %v4961_v40 = vadd.f32 %v10330_v52, %v4929_v59  ;;  %s10416_s18 = sld [smem:[#allocation5 + $0x93]]  ;;  %v8167_v52 = vld [vmem:[#allocation3 + $0x150] sm:$0xff] }
 0x915   : > { %v5098_v54 = vstv %s10355_s28  ;;  %v5102_v46 = vstv %s10360_s27  ;;  %v5082_v32 = vmul.f32 %v8167_v52, %v5081_v26  ;;  %v5115_v59 = vstv %s10365_s1  ;;  %s10420_s14 = sld [smem:[#allocation5 + $0x7f]] }
 0x916   : > { %v5032_v47 = vadd.f32 %v10317_v35, %v5015_v29  ;;  %v5036_v50 = vadd.f32 %v5035_v12, %v5019_v63  ;;  %v5006_v23 = vadd.f32 %v9908_v17, %v4985_v19  ;;  %v5086_v51 = vmul.f32 %v8167_v52, %v5085_v30  ;;  %s10424_s6 = sld [smem:[#allocation5 + $0x90]] }
 0x917   : > { %v4991_v53 = vpop.permute.xlu1 %4990  ;;  %v10413_v20 = vpop.permute.xlu0 %5406  ;;  %s10432_s25 = sld [smem:[#allocation5 + $0x96]] }
 0x918   : > { %v5049_v39 = vadd.f32 %v5048_v0, %v5032_v47  ;;  %v5053_v35 = vadd.f32 %v5052_v31, %v5036_v50  ;;  %v5023_v12 = vadd.f32 %v10234_v8, %v5006_v23  ;;  %v4993_v17 = vadd.f32 %v4991_v53, %v4961_v40  ;;  %v8168_v8 = vld [vmem:[#allocation3 + $0x160] sm:$0xff]  ;;  %s10436_s30 = sld [smem:[#allocation5 + $0x95]]  ;;  %v8169_v40 = vld [vmem:[#allocation3 + $0x170] sm:$0xff] }
 0x919   : > { %v5099_v31 = vmul.f32 %v8168_v8, %v5098_v54  ;;  %v5103_v47 = vmul.f32 %v8168_v8, %v5102_v46  ;;  %v5106_v50 = vstv %s10386_s23  ;;  %v5093_v23 = vstv %s10380_s17  ;;  %s10439_s20 = sld [smem:[#allocation5 + $0x94]] }
 0x91a   : > { %v5066_v29 = vadd.f32 %v5065_v27, %v5049_v39  ;;  %v5070_v63 = vadd.f32 %v5069_v6, %v5053_v35  ;;  %v5040_v19 = vadd.f32 %v10336_v62, %v5023_v12  ;;  %v5010_v0 = vadd.f32 %v10050_v57, %v4993_v17  ;;  %s10442_s5 = sld [smem:[#allocation5 + $0x99]] }
 0x91b   : > { %v10428_v26 = vpop.permute.xlu1 %5430  ;;  %v10430_v30 = vpop.permute.xlu0 %5390  ;;  %v5116_v54 = vmul.f32 %v8169_v40, %v5115_v59  ;;  %v5120_v46 = vmul.f32 %v8169_v40, %v5119_v56  ;;  %v5090_v53 = vmul.f32 %v8167_v52, %v5089_v33  ;;  %v5123_v39 = vstv %s10401_s9  ;;  %s10450_s21 = sld [smem:[#allocation5 + $0x98]] }
 0x91c   : > { %v5083_v27 = vadd.f32 %v5082_v32, %v5066_v29  ;;  %v5087_v6 = vadd.f32 %v5086_v51, %v5070_v63  ;;  %v5057_v62 = vadd.f32 %v10367_v60, %v5040_v19  ;;  %v5027_v57 = vadd.f32 %v10268_v3, %v5010_v0  ;;  %s10455_s26 = sld [smem:[#allocation5 + $0x9d]] }
 0x91d   : > { %v5107_v60 = vmul.f32 %v8168_v8, %v5106_v50  ;;  %v5077_v3 = vmul.f32 %v8166_v11, %v5076_v28  ;;  %v5110_v51 = vstv %s10411_s11  ;;  %v5208_v33 = vstv %s10397_s7  ;;  %s10459_s2 = sld [smem:[#allocation5 + $0x9c]] }
 0x91e   : > { %v5100_v35 = vadd.f32 %v5099_v31, %v5083_v27  ;;  %v5104_v12 = vadd.f32 %v5103_v47, %v5087_v6  ;;  %v5074_v17 = vadd.f32 %v5073_v13, %v5057_v62  ;;  %v5044_v32 = vadd.f32 %v10338_v38, %v5027_v57  ;;  %v10453_v38 = vld [vmem:[#allocation3 + $0x1c0] sm:$0xff]  ;;  %s10463_s4 = sld [smem:[#allocation5 + $0x97]] }
 0x91f   : > { %v10445_v29 = vpop.permute.xlu1 %5414  ;;  %v10447_v59 = vpop.permute.xlu0 %5438  ;;  %v5124_v0 = vmul.f32 %v8169_v40, %v5123_v39  ;;  %v5094_v28 = vmul.f32 %v8167_v52, %v5093_v23  ;;  %v5127_v11 = vstv %s10420_s14  ;;  %v5204_v31 = vstv %s10406_s10  ;;  %s10470_s22 = sld [smem:[#allocation5 + $0x9a]] }
 0x920   : > { %v5117_v56 = vadd.f32 %v5116_v54, %v5100_v35  ;;  %v5121_v63 = vadd.f32 %v5120_v46, %v5104_v12  ;;  %v5091_v19 = vadd.f32 %v5090_v53, %v5074_v17  ;;  %v5061_v13 = vadd.f32 %v10373_v34, %v5044_v32  ;;  %s10476_s13 = sld [smem:[#allocation5 + $0xc9]] }
 0x921   : > { %v5111_v34 = vmul.f32 %v8168_v8, %v5110_v51  ;;  %v5209_v52 = vmul.f32 %v5208_v33, %v10453_v38  ;;  %v5212_v23 = vstv %s10416_s18  ;;  %v5200_v54 = vstv %s10424_s6  ;;  %s10478_s19 = sld [smem:[#allocation5 + $0x9e]] }
 0x922   : > { %v5134_v47 = vadd.f32 %v10044_v58, %v5117_v56  ;;  %v5138_v50 = vadd.f32 %v10074_v36, %v5121_v63  ;;  %v5108_v27 = vadd.f32 %v5107_v60, %v5091_v19  ;;  %v5078_v6 = vadd.f32 %v5077_v3, %v5061_v13  ;;  %v5215_v60 = vld [vmem:[#allocation3 + $0x1d0] sm:$0xff]  ;;  %s10486_s3 = sld [smem:[#allocation5 + $0xca]]  ;;  %v5232_v63 = vld [vmem:[#allocation3 + $0x1e0] sm:$0xff] }
 0x923   : > { %v10465_v62 = vpop.permute.xlu1 %5462  ;;  %v10467_v57 = vpop.permute.xlu0 %5422  ;;  %v5128_v8 = vmul.f32 %v8169_v40, %v5127_v11  ;;  %v5205_v39 = vmul.f32 %v5204_v31, %v10453_v38  ;;  %v5221_v35 = vstv %s10436_s30  ;;  %v5217_v12 = vstv %s10439_s20  ;;  %s10494_s24 = sld [smem:[#allocation5 + $0x9b]] }
 0x924   : > { %v5151_v58 = vadd.f32 %v10262_v7, %v5134_v47  ;;  %v5155_v36 = vadd.f32 %v10264_v55, %v5138_v50  ;;  %v5125_v46 = vadd.f32 %v5124_v0, %v5108_v27  ;;  %v5095_v53 = vadd.f32 %v5094_v28, %v5078_v6  ;;  %s10501_s0 = sld [smem:[#allocation5 + $0xcb]]  ;;  %v5249_v50 = vld [vmem:[#allocation3 + $0x1f0] sm:$0xff] }
 0x925   : > { %v5225_v3 = vstv %s10432_s25  ;;  %v5238_v51 = vstv %s10442_s5  ;;  %v5234_v56 = vstv %s10450_s21  ;;  %v5222_v0 = vmul.f32 %v5221_v35, %v5215_v60  ;;  %s10504_s29 = sld [smem:[#allocation5 + $0x9f]] }
 0x926   : > { %v5168_v17 = vadd.f32 %v10334_v22, %v5151_v58  ;;  %v5172_v7 = vadd.f32 %v10343_v21, %v5155_v36  ;;  %v5142_v32 = vadd.f32 %v10108_v48, %v5125_v46  ;;  %v5112_v55 = vadd.f32 %v5111_v34, %v5095_v53  ;;  %s10509_s15 = sld [smem:[#allocation5 + $0xe9]] }
 0x927   : > { %v10489_v40 = vpop.permute.xlu1 %5446  ;;  %v10492_v33 = vpop.permute.xlu0 %5470  ;;  %v5201_v22 = vmul.f32 %v5200_v54, %v10453_v38  ;;  %v5255_v28 = vstv %s10455_s26  ;;  %v5218_v11 = vmul.f32 %v5217_v12, %v5215_v60  ;;  %v5251_v31 = vstv %s10459_s2  ;;  %s10517_s28 = sld [smem:[#allocation5 + $0xe8]] }
 0x928   : > { %v5159_v21 = vadd.f32 %v10282_v15, %v5142_v32  ;;  %v5129_v48 = vadd.f32 %v5128_v8, %v5112_v55  ;;  %v5189_v19 = vadd.f32 %v10388_v4, %v5172_v7  ;;  %v5185_v13 = vadd.f32 %v10392_v41, %v5168_v17  ;;  %s10521_s27 = sld [smem:[#allocation5 + $0xeb]] }
 0x929   : > { %v5242_v4 = vstv %s10470_s22  ;;  %v5239_v41 = vmul.f32 %v5238_v51, %v5232_v63  ;;  %v5229_v54 = vstv %s10463_s4  ;;  %v5235_v36 = vmul.f32 %v5234_v56, %v5232_v63  ;;  %s10524_s1 = sld [smem:[#allocation5 + $0xea]] }
 0x92a   : > { %v5146_v47 = vadd.f32 %v10120_v61, %v5129_v48  ;;  %v5176_v15 = vadd.f32 %v10345_v9, %v5159_v21  ;;  %v5206_v27 = vadd.f32 %v5205_v39, %v5189_v19  ;;  %v5202_v6 = vadd.f32 %v5201_v22, %v5185_v13  ;;  %s10527_s12 = sld [smem:[#allocation5 + $0xcc]] }
 0x92b   : > { %v10512_v34 = vpop.permute.xlu1 %5478  ;;  %v10515_v58 = vpop.permute.xlu0 %5454  ;;  %v5226_v8 = vmul.f32 %v5225_v3, %v5215_v60  ;;  %v5259_v39 = vstv %s10478_s19  ;;  %v5256_v35 = vmul.f32 %v5255_v28, %v5249_v50  ;;  %v5252_v12 = vmul.f32 %v5251_v31, %v5249_v50  ;;  %s10538_s17 = sld [smem:[#allocation5 + $0xcd]] }
 0x92c   : > { %v5163_v61 = vadd.f32 %v10284_v2, %v5146_v47  ;;  %v5193_v9 = vadd.f32 %v10375_v24, %v5176_v15  ;;  %v5223_v46 = vadd.f32 %v5222_v0, %v5206_v27  ;;  %v5219_v53 = vadd.f32 %v5218_v11, %v5202_v6  ;;  %s10541_s23 = sld [smem:[#allocation5 + $0xce]] }
 0x92d   : > { %v5243_v24 = vmul.f32 %v5242_v4, %v5232_v63  ;;  %v5213_v55 = vmul.f32 %v5212_v23, %v10453_v38  ;;  %v5246_v51 = vstv %s10494_s24  ;;  %v5558_v56 = vstv %s10143_s8  ;;  %s10545_s7 = sld [smem:[#allocation5 + $0xcf]] }
 0x92e   : > { %v5210_v17 = vadd.f32 %v5209_v52, %v5193_v9  ;;  %v5240_v7 = vadd.f32 %v5239_v41, %v5223_v46  ;;  %v5180_v32 = vadd.f32 %v10347_v45, %v5163_v61  ;;  %v5236_v2 = vadd.f32 %v5235_v36, %v5219_v53  ;;  %s10549_s8 = sld [smem:[#allocation5 + $0xed]] }
 0x92f   : > { %v10533_v3 = vpop.permute.xlu1 %5486  ;;  %v10535_v22 = vpop.permute.xlu0 %5798  ;;  %v5260_v19 = vmul.f32 %v5259_v39, %v5249_v50  ;;  %v5230_v38 = vmul.f32 %v5229_v54, %v5215_v60  ;;  %v5263_v23 = vstv %s10504_s29  ;;  %v5562_v13 = vstv %s10476_s13  ;;  %s10558_s9 = sld [smem:[#allocation5 + $0xec]]  ;;  %v5692_v39 = vld [vmem:[#allocation3 + $0xa1] sm:$0xff] }
 0x930   : > { %v5227_v52 = vadd.f32 %v5226_v8, %v5210_v17  ;;  %v5257_v21 = vadd.f32 %v5256_v35, %v5240_v7  ;;  %v5197_v45 = vadd.f32 %v10390_v43, %v5180_v32  ;;  %v5253_v48 = vadd.f32 %v5252_v12, %v5236_v2  ;;  %s10562_s10 = sld [smem:[#allocation5 + $0xef]]  ;;  %v11246_v32 = vld [vmem:[#allocation55_spill] sm:$0xff] }
 0x931   : > { %v5247_v43 = vmul.f32 %v5246_v51, %v5232_v63  ;;  %v5566_v60 = vstv %s10486_s3  ;;  %v5570_v27 = vstv %s10501_s0  ;;  %v5698_v6 = vstv %s10509_s15  ;;  %s10567_s11 = sld [smem:[#allocation5 + $0xee]] }
 0x932   : > { %v5244_v0 = vadd.f32 %v5243_v24, %v5227_v52  ;;  %v5281_v28 = vadd.f32 %v9667_v37, %v5257_v21  ;;  %v5214_v11 = vadd.f32 %v5213_v55, %v5197_v45  ;;  %v5273_v31 = vadd.f32 %v9634_v18, %v5253_v48  ;;  %s10578_s18 = sld [smem:[#allocation5 + $0xd0]]  ;;  %v11248_v21 = vld [vmem:[#allocation34_spill] sm:$0xff]  ;;  %v11249_v48 = vld [vmem:[#allocation57_spill] sm:$0xff] }
 0x933   : > { %v10551_v47 = vpop.permute.xlu1 %5806  ;;  %v10553_v15 = vpop.permute.xlu0 %5830  ;;  %v5264_v54 = vmul.f32 %v5263_v23, %v5249_v50  ;;  %v5694_v36 = vstv %s10517_s28  ;;  %v5706_v63 = vstv %s10521_s27  ;;  %v5702_v61 = vstv %s10524_s1  ;;  %s10589_s14 = sld [smem:[#allocation5 + $0xd1]] }
 0x934   : > { %v5261_v4 = vadd.f32 %v5260_v19, %v5244_v0  ;;  %v5313_v37 = vadd.f32 %v9777_v10, %v5281_v28  ;;  %v5231_v41 = vadd.f32 %v5230_v38, %v5214_v11  ;;  %v5305_v18 = vadd.f32 %v9751_v16, %v5273_v31  ;;  %v8170_v16 = vld [vmem:[#allocation3 + $0x21] sm:$0xff]  ;;  %s10591_s6 = sld [smem:[#allocation5 + $0xd2]] }
 0x935   : > { %v10576_v12 = vmul.f32 %v8170_v16, %v5558_v56  ;;  %v10580_v50 = vmul.f32 %v8170_v16, %v5562_v13  ;;  %v10582_v17 = vmul.f32 %v8170_v16, %v5566_v60  ;;  %v10593_v24 = vmul.f32 %v5698_v6, %v5692_v39  ;;  %s10605_s25 = sld [smem:[#allocation5 + $0xd3]] }
 0x936   : > { %v5289_v9 = vadd.f32 %v9690_v42, %v5261_v4  ;;  %v5345_v46 = vadd.f32 %v9924_v44, %v5313_v37  ;;  %v5248_v53 = vadd.f32 %v5247_v43, %v5231_v41  ;;  %v5337_v8 = vadd.f32 %v9793_v25, %v5305_v18  ;;  %s10612_s30 = sld [smem:[#allocation5 + $0xd4]]  ;;  %v11250_v43 = vld [vmem:[#allocation49_spill] sm:$0xff] }
 0x937   : > { %v10572_v10 = vpop.permute.xlu1 %5814  ;;  %v10574_v35 = vpop.permute.xlu0 %5838  ;;  %v10584_v42 = vmul.f32 %v8170_v16, %v5570_v27  ;;  %v10595_v55 = vmul.f32 %v5694_v36, %v5692_v39  ;;  %v10597_v51 = vmul.f32 %v5706_v63, %v5692_v39  ;;  %v5575_v13 = vstv %s10527_s12  ;;  %s10621_s20 = sld [smem:[#allocation5 + $0xd5]]  ;;  %v11251_v36 = vld [vmem:[#allocation56_spill] sm:$0xff]  ;;  %v8171_v63 = vld [vmem:[#allocation3 + $0x31] sm:$0xff] }
 0x938   : > { %v5321_v44 = vadd.f32 %v9722_v49, %v5289_v9  ;;  %v5377_v25 = vadd.f32 %v10080_v5, %v5345_v46  ;;  %v5265_v7 = vadd.f32 %v5264_v54, %v5248_v53  ;;  %v5369_v2 = vadd.f32 %v11246_v32, %v5337_v8  ;;  %v11247_v5 = vld [vmem:[#allocation50_spill] sm:$0xff]  ;;  %s10623_s5 = sld [smem:[#allocation5 + $0xd6]] }
 0x939   : > { %v10599_v49 = vmul.f32 %v5702_v61, %v5692_v39  ;;  %v5579_v0 = vstv %s10538_s17  ;;  %v5583_v28 = vstv %s10541_s23  ;;  %v5715_v6 = vstv %s10549_s8  ;;  %s10632_s21 = sld [smem:[#allocation5 + $0xd8]] }
 0x93a   : > { %v5353_v56 = vadd.f32 %v11247_v5, %v5321_v44  ;;  %v5409_v52 = vadd.f32 %v10413_v20, %v5377_v25  ;;  %v5297_v45 = vadd.f32 %v11248_v21, %v5265_v7  ;;  %v5401_v19 = vadd.f32 %v11249_v48, %v5369_v2  ;;  %s10635_s26 = sld [smem:[#allocation5 + $0xd9]]  ;;  %v11252_v5 = vld [vmem:[#allocation51_spill] sm:$0xff] }
 0x93b   : > { %v10607_v38 = vpop.permute.xlu1 %5862  ;;  %v10609_v23 = vpop.permute.xlu0 %5822  ;;  %v5587_v20 = vstv %s10545_s7  ;;  %v5711_v4 = vstv %s10558_s9  ;;  %v5723_v37 = vstv %s10562_s10  ;;  %v5719_v41 = vstv %s10567_s11  ;;  %s10643_s2 = sld [smem:[#allocation5 + $0xdc]] }
 0x93c   : > { %v5385_v11 = vadd.f32 %v10383_v1, %v5353_v56  ;;  %v5441_v31 = vadd.f32 %v10447_v59, %v5409_v52  ;;  %v5329_v60 = vadd.f32 %v11250_v43, %v5297_v45  ;;  %v5433_v27 = vadd.f32 %v10428_v26, %v5401_v19  ;;  %v5709_v26 = vld [vmem:[#allocation3 + $0xb1] sm:$0xff]  ;;  %s10647_s4 = sld [smem:[#allocation5 + $0xdd]] }
 0x93d   : > { %v5576_v61 = vmul.f32 %v8171_v63, %v5575_v13  ;;  %v5580_v46 = vmul.f32 %v8171_v63, %v5579_v0  ;;  %v10637_v8 = vmul.f32 %v8171_v63, %v5583_v28  ;;  %v5592_v44 = vstv %s10578_s18  ;;  %s10657_s22 = sld [smem:[#allocation5 + $0xd7]]  ;;  %v11254_v28 = vld [vmem:[#allocation62_spill] sm:$0xff] }
 0x93e   : > { %v5417_v18 = vadd.f32 %v10445_v29, %v5385_v11  ;;  %v5473_v54 = vadd.f32 %v10492_v33, %v5441_v31  ;;  %v5361_v1 = vadd.f32 %v11251_v36, %v5329_v60  ;;  %v5465_v59 = vadd.f32 %v10465_v62, %v5433_v27  ;;  %s10662_s13 = sld [smem:[#allocation5 + $0xda]]  ;;  %v8172_v31 = vld [vmem:[#allocation3 + $0x41] sm:$0xff] }
 0x93f   : > { %v5495_v9 = vpop.permute.xlu1 %5494  ;;  %v5503_v53 = vpop.permute.xlu0 %5502  ;;  %v10639_v29 = vmul.f32 %v8171_v63, %v5587_v20  ;;  %v5596_v25 = vstv %s10589_s14  ;;  %v10649_v7 = vmul.f32 %v5715_v6, %v5709_v26  ;;  %v10651_v32 = vmul.f32 %v5711_v4, %v5709_v26  ;;  %s10672_s19 = sld [smem:[#allocation5 + $0xf1]] }
 0x940   : > { %v5449_v33 = vadd.f32 %v10489_v40, %v5417_v18  ;;  %v5393_v39 = vadd.f32 %v10430_v30, %v5361_v1  ;;  %v5497_v62 = vadd.f32 %v5495_v9, %v5465_v59  ;;  %v5505_v16 = vadd.f32 %v5503_v53, %v5473_v54  ;;  %v11253_v30 = vld [vmem:[#allocation52_spill] sm:$0xff]  ;;  %s10676_s3 = sld [smem:[#allocation5 + $0xde]]  ;;  %v8173_v53 = vld [vmem:[#allocation3 + $0x51] sm:$0xff] }
 0x941   : > { %v5600_v45 = vstv %s10591_s6  ;;  %v5604_v19 = vstv %s10605_s25  ;;  %v10665_v13 = vmul.f32 %v5723_v37, %v5709_v26  ;;  %v5593_v43 = vmul.f32 %v8172_v31, %v5592_v44  ;;  %v11255_v37 = vld [vmem:[#allocation53_spill] sm:$0xff]  ;;  %s10682_s24 = sld [smem:[#allocation5 + $0xf0]]  ;;  %s11267_s6 = smov 1  }
 0x942   : > { %v5481_v2 = vadd.f32 %v10512_v34, %v5449_v33  ;;  %v5425_v40 = vadd.f32 %v10467_v57, %v5393_v39  ;;  %v5526_v56 = vadd.f32 %v11252_v5, %v5497_v62  ;;  %v5530_v52 = vadd.f32 %v11253_v30, %v5505_v16  ;;  %s10687_s0 = sld [smem:[#allocation5 + $0xdb]] }
 0x943   : > { %v10659_v21 = vpop.permute.xlu1 %5846  ;;  %v5511_v48 = vpop.permute.xlu0 %5510  ;;  %v10667_v34 = vmul.f32 %v5719_v41, %v5709_v26  ;;  %v5609_v60 = vstv %s10612_s30  ;;  %v5597_v27 = vmul.f32 %v8172_v31, %v5596_v25  ;;  %v5613_v6 = vstv %s10621_s20  ;;  %s10692_s29 = sld [smem:[#allocation5 + $0xf3]] }
 0x944   : > { %v5457_v57 = vadd.f32 %v10515_v58, %v5425_v40  ;;  %v5543_v0 = vadd.f32 %v10200_v14, %v5526_v56  ;;  %v5547_v20 = vadd.f32 %v11254_v28, %v5530_v52  ;;  %v5513_v11 = vadd.f32 %v5511_v48, %v5481_v2  ;;  %s10696_s15 = sld [smem:[#allocation5 + $0xdf]]  ;;  %v8174_v40 = vld [vmem:[#allocation3 + $0x61] sm:$0xff] }
 0x945   : > { %v5626_v18 = vstv %s10632_s21  ;;  %v5630_v54 = vstv %s10635_s26  ;;  %v5601_v36 = vmul.f32 %v8172_v31, %v5600_v45  ;;  %v5617_v1 = vstv %s10623_s5  ;;  %s10700_s28 = sld [smem:[#allocation5 + $0xf2]]  ;;  %v11258_v28 = vld [vmem:[#allocation64_spill] sm:$0xff] }
 0x946   : > { %v5489_v4 = vadd.f32 %v10533_v3, %v5457_v57  ;;  %v5560_v58 = vadd.f32 %v10576_v12, %v5543_v0  ;;  %v5564_v14 = vadd.f32 %v10580_v50, %v5547_v20  ;;  %v5534_v41 = vadd.f32 %v11255_v37, %v5513_v11  ;;  %v11256_v12 = vld [vmem:[#allocation63_spill] sm:$0xff]  ;;  %s10704_s27 = sld [smem:[#allocation5 + $0xf5]] }
 0x947   : > { %v5519_v59 = vpop.permute.xlu1 %5518  ;;  %v10689_v26 = vpop.permute.xlu0 %5870  ;;  %v5610_v33 = vmul.f32 %v8173_v53, %v5609_v60  ;;  %v5643_v39 = vstv %s10643_s2  ;;  %v5614_v62 = vmul.f32 %v8173_v53, %v5613_v6  ;;  %v5647_v16 = vstv %s10647_s4  ;;  %s10712_s1 = sld [smem:[#allocation5 + $0xf4]]  ;;  %v8175_v11 = vld [vmem:[#allocation3 + $0x71] sm:$0xff] }
 0x948   : > { %v5577_v3 = vadd.f32 %v5576_v61, %v5560_v58  ;;  %v5581_v63 = vadd.f32 %v5580_v46, %v5564_v14  ;;  %v5551_v9 = vadd.f32 %v11256_v12, %v5534_v41  ;;  %v5521_v50 = vadd.f32 %v5519_v59, %v5489_v4  ;;  %v11257_v61 = vld [vmem:[#allocation54_spill] sm:$0xff]  ;;  %s10715_s12 = sld [smem:[#allocation5 + $0xf6]]  ;;  %v10731_v12 = vld [vmem:[#allocation3 + $0xc1] sm:$0xff] }
 0x949   : > { %v5627_v5 = vmul.f32 %v8174_v40, %v5626_v18  ;;  %v5631_v56 = vmul.f32 %v8174_v40, %v5630_v54  ;;  %v5634_v30 = vstv %s10662_s13  ;;  %v5621_v52 = vstv %s10657_s22  ;;  %s10718_s17 = sld [smem:[#allocation5 + $0xf9]] }
 0x94a   : > { %v5594_v44 = vadd.f32 %v5593_v43, %v5577_v3  ;;  %v5598_v25 = vadd.f32 %v5597_v27, %v5581_v63  ;;  %v5568_v2 = vadd.f32 %v10582_v17, %v5551_v9  ;;  %v5538_v46 = vadd.f32 %v11257_v61, %v5521_v50  ;;  %s10724_s23 = sld [smem:[#allocation5 + $0xf8]] }
 0x94b   : > { %v10706_v45 = vpop.permute.xlu1 %5894  ;;  %v10708_v48 = vpop.permute.xlu0 %5854  ;;  %v5644_v43 = vmul.f32 %v8175_v11, %v5643_v39  ;;  %v5648_v60 = vmul.f32 %v8175_v11, %v5647_v16  ;;  %v5618_v27 = vmul.f32 %v8173_v53, %v5617_v1  ;;  %v5651_v6 = vstv %s10676_s3  ;;  %s10733_s7 = sld [smem:[#allocation5 + $0xfd]] }
 0x94c   : > { %v5611_v57 = vadd.f32 %v5610_v33, %v5594_v44  ;;  %v5615_v0 = vadd.f32 %v5614_v62, %v5598_v25  ;;  %v5585_v17 = vadd.f32 %v10637_v8, %v5568_v2  ;;  %v5555_v20 = vadd.f32 %v11258_v28, %v5538_v46  ;;  %s10737_s8 = sld [smem:[#allocation5 + $0xfc]]  ;;  %v11259_v33 = vld [vmem:[#allocation58_spill] sm:$0xff]  ;;  %v11260_v62 = vld [vmem:[#allocation59_spill] sm:$0xff] }
 0x94d   : > { %v5635_v8 = vmul.f32 %v8174_v40, %v5634_v30  ;;  %v5605_v41 = vmul.f32 %v8172_v31, %v5604_v19  ;;  %v5638_v18 = vstv %s10687_s0  ;;  %v5732_v54 = vstv %s10672_s19  ;;  %s10741_s9 = sld [smem:[#allocation5 + $0xf7]] }
 0x94e   : > { %v5628_v4 = vadd.f32 %v5627_v5, %v5611_v57  ;;  %v5632_v58 = vadd.f32 %v5631_v56, %v5615_v0  ;;  %v5602_v14 = vadd.f32 %v5601_v36, %v5585_v17  ;;  %v5572_v37 = vadd.f32 %v10584_v42, %v5555_v20  ;;  %s10746_s10 = sld [smem:[#allocation5 + $0xfa]]  ;;  %v11262_v0 = vld [vmem:[#allocation66_spill] sm:$0xff] }
 0x94f   : > { %v10726_v1 = vpop.permute.xlu1 %5878  ;;  %v10728_v59 = vpop.permute.xlu0 %5902  ;;  %v5652_v19 = vmul.f32 %v8175_v11, %v5651_v6  ;;  %v5622_v31 = vmul.f32 %v8173_v53, %v5621_v52  ;;  %v5655_v9 = vstv %s10696_s15  ;;  %v5728_v50 = vstv %s10682_s24  ;;  %v11261_v52 = vld [vmem:[#allocation65_spill] sm:$0xff]  ;;  %s10757_s11 = sld [smem:[#allocation5 + $0xfe]] }
 0x950   : > { %v5645_v3 = vadd.f32 %v5644_v43, %v5628_v4  ;;  %v5649_v63 = vadd.f32 %v5648_v60, %v5632_v58  ;;  %v5619_v36 = vadd.f32 %v5618_v27, %v5602_v14  ;;  %v5589_v42 = vadd.f32 %v10639_v29, %v5572_v37  ;;  %v11263_v60 = vld [vmem:[#allocation60_spill] sm:$0xff]  ;;  %v5743_v58 = vld [vmem:[#allocation3 + $0xd1] sm:$0xff]  ;;  %s10764_s18 = sld [smem:[#allocation5 + $0xfb]] }
 0x951   : > { %v5639_v29 = vmul.f32 %v8174_v40, %v5638_v18  ;;  %v5733_v2 = vmul.f32 %v5732_v54, %v10731_v12  ;;  %v5740_v61 = vstv %s10692_s29  ;;  %v5736_v46 = vstv %s10700_s28  ;;  %s10777_s14 = sld [smem:[#allocation5 + $0xff]] }
 0x952   : > { %v5662_v39 = vadd.f32 %v11259_v33, %v5645_v3  ;;  %v5666_v16 = vadd.f32 %v11260_v62, %v5649_v63  ;;  %v5636_v44 = vadd.f32 %v5635_v8, %v5619_v36  ;;  %v5606_v25 = vadd.f32 %v5605_v41, %v5589_v42  ;;  %v11264_v36 = vld [vmem:[#allocation68_spill] sm:$0xff]  ;;  %s7219_s25 = sld [smem:[#allocation10 + $0x9]] }
 0x953   : > { %v10748_v53 = vpop.permute.xlu1 %5926  ;;  %v10750_v5 = vpop.permute.xlu0 %5886  ;;  %v5656_v40 = vmul.f32 %v8175_v11, %v5655_v9  ;;  %v5749_v28 = vstv %s10704_s27  ;;  %v5729_v20 = vmul.f32 %v5728_v50, %v10731_v12  ;;  %v5745_v43 = vstv %s10712_s1  ;;  %s7218_s30 = sld [smem:[#allocation10 + $0x8]] }
 0x954   : > { %v5653_v56 = vadd.f32 %v5652_v19, %v5636_v44  ;;  %v5623_v30 = vadd.f32 %v5622_v31, %v5606_v25  ;;  %v5683_v57 = vadd.f32 %v11261_v52, %v5666_v16  ;;  %v5679_v17 = vadd.f32 %v11262_v0, %v5662_v39  ;;  %v5777_v39 = vld [vmem:[#allocation3 + $0xf1] sm:$0xff]  ;;  %v11265_v16 = vld [vmem:[#allocation61_spill] sm:$0xff]  ;;  %s10815_s20 = sld [smem:[#allocation10 + $0xb]] }
 0x955   : > { %v5766_v37 = vstv %s10718_s17  ;;  %v5762_v8 = vstv %s10724_s23  ;;  %v5737_v11 = vmul.f32 %v5736_v46, %v10731_v12  ;;  %v5753_v41 = vstv %s10715_s12  ;;  %v11266_v0 = vld [vmem:[#allocation67_spill] sm:$0xff]  ;;  %s10817_s5 = sld [smem:[#allocation10 + $0xa]] }
 0x956   : > { %v5670_v27 = vadd.f32 %v11263_v60, %v5653_v56  ;;  %v5640_v6 = vadd.f32 %v5639_v29, %v5623_v30  ;;  %v5700_v4 = vadd.f32 %v10593_v24, %v5683_v57  ;;  %v5696_v14 = vadd.f32 %v10595_v55, %v5679_v17  ;;  %v5760_v24 = vld [vmem:[#allocation3 + $0xe1] sm:$0xff]  ;;  %s10819_s21 = sld [smem:[#allocation10 + $0xd]] }
 0x957   : > { %v10768_v18 = vpop.permute.xlu1 %5910  ;;  %v10770_v54 = vpop.permute.xlu0 %5934  ;;  %v5750_v19 = vmul.f32 %v5749_v28, %v5743_v58  ;;  %v5783_v31 = vstv %s10733_s7  ;;  %v5746_v9 = vmul.f32 %v5745_v43, %v5743_v58  ;;  %v5779_v50 = vstv %s10737_s8  ;;  %s10823_s26 = sld [smem:[#allocation10 + $0xc]] }
 0x958   : > { %v5657_v3 = vadd.f32 %v5656_v40, %v5640_v6  ;;  %v5717_v63 = vadd.f32 %v10649_v7, %v5700_v4  ;;  %v5713_v55 = vadd.f32 %v10651_v32, %v5696_v14  ;;  %v5687_v42 = vadd.f32 %v11264_v36, %v5670_v27  ;;  %s10825_s2 = sld [smem:[#allocation10 + $0x11]] }
 0x959   : > { %v5767_v25 = vmul.f32 %v5766_v37, %v5760_v24  ;;  %v5763_v29 = vmul.f32 %v5762_v8, %v5760_v24  ;;  %v5757_v46 = vstv %s10741_s9  ;;  %v5770_v32 = vstv %s10746_s10  ;;  %s10827_s4 = sld [smem:[#allocation10 + $0x10]] }
 0x95a   : > { %v5734_v33 = vadd.f32 %v5733_v2, %v5717_v63  ;;  %v5730_v62 = vadd.f32 %v5729_v20, %v5713_v55  ;;  %v5674_v44 = vadd.f32 %v11265_v16, %v5657_v3  ;;  %v5704_v7 = vadd.f32 %v10599_v49, %v5687_v42  ;;  %s10829_s22 = sld [smem:[#allocation10 + $0xf]] }
 0x95b   : > { %v5959_v56 = vpop.permute.xlu1 %5958  ;;  %v10783_v30 = vpop.permute.xlu0 %5918  ;;  %v5784_v40 = vmul.f32 %v5783_v31, %v5777_v39  ;;  %v5780_v28 = vmul.f32 %v5779_v50, %v5777_v39  ;;  %v5754_v20 = vmul.f32 %v5753_v41, %v5743_v58  ;;  %v5787_v43 = vstv %s10757_s11  ;;  %s10832_s13 = sld [smem:[#allocation10 + $0xe]]  ;;  %s8319_s11 = smov 126  }
 0x95c   : > { %v5751_v52 = vadd.f32 %v5750_v19, %v5734_v33  ;;  %v5747_v57 = vadd.f32 %v5746_v9, %v5730_v62  ;;  %v5691_v17 = vadd.f32 %v11266_v0, %v5674_v44  ;;  %v5721_v2 = vadd.f32 %v10667_v34, %v5704_v7  ;;  %s10834_s19 = sld [smem:[#allocation11 + $0x1]] }
 0x95d   : > { %v5741_v4 = vmul.f32 %v5740_v61, %v10731_v12  ;;  %v5774_v14 = vstv %s10764_s18  ;;  %v5771_v37 = vmul.f32 %v5770_v32, %v5760_v24  ;;  %v5758_v42 = vmul.f32 %v5757_v46, %v5743_v58  ;;  %s10836_s3 = sld [smem:[#allocation10 + $0x1]] }
 0x95e   : > { %v5768_v49 = vadd.f32 %v5767_v25, %v5751_v52  ;;  %v5764_v60 = vadd.f32 %v5763_v29, %v5747_v57  ;;  %v5708_v27 = vadd.f32 %v10597_v51, %v5691_v17  ;;  %v5738_v6 = vadd.f32 %v5737_v11, %v5721_v2  ;;  %s10838_s24 = sld [smem:[#allocation10 + $0x3]] }
 0x95f   : > { %v5943_v8 = vpop.permute.xlu1 %5942  ;;  %v5967_v3 = vpop.permute.xlu0 %5966  ;;  %v5791_v41 = vstv %s10777_s14  ;;  %v5788_v19 = vmul.f32 %v5787_v43, %v5777_v39  ;;  %v5775_v50 = vmul.f32 %v5774_v14, %v5760_v24  ;;  %s10841_s0 = sld [smem:[#allocation10 + $0x5]] }
 0x960   : > { %v5785_v63 = vadd.f32 %v5784_v40, %v5768_v49  ;;  %v5781_v55 = vadd.f32 %v5780_v28, %v5764_v60  ;;  %v5725_v34 = vadd.f32 %v10665_v13, %v5708_v27  ;;  %v5755_v36 = vadd.f32 %v5754_v20, %v5738_v6  ;;  %s10847_s29 = sld [smem:[#allocation11]] }
 0x961   : > { %v5792_v13 = vmul.f32 %v5791_v41, %v5777_v39  ;;  %v6131_v41 = vstv %s7219_s25  ;;  %s10851_s15 = sld [smem:[#allocation10]] }
 0x962   : > { %v5809_v31 = vadd.f32 %v10551_v47, %v5785_v63  ;;  %v5801_v9 = vadd.f32 %v10535_v22, %v5781_v55  ;;  %v5742_v51 = vadd.f32 %v5741_v4, %v5725_v34  ;;  %v5772_v11 = vadd.f32 %v5771_v37, %v5755_v36  ;;  %s10853_s28 = sld [smem:[#allocation10 + $0x2]] }
 0x963   : > { %v5991_v12 = vpop.permute.xlu1 %5990  ;;  %v5951_v61 = vpop.permute.xlu0 %5950  ;;  %s10857_s27 = sld [smem:[#allocation10 + $0x4]] }
 0x964   : > { %v5841_v33 = vadd.f32 %v10574_v35, %v5809_v31  ;;  %v5833_v62 = vadd.f32 %v10553_v15, %v5801_v9  ;;  %v5759_v16 = vadd.f32 %v5758_v42, %v5742_v51  ;;  %v5789_v44 = vadd.f32 %v5788_v19, %v5772_v11  ;;  %s10863_s1 = sld [smem:[#allocation10 + $0x7]] }
 0x965   : > { %v6123_v19 = vstv %s7218_s30  ;;  %s10867_s12 = sld [smem:[#allocation10 + $0x6]] }
 0x966   : > { %v5873_v58 = vadd.f32 %v10689_v26, %v5841_v33  ;;  %v5865_v7 = vadd.f32 %v10607_v38, %v5833_v62  ;;  %v5776_v25 = vadd.f32 %v5775_v50, %v5759_v16  ;;  %v5817_v47 = vadd.f32 %v10572_v10, %v5789_v44  ;;  %s10869_s17 = sld [smem:[#allocation10 + $0x13]] }
 0x967   : > { %v5975_v22 = vpop.permute.xlu1 %5974  ;;  %v5999_v29 = vpop.permute.xlu0 %5998  ;;  %v6163_v44 = vstv %s10819_s21  ;;  %s10873_s23 = sld [smem:[#allocation10 + $0x12]] }
 0x968   : > { %v5897_v24 = vadd.f32 %v10706_v45, %v5865_v7  ;;  %v5793_v46 = vadd.f32 %v5792_v13, %v5776_v25  ;;  %v5849_v32 = vadd.f32 %v10659_v21, %v5817_v47  ;;  %v5905_v35 = vadd.f32 %v10728_v59, %v5873_v58  ;;  %s10889_s7 = sld [smem:[#allocation10 + $0x15]] }
 0x969   : > { %v6155_v13 = vstv %s10823_s26  ;;  %v6179_v47 = vstv %s10829_s22  ;;  %s10895_s8 = sld [smem:[#allocation10 + $0x14]] }
 0x96a   : > { %v5825_v15 = vadd.f32 %v10609_v23, %v5793_v46  ;;  %v5881_v39 = vadd.f32 %v10726_v1, %v5849_v32  ;;  %v5929_v26 = vadd.f32 %v10748_v53, %v5897_v24  ;;  %v5937_v38 = vadd.f32 %v10770_v54, %v5905_v35  ;;  %s7233_s9 = sld [smem:[#allocation10 + $0x17]] }
 0x96b   : > { %v6023_v52 = vpop.permute.xlu1 %6022  ;;  %v5983_v57 = vpop.permute.xlu0 %5982  ;;  %v6088_v24 = vstv %s10851_s15  ;;  %v6085_v46 = vstv %s10834_s19  ;;  %v6101_v32 = vstv %s10838_s24  ;;  %v6110_v35 = vstv %s10841_s0  ;;  %s7232_s10 = sld [smem:[#allocation10 + $0x16]] }
 0x96c   : > { %v5857_v10 = vadd.f32 %v10708_v48, %v5825_v15  ;;  %v5913_v0 = vadd.f32 %v10768_v18, %v5881_v39  ;;  %v5961_v45 = vadd.f32 %v5959_v56, %v5929_v26  ;;  %v5969_v17 = vadd.f32 %v5967_v3, %v5937_v38  ;;  %s7243_s18 = sld [smem:[#allocation10 + $0x21]] }
 0x96d   : > { %v6083_v15 = vstv %s10847_s29  ;;  %v6097_v38 = vstv %s10853_s28  ;;  %s7242_s14 = sld [smem:[#allocation10 + $0x20]] }
 0x96e   : > { %v5889_v21 = vadd.f32 %v10750_v5, %v5857_v10  ;;  %v5945_v2 = vadd.f32 %v5943_v8, %v5913_v0  ;;  %v5993_v59 = vadd.f32 %v5991_v12, %v5961_v45  ;;  %v6001_v40 = vadd.f32 %v5999_v29, %v5969_v17  ;;  %s7244_s25 = sld [smem:[#allocation10 + $0x22]] }
 0x96f   : > { %v6007_v23 = vpop.permute.xlu1 %6006  ;;  %v6031_v28 = vpop.permute.xlu0 %6030  ;;  %v6147_v12 = vstv %s10815_s20  ;;  %v6092_v29 = vstv %s10836_s3  ;;  %v6187_v10 = vstv %s10827_s4  ;;  %s7247_s30 = sld [smem:[#allocation10 + $0x25]] }
 0x970   : > { %v5921_v1 = vadd.f32 %v10783_v30, %v5889_v21  ;;  %v5977_v53 = vadd.f32 %v5975_v22, %v5945_v2  ;;  %v6025_v20 = vadd.f32 %v6023_v52, %v5993_v59  ;;  %v6033_v54 = vadd.f32 %v6031_v28, %v6001_v40  ;;  %s7246_s20 = sld [smem:[#allocation10 + $0x24]] }
 0x971   : > { %v6171_v22 = vstv %s10832_s13  ;;  %v6106_v52 = vstv %s10857_s27  ;;  %v6119_v21 = vstv %s10863_s1  ;;  %v6115_v59 = vstv %s10867_s12  ;;  %s7248_s21 = sld [smem:[#allocation10 + $0x26]] }
 0x972   : > { %v5953_v43 = vadd.f32 %v5951_v61, %v5921_v1  ;;  %v6050_v49 = vmul.f32 0.01, %v6025_v20  ;;  %v6009_v60 = vadd.f32 %v6007_v23, %v5977_v53  ;;  %v6058_v48 = vmul.f32 0.01, %v6033_v54  ;;  %s7251_s26 = sld [smem:[#allocation10 + $0x29]] }
 0x973   : > { %v6015_v27 = vpop.permute.xlu1 %6014  ;;  %v6039_v18 = vpop.permute.xlu0 %6038  ;;  %v6139_v61 = vstv %s10817_s5  ;;  %s7249_s5 = sld [smem:[#allocation10 + $0x27]] }
 0x974   : > { %v6051_v56 = vmax.f32 %v6025_v20, %v6050_v49  ;;  %v5985_v6 = vadd.f32 %v5983_v57, %v5953_v43  ;;  %v6059_v4 = vmax.f32 %v6033_v54, %v6058_v48  ;;  %v6041_v5 = vadd.f32 %v6039_v18, %v6009_v60  ;;  %s7253_s4 = sld [smem:[#allocation10 + $0x2b]] }
 0x975   : > { %v6195_v57 = vstv %s10825_s2  ;;  %v6211_v54 = vstv %s10869_s17  ;;  %v6203_v43 = vstv %s10873_s23  ;;  %s7250_s2 = sld [smem:[#allocation10 + $0x28]] }
 0x976   : > { %v6017_v14 = vadd.f32 %v6015_v27, %v5985_v6  ;;  %v6066_v37 = vmul.f32 0.01, %v6041_v5  ;;  %6053 = vrot.lane.b32.xlu0 %v6051_v56, %s11267_s6  ;;  %6061 = vrot.lane.b32.xlu1 %v6059_v4, %s11267_s6  ;;  %s7252_s22 = sld [smem:[#allocation10 + $0x2a]] }
 0x977   : > { %v6047_v30 = vpop.permute.xlu1 %6046  ;;  %s7255_s13 = sld [smem:[#allocation10 + $0x2d]] }
 0x978   : > { %v6067_v8 = vmax.f32 %v6041_v5, %v6066_v37  ;;  %v6049_v3 = vadd.f32 %v6047_v30, %v6017_v14  ;;  %v6227_v5 = vstv %s10889_s7  ;;  %v6219_v14 = vstv %s10895_s8  ;;  %s7254_s19 = sld [smem:[#allocation10 + $0x2c]] }
 0x979   : > { %s7257_s3 = sld [smem:[#allocation10 + $0x2f]] }
 0x97a   : > { %v6074_v63 = vmul.f32 0.01, %v6049_v3  ;;  %6069 = vrot.lane.b32.xlu0 %v6067_v8, %s11267_s6  ;;  %s7256_s24 = sld [smem:[#allocation10 + $0x2e]] }
 0x97b   : > { %s7267_s0 = sld [smem:[#allocation10 + $0x39]] }
 0x97c   : > { %v6075_v55 = vmax.f32 %v6049_v3, %v6074_v63  ;;  %v6243_v63 = vstv %s7233_s9  ;;  %s7266_s29 = sld [smem:[#allocation10 + $0x38]] }
 0x97d   : > { %s7269_s15 = sld [smem:[#allocation10 + $0x3b]] }
 0x97e   : > { %6077 = vrot.lane.b32.xlu1 %v6075_v55, %s11267_s6  ;;  %s7245_s6 = sld [smem:[#allocation10 + $0x23]]  ;;  %v6235_v55 = vstv %s7232_s10 }
 0x97f   : > { %s7268_s28 = sld [smem:[#allocation10 + $0x3a]] }
 0x980   : > { %s7271_s27 = sld [smem:[#allocation10 + $0x3d]] }
 0x981   : > { %s7270_s1 = sld [smem:[#allocation10 + $0x3c]] }
 0x982   : > { %s7273_s12 = sld [smem:[#allocation10 + $0x3f]] }
 0x983   : > { %s7272_s17 = sld [smem:[#allocation10 + $0x3e]] }
 0x984   : > { %s7275_s23 = sld [smem:[#allocation10 + $0x41]] }
 0x985   : > { %s7274_s7 = sld [smem:[#allocation10 + $0x40]] }
 0x986   : > { %s7277_s8 = sld [smem:[#allocation10 + $0x43]] }
 0x987   : > { %s7276_s9 = sld [smem:[#allocation10 + $0x42]] }
 0x988   : > { %s7279_s10 = sld [smem:[#allocation10 + $0x45]] }
 0x9e8   : > { %v6062_v34 = vpop.permute.xlu1 %6061  ;;  %v6054_v36 = vpop.permute.xlu0 %6053 }
 0x9e9   : > { %6065 = vst.msk [vmem:[#allocation4 + $0x11] sm:$0xff] %vm6056_vm1, %v6062_v34  ;;  %6057 = vst.msk [vmem:[#allocation4 + $0x1] sm:$0xff] %vm6056_vm1, %v6054_v36 }
 0x9ec   : > { %v6070_v42 = vpop.permute.xlu0 %6069 }
 0x9ed   : > { %6073 = vst.msk [vmem:[#allocation4 + $0x21] sm:$0xff] %vm6056_vm1, %v6070_v42 }
 0x9f0   : > { %v6078_v31 = vpop.permute.xlu1 %6077  ;;  %v6086_v9 = vld [vmem:[#allocation4] sm:$0xff]  ;;  %v10843_v50 = vld [vmem:[#allocation4 + $0x10] sm:$0xff] }
 0x9f1   : > { %6081 = vst.msk [vmem:[#allocation4 + $0x31] sm:$0xff] %vm6056_vm1, %v6078_v31  ;;  %v6132_v51 = vmul.f32 %v6131_v41, %v6086_v9  ;;  %v6124_v11 = vmul.f32 %v6123_v19, %v6086_v9  ;;  %v6148_v33 = vmul.f32 %v6147_v12, %v10843_v50  ;;  %v6140_v62 = vmul.f32 %v6139_v61, %v10843_v50  ;;  %v10927_v42 = vld [vmem:[#allocation4 + $0x1] sm:$0xff] }
 0x9f2   : > { %v6093_v0 = vmul.f32 %v6092_v29, %v6086_v9  ;;  %v6089_v45 = vmul.f32 %v6088_v24, %v6086_v9  ;;  %v6102_v17 = vmul.f32 %v6101_v32, %v10843_v50  ;;  %v6098_v28 = vmul.f32 %v6097_v38, %v10843_v50 }
 0x9f3   : > { %6134 = vrot.lane.b32.xlu1 %v6132_v51, %s11178_s16  ;;  %6126 = vrot.lane.b32.xlu0 %v6124_v11, %s11178_s16  ;;  %v6196_v53 = vmul.f32 %v6195_v57, %v6086_v9  ;;  %v6188_v20 = vmul.f32 %v6187_v10, %v6086_v9  ;;  %v6212_v6 = vmul.f32 %v6211_v54, %v10843_v50  ;;  %v6295_v41 = vstv %s7243_s18  ;;  %v10933_v51 = vld [vmem:[#allocation4 + $0x11] sm:$0xff]  ;;  %s7278_s18 = sld [smem:[#allocation10 + $0x44]] }
 0x9f4   : > { %v10859_v16 = vld [vmem:[#allocation4 + $0x20] sm:$0xff]  ;;  %v6094_v40 = vadd.f32 %v6093_v0, %v6085_v46  ;;  %v6090_v23 = vadd.f32 %v6089_v45, %v6083_v15  ;;  %v6204_v4 = vmul.f32 %v6203_v43, %v10843_v50  ;;  %v6287_v19 = vstv %s7242_s14  ;;  %s7281_s14 = sld [smem:[#allocation10 + $0x47]] }
 0x9f5   : > { %v6164_v58 = vmul.f32 %v6163_v44, %v10859_v16  ;;  %v6156_v7 = vmul.f32 %v6155_v13, %v10859_v16  ;;  %v6111_v2 = vmul.f32 %v6110_v35, %v10859_v16  ;;  %v6107_v1 = vmul.f32 %v6106_v52, %v10859_v16 }
 0x9f6   : > { %v6103_v60 = vadd.f32 %v6102_v17, %v6094_v40  ;;  %v6099_v48 = vadd.f32 %v6098_v28, %v6090_v23  ;;  %v6228_v8 = vmul.f32 %v6227_v5, %v10859_v16  ;;  %v6220_v3 = vmul.f32 %v6219_v14, %v10859_v16 }
 0x9f7   : > { %6150 = vrot.lane.b32.xlu1 %v6148_v33, %s11178_s16  ;;  %6142 = vrot.lane.b32.xlu0 %v6140_v62, %s11178_s16  ;;  %v6296_v31 = vmul.f32 %v6295_v41, %v10927_v42  ;;  %v6288_v9 = vmul.f32 %v6287_v19, %v10927_v42  ;;  %v6311_v11 = vstv %s7245_s6  ;;  %v6303_v50 = vstv %s7244_s25  ;;  %v10939_v33 = vld [vmem:[#allocation4 + $0x21] sm:$0xff]  ;;  %s7280_s6 = sld [smem:[#allocation10 + $0x46]] }
 0x9f8   : > { %v10875_v25 = vld [vmem:[#allocation4 + $0x30] sm:$0xff]  ;;  %v6112_v18 = vadd.f32 %v6111_v2, %v6103_v60  ;;  %v6108_v56 = vadd.f32 %v6107_v1, %v6099_v48  ;;  %v6312_v12 = vmul.f32 %v6311_v11, %v10933_v51  ;;  %v6304_v61 = vmul.f32 %v6303_v50, %v10933_v51  ;;  %v10967_v2 = vld [vmem:[#allocation4 + $0x2] sm:$0xff]  ;;  %s7234_s25 = sld [smem:[#allocation10 + $0x18]] }
 0x9f9   : > { %v6180_v39 = vmul.f32 %v6179_v47, %v10875_v25  ;;  %v6172_v26 = vmul.f32 %v6171_v22, %v10875_v25  ;;  %v6120_v49 = vmul.f32 %v6119_v21, %v10875_v25  ;;  %v6116_v27 = vmul.f32 %v6115_v59, %v10875_v25  ;;  %v10973_v1 = vld [vmem:[#allocation4 + $0x12] sm:$0xff] }
 0x9fa   : > { %v6244_v34 = vmul.f32 %v6243_v63, %v10875_v25  ;;  %v6236_v36 = vmul.f32 %v6235_v55, %v10875_v25  ;;  %v6327_v62 = vstv %s7247_s30  ;;  %v6319_v16 = vstv %s7246_s20  ;;  %s7236_s30 = sld [smem:[#allocation10 + $0x1a]] }
 0x9fb   : > { %6166 = vrot.lane.b32.xlu1 %v6164_v58, %s11178_s16  ;;  %6158 = vrot.lane.b32.xlu0 %v6156_v7, %s11178_s16  ;;  %v10915_v37 = vadd.f32 %v6120_v49, %v6112_v18  ;;  %v10917_v30 = vadd.f32 %v6116_v27, %v6108_v56  ;;  %v6328_v44 = vmul.f32 %v6327_v62, %v10939_v33  ;;  %v10945_v58 = vld [vmem:[#allocation4 + $0x31] sm:$0xff]  ;;  %v6343_v7 = vstv %s7249_s5  ;;  %v10979_v49 = vld [vmem:[#allocation4 + $0x22] sm:$0xff]  ;;  %s11013_s20 = sld [smem:[#allocation10 + $0x1d]] }
 0x9fc   : > { %v6320_v13 = vmul.f32 %v6319_v16, %v10939_v33  ;;  %v6335_v25 = vstv %s7248_s21  ;;  %v6344_v47 = vmul.f32 %v6343_v7, %v10945_v58  ;;  %v6359_v29 = vstv %s7251_s26  ;;  %v10985_v56 = vld [vmem:[#allocation4 + $0x32] sm:$0xff]  ;;  %s11015_s5 = sld [smem:[#allocation10 + $0x1c]] }
 0x9fd   : > { %v6336_v22 = vmul.f32 %v6335_v25, %v10945_v58  ;;  %v6351_v24 = vstv %s7250_s2  ;;  %v6360_v46 = vmul.f32 %v6359_v29, %v10927_v42  ;;  %v6375_v35 = vstv %s7253_s4  ;;  %s11017_s21 = sld [smem:[#allocation10 + $0x1f]] }
 0x9fe   : > { %v6352_v32 = vmul.f32 %v6351_v24, %v10927_v42  ;;  %v6367_v15 = vstv %s7252_s22  ;;  %v6391_v38 = vstv %s7255_s13  ;;  %v6383_v52 = vstv %s7254_s19  ;;  %s11019_s26 = sld [smem:[#allocation10 + $0x1e]] }
 0x9ff   : > { %6182 = vrot.lane.b32.xlu1 %v6180_v39, %s11178_s16  ;;  %6174 = vrot.lane.b32.xlu0 %v6172_v26, %s11178_s16  ;;  %v6376_v39 = vmul.f32 %v6375_v35, %v10933_v51  ;;  %v6368_v26 = vmul.f32 %v6367_v15, %v10933_v51  ;;  %v6392_v57 = vmul.f32 %v6391_v38, %v10939_v33  ;;  %v6407_v0 = vstv %s7257_s3  ;;  %s7259_s2 = sld [smem:[#allocation10 + $0x31]] }
 0xa00   : > { %v6384_v10 = vmul.f32 %v6383_v52, %v10939_v33  ;;  %v6399_v45 = vstv %s7256_s24  ;;  %v6408_v17 = vmul.f32 %v6407_v0, %v10945_v58  ;;  %v6459_v59 = vstv %s7267_s0  ;;  %s7258_s4 = sld [smem:[#allocation10 + $0x30]] }
 0xa01   : > { %v6400_v21 = vmul.f32 %v6399_v45, %v10945_v58  ;;  %v6451_v40 = vstv %s7266_s29  ;;  %v6460_v23 = vmul.f32 %v6459_v59, %v10967_v2  ;;  %v6491_v60 = vstv %s7271_s27  ;;  %s11034_s22 = sld [smem:[#allocation10 + $0x33]] }
 0xa02   : > { %v6452_v28 = vmul.f32 %v6451_v40, %v10967_v2  ;;  %v6483_v48 = vstv %s7270_s1  ;;  %v6492_v27 = vmul.f32 %v6491_v60, %v10979_v49  ;;  %v6261_v60 = vstv %s7236_s30  ;;  %s7260_s13 = sld [smem:[#allocation10 + $0x32]] }
 0xa03   : > { %6198 = vrot.lane.b32.xlu1 %v6196_v53, %s8319_s11  ;;  %6190 = vrot.lane.b32.xlu0 %v6188_v20, %s8319_s11  ;;  %v6475_v53 = vstv %s7269_s15  ;;  %v6467_v20 = vstv %s7268_s28  ;;  %v6484_v18 = vmul.f32 %v6483_v48, %v10979_v49  ;;  %s11036_s19 = sld [smem:[#allocation10 + $0x35]] }
 0xa04   : > { %v6476_v54 = vmul.f32 %v6475_v53, %v10973_v1  ;;  %v6468_v43 = vmul.f32 %v6467_v20, %v10973_v1  ;;  %s11038_s3 = sld [smem:[#allocation10 + $0x34]] }
 0xa05   : > { %s11040_s24 = sld [smem:[#allocation10 + $0x37]] }
 0xa06   : > { %s11042_s0 = sld [smem:[#allocation10 + $0x36]] }
 0xa07   : > { %6214 = vrot.lane.b32.xlu1 %v6212_v6, %s8319_s11  ;;  %6206 = vrot.lane.b32.xlu0 %v6204_v4, %s8319_s11  ;;  %v6507_v6 = vstv %s7273_s12  ;;  %v6499_v4 = vstv %s7272_s17  ;;  %s11268_s29 = sld [smem:[#allocation19_spill]] }
 0xa08   : > { %v6508_v5 = vmul.f32 %v6507_v6, %v10985_v56  ;;  %v6500_v14 = vmul.f32 %v6499_v4, %v10985_v56  ;;  %s11269_s28 = sld [smem:[#allocation22_spill]] }
 0xa09   : > { %s11270_s12 = sld [smem:[#allocation25_spill]] }
 0xa0b   : > { %6230 = vrot.lane.b32.xlu1 %v6228_v8, %s8319_s11  ;;  %6222 = vrot.lane.b32.xlu0 %v6220_v3, %s8319_s11  ;;  %v6523_v8 = vstv %s7275_s23  ;;  %v6515_v3 = vstv %s7274_s7 }
 0xa0c   : > { %v6524_v63 = vmul.f32 %v6523_v8, %v10967_v2  ;;  %v6516_v55 = vmul.f32 %v6515_v3, %v10967_v2 }
 0xa0d   : > { %s267_s15 = sand.u32 1, %s11268_s29  }
 0xa0e   : > { %s6715_s27 = sshll.u32 %s267_s15, 4  ;;  %s7289_s23 = sshll.u32 %s11269_s28, 8 }
 0xa0f   : > { %6246 = vrot.lane.b32.xlu1 %v6244_v34, %s8319_s11  ;;  %6238 = vrot.lane.b32.xlu0 %v6236_v36, %s8319_s11  ;;  %v6539_v34 = vstv %s7277_s8  ;;  %v6531_v36 = vstv %s7276_s9  ;;  %s269_s1 = scalar_lea.vmem [#allocation13], %s6715_s27  ;;  %s11271_s9 = sld [smem:[#allocation74_spill]] }
 0xa10   : > { %v6540_v41 = vmul.f32 %v6539_v34, %v10973_v1  ;;  %v6532_v19 = vmul.f32 %v6531_v36, %v10973_v1  ;;  %v6283_v34 = vstv %s11017_s21  ;;  %s6600_s17 = sshll.u32 %s269_s1, 4  ;;  %p11272_p11 = scmp.ne.s32.totalorder %s11270_s12, 0  ;;  %s11064_s17 = int_to_ptr.vmem [resolvable:$true] %s6600_s17 }
 0xa13   : > { %6298 = vrot.lane.b32.xlu1 %v6296_v31, %s11178_s16  ;;  %6290 = vrot.lane.b32.xlu0 %v6288_v9, %s11178_s16  ;;  %v6555_v31 = vstv %s7279_s10  ;;  %v6547_v9 = vstv %s7278_s18  ;;  %s11066_s18 = scalar_lea.sflag [#allocation6], %s267_s15 }
 0xa14   : > { %v6556_v11 = vmul.f32 %v6555_v31, %v10979_v49  ;;  %v6548_v50 = vmul.f32 %v6547_v9, %v10979_v49 }
 0xa15   : > { %s11062_s10 = scalar_lea.hbm %s11271_s9, %s7289_s23 }
 0xa17   : > { %6314 = vrot.lane.b32.xlu1 %v6312_v12, %s11178_s16  ;;  %6306 = vrot.lane.b32.xlu0 %v6304_v61, %s11178_s16  ;;  %v6571_v12 = vstv %s7281_s14  ;;  %v6563_v61 = vstv %s7280_s6  ;;  %s8236_s14 = scalar_lea.vmem %s11064_s17, 256  ;;  %s8320_s6 = smov [#allocation13]  }
 0xa18   : > { %v6572_v62 = vmul.f32 %v6571_v12, %v10985_v56  ;;  %v6564_v16 = vmul.f32 %v6563_v61, %v10985_v56  ;;  %p8237_p8 = scmp.ne.s32.totalorder %s11064_s17, %s8236_s14 }
 0xa1a   : > { %p8238_p13 = pnand %p8237_p8, %p11272_p11 }
 0xa1b   : > { %6330 = vrot.lane.b32.xlu1 %v6328_v44, %s11178_s16  ;;  %6322 = vrot.lane.b32.xlu0 %v6320_v13, %s11178_s16 }
 0xa1c   : > { %p8239_p1 = pneg %p8238_p13 }
 0xa1f   : > { %6346 = vrot.lane.b32.xlu1 %v6344_v47, %s11178_s16  ;;  %6338 = vrot.lane.b32.xlu0 %v6336_v22, %s11178_s16 }
 0xa23   : > { %6362 = vrot.lane.b32.xlu1 %v6360_v46, %s8319_s11  ;;  %6354 = vrot.lane.b32.xlu0 %v6352_v32, %s8319_s11 }
 0xa27   : > { %6378 = vrot.lane.b32.xlu1 %v6376_v39, %s8319_s11  ;;  %6370 = vrot.lane.b32.xlu0 %v6368_v26, %s8319_s11 }
 0xa2b   : > { %6394 = vrot.lane.b32.xlu1 %v6392_v57, %s8319_s11  ;;  %6386 = vrot.lane.b32.xlu0 %v6384_v10, %s8319_s11 }
 0xa2f   : > { %6410 = vrot.lane.b32.xlu1 %v6408_v17, %s8319_s11  ;;  %6402 = vrot.lane.b32.xlu0 %v6400_v21, %s8319_s11 }
 0xa33   : > { %6462 = vrot.lane.b32.xlu1 %v6460_v23, %s11178_s16  ;;  %6454 = vrot.lane.b32.xlu0 %v6452_v28, %s11178_s16  ;;  %v6252_v28 = vstv %s7234_s25 }
 0xa34   : > { %v6253_v6 = vmul.f32 %v6252_v28, %v10927_v42 }
 0xa37   : > { %6478 = vrot.lane.b32.xlu1 %v6476_v54, %s11178_s16  ;;  %6470 = vrot.lane.b32.xlu0 %v6468_v43, %s11178_s16 }
 0xa3b   : > { %6494 = vrot.lane.b32.xlu1 %v6492_v27, %s11178_s16  ;;  %6486 = vrot.lane.b32.xlu0 %v6484_v18, %s11178_s16 }
 0xa3f   : > { %6510 = vrot.lane.b32.xlu1 %v6508_v5, %s11178_s16  ;;  %6502 = vrot.lane.b32.xlu0 %v6500_v14, %s11178_s16  ;;  %s7235_s16 = sld [smem:[#allocation10 + $0x19]]  ;;  %v6274_v5 = vstv %s11013_s20  ;;  %v6270_v14 = vstv %s11015_s5 }
 0xa43   : > { %6526 = vrot.lane.b32.xlu1 %v6524_v63, %s8319_s11  ;;  %6518 = vrot.lane.b32.xlu0 %v6516_v55, %s8319_s11  ;;  %v6262_v63 = vmul.f32 %v6261_v60, %v10933_v51 }
 0xa45   : > { %v6256_v23 = vstv %s7235_s16  ;;  %s8240_s16 = sshll.u32 %s8320_s6, 4  ;;  %s8241_s16 = int_to_ptr.vmem [resolvable:$false] %s8240_s16 }
 0xa46   : > { %v6257_v27 = vmul.f32 %v6256_v23, %v10927_v42  ;;  %v6284_v42 = vmul.f32 %v6283_v34, %v10945_v58  ;;  %v6429_v23 = vstv %s11034_s22  ;;  %s8242_s25 = scalar_lea.vmem %s8241_s16, 512  ;;  %p8243_p2 = scmp.lt.s32.totalorder %s11064_s17, %s8241_s16 }
 0xa47   : > { %6542 = vrot.lane.b32.xlu1 %v6540_v41, %s8319_s11  ;;  %6534 = vrot.lane.b32.xlu0 %v6532_v19, %s8319_s11  ;;  %v6279_v41 = vstv %s11019_s26  ;;  %p8244_p3 = scmp.lt.s32.totalorder %s8242_s25, %s8236_s14 }
 0xa49   : > { %p8245_p9 = por %p8244_p3, %p8243_p2 }
 0xa4b   : > { %6558 = vrot.lane.b32.xlu1 %v6556_v11, %s8319_s11  ;;  %6550 = vrot.lane.b32.xlu0 %v6548_v50, %s8319_s11  ;;  %v6275_v11 = vmul.f32 %v6274_v5, %v10939_v33  ;;  %v6271_v50 = vmul.f32 %v6270_v14, %v10939_v33  ;;  %p8246_p4 = pnand %p8245_p9, %p8239_p1 }
 0xa4f   : > { %6574 = vrot.lane.b32.xlu1 %v6572_v62, %s8319_s11  ;;  %6566 = vrot.lane.b32.xlu0 %v6564_v16, %s8319_s11  ;;  %s11011_s11 = sld [smem:[#allocation10 + $0x1b]]  ;;  %v6280_v62 = vmul.f32 %v6279_v41, %v10945_v58 }
 0xa55   : > { %v6265_v54 = vstv %s11011_s11 }
 0xa56   : > { %v6266_v8 = vmul.f32 %v6265_v54, %v10933_v51 }
 0xa65   : > { %v6135_v44 = vpop.permute.xlu1 %6134  ;;  %v6127_v13 = vpop.permute.xlu0 %6126 }
 0xa66   : > { %v6137_v46 = vadd.f32 %v6135_v44, %v10915_v37  ;;  %v6129_v32 = vadd.f32 %v6127_v13, %v10917_v30 }
 0xa69   : > { %v6151_v7 = vpop.permute.xlu1 %6150  ;;  %v6143_v25 = vpop.permute.xlu0 %6142 }
 0xa6a   : > { %v6153_v39 = vadd.f32 %v6151_v7, %v6137_v46  ;;  %v6145_v26 = vadd.f32 %v6143_v25, %v6129_v32 }
 0xa6d   : > { %v6167_v47 = vpop.permute.xlu1 %6166  ;;  %v6159_v22 = vpop.permute.xlu0 %6158 }
 0xa6e   : > { %v6169_v38 = vadd.f32 %v6167_v47, %v6153_v39  ;;  %v6161_v52 = vadd.f32 %v6159_v22, %v6145_v26 }
 0xa71   : > { %v6183_v29 = vpop.permute.xlu1 %6182  ;;  %v6175_v24 = vpop.permute.xlu0 %6174 }
 0xa72   : > { %v6185_v0 = vadd.f32 %v6183_v29, %v6169_v38  ;;  %v6177_v45 = vadd.f32 %v6175_v24, %v6161_v52 }
 0xa75   : > { %v6199_v35 = vpop.permute.xlu1 %6198  ;;  %v6191_v15 = vpop.permute.xlu0 %6190 }
 0xa76   : > { %v6201_v37 = vadd.f32 %v6199_v35, %v6185_v0  ;;  %v6193_v30 = vadd.f32 %v6191_v15, %v6177_v45 }
 0xa79   : > { %v6215_v57 = vpop.permute.xlu1 %6214  ;;  %v6207_v10 = vpop.permute.xlu0 %6206 }
 0xa7a   : > { %v6217_v59 = vadd.f32 %v6215_v57, %v6201_v37  ;;  %v6209_v40 = vadd.f32 %v6207_v10, %v6193_v30 }
 0xa7d   : > { %v6231_v17 = vpop.permute.xlu1 %6230  ;;  %v6223_v21 = vpop.permute.xlu0 %6222 }
 0xa7e   : > { %v6233_v53 = vadd.f32 %v6231_v17, %v6217_v59  ;;  %v6225_v20 = vadd.f32 %v6223_v21, %v6209_v40  ;;  %v6420_v17 = vstv %s7259_s2  ;;  %v6416_v21 = vstv %s7258_s4 }
 0xa7f   : > { %v6421_v54 = vmul.f32 %v6420_v17, %v10967_v2  ;;  %v6417_v60 = vmul.f32 %v6416_v21, %v10967_v2 }
 0xa81   : > { %v6247_v43 = vpop.permute.xlu1 %6246  ;;  %v6239_v48 = vpop.permute.xlu0 %6238 }
 0xa82   : > { %v6249_v18 = vadd.f32 %v6247_v43, %v6233_v53  ;;  %v6241_v4 = vadd.f32 %v6239_v48, %v6225_v20  ;;  %v6425_v53 = vstv %s7260_s13 }
 0xa83   : > { %v6426_v5 = vmul.f32 %v6425_v53, %v10973_v1 }
 0xa84   : > { %v6258_v3 = vadd.f32 %v6257_v27, %v6249_v18  ;;  %v6254_v55 = vadd.f32 %v6253_v6, %v6241_v4  ;;  %v6438_v27 = vstv %s11036_s19  ;;  %v6434_v18 = vstv %s11038_s3 }
 0xa85   : > { %v6299_v36 = vpop.permute.xlu1 %6298  ;;  %v6291_v19 = vpop.permute.xlu0 %6290  ;;  %v6430_v6 = vmul.f32 %v6429_v23, %v10973_v1  ;;  %v6439_v41 = vmul.f32 %v6438_v27, %v10979_v49 }
 0xa86   : > { %v6267_v31 = vadd.f32 %v6266_v8, %v6258_v3  ;;  %v6263_v9 = vadd.f32 %v6262_v63, %v6254_v55  ;;  %v6447_v8 = vstv %s11040_s24  ;;  %v6443_v63 = vstv %s11042_s0 }
 0xa87   : > { %v6448_v2 = vmul.f32 %v6447_v8, %v10985_v56 }
 0xa88   : > { %v6276_v12 = vadd.f32 %v6275_v11, %v6267_v31  ;;  %v6272_v61 = vadd.f32 %v6271_v50, %v6263_v9  ;;  %v6444_v11 = vmul.f32 %v6443_v63, %v10985_v56 }
 0xa89   : > { %v6315_v16 = vpop.permute.xlu1 %6314  ;;  %v6307_v44 = vpop.permute.xlu0 %6306 }
 0xa8a   : > { %v6285_v51 = vadd.f32 %v6284_v42, %v6276_v12  ;;  %v6281_v13 = vadd.f32 %v6280_v62, %v6272_v61 }
 0xa8c   : > { %v6301_v47 = vadd.f32 %v6299_v36, %v6285_v51  ;;  %v6293_v22 = vadd.f32 %v6291_v19, %v6281_v13  ;;  %v6435_v19 = vmul.f32 %v6434_v18, %v10979_v49 }
 0xa8d   : > { %v6331_v7 = vpop.permute.xlu1 %6330  ;;  %v6323_v25 = vpop.permute.xlu0 %6322 }
 0xa8e   : > { %v6317_v46 = vadd.f32 %v6315_v16, %v6301_v47  ;;  %v6309_v32 = vadd.f32 %v6307_v44, %v6293_v22 }
 0xa90   : > { %v6333_v15 = vadd.f32 %v6331_v7, %v6317_v46  ;;  %v6325_v39 = vadd.f32 %v6323_v25, %v6309_v32 }
 0xa91   : > { %v6347_v29 = vpop.permute.xlu1 %6346  ;;  %v6339_v24 = vpop.permute.xlu0 %6338 }
 0xa92   : > { %v6349_v38 = vadd.f32 %v6347_v29, %v6333_v15  ;;  %v6341_v52 = vadd.f32 %v6339_v24, %v6325_v39 }
 0xa95   : > { %v6363_v35 = vpop.permute.xlu1 %6362  ;;  %v6355_v33 = vpop.permute.xlu0 %6354 }
 0xa96   : > { %v6365_v57 = vadd.f32 %v6363_v35, %v6349_v38  ;;  %v6357_v10 = vadd.f32 %v6355_v33, %v6341_v52 }
 0xa99   : > { %v6379_v58 = vpop.permute.xlu1 %6378  ;;  %v6371_v26 = vpop.permute.xlu0 %6370 }
 0xa9a   : > { %v6381_v37 = vadd.f32 %v6379_v58, %v6365_v57  ;;  %v6373_v30 = vadd.f32 %v6371_v26, %v6357_v10 }
 0xa9d   : > { %v6395_v0 = vpop.permute.xlu1 %6394  ;;  %v6387_v45 = vpop.permute.xlu0 %6386 }
 0xa9e   : > { %v6397_v59 = vadd.f32 %v6395_v0, %v6381_v37  ;;  %v6389_v40 = vadd.f32 %v6387_v45, %v6373_v30 }
 0xaa1   : > { %v6411_v28 = vpop.permute.xlu1 %6410  ;;  %v6403_v20 = vpop.permute.xlu0 %6402 }
 0xaa2   : > { %v6413_v43 = vadd.f32 %v6411_v28, %v6397_v59  ;;  %v6405_v48 = vadd.f32 %v6403_v20, %v6389_v40 }
 0xaa4   : > { %v6422_v4 = vadd.f32 %v6421_v54, %v6413_v43  ;;  %v6418_v14 = vadd.f32 %v6417_v60, %v6405_v48 }
 0xaa5   : > { %v6463_v3 = vpop.permute.xlu1 %6462  ;;  %v6455_v55 = vpop.permute.xlu0 %6454 }
 0xaa6   : > { %v6431_v34 = vadd.f32 %v6430_v6, %v6422_v4  ;;  %v6427_v36 = vadd.f32 %v6426_v5, %v6418_v14 }
 0xaa8   : > { %v6440_v31 = vadd.f32 %v6439_v41, %v6431_v34  ;;  %v6436_v9 = vadd.f32 %v6435_v19, %v6427_v36 }
 0xaa9   : > { %v6479_v50 = vpop.permute.xlu1 %6478  ;;  %v6471_v42 = vpop.permute.xlu0 %6470 }
 0xaaa   : > { %v6449_v1 = vadd.f32 %v6448_v2, %v6440_v31  ;;  %v6445_v12 = vadd.f32 %v6444_v11, %v6436_v9 }
 0xaac   : > { %v6465_v16 = vadd.f32 %v6463_v3, %v6449_v1  ;;  %v6457_v44 = vadd.f32 %v6455_v55, %v6445_v12 }
 0xaad   : > { %v6495_v61 = vpop.permute.xlu1 %6494  ;;  %v6487_v62 = vpop.permute.xlu0 %6486 }
 0xaae   : > { %v6481_v7 = vadd.f32 %v6479_v50, %v6465_v16  ;;  %v6473_v25 = vadd.f32 %v6471_v42, %v6457_v44 }
 0xab0   : > { %v6497_v22 = vadd.f32 %v6495_v61, %v6481_v7  ;;  %v6489_v29 = vadd.f32 %v6487_v62, %v6473_v25 }
 0xab1   : > { %v6511_v51 = vpop.permute.xlu1 %6510  ;;  %v6503_v13 = vpop.permute.xlu0 %6502 }
 0xab2   : > { %v6513_v56 = vadd.f32 %v6511_v51, %v6497_v22  ;;  %v6505_v32 = vadd.f32 %v6503_v13, %v6489_v29 }
 0xab5   : > { %v6527_v49 = vpop.permute.xlu1 %6526  ;;  %v6519_v47 = vpop.permute.xlu0 %6518 }
 0xab6   : > { %v6529_v35 = vadd.f32 %v6527_v49, %v6513_v56  ;;  %v6521_v33 = vadd.f32 %v6519_v47, %v6505_v32 }
 0xab9   : > { %v6543_v24 = vpop.permute.xlu1 %6542  ;;  %v6535_v46 = vpop.permute.xlu0 %6534 }
 0xaba   : > { %v6545_v58 = vadd.f32 %v6543_v24, %v6529_v35  ;;  %v6537_v26 = vadd.f32 %v6535_v46, %v6521_v33 }
 0xabd   : > { %v6559_v15 = vpop.permute.xlu1 %6558  ;;  %v6551_v39 = vpop.permute.xlu0 %6550 }
 0xabe   : > { %v6561_v38 = vadd.f32 %v6559_v15, %v6545_v58  ;;  %v6553_v52 = vadd.f32 %v6551_v39, %v6537_v26 }
 0xac1   : > { %v6575_v57 = vpop.permute.xlu1 %6574  ;;  %v6567_v10 = vpop.permute.xlu0 %6566 }
 0xac2   : > { %v6577_v0 = vadd.f32 %v6575_v57, %v6561_v38  ;;  %v6569_v45 = vadd.f32 %v6567_v10, %v6553_v52 }
 0xac4   : > { %v6582_v37 = vmul.f32 0.01, %v6577_v0  ;;  %v6578_v30 = vmul.f32 0.01, %v6569_v45 }
 0xac6   : > { %v6583_v17 = vmax.f32 %v6577_v0, %v6582_v37  ;;  %v6579_v21 = vmax.f32 %v6569_v45, %v6578_v30 }
 0xac8   : > { %7282 = vst.msk [vmem:[%s269_s1 + $0x8] sm:$0xff] %vm6580_vm3, %v6583_v17  ;;  %6581 = vst.msk [vmem:[%s269_s1] sm:$0xff] %vm6580_vm3, %v6579_v21 }
 0xac9   : > { %8249 = shalt.err (!%p8246_p4)
}
 0xaca   : > { %s8250_s11 = scalar_lea.hbm %s11062_s10, 256  ;;  %s8254_s5 = scalar_lea.hbm %s11271_s9, 512 }
 0xacb   : > { %p8251_p7 = scmp.ne.s32.totalorder %s11062_s10, %s8250_s11  ;;  %p8255_p6 = scmp.lt.s32.totalorder %s11062_s10, %s11271_s9 }
 0xacc   : > { %p8256_p12 = scmp.lt.s32.totalorder %s8254_s5, %s8250_s11 }
 0xacd   : > { %p8252_p0 = pnand %p8251_p7, %p11272_p11 }
 0xace   : > { %p8257_p10 = por %p8256_p12, %p8255_p6 }
 0xacf   : > { %p8253_p5 = pneg %p8252_p0 }
 0xad1   : > { %p8258_p8 = pnand %p8257_p10, %p8253_p5 }
 0xad3   : > { %8261 = shalt.err (!%p8258_p8)
}
 0xad4   : > { %s8321_s2 = smov 128   ;;  %s8322_s4 = smov 8  }
 0xad5   : > { %8090 = dma.vmem_to_hbm [thread:$0]  (%p11272_p11), %s11064_s17, 256, %s11062_s10, %s11066_s18, %s8321_s2, %s8321_s2, %s8322_s4  }
 0xad6 PF: > { %s11273_s22 = sld [smem:[#allocation21_spill]] }
 0xad7   : > { %s11274_s13 = sld [smem:[#allocation18_spill]] }
 0xad8   : > { %s11275_s19 = sld [smem:[#allocation26_spill]] }
 0xadc   : > { %p8117_p13 = scmp.ge.s32.totalorder %s11273_s22, 2 }
 0xadd   : > { %s6615_s3 = sand.u32 1, %s11274_s13  }
 0xade   : > { %p11276_p1 = scmp.ne.s32.totalorder %s11275_s19, 0  ;;  %s6616_s24 = scalar_lea.sflag [#allocation6], %s6615_s3 }
 0xae0   : > { %p8106_p2 = pnand %p8117_p13, %p11276_p1 }
 0xae2   : > { %p8107_p3 = pneg %p8106_p2 }
 0xae4   : > { %8291 = dma.done.wait (%p8107_p3), %s6616_s24, 256  }
 0xae5   : > { %8293 = vsyncadd (%p8107_p3), %s6616_s24, 4294967040  ;;  %s11277_s21 = sld [smem:[#allocation23_spill]] }
 0xae6   : > { %s11278_s18 = sld [smem:[#allocation19_spill]] }
 0xae7   : > { %s11279_s19 = sld [smem:[#allocation20_spill]] }
 0xae8   : > { %s11280_s20 = sld [smem:[#allocation24_spill]] }
 0xaeb   : > { %p18_p9 = scmp.ge.s32.totalorder %s11277_s21, 4  }
 0xaed   :  { %20 = sbr.rel (!%p18_p9) target bundleno = 13 (0xd), region = 134 }
 0xaf2   :  { %6621 = vsyncpa [#allocation6], 1 }
 0xaf3   :  { %6623 = vsyncpa [#allocation6 + $0x1], 1 }
 0xaf4   :  { %6624 = vsyncpa [#allocation7], 1 }
 0xaf5   :  { %6626 = vsyncpa [#allocation7 + $0x1], 1 }
 0xaf6   :  { %6627 = vsyncpa [#allocation9], 1 }
 0xaf7   :  { %6628 = vsyncpa [#allocation12], 1 }

</bundles_post_ra>
